<compile_context>
chip_gen: v6e
topology: v6e:2x2x1
jax: 0.10.0
libtpu: 0.0.40
codegen_flags: <defaults>
</compile_context>

<pallas_src>
import functools

import numpy as np

import jax
import jax.numpy as jnp
from jax.experimental import pallas as pl
from jax.experimental.pallas import tpu as pltpu


# ----------------------------- fused Pallas kernel -----------------------------

def _fused_block_kernel(x_ref, w_ref, m_ref, alpha_ref, out_ref,
                        act_ref, skip_ref, patch_ref,
                        *, W, HW, PAD, C0, half, layers):
    """Full ResidualBlock for one batch element.

    x_ref    : (1, C0, H*W)            VMEM  lane-dense input
    w_ref    : (n_layers, C0, Kmax+1)  VMEM  [bias | flattened OIHW weights]
    m_ref    : (n_layers, k*k, H*W)    VMEM  0/1 'same'-padding edge masks
    alpha_ref: (2,)                    SMEM  [pre-conv PReLU alpha, gating PReLU alpha]
    out_ref  : (1, half, H*W)          VMEM  lane-dense output
    act_ref  : (C0, H*W + 2*PAD)       VMEM  flat activation with zero end-pads
    skip_ref : (C0, H*W)               VMEM  residual accumulator
    patch_ref: (Kmax+1, H*W)           VMEM  im2col slab (row 0 = ones -> bias)
    layers   : static tuple of (cin, cout, k, dilation, pad)
    """
    pre_alpha = alpha_ref[0]
    gate_alpha = alpha_ref[1]

    # Zero only the two thin pad strips every batch step (not a whole padded
    # plane, and not gated on program_id==0 so it stays correct under megacore
    # sharding of the batch axis).
    zpad = jnp.zeros((C0, PAD), jnp.float32)
    act_ref[:, :PAD] = zpad
    act_ref[:, PAD + HW:] = zpad
    act_ref[:, PAD:PAD + HW] = x_ref[0]

    # Constant "ones" row of the im2col slab: folds the conv bias into the MXU
    # matmul (weight column 0 holds the bias).
    patch_ref[0:1, :] = jnp.ones((1, HW), jnp.float32)

    n_layers = len(layers)
    for li in range(n_layers):
        cin, cout, k, d, p = layers[li]
        kin = cin * k * k

        # ---- im2col: masked, shifted, lane-dense rows into the patch slab ----
        masks_l = m_ref[li]                                   # (k*k, HW)
        mrows = [masks_l[t:t + 1, :] for t in range(k * k)]   # hoisted per layer
        for ci in range(cin):
            row = act_ref[ci:ci + 1, :]                       # (1, HW + 2*PAD)
            for kh in range(k):
                for kw in range(k):
                    s = (kh * d - p) * W + (kw * d - p)       # flat spatial shift
                    tap = row[:, PAD + s:PAD + s + HW] * mrows[kh * k + kw]
                    r = 1 + (ci * k + kh) * k + kw
                    patch_ref[r:r + 1, :] = tap               # bound live range

        # ---- conv layer as one MXU matmul: (cout, kin+1) @ (kin+1, HW) ----
        w_l = w_ref[li][:, :kin + 1]                          # (C0, kin+1)
        patches = patch_ref[0:kin + 1, :]                     # (kin+1, HW)
        conv = jnp.dot(w_l, patches, preferred_element_type=jnp.float32)

        if li == 0:
            # pre_noiseconv: Conv2d + PReLU -> becomes the next activation.
            act = jnp.where(conv >= 0.0, conv, pre_alpha * conv)
            act_ref[:, PAD:PAD + HW] = act
        else:
            # Residual skip (x_res = 0 before the first residual layer).
            x_res = conv if li == 1 else conv + skip_ref[...]
            if li < n_layers - 1:
                skip_ref[...] = x_res
            # SelfGating: PReLU(first half) * sigmoid(second half).  The single
            # shared PReLU alpha matches the PyTorch module (one SelfGating
            # instance reused for all 9 steps).
            pre = x_res[:half]
            sig = x_res[half:]
            gated = (jnp.where(pre >= 0.0, pre, gate_alpha * pre)
                     * jax.nn.sigmoid(sig))
            # TODO(synk): if the VPU ever binds here, route the sigmoid through
            # exp(-x) + pl.reciprocal(..., approx=True) to keep it on the EUP.
            if li == n_layers - 1:
                out_ref[0] = gated                            # lane-dense store
            else:
                act_ref[:half, PAD:PAD + HW] = gated


# ----------------------------- Pallas wrapper -----------------------------

_SMEM_SPEC = pl.BlockSpec(memory_space=pltpu.MemorySpace.SMEM)


def residual_block_forward(x, params, channels, k_sizes, dilation, padding):
    """Fused Pallas forward. x: (N, C0, H, W) f32 -> (N, C0//2, H, W) f32."""
    N, C0, H, W = x.shape
    half = C0 // 2
    HW = H * W
    n_layers = 10

    # Static per-layer shapes + parameters.
    layer_params = [(params["pre_w"], params["pre_b"])] + list(params["convs"])
    layer_shapes = []
    for li in range(n_layers):
        cin = channels[0] if li == 0 else channels[2 * li - 1]
        cout = channels[0] if li == 0 else channels[2 * li]
        k, d, p = k_sizes[li], dilation[li], padding[li]
        assert p == d * (k - 1) // 2, "residual block requires 'same' convs"
        layer_shapes.append((cin, cout, k, d, p))

    # Consistency the fused kernel (and the module's residual adds / fixed
    # gating split) relies on: every conv outputs C0 channels, layer 1 consumes
    # the C0-channel pre-conv output, later layers the half-channel gated one.
    for li, (cin, cout, _, _, _) in enumerate(layer_shapes):
        assert cout == C0, "every conv must output channels[0] channels"
        assert cin == (C0 if li <= 1 else half), "cin must match previous stage"

    pmax = max(padding)
    PAD = pmax * (W + 1)                      # max |flat shift| = pmax*W + pmax
    max_kin = max(cin * k * k for (cin, _, k, _, _) in layer_shapes)
    max_kk = max(k * k for (_, _, k, _, _) in layer_shapes)

    # One resident VMEM weight slab: column 0 = bias, cols 1.. = OIHW weights.
    w_all = jnp.zeros((n_layers, C0, max_kin + 1), jnp.float32)
    for li, ((cin, cout, k, _, _), (w, b)) in enumerate(
            zip(layer_shapes, layer_params)):
        w_all = w_all.at[li, :, 0].set(b)
        w_all = w_all.at[li, :, 1:1 + cin * k * k].set(
            w.reshape(cout, cin * k * k))

    # Precomputed 0/1 edge masks for the 'same' padding of each (kh, kw) tap.
    hh = np.arange(H)[:, None]
    ww = np.arange(W)[None, :]
    masks_np = np.zeros((n_layers, max_kk, HW), np.float32)
    for li, (_, _, k, d, p) in enumerate(layer_shapes):
        for kh in range(k):
            for kw in range(k):
                dh, dw = kh * d - p, kw * d - p
                valid = ((hh + dh >= 0) & (hh + dh < H) &
                         (ww + dw >= 0) & (ww + dw < W))
                masks_np[li, kh * k + kw] = valid.astype(np.float32).reshape(-1)
    masks = jnp.asarray(masks_np)

    alphas = jnp.concatenate([params["pre_alpha"], params["gate_alpha"]])
    x_flat = x.reshape(N, C0, HW)             # lane-dense layout (free reshape)

    kernel = functools.partial(
        _fused_block_kernel, W=W, HW=HW, PAD=PAD, C0=C0, half=half,
        layers=tuple(layer_shapes))

    out_flat = pl.pallas_call(
        kernel,
        out_shape=jax.ShapeDtypeStruct((N, half, HW), jnp.float32),
        grid=(N,),
        in_specs=[
            pl.BlockSpec((1, C0, HW), lambda n: (n, 0, 0)),                  # x
            pl.BlockSpec((n_layers, C0, max_kin + 1), lambda n: (0, 0, 0)),  # weights
            pl.BlockSpec((n_layers, max_kk, HW), lambda n: (0, 0, 0)),       # masks
            _SMEM_SPEC,                                                      # alphas
        ],
        out_specs=pl.BlockSpec((1, half, HW), lambda n: (n, 0, 0)),
        scratch_shapes=[
            pltpu.VMEM((C0, HW + 2 * PAD), jnp.float32),   # flat padded activation
            pltpu.VMEM((C0, HW), jnp.float32),             # residual skip
            pltpu.VMEM((max_kin + 1, HW), jnp.float32),    # im2col slab
        ],
        compiler_params=pltpu.CompilerParams(
            dimension_semantics=("parallel",),   # batch elements are independent
            vmem_limit_bytes=32 * 1024 * 1024),
    )(x_flat, w_all, masks, alphas)

    return out_flat.reshape(N, half, H, W)


# ----------------------------- pure-JAX reference -----------------------------

def reference_forward(x, params, channels, k_sizes, dilation, padding):
    def conv(v, w, b, d, p):
        out = jax.lax.conv_general_dilated(
            v, w, window_strides=(1, 1), padding=((p, p), (p, p)),
            rhs_dilation=(d, d), dimension_numbers=("NCHW", "OIHW", "NCHW"),
            precision=jax.lax.Precision.HIGHEST)
        return out + b[None, :, None, None]

    def prelu(v, a):
        return jnp.where(v >= 0, v, a * v)

    half = channels[0] // 2
    x = prelu(conv(x, params["pre_w"], params["pre_b"], dilation[0], padding[0]),
              params["pre_alpha"])
    x_res = 0.0
    for i in range(9):
        w, b = params["convs"][i]
        x_res = conv(x, w, b, dilation[i + 1], padding[i + 1]) + x_res
        x = prelu(x_res[:, :half], params["gate_alpha"]) * jax.nn.sigmoid(x_res[:, half:])
    return x


# ----------------------------- setup & run -----------------------------

def init_conv(key, cout, cin, k):
    k1, k2 = jax.random.split(key)
    bound = 1.0 / (cin * k * k) ** 0.5
    w = jax.random.uniform(k1, (cout, cin, k, k), jnp.float32, -bound, bound)
    b = jax.random.uniform(k2, (cout,), jnp.float32, -bound, bound)
    return w, b


if __name__ == "__main__":
    # Small, self-consistent configuration (channel list must make the residual
    # adds and gating shapes line up, as the PyTorch module assumes).
    N, C0, H, W = 2, 4, 16, 16
    channels = [C0, C0, C0]
    for _ in range(8):
        channels += [C0 // 2, C0]           # 19 entries: channels[0..18]
    k_sizes = [3] * 10
    dilation = [1, 1, 2, 1, 2, 1, 2, 1, 2, 1]
    padding = [dilation[j] * (k_sizes[j] - 1) // 2 for j in range(10)]  # 'same'

    key = jax.random.PRNGKey(0)
    keys = jax.random.split(key, 11)
    pre_w, pre_b = init_conv(keys[0], channels[0], channels[0], k_sizes[0])
    convs = []
    for i in range(1, 10):
        w, b = init_conv(keys[i], channels[2 * i], channels[2 * i - 1], k_sizes[i])
        convs.append((w, b))
    params = {
        "pre_w": pre_w, "pre_b": pre_b,
        "pre_alpha": jnp.array([0.25], jnp.float32),    # nn.PReLU() default
        "gate_alpha": jnp.array([0.25], jnp.float32),   # shared SelfGating PReLU
        "convs": convs,
    }

    x = jax.random.normal(keys[10], (N, C0, H, W), jnp.float32)

    out = residual_block_forward(x, params, channels, k_sizes, dilation, padding)
    out = jax.block_until_ready(out)

    ref = reference_forward(x, params, channels, k_sizes, dilation, padding)
    assert out.shape == (N, C0 // 2, H, W), out.shape
    # MXU f32 matmul accumulation order differs from lax.conv(HIGHEST); keep a
    # slightly looser tolerance than exact-ULP parity.
    assert jnp.allclose(out, ref, atol=2e-3, rtol=2e-3), \
        float(jnp.max(jnp.abs(out - ref)))

    print("KERNEL_OK")
</pallas_src>

<mosaic_0001>
module attributes {stable_mosaic.version = 11 : i64} {
  func.func @_fused_block_kernel(%arg0: i32, %arg1: memref<1x4x256xf32, #tpu.memory_space<vmem>>, %arg2: memref<10x4x37xf32, #tpu.memory_space<vmem>>, %arg3: memref<10x9x256xf32, #tpu.memory_space<vmem>>, %arg4: memref<2xf32, #tpu.memory_space<smem>>, %arg5: memref<1x2x256xf32, #tpu.memory_space<vmem>>, %arg6: memref<4x324xf32, #tpu.memory_space<vmem>>, %arg7: memref<4x256xf32, #tpu.memory_space<vmem>>, %arg8: memref<37x256xf32, #tpu.memory_space<vmem>>) attributes {dimension_semantics = [#tpu.dimension_semantics<parallel>], iteration_bounds = array<i64: 2>, scalar_prefetch = 0 : i64, scratch_operands = 3 : i64, tpu.core_type = #tpu.core_type<tc>, window_params = [{transform_indices = @transform_0, window_bounds = array<i64: 1, 4, 256>}, {pipeline_mode = #tpu.pipeline_mode<synchronous>, transform_indices = @transform_1, window_bounds = array<i64: 10, 4, 37>}, {pipeline_mode = #tpu.pipeline_mode<synchronous>, transform_indices = @transform_2, window_bounds = array<i64: 10, 9, 256>}, {transform_indices = @transform_3, window_bounds = array<i64: 2>}, {transform_indices = @transform_4, window_bounds = array<i64: 1, 2, 256>}]} {
    %c0 = arith.constant 0 : index
    %0 = memref.load %arg4[%c0] : memref<2xf32, #tpu.memory_space<smem>>
    %c1 = arith.constant 1 : index
    %1 = memref.load %arg4[%c1] : memref<2xf32, #tpu.memory_space<smem>>
    %cst = arith.constant 0.000000e+00 : f32
    %2 = vector.broadcast %cst : f32 to vector<4x34xf32>
    %c0_0 = arith.constant 0 : index
    %c0_1 = arith.constant 0 : index
    %3 = vector.load %arg6[%c0_0, %c0_1] : memref<4x324xf32, #tpu.memory_space<vmem>>, vector<4x34xf32>
    tpu.vector_store %arg6[%c0_0, %c0_1], %2 {strides = array<i32>} : memref<4x324xf32, #tpu.memory_space<vmem>>, vector<4x34xf32>,
    %c0_2 = arith.constant 0 : index
    %c290 = arith.constant 290 : index
    %4 = vector.load %arg6[%c0_2, %c290] : memref<4x324xf32, #tpu.memory_space<vmem>>, vector<4x34xf32>
    tpu.vector_store %arg6[%c0_2, %c290], %2 {strides = array<i32>} : memref<4x324xf32, #tpu.memory_space<vmem>>, vector<4x34xf32>,
    %c0_3 = arith.constant 0 : index
    %c0_4 = arith.constant 0 : index
    %c0_5 = arith.constant 0 : index
    %5 = vector.load %arg1[%c0_3, %c0_4, %c0_5] : memref<1x4x256xf32, #tpu.memory_space<vmem>>, vector<1x4x256xf32>
    %6 = vector.shape_cast %5 : vector<1x4x256xf32> to vector<4x256xf32>
    %c0_6 = arith.constant 0 : index
    %c34 = arith.constant 34 : index
    %7 = vector.load %arg6[%c0_6, %c34] : memref<4x324xf32, #tpu.memory_space<vmem>>, vector<4x256xf32>
    tpu.vector_store %arg6[%c0_6, %c34], %6 {strides = array<i32>} : memref<4x324xf32, #tpu.memory_space<vmem>>, vector<4x256xf32>,
    %cst_7 = arith.constant 1.000000e+00 : f32
    %8 = vector.broadcast %cst_7 : f32 to vector<1x256xf32>
    %c0_8 = arith.constant 0 : index
    %c0_9 = arith.constant 0 : index
    %9 = vector.load %arg8[%c0_8, %c0_9] : memref<37x256xf32, #tpu.memory_space<vmem>>, vector<1x256xf32>
    tpu.vector_store %arg8[%c0_8, %c0_9], %8 {strides = array<i32>} : memref<37x256xf32, #tpu.memory_space<vmem>>, vector<1x256xf32>,
    %c0_10 = arith.constant 0 : index
    %c0_11 = arith.constant 0 : index
    %c0_12 = arith.constant 0 : index
    %10 = vector.load %arg3[%c0_10, %c0_11, %c0_12] : memref<10x9x256xf32, #tpu.memory_space<vmem>>, vector<1x9x256xf32>
    %11 = vector.shape_cast %10 : vector<1x9x256xf32> to vector<9x256xf32>
    %12 = vector.extract_strided_slice %11 {offsets = [0, 0], sizes = [1, 256], strides = [1, 1]} : vector<9x256xf32> to vector<1x256xf32>
    %13 = vector.extract_strided_slice %11 {offsets = [1, 0], sizes = [1, 256], strides = [1, 1]} : vector<9x256xf32> to vector<1x256xf32>
    %14 = vector.extract_strided_slice %11 {offsets = [2, 0], sizes = [1, 256], strides = [1, 1]} : vector<9x256xf32> to vector<1x256xf32>
    %15 = vector.extract_strided_slice %11 {offsets = [3, 0], sizes = [1, 256], strides = [1, 1]} : vector<9x256xf32> to vector<1x256xf32>
    %16 = vector.extract_strided_slice %11 {offsets = [4, 0], sizes = [1, 256], strides = [1, 1]} : vector<9x256xf32> to vector<1x256xf32>
    %17 = vector.extract_strided_slice %11 {offsets = [5, 0], sizes = [1, 256], strides = [1, 1]} : vector<9x256xf32> to vector<1x256xf32>
    %18 = vector.extract_strided_slice %11 {offsets = [6, 0], sizes = [1, 256], strides = [1, 1]} : vector<9x256xf32> to vector<1x256xf32>
    %19 = vector.extract_strided_slice %11 {offsets = [7, 0], sizes = [1, 256], strides = [1, 1]} : vector<9x256xf32> to vector<1x256xf32>
    %20 = vector.extract_strided_slice %11 {offsets = [8, 0], sizes = [1, 256], strides = [1, 1]} : vector<9x256xf32> to vector<1x256xf32>
    %c0_13 = arith.constant 0 : index
    %c0_14 = arith.constant 0 : index
    %21 = vector.load %arg6[%c0_13, %c0_14] : memref<4x324xf32, #tpu.memory_space<vmem>>, vector<1x324xf32>
    %22 = vector.extract_strided_slice %21 {offsets = [0, 17], sizes = [1, 256], strides = [1, 1]} : vector<1x324xf32> to vector<1x256xf32>
    %23 = arith.mulf %22, %12 : vector<1x256xf32>
    %c1_15 = arith.constant 1 : index
    %c0_16 = arith.constant 0 : index
    %24 = vector.load %arg8[%c1_15, %c0_16] : memref<37x256xf32, #tpu.memory_space<vmem>>, vector<1x256xf32>
    tpu.vector_store %arg8[%c1_15, %c0_16], %23 {strides = array<i32>} : memref<37x256xf32, #tpu.memory_space<vmem>>, vector<1x256xf32>,
    %25 = vector.extract_strided_slice %21 {offsets = [0, 18], sizes = [1, 256], strides = [1, 1]} : vector<1x324xf32> to vector<1x256xf32>
    %26 = arith.mulf %25, %13 : vector<1x256xf32>
    %c2 = arith.constant 2 : index
    %c0_17 = arith.constant 0 : index
    %27 = vector.load %arg8[%c2, %c0_17] : memref<37x256xf32, #tpu.memory_space<vmem>>, vector<1x256xf32>
    tpu.vector_store %arg8[%c2, %c0_17], %26 {strides = array<i32>} : memref<37x256xf32, #tpu.memory_space<vmem>>, vector<1x256xf32>,
    %28 = vector.extract_strided_slice %21 {offsets = [0, 19], sizes = [1, 256], strides = [1, 1]} : vector<1x324xf32> to vector<1x256xf32>
    %29 = arith.mulf %28, %14 : vector<1x256xf32>
    %c3 = arith.constant 3 : index
    %c0_18 = arith.constant 0 : index
    %30 = vector.load %arg8[%c3, %c0_18] : memref<37x256xf32, #tpu.memory_space<vmem>>, vector<1x256xf32>
    tpu.vector_store %arg8[%c3, %c0_18], %29 {strides = array<i32>} : memref<37x256xf32, #tpu.memory_space<vmem>>, vector<1x256xf32>,
    %31 = vector.extract_strided_slice %21 {offsets = [0, 33], sizes = [1, 256], strides = [1, 1]} : vector<1x324xf32> to vector<1x256xf32>
    %32 = arith.mulf %31, %15 : vector<1x256xf32>
    %c4 = arith.constant 4 : index
    %c0_19 = arith.constant 0 : index
    %33 = vector.load %arg8[%c4, %c0_19] : memref<37x256xf32, #tpu.memory_space<vmem>>, vector<1x256xf32>
    tpu.vector_store %arg8[%c4, %c0_19], %32 {strides = array<i32>} : memref<37x256xf32, #tpu.memory_space<vmem>>, vector<1x256xf32>,
    %34 = vector.extract_strided_slice %21 {offsets = [0, 34], sizes = [1, 256], strides = [1, 1]} : vector<1x324xf32> to vector<1x256xf32>
    %35 = arith.mulf %34, %16 : vector<1x256xf32>
    %c5 = arith.constant 5 : index
    %c0_20 = arith.constant 0 : index
    %36 = vector.load %arg8[%c5, %c0_20] : memref<37x256xf32, #tpu.memory_space<vmem>>, vector<1x256xf32>
    tpu.vector_store %arg8[%c5, %c0_20], %35 {strides = array<i32>} : memref<37x256xf32, #tpu.memory_space<vmem>>, vector<1x256xf32>,
    %37 = vector.extract_strided_slice %21 {offsets = [0, 35], sizes = [1, 256], strides = [1, 1]} : vector<1x324xf32> to vector<1x256xf32>
    %38 = arith.mulf %37, %17 : vector<1x256xf32>
    %c6 = arith.constant 6 : index
    %c0_21 = arith.constant 0 : index
    %39 = vector.load %arg8[%c6, %c0_21] : memref<37x256xf32, #tpu.memory_space<vmem>>, vector<1x256xf32>
    tpu.vector_store %arg8[%c6, %c0_21], %38 {strides = array<i32>} : memref<37x256xf32, #tpu.memory_space<vmem>>, vector<1x256xf32>,
    %40 = vector.extract_strided_slice %21 {offsets = [0, 49], sizes = [1, 256], strides = [1, 1]} : vector<1x324xf32> to vector<1x256xf32>
    %41 = arith.mulf %40, %18 : vector<1x256xf32>
    %c7 = arith.constant 7 : index
    %c0_22 = arith.constant 0 : index
    %42 = vector.load %arg8[%c7, %c0_22] : memref<37x256xf32, #tpu.memory_space<vmem>>, vector<1x256xf32>
    tpu.vector_store %arg8[%c7, %c0_22], %41 {strides = array<i32>} : memref<37x256xf32, #tpu.memory_space<vmem>>, vector<1x256xf32>,
    %43 = vector.extract_strided_slice %21 {offsets = [0, 50], sizes = [1, 256], strides = [1, 1]} : vector<1x324xf32> to vector<1x256xf32>
    %44 = arith.mulf %43, %19 : vector<1x256xf32>
    %c8 = arith.constant 8 : index
    %c0_23 = arith.constant 0 : index
    %45 = vector.load %arg8[%c8, %c0_23] : memref<37x256xf32, #tpu.memory_space<vmem>>, vector<1x256xf32>
    tpu.vector_store %arg8[%c8, %c0_23], %44 {strides = array<i32>} : memref<37x256xf32, #tpu.memory_space<vmem>>, vector<1x256xf32>,
    %46 = vector.extract_strided_slice %21 {offsets = [0, 51], sizes = [1, 256], strides = [1, 1]} : vector<1x324xf32> to vector<1x256xf32>
    %47 = arith.mulf %46, %20 : vector<1x256xf32>
    %c9 = arith.constant 9 : index
    %c0_24 = arith.constant 0 : index
    %48 = vector.load %arg8[%c9, %c0_24] : memref<37x256xf32, #tpu.memory_space<vmem>>, vector<1x256xf32>
    tpu.vector_store %arg8[%c9, %c0_24], %47 {strides = array<i32>} : memref<37x256xf32, #tpu.memory_space<vmem>>, vector<1x256xf32>,
    %c1_25 = arith.constant 1 : index
    %c0_26 = arith.constant 0 : index
    %49 = vector.load %arg6[%c1_25, %c0_26] : memref<4x324xf32, #tpu.memory_space<vmem>>, vector<1x324xf32>
    %50 = vector.extract_strided_slice %49 {offsets = [0, 17], sizes = [1, 256], strides = [1, 1]} : vector<1x324xf32> to vector<1x256xf32>
    %51 = arith.mulf %50, %12 : vector<1x256xf32>
    %c10 = arith.constant 10 : index
    %c0_27 = arith.constant 0 : index
    %52 = vector.load %arg8[%c10, %c0_27] : memref<37x256xf32, #tpu.memory_space<vmem>>, vector<1x256xf32>
    tpu.vector_store %arg8[%c10, %c0_27], %51 {strides = array<i32>} : memref<37x256xf32, #tpu.memory_space<vmem>>, vector<1x256xf32>,
    %53 = vector.extract_strided_slice %49 {offsets = [0, 18], sizes = [1, 256], strides = [1, 1]} : vector<1x324xf32> to vector<1x256xf32>
    %54 = arith.mulf %53, %13 : vector<1x256xf32>
    %c11 = arith.constant 11 : index
    %c0_28 = arith.constant 0 : index
    %55 = vector.load %arg8[%c11, %c0_28] : memref<37x256xf32, #tpu.memory_space<vmem>>, vector<1x256xf32>
    tpu.vector_store %arg8[%c11, %c0_28], %54 {strides = array<i32>} : memref<37x256xf32, #tpu.memory_space<vmem>>, vector<1x256xf32>,
    %56 = vector.extract_strided_slice %49 {offsets = [0, 19], sizes = [1, 256], strides = [1, 1]} : vector<1x324xf32> to vector<1x256xf32>
    %57 = arith.mulf %56, %14 : vector<1x256xf32>
    %c12 = arith.constant 12 : index
    %c0_29 = arith.constant 0 : index
    %58 = vector.load %arg8[%c12, %c0_29] : memref<37x256xf32, #tpu.memory_space<vmem>>, vector<1x256xf32>
    tpu.vector_store %arg8[%c12, %c0_29], %57 {strides = array<i32>} : memref<37x256xf32, #tpu.memory_space<vmem>>, vector<1x256xf32>,
    %59 = vector.extract_strided_slice %49 {offsets = [0, 33], sizes = [1, 256], strides = [1, 1]} : vector<1x324xf32> to vector<1x256xf32>
    %60 = arith.mulf %59, %15 : vector<1x256xf32>
    %c13 = arith.constant 13 : index
    %c0_30 = arith.constant 0 : index
    %61 = vector.load %arg8[%c13, %c0_30] : memref<37x256xf32, #tpu.memory_space<vmem>>, vector<1x256xf32>
    tpu.vector_store %arg8[%c13, %c0_30], %60 {strides = array<i32>} : memref<37x256xf32, #tpu.memory_space<vmem>>, vector<1x256xf32>,
    %62 = vector.extract_strided_slice %49 {offsets = [0, 34], sizes = [1, 256], strides = [1, 1]} : vector<1x324xf32> to vector<1x256xf32>
    %63 = arith.mulf %62, %16 : vector<1x256xf32>
    %c14 = arith.constant 14 : index
    %c0_31 = arith.constant 0 : index
    %64 = vector.load %arg8[%c14, %c0_31] : memref<37x256xf32, #tpu.memory_space<vmem>>, vector<1x256xf32>
    tpu.vector_store %arg8[%c14, %c0_31], %63 {strides = array<i32>} : memref<37x256xf32, #tpu.memory_space<vmem>>, vector<1x256xf32>,
    %65 = vector.extract_strided_slice %49 {offsets = [0, 35], sizes = [1, 256], strides = [1, 1]} : vector<1x324xf32> to vector<1x256xf32>
    %66 = arith.mulf %65, %17 : vector<1x256xf32>
    %c15 = arith.constant 15 : index
    %c0_32 = arith.constant 0 : index
    %67 = vector.load %arg8[%c15, %c0_32] : memref<37x256xf32, #tpu.memory_space<vmem>>, vector<1x256xf32>
    tpu.vector_store %arg8[%c15, %c0_32], %66 {strides = array<i32>} : memref<37x256xf32, #tpu.memory_space<vmem>>, vector<1x256xf32>,
    %68 = vector.extract_strided_slice %49 {offsets = [0, 49], sizes = [1, 256], strides = [1, 1]} : vector<1x324xf32> to vector<1x256xf32>
    %69 = arith.mulf %68, %18 : vector<1x256xf32>
    %c16 = arith.constant 16 : index
    %c0_33 = arith.constant 0 : index
    %70 = vector.load %arg8[%c16, %c0_33] : memref<37x256xf32, #tpu.memory_space<vmem>>, vector<1x256xf32>
    tpu.vector_store %arg8[%c16, %c0_33], %69 {strides = array<i32>} : memref<37x256xf32, #tpu.memory_space<vmem>>, vector<1x256xf32>,
    %71 = vector.extract_strided_slice %49 {offsets = [0, 50], sizes = [1, 256], strides = [1, 1]} : vector<1x324xf32> to vector<1x256xf32>
    %72 = arith.mulf %71, %19 : vector<1x256xf32>
    %c17 = arith.constant 17 : index
    %c0_34 = arith.constant 0 : index
    %73 = vector.load %arg8[%c17, %c0_34] : memref<37x256xf32, #tpu.memory_space<vmem>>, vector<1x256xf32>
    tpu.vector_store %arg8[%c17, %c0_34], %72 {strides = array<i32>} : memref<37x256xf32, #tpu.memory_space<vmem>>, vector<1x256xf32>,
    %74 = vector.extract_strided_slice %49 {offsets = [0, 51], sizes = [1, 256], strides = [1, 1]} : vector<1x324xf32> to vector<1x256xf32>
    %75 = arith.mulf %74, %20 : vector<1x256xf32>
    %c18 = arith.constant 18 : index
    %c0_35 = arith.constant 0 : index
    %76 = vector.load %arg8[%c18, %c0_35] : memref<37x256xf32, #tpu.memory_space<vmem>>, vector<1x256xf32>
    tpu.vector_store %arg8[%c18, %c0_35], %75 {strides = array<i32>} : memref<37x256xf32, #tpu.memory_space<vmem>>, vector<1x256xf32>,
    %c2_36 = arith.constant 2 : index
    %c0_37 = arith.constant 0 : index
    %77 = vector.load %arg6[%c2_36, %c0_37] : memref<4x324xf32, #tpu.memory_space<vmem>>, vector<1x324xf32>
    %78 = vector.extract_strided_slice %77 {offsets = [0, 17], sizes = [1, 256], strides = [1, 1]} : vector<1x324xf32> to vector<1x256xf32>
    %79 = arith.mulf %78, %12 : vector<1x256xf32>
    %c19 = arith.constant 19 : index
    %c0_38 = arith.constant 0 : index
    %80 = vector.load %arg8[%c19, %c0_38] : memref<37x256xf32, #tpu.memory_space<vmem>>, vector<1x256xf32>
    tpu.vector_store %arg8[%c19, %c0_38], %79 {strides = array<i32>} : memref<37x256xf32, #tpu.memory_space<vmem>>, vector<1x256xf32>,
    %81 = vector.extract_strided_slice %77 {offsets = [0, 18], sizes = [1, 256], strides = [1, 1]} : vector<1x324xf32> to vector<1x256xf32>
    %82 = arith.mulf %81, %13 : vector<1x256xf32>
    %c20 = arith.constant 20 : index
    %c0_39 = arith.constant 0 : index
    %83 = vector.load %arg8[%c20, %c0_39] : memref<37x256xf32, #tpu.memory_space<vmem>>, vector<1x256xf32>
    tpu.vector_store %arg8[%c20, %c0_39], %82 {strides = array<i32>} : memref<37x256xf32, #tpu.memory_space<vmem>>, vector<1x256xf32>,
    %84 = vector.extract_strided_slice %77 {offsets = [0, 19], sizes = [1, 256], strides = [1, 1]} : vector<1x324xf32> to vector<1x256xf32>
    %85 = arith.mulf %84, %14 : vector<1x256xf32>
    %c21 = arith.constant 21 : index
    %c0_40 = arith.constant 0 : index
    %86 = vector.load %arg8[%c21, %c0_40] : memref<37x256xf32, #tpu.memory_space<vmem>>, vector<1x256xf32>
    tpu.vector_store %arg8[%c21, %c0_40], %85 {strides = array<i32>} : memref<37x256xf32, #tpu.memory_space<vmem>>, vector<1x256xf32>,
    %87 = vector.extract_strided_slice %77 {offsets = [0, 33], sizes = [1, 256], strides = [1, 1]} : vector<1x324xf32> to vector<1x256xf32>
    %88 = arith.mulf %87, %15 : vector<1x256xf32>
    %c22 = arith.constant 22 : index
    %c0_41 = arith.constant 0 : index
    %89 = vector.load %arg8[%c22, %c0_41] : memref<37x256xf32, #tpu.memory_space<vmem>>, vector<1x256xf32>
    tpu.vector_store %arg8[%c22, %c0_41], %88 {strides = array<i32>} : memref<37x256xf32, #tpu.memory_space<vmem>>, vector<1x256xf32>,
    %90 = vector.extract_strided_slice %77 {offsets = [0, 34], sizes = [1, 256], strides = [1, 1]} : vector<1x324xf32> to vector<1x256xf32>
    %91 = arith.mulf %90, %16 : vector<1x256xf32>
    %c23 = arith.constant 23 : index
    %c0_42 = arith.constant 0 : index
    %92 = vector.load %arg8[%c23, %c0_42] : memref<37x256xf32, #tpu.memory_space<vmem>>, vector<1x256xf32>
    tpu.vector_store %arg8[%c23, %c0_42], %91 {strides = array<i32>} : memref<37x256xf32, #tpu.memory_space<vmem>>, vector<1x256xf32>,
    %93 = vector.extract_strided_slice %77 {offsets = [0, 35], sizes = [1, 256], strides = [1, 1]} : vector<1x324xf32> to vector<1x256xf32>
    %94 = arith.mulf %93, %17 : vector<1x256xf32>
    %c24 = arith.constant 24 : index
    %c0_43 = arith.constant 0 : index
    %95 = vector.load %arg8[%c24, %c0_43] : memref<37x256xf32, #tpu.memory_space<vmem>>, vector<1x256xf32>
    tpu.vector_store %arg8[%c24, %c0_43], %94 {strides = array<i32>} : memref<37x256xf32, #tpu.memory_space<vmem>>, vector<1x256xf32>,
    %96 = vector.extract_strided_slice %77 {offsets = [0, 49], sizes = [1, 256], strides = [1, 1]} : vector<1x324xf32> to vector<1x256xf32>
    %97 = arith.mulf %96, %18 : vector<1x256xf32>
    %c25 = arith.constant 25 : index
    %c0_44 = arith.constant 0 : index
    %98 = vector.load %arg8[%c25, %c0_44] : memref<37x256xf32, #tpu.memory_space<vmem>>, vector<1x256xf32>
    tpu.vector_store %arg8[%c25, %c0_44], %97 {strides = array<i32>} : memref<37x256xf32, #tpu.memory_space<vmem>>, vector<1x256xf32>,
    %99 = vector.extract_strided_slice %77 {offsets = [0, 50], sizes = [1, 256], strides = [1, 1]} : vector<1x324xf32> to vector<1x256xf32>
    %100 = arith.mulf %99, %19 : vector<1x256xf32>
    %c26 = arith.constant 26 : index
    %c0_45 = arith.constant 0 : index
    %101 = vector.load %arg8[%c26, %c0_45] : memref<37x256xf32, #tpu.memory_space<vmem>>, vector<1x256xf32>
    tpu.vector_store %arg8[%c26, %c0_45], %100 {strides = array<i32>} : memref<37x256xf32, #tpu.memory_space<vmem>>, vector<1x256xf32>,
    %102 = vector.extract_strided_slice %77 {offsets = [0, 51], sizes = [1, 256], strides = [1, 1]} : vector<1x324xf32> to vector<1x256xf32>
    %103 = arith.mulf %102, %20 : vector<1x256xf32>
    %c27 = arith.constant 27 : index
    %c0_46 = arith.constant 0 : index
    %104 = vector.load %arg8[%c27, %c0_46] : memref<37x256xf32, #tpu.memory_space<vmem>>, vector<1x256xf32>
    tpu.vector_store %arg8[%c27, %c0_46], %103 {strides = array<i32>} : memref<37x256xf32, #tpu.memory_space<vmem>>, vector<1x256xf32>,
    %c3_47 = arith.constant 3 : index
    %c0_48 = arith.constant 0 : index
    %105 = vector.load %arg6[%c3_47, %c0_48] : memref<4x324xf32, #tpu.memory_space<vmem>>, vector<1x324xf32>
    %106 = vector.extract_strided_slice %105 {offsets = [0, 17], sizes = [1, 256], strides = [1, 1]} : vector<1x324xf32> to vector<1x256xf32>
    %107 = arith.mulf %106, %12 : vector<1x256xf32>
    %c28 = arith.constant 28 : index
    %c0_49 = arith.constant 0 : index
    %108 = vector.load %arg8[%c28, %c0_49] : memref<37x256xf32, #tpu.memory_space<vmem>>, vector<1x256xf32>
    tpu.vector_store %arg8[%c28, %c0_49], %107 {strides = array<i32>} : memref<37x256xf32, #tpu.memory_space<vmem>>, vector<1x256xf32>,
    %109 = vector.extract_strided_slice %105 {offsets = [0, 18], sizes = [1, 256], strides = [1, 1]} : vector<1x324xf32> to vector<1x256xf32>
    %110 = arith.mulf %109, %13 : vector<1x256xf32>
    %c29 = arith.constant 29 : index
    %c0_50 = arith.constant 0 : index
    %111 = vector.load %arg8[%c29, %c0_50] : memref<37x256xf32, #tpu.memory_space<vmem>>, vector<1x256xf32>
    tpu.vector_store %arg8[%c29, %c0_50], %110 {strides = array<i32>} : memref<37x256xf32, #tpu.memory_space<vmem>>, vector<1x256xf32>,
    %112 = vector.extract_strided_slice %105 {offsets = [0, 19], sizes = [1, 256], strides = [1, 1]} : vector<1x324xf32> to vector<1x256xf32>
    %113 = arith.mulf %112, %14 : vector<1x256xf32>
    %c30 = arith.constant 30 : index
    %c0_51 = arith.constant 0 : index
    %114 = vector.load %arg8[%c30, %c0_51] : memref<37x256xf32, #tpu.memory_space<vmem>>, vector<1x256xf32>
    tpu.vector_store %arg8[%c30, %c0_51], %113 {strides = array<i32>} : memref<37x256xf32, #tpu.memory_space<vmem>>, vector<1x256xf32>,
    %115 = vector.extract_strided_slice %105 {offsets = [0, 33], sizes = [1, 256], strides = [1, 1]} : vector<1x324xf32> to vector<1x256xf32>
    %116 = arith.mulf %115, %15 : vector<1x256xf32>
    %c31 = arith.constant 31 : index
    %c0_52 = arith.constant 0 : index
    %117 = vector.load %arg8[%c31, %c0_52] : memref<37x256xf32, #tpu.memory_space<vmem>>, vector<1x256xf32>
    tpu.vector_store %arg8[%c31, %c0_52], %116 {strides = array<i32>} : memref<37x256xf32, #tpu.memory_space<vmem>>, vector<1x256xf32>,
    %118 = vector.extract_strided_slice %105 {offsets = [0, 34], sizes = [1, 256], strides = [1, 1]} : vector<1x324xf32> to vector<1x256xf32>
    %119 = arith.mulf %118, %16 : vector<1x256xf32>
    %c32 = arith.constant 32 : index
    %c0_53 = arith.constant 0 : index
    %120 = vector.load %arg8[%c32, %c0_53] : memref<37x256xf32, #tpu.memory_space<vmem>>, vector<1x256xf32>
    tpu.vector_store %arg8[%c32, %c0_53], %119 {strides = array<i32>} : memref<37x256xf32, #tpu.memory_space<vmem>>, vector<1x256xf32>,
    %121 = vector.extract_strided_slice %105 {offsets = [0, 35], sizes = [1, 256], strides = [1, 1]} : vector<1x324xf32> to vector<1x256xf32>
    %122 = arith.mulf %121, %17 : vector<1x256xf32>
    %c33 = arith.constant 33 : index
    %c0_54 = arith.constant 0 : index
    %123 = vector.load %arg8[%c33, %c0_54] : memref<37x256xf32, #tpu.memory_space<vmem>>, vector<1x256xf32>
    tpu.vector_store %arg8[%c33, %c0_54], %122 {strides = array<i32>} : memref<37x256xf32, #tpu.memory_space<vmem>>, vector<1x256xf32>,
    %124 = vector.extract_strided_slice %105 {offsets = [0, 49], sizes = [1, 256], strides = [1, 1]} : vector<1x324xf32> to vector<1x256xf32>
    %125 = arith.mulf %124, %18 : vector<1x256xf32>
    %c34_55 = arith.constant 34 : index
    %c0_56 = arith.constant 0 : index
    %126 = vector.load %arg8[%c34_55, %c0_56] : memref<37x256xf32, #tpu.memory_space<vmem>>, vector<1x256xf32>
    tpu.vector_store %arg8[%c34_55, %c0_56], %125 {strides = array<i32>} : memref<37x256xf32, #tpu.memory_space<vmem>>, vector<1x256xf32>,
    %127 = vector.extract_strided_slice %105 {offsets = [0, 50], sizes = [1, 256], strides = [1, 1]} : vector<1x324xf32> to vector<1x256xf32>
    %128 = arith.mulf %127, %19 : vector<1x256xf32>
    %c35 = arith.constant 35 : index
    %c0_57 = arith.constant 0 : index
    %129 = vector.load %arg8[%c35, %c0_57] : memref<37x256xf32, #tpu.memory_space<vmem>>, vector<1x256xf32>
    tpu.vector_store %arg8[%c35, %c0_57], %128 {strides = array<i32>} : memref<37x256xf32, #tpu.memory_space<vmem>>, vector<1x256xf32>,
    %130 = vector.extract_strided_slice %105 {offsets = [0, 51], sizes = [1, 256], strides = [1, 1]} : vector<1x324xf32> to vector<1x256xf32>
    %131 = arith.mulf %130, %20 : vector<1x256xf32>
    %c36 = arith.constant 36 : index
    %c0_58 = arith.constant 0 : index
    %132 = vector.load %arg8[%c36, %c0_58] : memref<37x256xf32, #tpu.memory_space<vmem>>, vector<1x256xf32>
    tpu.vector_store %arg8[%c36, %c0_58], %131 {strides = array<i32>} : memref<37x256xf32, #tpu.memory_space<vmem>>, vector<1x256xf32>,
    %c0_59 = arith.constant 0 : index
    %c0_60 = arith.constant 0 : index
    %c0_61 = arith.constant 0 : index
    %133 = vector.load %arg2[%c0_59, %c0_60, %c0_61] : memref<10x4x37xf32, #tpu.memory_space<vmem>>, vector<1x4x37xf32>
    %134 = vector.shape_cast %133 : vector<1x4x37xf32> to vector<4x37xf32>
    %c0_62 = arith.constant 0 : index
    %c0_63 = arith.constant 0 : index
    %135 = vector.load %arg8[%c0_62, %c0_63] : memref<37x256xf32, #tpu.memory_space<vmem>>, vector<37x256xf32>
    %cst_64 = arith.constant dense<0.000000e+00> : vector<4x256xf32>
    %136 = tpu.matmul %134, %135, %cst_64 {dimension_numbers = #tpu.dot_dimension_numbers<[1], [0], [0], [1], [0, 0, 1, 1], [], []>} : vector<4x37xf32>, vector<37x256xf32>, vector<4x256xf32> -> vector<4x256xf32>
    %cst_65 = arith.constant 0.000000e+00 : f32
    %137 = vector.broadcast %cst_65 : f32 to vector<4x256xf32>
    %138 = arith.cmpf oge, %136, %137 : vector<4x256xf32>
    %139 = vector.broadcast %0 : f32 to vector<4x256xf32>
    %140 = arith.mulf %139, %136 : vector<4x256xf32>
    %141 = arith.select %138, %136, %140 : vector<4x256xi1>, vector<4x256xf32>
    %c0_66 = arith.constant 0 : index
    %c34_67 = arith.constant 34 : index
    %142 = vector.load %arg6[%c0_66, %c34_67] : memref<4x324xf32, #tpu.memory_space<vmem>>, vector<4x256xf32>
    tpu.vector_store %arg6[%c0_66, %c34_67], %141 {strides = array<i32>} : memref<4x324xf32, #tpu.memory_space<vmem>>, vector<4x256xf32>,
    %c1_68 = arith.constant 1 : index
    %c0_69 = arith.constant 0 : index
    %c0_70 = arith.constant 0 : index
    %143 = vector.load %arg3[%c1_68, %c0_69, %c0_70] : memref<10x9x256xf32, #tpu.memory_space<vmem>>, vector<1x9x256xf32>
    %144 = vector.shape_cast %143 : vector<1x9x256xf32> to vector<9x256xf32>
    %145 = vector.extract_strided_slice %144 {offsets = [0, 0], sizes = [1, 256], strides = [1, 1]} : vector<9x256xf32> to vector<1x256xf32>
    %146 = vector.extract_strided_slice %144 {offsets = [1, 0], sizes = [1, 256], strides = [1, 1]} : vector<9x256xf32> to vector<1x256xf32>
    %147 = vector.extract_strided_slice %144 {offsets = [2, 0], sizes = [1, 256], strides = [1, 1]} : vector<9x256xf32> to vector<1x256xf32>
    %148 = vector.extract_strided_slice %144 {offsets = [3, 0], sizes = [1, 256], strides = [1, 1]} : vector<9x256xf32> to vector<1x256xf32>
    %149 = vector.extract_strided_slice %144 {offsets = [4, 0], sizes = [1, 256], strides = [1, 1]} : vector<9x256xf32> to vector<1x256xf32>
    %150 = vector.extract_strided_slice %144 {offsets = [5, 0], sizes = [1, 256], strides = [1, 1]} : vector<9x256xf32> to vector<1x256xf32>
    %151 = vector.extract_strided_slice %144 {offsets = [6, 0], sizes = [1, 256], strides = [1, 1]} : vector<9x256xf32> to vector<1x256xf32>
    %152 = vector.extract_strided_slice %144 {offsets = [7, 0], sizes = [1, 256], strides = [1, 1]} : vector<9x256xf32> to vector<1x256xf32>
    %153 = vector.extract_strided_slice %144 {offsets = [8, 0], sizes = [1, 256], strides = [1, 1]} : vector<9x256xf32> to vector<1x256xf32>
    %c0_71 = arith.constant 0 : index
    %c0_72 = arith.constant 0 : index
    %154 = vector.load %arg6[%c0_71, %c0_72] : memref<4x324xf32, #tpu.memory_space<vmem>>, vector<1x324xf32>
    %155 = vector.extract_strided_slice %154 {offsets = [0, 17], sizes = [1, 256], strides = [1, 1]} : vector<1x324xf32> to vector<1x256xf32>
    %156 = arith.mulf %155, %145 : vector<1x256xf32>
    %c1_73 = arith.constant 1 : index
    %c0_74 = arith.constant 0 : index
    %157 = vector.load %arg8[%c1_73, %c0_74] : memref<37x256xf32, #tpu.memory_space<vmem>>, vector<1x256xf32>
    tpu.vector_store %arg8[%c1_73, %c0_74], %156 {strides = array<i32>} : memref<37x256xf32, #tpu.memory_space<vmem>>, vector<1x256xf32>,
    %158 = vector.extract_strided_slice %154 {offsets = [0, 18], sizes = [1, 256], strides = [1, 1]} : vector<1x324xf32> to vector<1x256xf32>
    %159 = arith.mulf %158, %146 : vector<1x256xf32>
    %c2_75 = arith.constant 2 : index
    %c0_76 = arith.constant 0 : index
    %160 = vector.load %arg8[%c2_75, %c0_76] : memref<37x256xf32, #tpu.memory_space<vmem>>, vector<1x256xf32>
    tpu.vector_store %arg8[%c2_75, %c0_76], %159 {strides = array<i32>} : memref<37x256xf32, #tpu.memory_space<vmem>>, vector<1x256xf32>,
    %161 = vector.extract_strided_slice %154 {offsets = [0, 19], sizes = [1, 256], strides = [1, 1]} : vector<1x324xf32> to vector<1x256xf32>
    %162 = arith.mulf %161, %147 : vector<1x256xf32>
    %c3_77 = arith.constant 3 : index
    %c0_78 = arith.constant 0 : index
    %163 = vector.load %arg8[%c3_77, %c0_78] : memref<37x256xf32, #tpu.memory_space<vmem>>, vector<1x256xf32>
    tpu.vector_store %arg8[%c3_77, %c0_78], %162 {strides = array<i32>} : memref<37x256xf32, #tpu.memory_space<vmem>>, vector<1x256xf32>,
    %164 = vector.extract_strided_slice %154 {offsets = [0, 33], sizes = [1, 256], strides = [1, 1]} : vector<1x324xf32> to vector<1x256xf32>
    %165 = arith.mulf %164, %148 : vector<1x256xf32>
    %c4_79 = arith.constant 4 : index
    %c0_80 = arith.constant 0 : index
    %166 = vector.load %arg8[%c4_79, %c0_80] : memref<37x256xf32, #tpu.memory_space<vmem>>, vector<1x256xf32>
    tpu.vector_store %arg8[%c4_79, %c0_80], %165 {strides = array<i32>} : memref<37x256xf32, #tpu.memory_space<vmem>>, vector<1x256xf32>,
    %167 = vector.extract_strided_slice %154 {offsets = [0, 34], sizes = [1, 256], strides = [1, 1]} : vector<1x324xf32> to vector<1x256xf32>
    %168 = arith.mulf %167, %149 : vector<1x256xf32>
    %c5_81 = arith.constant 5 : index
    %c0_82 = arith.constant 0 : index
    %169 = vector.load %arg8[%c5_81, %c0_82] : memref<37x256xf32, #tpu.memory_space<vmem>>, vector<1x256xf32>
    tpu.vector_store %arg8[%c5_81, %c0_82], %168 {strides = array<i32>} : memref<37x256xf32, #tpu.memory_space<vmem>>, vector<1x256xf32>,
    %170 = vector.extract_strided_slice %154 {offsets = [0, 35], sizes = [1, 256], strides = [1, 1]} : vector<1x324xf32> to vector<1x256xf32>
    %171 = arith.mulf %170, %150 : vector<1x256xf32>
    %c6_83 = arith.constant 6 : index
    %c0_84 = arith.constant 0 : index
    %172 = vector.load %arg8[%c6_83, %c0_84] : memref<37x256xf32, #tpu.memory_space<vmem>>, vector<1x256xf32>
    tpu.vector_store %arg8[%c6_83, %c0_84], %171 {strides = array<i32>} : memref<37x256xf32, #tpu.memory_space<vmem>>, vector<1x256xf32>,
    %173 = vector.extract_strided_slice %154 {offsets = [0, 49], sizes = [1, 256], strides = [1, 1]} : vector<1x324xf32> to vector<1x256xf32>
    %174 = arith.mulf %173, %151 : vector<1x256xf32>
    %c7_85 = arith.constant 7 : index
    %c0_86 = arith.constant 0 : index
    %175 = vector.load %arg8[%c7_85, %c0_86] : memref<37x256xf32, #tpu.memory_space<vmem>>, vector<1x256xf32>
    tpu.vector_store %arg8[%c7_85, %c0_86], %174 {strides = array<i32>} : memref<37x256xf32, #tpu.memory_space<vmem>>, vector<1x256xf32>,
    %176 = vector.extract_strided_slice %154 {offsets = [0, 50], sizes = [1, 256], strides = [1, 1]} : vector<1x324xf32> to vector<1x256xf32>
    %177 = arith.mulf %176, %152 : vector<1x256xf32>
    %c8_87 = arith.constant 8 : index
    %c0_88 = arith.constant 0 : index
    %178 = vector.load %arg8[%c8_87, %c0_88] : memref<37x256xf32, #tpu.memory_space<vmem>>, vector<1x256xf32>
    tpu.vector_store %arg8[%c8_87, %c0_88], %177 {strides = array<i32>} : memref<37x256xf32, #tpu.memory_space<vmem>>, vector<1x256xf32>,
    %179 = vector.extract_strided_slice %154 {offsets = [0, 51], sizes = [1, 256], strides = [1, 1]} : vector<1x324xf32> to vector<1x256xf32>
    %180 = arith.mulf %179, %153 : vector<1x256xf32>
    %c9_89 = arith.constant 9 : index
    %c0_90 = arith.constant 0 : index
    %181 = vector.load %arg8[%c9_89, %c0_90] : memref<37x256xf32, #tpu.memory_space<vmem>>, vector<1x256xf32>
    tpu.vector_store %arg8[%c9_89, %c0_90], %180 {strides = array<i32>} : memref<37x256xf32, #tpu.memory_space<vmem>>, vector<1x256xf32>,
    %c1_91 = arith.constant 1 : index
    %c0_92 = arith.constant 0 : index
    %182 = vector.load %arg6[%c1_91, %c0_92] : memref<4x324xf32, #tpu.memory_space<vmem>>, vector<1x324xf32>
    %183 = vector.extract_strided_slice %182 {offsets = [0, 17], sizes = [1, 256], strides = [1, 1]} : vector<1x324xf32> to vector<1x256xf32>
    %184 = arith.mulf %183, %145 : vector<1x256xf32>
    %c10_93 = arith.constant 10 : index
    %c0_94 = arith.constant 0 : index
    %185 = vector.load %arg8[%c10_93, %c0_94] : memref<37x256xf32, #tpu.memory_space<vmem>>, vector<1x256xf32>
    tpu.vector_store %arg8[%c10_93, %c0_94], %184 {strides = array<i32>} : memref<37x256xf32, #tpu.memory_space<vmem>>, vector<1x256xf32>,
    %186 = vector.extract_strided_slice %182 {offsets = [0, 18], sizes = [1, 256], strides = [1, 1]} : vector<1x324xf32> to vector<1x256xf32>
    %187 = arith.mulf %186, %146 : vector<1x256xf32>
    %c11_95 = arith.constant 11 : index
    %c0_96 = arith.constant 0 : index
    %188 = vector.load %arg8[%c11_95, %c0_96] : memref<37x256xf32, #tpu.memory_space<vmem>>, vector<1x256xf32>
    tpu.vector_store %arg8[%c11_95, %c0_96], %187 {strides = array<i32>} : memref<37x256xf32, #tpu.memory_space<vmem>>, vector<1x256xf32>,
    %189 = vector.extract_strided_slice %182 {offsets = [0, 19], sizes = [1, 256], strides = [1, 1]} : vector<1x324xf32> to vector<1x256xf32>
    %190 = arith.mulf %189, %147 : vector<1x256xf32>
    %c12_97 = arith.constant 12 : index
    %c0_98 = arith.constant 0 : index
    %191 = vector.load %arg8[%c12_97, %c0_98] : memref<37x256xf32, #tpu.memory_space<vmem>>, vector<1x256xf32>
    tpu.vector_store %arg8[%c12_97, %c0_98], %190 {strides = array<i32>} : memref<37x256xf32, #tpu.memory_space<vmem>>, vector<1x256xf32>,
    %192 = vector.extract_strided_slice %182 {offsets = [0, 33], sizes = [1, 256], strides = [1, 1]} : vector<1x324xf32> to vector<1x256xf32>
    %193 = arith.mulf %192, %148 : vector<1x256xf32>
    %c13_99 = arith.constant 13 : index
    %c0_100 = arith.constant 0 : index
    %194 = vector.load %arg8[%c13_99, %c0_100] : memref<37x256xf32, #tpu.memory_space<vmem>>, vector<1x256xf32>
    tpu.vector_store %arg8[%c13_99, %c0_100], %193 {strides = array<i32>} : memref<37x256xf32, #tpu.memory_space<vmem>>, vector<1x256xf32>,
    %195 = vector.extract_strided_slice %182 {offsets = [0, 34], sizes = [1, 256], strides = [1, 1]} : vector<1x324xf32> to vector<1x256xf32>
    %196 = arith.mulf %195, %149 : vector<1x256xf32>
    %c14_101 = arith.constant 14 : index
    %c0_102 = arith.constant 0 : index
    %197 = vector.load %arg8[%c14_101, %c0_102] : memref<37x256xf32, #tpu.memory_space<vmem>>, vector<1x256xf32>
    tpu.vector_store %arg8[%c14_101, %c0_102], %196 {strides = array<i32>} : memref<37x256xf32, #tpu.memory_space<vmem>>, vector<1x256xf32>,
    %198 = vector.extract_strided_slice %182 {offsets = [0, 35], sizes = [1, 256], strides = [1, 1]} : vector<1x324xf32> to vector<1x256xf32>
    %199 = arith.mulf %198, %150 : vector<1x256xf32>
    %c15_103 = arith.constant 15 : index
    %c0_104 = arith.constant 0 : index
    %200 = vector.load %arg8[%c15_103, %c0_104] : memref<37x256xf32, #tpu.memory_space<vmem>>, vector<1x256xf32>
    tpu.vector_store %arg8[%c15_103, %c0_104], %199 {strides = array<i32>} : memref<37x256xf32, #tpu.memory_space<vmem>>, vector<1x256xf32>,
    %201 = vector.extract_strided_slice %182 {offsets = [0, 49], sizes = [1, 256], strides = [1, 1]} : vector<1x324xf32> to vector<1x256xf32>
    %202 = arith.mulf %201, %151 : vector<1x256xf32>
    %c16_105 = arith.constant 16 : index
    %c0_106 = arith.constant 0 : index
    %203 = vector.load %arg8[%c16_105, %c0_106] : memref<37x256xf32, #tpu.memory_space<vmem>>, vector<1x256xf32>
    tpu.vector_store %arg8[%c16_105, %c0_106], %202 {strides = array<i32>} : memref<37x256xf32, #tpu.memory_space<vmem>>, vector<1x256xf32>,
    %204 = vector.extract_strided_slice %182 {offsets = [0, 50], sizes = [1, 256], strides = [1, 1]} : vector<1x324xf32> to vector<1x256xf32>
    %205 = arith.mulf %204, %152 : vector<1x256xf32>
    %c17_107 = arith.constant 17 : index
    %c0_108 = arith.constant 0 : index
    %206 = vector.load %arg8[%c17_107, %c0_108] : memref<37x256xf32, #tpu.memory_space<vmem>>, vector<1x256xf32>
    tpu.vector_store %arg8[%c17_107, %c0_108], %205 {strides = array<i32>} : memref<37x256xf32, #tpu.memory_space<vmem>>, vector<1x256xf32>,
    %207 = vector.extract_strided_slice %182 {offsets = [0, 51], sizes = [1, 256], strides = [1, 1]} : vector<1x324xf32> to vector<1x256xf32>
    %208 = arith.mulf %207, %153 : vector<1x256xf32>
    %c18_109 = arith.constant 18 : index
    %c0_110 = arith.constant 0 : index
    %209 = vector.load %arg8[%c18_109, %c0_110] : memref<37x256xf32, #tpu.memory_space<vmem>>, vector<1x256xf32>
    tpu.vector_store %arg8[%c18_109, %c0_110], %208 {strides = array<i32>} : memref<37x256xf32, #tpu.memory_space<vmem>>, vector<1x256xf32>,
    %c2_111 = arith.constant 2 : index
    %c0_112 = arith.constant 0 : index
    %210 = vector.load %arg6[%c2_111, %c0_112] : memref<4x324xf32, #tpu.memory_space<vmem>>, vector<1x324xf32>
    %211 = vector.extract_strided_slice %210 {offsets = [0, 17], sizes = [1, 256], strides = [1, 1]} : vector<1x324xf32> to vector<1x256xf32>
    %212 = arith.mulf %211, %145 : vector<1x256xf32>
    %c19_113 = arith.constant 19 : index
    %c0_114 = arith.constant 0 : index
    %213 = vector.load %arg8[%c19_113, %c0_114] : memref<37x256xf32, #tpu.memory_space<vmem>>, vector<1x256xf32>
    tpu.vector_store %arg8[%c19_113, %c0_114], %212 {strides = array<i32>} : memref<37x256xf32, #tpu.memory_space<vmem>>, vector<1x256xf32>,
    %214 = vector.extract_strided_slice %210 {offsets = [0, 18], sizes = [1, 256], strides = [1, 1]} : vector<1x324xf32> to vector<1x256xf32>
    %215 = arith.mulf %214, %146 : vector<1x256xf32>
    %c20_115 = arith.constant 20 : index
    %c0_116 = arith.constant 0 : index
    %216 = vector.load %arg8[%c20_115, %c0_116] : memref<37x256xf32, #tpu.memory_space<vmem>>, vector<1x256xf32>
    tpu.vector_store %arg8[%c20_115, %c0_116], %215 {strides = array<i32>} : memref<37x256xf32, #tpu.memory_space<vmem>>, vector<1x256xf32>,
    %217 = vector.extract_strided_slice %210 {offsets = [0, 19], sizes = [1, 256], strides = [1, 1]} : vector<1x324xf32> to vector<1x256xf32>
    %218 = arith.mulf %217, %147 : vector<1x256xf32>
    %c21_117 = arith.constant 21 : index
    %c0_118 = arith.constant 0 : index
    %219 = vector.load %arg8[%c21_117, %c0_118] : memref<37x256xf32, #tpu.memory_space<vmem>>, vector<1x256xf32>
    tpu.vector_store %arg8[%c21_117, %c0_118], %218 {strides = array<i32>} : memref<37x256xf32, #tpu.memory_space<vmem>>, vector<1x256xf32>,
    %220 = vector.extract_strided_slice %210 {offsets = [0, 33], sizes = [1, 256], strides = [1, 1]} : vector<1x324xf32> to vector<1x256xf32>
    %221 = arith.mulf %220, %148 : vector<1x256xf32>
    %c22_119 = arith.constant 22 : index
    %c0_120 = arith.constant 0 : index
    %222 = vector.load %arg8[%c22_119, %c0_120] : memref<37x256xf32, #tpu.memory_space<vmem>>, vector<1x256xf32>
    tpu.vector_store %arg8[%c22_119, %c0_120], %221 {strides = array<i32>} : memref<37x256xf32, #tpu.memory_space<vmem>>, vector<1x256xf32>,
    %223 = vector.extract_strided_slice %210 {offsets = [0, 34], sizes = [1, 256], strides = [1, 1]} : vector<1x324xf32> to vector<1x256xf32>
    %224 = arith.mulf %223, %149 : vector<1x256xf32>
    %c23_121 = arith.constant 23 : index
    %c0_122 = arith.constant 0 : index
    %225 = vector.load %arg8[%c23_121, %c0_122] : memref<37x256xf32, #tpu.memory_space<vmem>>, vector<1x256xf32>
    tpu.vector_store %arg8[%c23_121, %c0_122], %224 {strides = array<i32>} : memref<37x256xf32, #tpu.memory_space<vmem>>, vector<1x256xf32>,
    %226 = vector.extract_strided_slice %210 {offsets = [0, 35], sizes = [1, 256], strides = [1, 1]} : vector<1x324xf32> to vector<1x256xf32>
    %227 = arith.mulf %226, %150 : vector<1x256xf32>
    %c24_123 = arith.constant 24 : index
    %c0_124 = arith.constant 0 : index
    %228 = vector.load %arg8[%c24_123, %c0_124] : memref<37x256xf32, #tpu.memory_space<vmem>>, vector<1x256xf32>
    tpu.vector_store %arg8[%c24_123, %c0_124], %227 {strides = array<i32>} : memref<37x256xf32, #tpu.memory_space<vmem>>, vector<1x256xf32>,
    %229 = vector.extract_strided_slice %210 {offsets = [0, 49], sizes = [1, 256], strides = [1, 1]} : vector<1x324xf32> to vector<1x256xf32>
    %230 = arith.mulf %229, %151 : vector<1x256xf32>
    %c25_125 = arith.constant 25 : index
    %c0_126 = arith.constant 0 : index
    %231 = vector.load %arg8[%c25_125, %c0_126] : memref<37x256xf32, #tpu.memory_space<vmem>>, vector<1x256xf32>
    tpu.vector_store %arg8[%c25_125, %c0_126], %230 {strides = array<i32>} : memref<37x256xf32, #tpu.memory_space<vmem>>, vector<1x256xf32>,
    %232 = vector.extract_strided_slice %210 {offsets = [0, 50], sizes = [1, 256], strides = [1, 1]} : vector<1x324xf32> to vector<1x256xf32>
    %233 = arith.mulf %232, %152 : vector<1x256xf32>
    %c26_127 = arith.constant 26 : index
    %c0_128 = arith.constant 0 : index
    %234 = vector.load %arg8[%c26_127, %c0_128] : memref<37x256xf32, #tpu.memory_space<vmem>>, vector<1x256xf32>
    tpu.vector_store %arg8[%c26_127, %c0_128], %233 {strides = array<i32>} : memref<37x256xf32, #tpu.memory_space<vmem>>, vector<1x256xf32>,
    %235 = vector.extract_strided_slice %210 {offsets = [0, 51], sizes = [1, 256], strides = [1, 1]} : vector<1x324xf32> to vector<1x256xf32>
    %236 = arith.mulf %235, %153 : vector<1x256xf32>
    %c27_129 = arith.constant 27 : index
    %c0_130 = arith.constant 0 : index
    %237 = vector.load %arg8[%c27_129, %c0_130] : memref<37x256xf32, #tpu.memory_space<vmem>>, vector<1x256xf32>
    tpu.vector_store %arg8[%c27_129, %c0_130], %236 {strides = array<i32>} : memref<37x256xf32, #tpu.memory_space<vmem>>, vector<1x256xf32>,
    %c3_131 = arith.constant 3 : index
    %c0_132 = arith.constant 0 : index
    %238 = vector.load %arg6[%c3_131, %c0_132] : memref<4x324xf32, #tpu.memory_space<vmem>>, vector<1x324xf32>
    %239 = vector.extract_strided_slice %238 {offsets = [0, 17], sizes = [1, 256], strides = [1, 1]} : vector<1x324xf32> to vector<1x256xf32>
    %240 = arith.mulf %239, %145 : vector<1x256xf32>
    %c28_133 = arith.constant 28 : index
    %c0_134 = arith.constant 0 : index
    %241 = vector.load %arg8[%c28_133, %c0_134] : memref<37x256xf32, #tpu.memory_space<vmem>>, vector<1x256xf32>
    tpu.vector_store %arg8[%c28_133, %c0_134], %240 {strides = array<i32>} : memref<37x256xf32, #tpu.memory_space<vmem>>, vector<1x256xf32>,
    %242 = vector.extract_strided_slice %238 {offsets = [0, 18], sizes = [1, 256], strides = [1, 1]} : vector<1x324xf32> to vector<1x256xf32>
    %243 = arith.mulf %242, %146 : vector<1x256xf32>
    %c29_135 = arith.constant 29 : index
    %c0_136 = arith.constant 0 : index
    %244 = vector.load %arg8[%c29_135, %c0_136] : memref<37x256xf32, #tpu.memory_space<vmem>>, vector<1x256xf32>
    tpu.vector_store %arg8[%c29_135, %c0_136], %243 {strides = array<i32>} : memref<37x256xf32, #tpu.memory_space<vmem>>, vector<1x256xf32>,
    %245 = vector.extract_strided_slice %238 {offsets = [0, 19], sizes = [1, 256], strides = [1, 1]} : vector<1x324xf32> to vector<1x256xf32>
    %246 = arith.mulf %245, %147 : vector<1x256xf32>
    %c30_137 = arith.constant 30 : index
    %c0_138 = arith.constant 0 : index
    %247 = vector.load %arg8[%c30_137, %c0_138] : memref<37x256xf32, #tpu.memory_space<vmem>>, vector<1x256xf32>
    tpu.vector_store %arg8[%c30_137, %c0_138], %246 {strides = array<i32>} : memref<37x256xf32, #tpu.memory_space<vmem>>, vector<1x256xf32>,
    %248 = vector.extract_strided_slice %238 {offsets = [0, 33], sizes = [1, 256], strides = [1, 1]} : vector<1x324xf32> to vector<1x256xf32>
    %249 = arith.mulf %248, %148 : vector<1x256xf32>
    %c31_139 = arith.constant 31 : index
    %c0_140 = arith.constant 0 : index
    %250 = vector.load %arg8[%c31_139, %c0_140] : memref<37x256xf32, #tpu.memory_space<vmem>>, vector<1x256xf32>
    tpu.vector_store %arg8[%c31_139, %c0_140], %249 {strides = array<i32>} : memref<37x256xf32, #tpu.memory_space<vmem>>, vector<1x256xf32>,
    %251 = vector.extract_strided_slice %238 {offsets = [0, 34], sizes = [1, 256], strides = [1, 1]} : vector<1x324xf32> to vector<1x256xf32>
    %252 = arith.mulf %251, %149 : vector<1x256xf32>
    %c32_141 = arith.constant 32 : index
    %c0_142 = arith.constant 0 : index
    %253 = vector.load %arg8[%c32_141, %c0_142] : memref<37x256xf32, #tpu.memory_space<vmem>>, vector<1x256xf32>
    tpu.vector_store %arg8[%c32_141, %c0_142], %252 {strides = array<i32>} : memref<37x256xf32, #tpu.memory_space<vmem>>, vector<1x256xf32>,
    %254 = vector.extract_strided_slice %238 {offsets = [0, 35], sizes = [1, 256], strides = [1, 1]} : vector<1x324xf32> to vector<1x256xf32>
    %255 = arith.mulf %254, %150 : vector<1x256xf32>
    %c33_143 = arith.constant 33 : index
    %c0_144 = arith.constant 0 : index
    %256 = vector.load %arg8[%c33_143, %c0_144] : memref<37x256xf32, #tpu.memory_space<vmem>>, vector<1x256xf32>
    tpu.vector_store %arg8[%c33_143, %c0_144], %255 {strides = array<i32>} : memref<37x256xf32, #tpu.memory_space<vmem>>, vector<1x256xf32>,
    %257 = vector.extract_strided_slice %238 {offsets = [0, 49], sizes = [1, 256], strides = [1, 1]} : vector<1x324xf32> to vector<1x256xf32>
    %258 = arith.mulf %257, %151 : vector<1x256xf32>
    %c34_145 = arith.constant 34 : index
    %c0_146 = arith.constant 0 : index
    %259 = vector.load %arg8[%c34_145, %c0_146] : memref<37x256xf32, #tpu.memory_space<vmem>>, vector<1x256xf32>
    tpu.vector_store %arg8[%c34_145, %c0_146], %258 {strides = array<i32>} : memref<37x256xf32, #tpu.memory_space<vmem>>, vector<1x256xf32>,
    %260 = vector.extract_strided_slice %238 {offsets = [0, 50], sizes = [1, 256], strides = [1, 1]} : vector<1x324xf32> to vector<1x256xf32>
    %261 = arith.mulf %260, %152 : vector<1x256xf32>
    %c35_147 = arith.constant 35 : index
    %c0_148 = arith.constant 0 : index
    %262 = vector.load %arg8[%c35_147, %c0_148] : memref<37x256xf32, #tpu.memory_space<vmem>>, vector<1x256xf32>
    tpu.vector_store %arg8[%c35_147, %c0_148], %261 {strides = array<i32>} : memref<37x256xf32, #tpu.memory_space<vmem>>, vector<1x256xf32>,
    %263 = vector.extract_strided_slice %238 {offsets = [0, 51], sizes = [1, 256], strides = [1, 1]} : vector<1x324xf32> to vector<1x256xf32>
    %264 = arith.mulf %263, %153 : vector<1x256xf32>
    %c36_149 = arith.constant 36 : index
    %c0_150 = arith.constant 0 : index
    %265 = vector.load %arg8[%c36_149, %c0_150] : memref<37x256xf32, #tpu.memory_space<vmem>>, vector<1x256xf32>
    tpu.vector_store %arg8[%c36_149, %c0_150], %264 {strides = array<i32>} : memref<37x256xf32, #tpu.memory_space<vmem>>, vector<1x256xf32>,
    %c1_151 = arith.constant 1 : index
    %c0_152 = arith.constant 0 : index
    %c0_153 = arith.constant 0 : index
    %266 = vector.load %arg2[%c1_151, %c0_152, %c0_153] : memref<10x4x37xf32, #tpu.memory_space<vmem>>, vector<1x4x37xf32>
    %267 = vector.shape_cast %266 : vector<1x4x37xf32> to vector<4x37xf32>
    %c0_154 = arith.constant 0 : index
    %c0_155 = arith.constant 0 : index
    %268 = vector.load %arg8[%c0_154, %c0_155] : memref<37x256xf32, #tpu.memory_space<vmem>>, vector<37x256xf32>
    %cst_156 = arith.constant dense<0.000000e+00> : vector<4x256xf32>
    %269 = tpu.matmul %267, %268, %cst_156 {dimension_numbers = #tpu.dot_dimension_numbers<[1], [0], [0], [1], [0, 0, 1, 1], [], []>} : vector<4x37xf32>, vector<37x256xf32>, vector<4x256xf32> -> vector<4x256xf32>
    %c0_157 = arith.constant 0 : index
    %c0_158 = arith.constant 0 : index
    %270 = vector.load %arg7[%c0_157, %c0_158] : memref<4x256xf32, #tpu.memory_space<vmem>>, vector<4x256xf32>
    tpu.vector_store %arg7[%c0_157, %c0_158], %269 {strides = array<i32>} : memref<4x256xf32, #tpu.memory_space<vmem>>, vector<4x256xf32>,
    %271 = vector.extract_strided_slice %269 {offsets = [0, 0], sizes = [2, 256], strides = [1, 1]} : vector<4x256xf32> to vector<2x256xf32>
    %272 = vector.extract_strided_slice %269 {offsets = [2, 0], sizes = [2, 256], strides = [1, 1]} : vector<4x256xf32> to vector<2x256xf32>
    %cst_159 = arith.constant 0.000000e+00 : f32
    %273 = vector.broadcast %cst_159 : f32 to vector<2x256xf32>
    %274 = arith.cmpf oge, %271, %273 : vector<2x256xf32>
    %275 = vector.broadcast %1 : f32 to vector<2x256xf32>
    %276 = arith.mulf %275, %271 : vector<2x256xf32>
    %277 = arith.select %274, %271, %276 : vector<2x256xi1>, vector<2x256xf32>
    %278 = arith.negf %272 : vector<2x256xf32>
    %279 = math.exp %278 : vector<2x256xf32>
    %cst_160 = arith.constant 1.000000e+00 : f32
    %280 = vector.broadcast %cst_160 : f32 to vector<2x256xf32>
    %281 = arith.addf %280, %279 : vector<2x256xf32>
    %282 = arith.divf %280, %281 : vector<2x256xf32>
    %283 = arith.mulf %277, %282 : vector<2x256xf32>
    %c0_161 = arith.constant 0 : index
    %c34_162 = arith.constant 34 : index
    %284 = vector.load %arg6[%c0_161, %c34_162] : memref<4x324xf32, #tpu.memory_space<vmem>>, vector<2x256xf32>
    tpu.vector_store %arg6[%c0_161, %c34_162], %283 {strides = array<i32>} : memref<4x324xf32, #tpu.memory_space<vmem>>, vector<2x256xf32>,
    %c2_163 = arith.constant 2 : index
    %c0_164 = arith.constant 0 : index
    %c0_165 = arith.constant 0 : index
    %285 = vector.load %arg3[%c2_163, %c0_164, %c0_165] : memref<10x9x256xf32, #tpu.memory_space<vmem>>, vector<1x9x256xf32>
    %286 = vector.shape_cast %285 : vector<1x9x256xf32> to vector<9x256xf32>
    %287 = vector.extract_strided_slice %286 {offsets = [0, 0], sizes = [1, 256], strides = [1, 1]} : vector<9x256xf32> to vector<1x256xf32>
    %288 = vector.extract_strided_slice %286 {offsets = [1, 0], sizes = [1, 256], strides = [1, 1]} : vector<9x256xf32> to vector<1x256xf32>
    %289 = vector.extract_strided_slice %286 {offsets = [2, 0], sizes = [1, 256], strides = [1, 1]} : vector<9x256xf32> to vector<1x256xf32>
    %290 = vector.extract_strided_slice %286 {offsets = [3, 0], sizes = [1, 256], strides = [1, 1]} : vector<9x256xf32> to vector<1x256xf32>
    %291 = vector.extract_strided_slice %286 {offsets = [4, 0], sizes = [1, 256], strides = [1, 1]} : vector<9x256xf32> to vector<1x256xf32>
    %292 = vector.extract_strided_slice %286 {offsets = [5, 0], sizes = [1, 256], strides = [1, 1]} : vector<9x256xf32> to vector<1x256xf32>
    %293 = vector.extract_strided_slice %286 {offsets = [6, 0], sizes = [1, 256], strides = [1, 1]} : vector<9x256xf32> to vector<1x256xf32>
    %294 = vector.extract_strided_slice %286 {offsets = [7, 0], sizes = [1, 256], strides = [1, 1]} : vector<9x256xf32> to vector<1x256xf32>
    %295 = vector.extract_strided_slice %286 {offsets = [8, 0], sizes = [1, 256], strides = [1, 1]} : vector<9x256xf32> to vector<1x256xf32>
    %c0_166 = arith.constant 0 : index
    %c0_167 = arith.constant 0 : index
    %296 = vector.load %arg6[%c0_166, %c0_167] : memref<4x324xf32, #tpu.memory_space<vmem>>, vector<1x324xf32>
    %297 = vector.extract_strided_slice %296 {offsets = [0, 0], sizes = [1, 256], strides = [1, 1]} : vector<1x324xf32> to vector<1x256xf32>
    %298 = arith.mulf %297, %287 : vector<1x256xf32>
    %c1_168 = arith.constant 1 : index
    %c0_169 = arith.constant 0 : index
    %299 = vector.load %arg8[%c1_168, %c0_169] : memref<37x256xf32, #tpu.memory_space<vmem>>, vector<1x256xf32>
    tpu.vector_store %arg8[%c1_168, %c0_169], %298 {strides = array<i32>} : memref<37x256xf32, #tpu.memory_space<vmem>>, vector<1x256xf32>,
    %300 = vector.extract_strided_slice %296 {offsets = [0, 2], sizes = [1, 256], strides = [1, 1]} : vector<1x324xf32> to vector<1x256xf32>
    %301 = arith.mulf %300, %288 : vector<1x256xf32>
    %c2_170 = arith.constant 2 : index
    %c0_171 = arith.constant 0 : index
    %302 = vector.load %arg8[%c2_170, %c0_171] : memref<37x256xf32, #tpu.memory_space<vmem>>, vector<1x256xf32>
    tpu.vector_store %arg8[%c2_170, %c0_171], %301 {strides = array<i32>} : memref<37x256xf32, #tpu.memory_space<vmem>>, vector<1x256xf32>,
    %303 = vector.extract_strided_slice %296 {offsets = [0, 4], sizes = [1, 256], strides = [1, 1]} : vector<1x324xf32> to vector<1x256xf32>
    %304 = arith.mulf %303, %289 : vector<1x256xf32>
    %c3_172 = arith.constant 3 : index
    %c0_173 = arith.constant 0 : index
    %305 = vector.load %arg8[%c3_172, %c0_173] : memref<37x256xf32, #tpu.memory_space<vmem>>, vector<1x256xf32>
    tpu.vector_store %arg8[%c3_172, %c0_173], %304 {strides = array<i32>} : memref<37x256xf32, #tpu.memory_space<vmem>>, vector<1x256xf32>,
    %306 = vector.extract_strided_slice %296 {offsets = [0, 32], sizes = [1, 256], strides = [1, 1]} : vector<1x324xf32> to vector<1x256xf32>
    %307 = arith.mulf %306, %290 : vector<1x256xf32>
    %c4_174 = arith.constant 4 : index
    %c0_175 = arith.constant 0 : index
    %308 = vector.load %arg8[%c4_174, %c0_175] : memref<37x256xf32, #tpu.memory_space<vmem>>, vector<1x256xf32>
    tpu.vector_store %arg8[%c4_174, %c0_175], %307 {strides = array<i32>} : memref<37x256xf32, #tpu.memory_space<vmem>>, vector<1x256xf32>,
    %309 = vector.extract_strided_slice %296 {offsets = [0, 34], sizes = [1, 256], strides = [1, 1]} : vector<1x324xf32> to vector<1x256xf32>
    %310 = arith.mulf %309, %291 : vector<1x256xf32>
    %c5_176 = arith.constant 5 : index
    %c0_177 = arith.constant 0 : index
    %311 = vector.load %arg8[%c5_176, %c0_177] : memref<37x256xf32, #tpu.memory_space<vmem>>, vector<1x256xf32>
    tpu.vector_store %arg8[%c5_176, %c0_177], %310 {strides = array<i32>} : memref<37x256xf32, #tpu.memory_space<vmem>>, vector<1x256xf32>,
    %312 = vector.extract_strided_slice %296 {offsets = [0, 36], sizes = [1, 256], strides = [1, 1]} : vector<1x324xf32> to vector<1x256xf32>
    %313 = arith.mulf %312, %292 : vector<1x256xf32>
    %c6_178 = arith.constant 6 : index
    %c0_179 = arith.constant 0 : index
    %314 = vector.load %arg8[%c6_178, %c0_179] : memref<37x256xf32, #tpu.memory_space<vmem>>, vector<1x256xf32>
    tpu.vector_store %arg8[%c6_178, %c0_179], %313 {strides = array<i32>} : memref<37x256xf32, #tpu.memory_space<vmem>>, vector<1x256xf32>,
    %315 = vector.extract_strided_slice %296 {offsets = [0, 64], sizes = [1, 256], strides = [1, 1]} : vector<1x324xf32> to vector<1x256xf32>
    %316 = arith.mulf %315, %293 : vector<1x256xf32>
    %c7_180 = arith.constant 7 : index
    %c0_181 = arith.constant 0 : index
    %317 = vector.load %arg8[%c7_180, %c0_181] : memref<37x256xf32, #tpu.memory_space<vmem>>, vector<1x256xf32>
    tpu.vector_store %arg8[%c7_180, %c0_181], %316 {strides = array<i32>} : memref<37x256xf32, #tpu.memory_space<vmem>>, vector<1x256xf32>,
    %318 = vector.extract_strided_slice %296 {offsets = [0, 66], sizes = [1, 256], strides = [1, 1]} : vector<1x324xf32> to vector<1x256xf32>
    %319 = arith.mulf %318, %294 : vector<1x256xf32>
    %c8_182 = arith.constant 8 : index
    %c0_183 = arith.constant 0 : index
    %320 = vector.load %arg8[%c8_182, %c0_183] : memref<37x256xf32, #tpu.memory_space<vmem>>, vector<1x256xf32>
    tpu.vector_store %arg8[%c8_182, %c0_183], %319 {strides = array<i32>} : memref<37x256xf32, #tpu.memory_space<vmem>>, vector<1x256xf32>,
    %321 = vector.extract_strided_slice %296 {offsets = [0, 68], sizes = [1, 256], strides = [1, 1]} : vector<1x324xf32> to vector<1x256xf32>
    %322 = arith.mulf %321, %295 : vector<1x256xf32>
    %c9_184 = arith.constant 9 : index
    %c0_185 = arith.constant 0 : index
    %323 = vector.load %arg8[%c9_184, %c0_185] : memref<37x256xf32, #tpu.memory_space<vmem>>, vector<1x256xf32>
    tpu.vector_store %arg8[%c9_184, %c0_185], %322 {strides = array<i32>} : memref<37x256xf32, #tpu.memory_space<vmem>>, vector<1x256xf32>,
    %c1_186 = arith.constant 1 : index
    %c0_187 = arith.constant 0 : index
    %324 = vector.load %arg6[%c1_186, %c0_187] : memref<4x324xf32, #tpu.memory_space<vmem>>, vector<1x324xf32>
    %325 = vector.extract_strided_slice %324 {offsets = [0, 0], sizes = [1, 256], strides = [1, 1]} : vector<1x324xf32> to vector<1x256xf32>
    %326 = arith.mulf %325, %287 : vector<1x256xf32>
    %c10_188 = arith.constant 10 : index
    %c0_189 = arith.constant 0 : index
    %327 = vector.load %arg8[%c10_188, %c0_189] : memref<37x256xf32, #tpu.memory_space<vmem>>, vector<1x256xf32>
    tpu.vector_store %arg8[%c10_188, %c0_189], %326 {strides = array<i32>} : memref<37x256xf32, #tpu.memory_space<vmem>>, vector<1x256xf32>,
    %328 = vector.extract_strided_slice %324 {offsets = [0, 2], sizes = [1, 256], strides = [1, 1]} : vector<1x324xf32> to vector<1x256xf32>
    %329 = arith.mulf %328, %288 : vector<1x256xf32>
    %c11_190 = arith.constant 11 : index
    %c0_191 = arith.constant 0 : index
    %330 = vector.load %arg8[%c11_190, %c0_191] : memref<37x256xf32, #tpu.memory_space<vmem>>, vector<1x256xf32>
    tpu.vector_store %arg8[%c11_190, %c0_191], %329 {strides = array<i32>} : memref<37x256xf32, #tpu.memory_space<vmem>>, vector<1x256xf32>,
    %331 = vector.extract_strided_slice %324 {offsets = [0, 4], sizes = [1, 256], strides = [1, 1]} : vector<1x324xf32> to vector<1x256xf32>
    %332 = arith.mulf %331, %289 : vector<1x256xf32>
    %c12_192 = arith.constant 12 : index
    %c0_193 = arith.constant 0 : index
    %333 = vector.load %arg8[%c12_192, %c0_193] : memref<37x256xf32, #tpu.memory_space<vmem>>, vector<1x256xf32>
    tpu.vector_store %arg8[%c12_192, %c0_193], %332 {strides = array<i32>} : memref<37x256xf32, #tpu.memory_space<vmem>>, vector<1x256xf32>,
    %334 = vector.extract_strided_slice %324 {offsets = [0, 32], sizes = [1, 256], strides = [1, 1]} : vector<1x324xf32> to vector<1x256xf32>
    %335 = arith.mulf %334, %290 : vector<1x256xf32>
    %c13_194 = arith.constant 13 : index
    %c0_195 = arith.constant 0 : index
    %336 = vector.load %arg8[%c13_194, %c0_195] : memref<37x256xf32, #tpu.memory_space<vmem>>, vector<1x256xf32>
    tpu.vector_store %arg8[%c13_194, %c0_195], %335 {strides = array<i32>} : memref<37x256xf32, #tpu.memory_space<vmem>>, vector<1x256xf32>,
    %337 = vector.extract_strided_slice %324 {offsets = [0, 34], sizes = [1, 256], strides = [1, 1]} : vector<1x324xf32> to vector<1x256xf32>
    %338 = arith.mulf %337, %291 : vector<1x256xf32>
    %c14_196 = arith.constant 14 : index
    %c0_197 = arith.constant 0 : index
    %339 = vector.load %arg8[%c14_196, %c0_197] : memref<37x256xf32, #tpu.memory_space<vmem>>, vector<1x256xf32>
    tpu.vector_store %arg8[%c14_196, %c0_197], %338 {strides = array<i32>} : memref<37x256xf32, #tpu.memory_space<vmem>>, vector<1x256xf32>,
    %340 = vector.extract_strided_slice %324 {offsets = [0, 36], sizes = [1, 256], strides = [1, 1]} : vector<1x324xf32> to vector<1x256xf32>
    %341 = arith.mulf %340, %292 : vector<1x256xf32>
    %c15_198 = arith.constant 15 : index
    %c0_199 = arith.constant 0 : index
    %342 = vector.load %arg8[%c15_198, %c0_199] : memref<37x256xf32, #tpu.memory_space<vmem>>, vector<1x256xf32>
    tpu.vector_store %arg8[%c15_198, %c0_199], %341 {strides = array<i32>} : memref<37x256xf32, #tpu.memory_space<vmem>>, vector<1x256xf32>,
    %343 = vector.extract_strided_slice %324 {offsets = [0, 64], sizes = [1, 256], strides = [1, 1]} : vector<1x324xf32> to vector<1x256xf32>
    %344 = arith.mulf %343, %293 : vector<1x256xf32>
    %c16_200 = arith.constant 16 : index
    %c0_201 = arith.constant 0 : index
    %345 = vector.load %arg8[%c16_200, %c0_201] : memref<37x256xf32, #tpu.memory_space<vmem>>, vector<1x256xf32>
    tpu.vector_store %arg8[%c16_200, %c0_201], %344 {strides = array<i32>} : memref<37x256xf32, #tpu.memory_space<vmem>>, vector<1x256xf32>,
    %346 = vector.extract_strided_slice %324 {offsets = [0, 66], sizes = [1, 256], strides = [1, 1]} : vector<1x324xf32> to vector<1x256xf32>
    %347 = arith.mulf %346, %294 : vector<1x256xf32>
    %c17_202 = arith.constant 17 : index
    %c0_203 = arith.constant 0 : index
    %348 = vector.load %arg8[%c17_202, %c0_203] : memref<37x256xf32, #tpu.memory_space<vmem>>, vector<1x256xf32>
    tpu.vector_store %arg8[%c17_202, %c0_203], %347 {strides = array<i32>} : memref<37x256xf32, #tpu.memory_space<vmem>>, vector<1x256xf32>,
    %349 = vector.extract_strided_slice %324 {offsets = [0, 68], sizes = [1, 256], strides = [1, 1]} : vector<1x324xf32> to vector<1x256xf32>
    %350 = arith.mulf %349, %295 : vector<1x256xf32>
    %c18_204 = arith.constant 18 : index
    %c0_205 = arith.constant 0 : index
    %351 = vector.load %arg8[%c18_204, %c0_205] : memref<37x256xf32, #tpu.memory_space<vmem>>, vector<1x256xf32>
    tpu.vector_store %arg8[%c18_204, %c0_205], %350 {strides = array<i32>} : memref<37x256xf32, #tpu.memory_space<vmem>>, vector<1x256xf32>,
    %c2_206 = arith.constant 2 : index
    %c0_207 = arith.constant 0 : index
    %c0_208 = arith.constant 0 : index
    %352 = vector.load %arg2[%c2_206, %c0_207, %c0_208] : memref<10x4x37xf32, #tpu.memory_space<vmem>>, vector<1x4x37xf32>
    %353 = vector.shape_cast %352 : vector<1x4x37xf32> to vector<4x37xf32>
    %354 = vector.extract_strided_slice %353 {offsets = [0, 0], sizes = [4, 19], strides = [1, 1]} : vector<4x37xf32> to vector<4x19xf32>
    %c0_209 = arith.constant 0 : index
    %c0_210 = arith.constant 0 : index
    %355 = vector.load %arg8[%c0_209, %c0_210] : memref<37x256xf32, #tpu.memory_space<vmem>>, vector<19x256xf32>
    %cst_211 = arith.constant dense<0.000000e+00> : vector<4x256xf32>
    %356 = tpu.matmul %354, %355, %cst_211 {dimension_numbers = #tpu.dot_dimension_numbers<[1], [0], [0], [1], [0, 0, 1, 1], [], []>} : vector<4x19xf32>, vector<19x256xf32>, vector<4x256xf32> -> vector<4x256xf32>
    %c0_212 = arith.constant 0 : index
    %c0_213 = arith.constant 0 : index
    %357 = vector.load %arg7[%c0_212, %c0_213] : memref<4x256xf32, #tpu.memory_space<vmem>>, vector<4x256xf32>
    %358 = arith.addf %356, %357 : vector<4x256xf32>
    %c0_214 = arith.constant 0 : index
    %c0_215 = arith.constant 0 : index
    %359 = vector.load %arg7[%c0_214, %c0_215] : memref<4x256xf32, #tpu.memory_space<vmem>>, vector<4x256xf32>
    tpu.vector_store %arg7[%c0_214, %c0_215], %358 {strides = array<i32>} : memref<4x256xf32, #tpu.memory_space<vmem>>, vector<4x256xf32>,
    %360 = vector.extract_strided_slice %358 {offsets = [0, 0], sizes = [2, 256], strides = [1, 1]} : vector<4x256xf32> to vector<2x256xf32>
    %361 = vector.extract_strided_slice %358 {offsets = [2, 0], sizes = [2, 256], strides = [1, 1]} : vector<4x256xf32> to vector<2x256xf32>
    %cst_216 = arith.constant 0.000000e+00 : f32
    %362 = vector.broadcast %cst_216 : f32 to vector<2x256xf32>
    %363 = arith.cmpf oge, %360, %362 : vector<2x256xf32>
    %364 = vector.broadcast %1 : f32 to vector<2x256xf32>
    %365 = arith.mulf %364, %360 : vector<2x256xf32>
    %366 = arith.select %363, %360, %365 : vector<2x256xi1>, vector<2x256xf32>
    %367 = arith.negf %361 : vector<2x256xf32>
    %368 = math.exp %367 : vector<2x256xf32>
    %cst_217 = arith.constant 1.000000e+00 : f32
    %369 = vector.broadcast %cst_217 : f32 to vector<2x256xf32>
    %370 = arith.addf %369, %368 : vector<2x256xf32>
    %371 = arith.divf %369, %370 : vector<2x256xf32>
    %372 = arith.mulf %366, %371 : vector<2x256xf32>
    %c0_218 = arith.constant 0 : index
    %c34_219 = arith.constant 34 : index
    %373 = vector.load %arg6[%c0_218, %c34_219] : memref<4x324xf32, #tpu.memory_space<vmem>>, vector<2x256xf32>
    tpu.vector_store %arg6[%c0_218, %c34_219], %372 {strides = array<i32>} : memref<4x324xf32, #tpu.memory_space<vmem>>, vector<2x256xf32>,
    %c3_220 = arith.constant 3 : index
    %c0_221 = arith.constant 0 : index
    %c0_222 = arith.constant 0 : index
    %374 = vector.load %arg3[%c3_220, %c0_221, %c0_222] : memref<10x9x256xf32, #tpu.memory_space<vmem>>, vector<1x9x256xf32>
    %375 = vector.shape_cast %374 : vector<1x9x256xf32> to vector<9x256xf32>
    %376 = vector.extract_strided_slice %375 {offsets = [0, 0], sizes = [1, 256], strides = [1, 1]} : vector<9x256xf32> to vector<1x256xf32>
    %377 = vector.extract_strided_slice %375 {offsets = [1, 0], sizes = [1, 256], strides = [1, 1]} : vector<9x256xf32> to vector<1x256xf32>
    %378 = vector.extract_strided_slice %375 {offsets = [2, 0], sizes = [1, 256], strides = [1, 1]} : vector<9x256xf32> to vector<1x256xf32>
    %379 = vector.extract_strided_slice %375 {offsets = [3, 0], sizes = [1, 256], strides = [1, 1]} : vector<9x256xf32> to vector<1x256xf32>
    %380 = vector.extract_strided_slice %375 {offsets = [4, 0], sizes = [1, 256], strides = [1, 1]} : vector<9x256xf32> to vector<1x256xf32>
    %381 = vector.extract_strided_slice %375 {offsets = [5, 0], sizes = [1, 256], strides = [1, 1]} : vector<9x256xf32> to vector<1x256xf32>
    %382 = vector.extract_strided_slice %375 {offsets = [6, 0], sizes = [1, 256], strides = [1, 1]} : vector<9x256xf32> to vector<1x256xf32>
    %383 = vector.extract_strided_slice %375 {offsets = [7, 0], sizes = [1, 256], strides = [1, 1]} : vector<9x256xf32> to vector<1x256xf32>
    %384 = vector.extract_strided_slice %375 {offsets = [8, 0], sizes = [1, 256], strides = [1, 1]} : vector<9x256xf32> to vector<1x256xf32>
    %c0_223 = arith.constant 0 : index
    %c0_224 = arith.constant 0 : index
    %385 = vector.load %arg6[%c0_223, %c0_224] : memref<4x324xf32, #tpu.memory_space<vmem>>, vector<1x324xf32>
    %386 = vector.extract_strided_slice %385 {offsets = [0, 17], sizes = [1, 256], strides = [1, 1]} : vector<1x324xf32> to vector<1x256xf32>
    %387 = arith.mulf %386, %376 : vector<1x256xf32>
    %c1_225 = arith.constant 1 : index
    %c0_226 = arith.constant 0 : index
    %388 = vector.load %arg8[%c1_225, %c0_226] : memref<37x256xf32, #tpu.memory_space<vmem>>, vector<1x256xf32>
    tpu.vector_store %arg8[%c1_225, %c0_226], %387 {strides = array<i32>} : memref<37x256xf32, #tpu.memory_space<vmem>>, vector<1x256xf32>,
    %389 = vector.extract_strided_slice %385 {offsets = [0, 18], sizes = [1, 256], strides = [1, 1]} : vector<1x324xf32> to vector<1x256xf32>
    %390 = arith.mulf %389, %377 : vector<1x256xf32>
    %c2_227 = arith.constant 2 : index
    %c0_228 = arith.constant 0 : index
    %391 = vector.load %arg8[%c2_227, %c0_228] : memref<37x256xf32, #tpu.memory_space<vmem>>, vector<1x256xf32>
    tpu.vector_store %arg8[%c2_227, %c0_228], %390 {strides = array<i32>} : memref<37x256xf32, #tpu.memory_space<vmem>>, vector<1x256xf32>,
    %392 = vector.extract_strided_slice %385 {offsets = [0, 19], sizes = [1, 256], strides = [1, 1]} : vector<1x324xf32> to vector<1x256xf32>
    %393 = arith.mulf %392, %378 : vector<1x256xf32>
    %c3_229 = arith.constant 3 : index
    %c0_230 = arith.constant 0 : index
    %394 = vector.load %arg8[%c3_229, %c0_230] : memref<37x256xf32, #tpu.memory_space<vmem>>, vector<1x256xf32>
    tpu.vector_store %arg8[%c3_229, %c0_230], %393 {strides = array<i32>} : memref<37x256xf32, #tpu.memory_space<vmem>>, vector<1x256xf32>,
    %395 = vector.extract_strided_slice %385 {offsets = [0, 33], sizes = [1, 256], strides = [1, 1]} : vector<1x324xf32> to vector<1x256xf32>
    %396 = arith.mulf %395, %379 : vector<1x256xf32>
    %c4_231 = arith.constant 4 : index
    %c0_232 = arith.constant 0 : index
    %397 = vector.load %arg8[%c4_231, %c0_232] : memref<37x256xf32, #tpu.memory_space<vmem>>, vector<1x256xf32>
    tpu.vector_store %arg8[%c4_231, %c0_232], %396 {strides = array<i32>} : memref<37x256xf32, #tpu.memory_space<vmem>>, vector<1x256xf32>,
    %398 = vector.extract_strided_slice %385 {offsets = [0, 34], sizes = [1, 256], strides = [1, 1]} : vector<1x324xf32> to vector<1x256xf32>
    %399 = arith.mulf %398, %380 : vector<1x256xf32>
    %c5_233 = arith.constant 5 : index
    %c0_234 = arith.constant 0 : index
    %400 = vector.load %arg8[%c5_233, %c0_234] : memref<37x256xf32, #tpu.memory_space<vmem>>, vector<1x256xf32>
    tpu.vector_store %arg8[%c5_233, %c0_234], %399 {strides = array<i32>} : memref<37x256xf32, #tpu.memory_space<vmem>>, vector<1x256xf32>,
    %401 = vector.extract_strided_slice %385 {offsets = [0, 35], sizes = [1, 256], strides = [1, 1]} : vector<1x324xf32> to vector<1x256xf32>
    %402 = arith.mulf %401, %381 : vector<1x256xf32>
    %c6_235 = arith.constant 6 : index
    %c0_236 = arith.constant 0 : index
    %403 = vector.load %arg8[%c6_235, %c0_236] : memref<37x256xf32, #tpu.memory_space<vmem>>, vector<1x256xf32>
    tpu.vector_store %arg8[%c6_235, %c0_236], %402 {strides = array<i32>} : memref<37x256xf32, #tpu.memory_space<vmem>>, vector<1x256xf32>,
    %404 = vector.extract_strided_slice %385 {offsets = [0, 49], sizes = [1, 256], strides = [1, 1]} : vector<1x324xf32> to vector<1x256xf32>
    %405 = arith.mulf %404, %382 : vector<1x256xf32>
    %c7_237 = arith.constant 7 : index
    %c0_238 = arith.constant 0 : index
    %406 = vector.load %arg8[%c7_237, %c0_238] : memref<37x256xf32, #tpu.memory_space<vmem>>, vector<1x256xf32>
    tpu.vector_store %arg8[%c7_237, %c0_238], %405 {strides = array<i32>} : memref<37x256xf32, #tpu.memory_space<vmem>>, vector<1x256xf32>,
    %407 = vector.extract_strided_slice %385 {offsets = [0, 50], sizes = [1, 256], strides = [1, 1]} : vector<1x324xf32> to vector<1x256xf32>
    %408 = arith.mulf %407, %383 : vector<1x256xf32>
    %c8_239 = arith.constant 8 : index
    %c0_240 = arith.constant 0 : index
    %409 = vector.load %arg8[%c8_239, %c0_240] : memref<37x256xf32, #tpu.memory_space<vmem>>, vector<1x256xf32>
    tpu.vector_store %arg8[%c8_239, %c0_240], %408 {strides = array<i32>} : memref<37x256xf32, #tpu.memory_space<vmem>>, vector<1x256xf32>,
    %410 = vector.extract_strided_slice %385 {offsets = [0, 51], sizes = [1, 256], strides = [1, 1]} : vector<1x324xf32> to vector<1x256xf32>
    %411 = arith.mulf %410, %384 : vector<1x256xf32>
    %c9_241 = arith.constant 9 : index
    %c0_242 = arith.constant 0 : index
    %412 = vector.load %arg8[%c9_241, %c0_242] : memref<37x256xf32, #tpu.memory_space<vmem>>, vector<1x256xf32>
    tpu.vector_store %arg8[%c9_241, %c0_242], %411 {strides = array<i32>} : memref<37x256xf32, #tpu.memory_space<vmem>>, vector<1x256xf32>,
    %c1_243 = arith.constant 1 : index
    %c0_244 = arith.constant 0 : index
    %413 = vector.load %arg6[%c1_243, %c0_244] : memref<4x324xf32, #tpu.memory_space<vmem>>, vector<1x324xf32>
    %414 = vector.extract_strided_slice %413 {offsets = [0, 17], sizes = [1, 256], strides = [1, 1]} : vector<1x324xf32> to vector<1x256xf32>
    %415 = arith.mulf %414, %376 : vector<1x256xf32>
    %c10_245 = arith.constant 10 : index
    %c0_246 = arith.constant 0 : index
    %416 = vector.load %arg8[%c10_245, %c0_246] : memref<37x256xf32, #tpu.memory_space<vmem>>, vector<1x256xf32>
    tpu.vector_store %arg8[%c10_245, %c0_246], %415 {strides = array<i32>} : memref<37x256xf32, #tpu.memory_space<vmem>>, vector<1x256xf32>,
    %417 = vector.extract_strided_slice %413 {offsets = [0, 18], sizes = [1, 256], strides = [1, 1]} : vector<1x324xf32> to vector<1x256xf32>
    %418 = arith.mulf %417, %377 : vector<1x256xf32>
    %c11_247 = arith.constant 11 : index
    %c0_248 = arith.constant 0 : index
    %419 = vector.load %arg8[%c11_247, %c0_248] : memref<37x256xf32, #tpu.memory_space<vmem>>, vector<1x256xf32>
    tpu.vector_store %arg8[%c11_247, %c0_248], %418 {strides = array<i32>} : memref<37x256xf32, #tpu.memory_space<vmem>>, vector<1x256xf32>,
    %420 = vector.extract_strided_slice %413 {offsets = [0, 19], sizes = [1, 256], strides = [1, 1]} : vector<1x324xf32> to vector<1x256xf32>
    %421 = arith.mulf %420, %378 : vector<1x256xf32>
    %c12_249 = arith.constant 12 : index
    %c0_250 = arith.constant 0 : index
    %422 = vector.load %arg8[%c12_249, %c0_250] : memref<37x256xf32, #tpu.memory_space<vmem>>, vector<1x256xf32>
    tpu.vector_store %arg8[%c12_249, %c0_250], %421 {strides = array<i32>} : memref<37x256xf32, #tpu.memory_space<vmem>>, vector<1x256xf32>,
    %423 = vector.extract_strided_slice %413 {offsets = [0, 33], sizes = [1, 256], strides = [1, 1]} : vector<1x324xf32> to vector<1x256xf32>
    %424 = arith.mulf %423, %379 : vector<1x256xf32>
    %c13_251 = arith.constant 13 : index
    %c0_252 = arith.constant 0 : index
    %425 = vector.load %arg8[%c13_251, %c0_252] : memref<37x256xf32, #tpu.memory_space<vmem>>, vector<1x256xf32>
    tpu.vector_store %arg8[%c13_251, %c0_252], %424 {strides = array<i32>} : memref<37x256xf32, #tpu.memory_space<vmem>>, vector<1x256xf32>,
    %426 = vector.extract_strided_slice %413 {offsets = [0, 34], sizes = [1, 256], strides = [1, 1]} : vector<1x324xf32> to vector<1x256xf32>
    %427 = arith.mulf %426, %380 : vector<1x256xf32>
    %c14_253 = arith.constant 14 : index
    %c0_254 = arith.constant 0 : index
    %428 = vector.load %arg8[%c14_253, %c0_254] : memref<37x256xf32, #tpu.memory_space<vmem>>, vector<1x256xf32>
    tpu.vector_store %arg8[%c14_253, %c0_254], %427 {strides = array<i32>} : memref<37x256xf32, #tpu.memory_space<vmem>>, vector<1x256xf32>,
    %429 = vector.extract_strided_slice %413 {offsets = [0, 35], sizes = [1, 256], strides = [1, 1]} : vector<1x324xf32> to vector<1x256xf32>
    %430 = arith.mulf %429, %381 : vector<1x256xf32>
    %c15_255 = arith.constant 15 : index
    %c0_256 = arith.constant 0 : index
    %431 = vector.load %arg8[%c15_255, %c0_256] : memref<37x256xf32, #tpu.memory_space<vmem>>, vector<1x256xf32>
    tpu.vector_store %arg8[%c15_255, %c0_256], %430 {strides = array<i32>} : memref<37x256xf32, #tpu.memory_space<vmem>>, vector<1x256xf32>,
    %432 = vector.extract_strided_slice %413 {offsets = [0, 49], sizes = [1, 256], strides = [1, 1]} : vector<1x324xf32> to vector<1x256xf32>
    %433 = arith.mulf %432, %382 : vector<1x256xf32>
    %c16_257 = arith.constant 16 : index
    %c0_258 = arith.constant 0 : index
    %434 = vector.load %arg8[%c16_257, %c0_258] : memref<37x256xf32, #tpu.memory_space<vmem>>, vector<1x256xf32>
    tpu.vector_store %arg8[%c16_257, %c0_258], %433 {strides = array<i32>} : memref<37x256xf32, #tpu.memory_space<vmem>>, vector<1x256xf32>,
    %435 = vector.extract_strided_slice %413 {offsets = [0, 50], sizes = [1, 256], strides = [1, 1]} : vector<1x324xf32> to vector<1x256xf32>
    %436 = arith.mulf %435, %383 : vector<1x256xf32>
    %c17_259 = arith.constant 17 : index
    %c0_260 = arith.constant 0 : index
    %437 = vector.load %arg8[%c17_259, %c0_260] : memref<37x256xf32, #tpu.memory_space<vmem>>, vector<1x256xf32>
    tpu.vector_store %arg8[%c17_259, %c0_260], %436 {strides = array<i32>} : memref<37x256xf32, #tpu.memory_space<vmem>>, vector<1x256xf32>,
    %438 = vector.extract_strided_slice %413 {offsets = [0, 51], sizes = [1, 256], strides = [1, 1]} : vector<1x324xf32> to vector<1x256xf32>
    %439 = arith.mulf %438, %384 : vector<1x256xf32>
    %c18_261 = arith.constant 18 : index
    %c0_262 = arith.constant 0 : index
    %440 = vector.load %arg8[%c18_261, %c0_262] : memref<37x256xf32, #tpu.memory_space<vmem>>, vector<1x256xf32>
    tpu.vector_store %arg8[%c18_261, %c0_262], %439 {strides = array<i32>} : memref<37x256xf32, #tpu.memory_space<vmem>>, vector<1x256xf32>,
    %c3_263 = arith.constant 3 : index
    %c0_264 = arith.constant 0 : index
    %c0_265 = arith.constant 0 : index
    %441 = vector.load %arg2[%c3_263, %c0_264, %c0_265] : memref<10x4x37xf32, #tpu.memory_space<vmem>>, vector<1x4x37xf32>
    %442 = vector.shape_cast %441 : vector<1x4x37xf32> to vector<4x37xf32>
    %443 = vector.extract_strided_slice %442 {offsets = [0, 0], sizes = [4, 19], strides = [1, 1]} : vector<4x37xf32> to vector<4x19xf32>
    %c0_266 = arith.constant 0 : index
    %c0_267 = arith.constant 0 : index
    %444 = vector.load %arg8[%c0_266, %c0_267] : memref<37x256xf32, #tpu.memory_space<vmem>>, vector<19x256xf32>
    %cst_268 = arith.constant dense<0.000000e+00> : vector<4x256xf32>
    %445 = tpu.matmul %443, %444, %cst_268 {dimension_numbers = #tpu.dot_dimension_numbers<[1], [0], [0], [1], [0, 0, 1, 1], [], []>} : vector<4x19xf32>, vector<19x256xf32>, vector<4x256xf32> -> vector<4x256xf32>
    %c0_269 = arith.constant 0 : index
    %c0_270 = arith.constant 0 : index
    %446 = vector.load %arg7[%c0_269, %c0_270] : memref<4x256xf32, #tpu.memory_space<vmem>>, vector<4x256xf32>
    %447 = arith.addf %445, %446 : vector<4x256xf32>
    %c0_271 = arith.constant 0 : index
    %c0_272 = arith.constant 0 : index
    %448 = vector.load %arg7[%c0_271, %c0_272] : memref<4x256xf32, #tpu.memory_space<vmem>>, vector<4x256xf32>
    tpu.vector_store %arg7[%c0_271, %c0_272], %447 {strides = array<i32>} : memref<4x256xf32, #tpu.memory_space<vmem>>, vector<4x256xf32>,
    %449 = vector.extract_strided_slice %447 {offsets = [0, 0], sizes = [2, 256], strides = [1, 1]} : vector<4x256xf32> to vector<2x256xf32>
    %450 = vector.extract_strided_slice %447 {offsets = [2, 0], sizes = [2, 256], strides = [1, 1]} : vector<4x256xf32> to vector<2x256xf32>
    %cst_273 = arith.constant 0.000000e+00 : f32
    %451 = vector.broadcast %cst_273 : f32 to vector<2x256xf32>
    %452 = arith.cmpf oge, %449, %451 : vector<2x256xf32>
    %453 = vector.broadcast %1 : f32 to vector<2x256xf32>
    %454 = arith.mulf %453, %449 : vector<2x256xf32>
    %455 = arith.select %452, %449, %454 : vector<2x256xi1>, vector<2x256xf32>
    %456 = arith.negf %450 : vector<2x256xf32>
    %457 = math.exp %456 : vector<2x256xf32>
    %cst_274 = arith.constant 1.000000e+00 : f32
    %458 = vector.broadcast %cst_274 : f32 to vector<2x256xf32>
    %459 = arith.addf %458, %457 : vector<2x256xf32>
    %460 = arith.divf %458, %459 : vector<2x256xf32>
    %461 = arith.mulf %455, %460 : vector<2x256xf32>
    %c0_275 = arith.constant 0 : index
    %c34_276 = arith.constant 34 : index
    %462 = vector.load %arg6[%c0_275, %c34_276] : memref<4x324xf32, #tpu.memory_space<vmem>>, vector<2x256xf32>
    tpu.vector_store %arg6[%c0_275, %c34_276], %461 {strides = array<i32>} : memref<4x324xf32, #tpu.memory_space<vmem>>, vector<2x256xf32>,
    %c4_277 = arith.constant 4 : index
    %c0_278 = arith.constant 0 : index
    %c0_279 = arith.constant 0 : index
    %463 = vector.load %arg3[%c4_277, %c0_278, %c0_279] : memref<10x9x256xf32, #tpu.memory_space<vmem>>, vector<1x9x256xf32>
    %464 = vector.shape_cast %463 : vector<1x9x256xf32> to vector<9x256xf32>
    %465 = vector.extract_strided_slice %464 {offsets = [0, 0], sizes = [1, 256], strides = [1, 1]} : vector<9x256xf32> to vector<1x256xf32>
    %466 = vector.extract_strided_slice %464 {offsets = [1, 0], sizes = [1, 256], strides = [1, 1]} : vector<9x256xf32> to vector<1x256xf32>
    %467 = vector.extract_strided_slice %464 {offsets = [2, 0], sizes = [1, 256], strides = [1, 1]} : vector<9x256xf32> to vector<1x256xf32>
    %468 = vector.extract_strided_slice %464 {offsets = [3, 0], sizes = [1, 256], strides = [1, 1]} : vector<9x256xf32> to vector<1x256xf32>
    %469 = vector.extract_strided_slice %464 {offsets = [4, 0], sizes = [1, 256], strides = [1, 1]} : vector<9x256xf32> to vector<1x256xf32>
    %470 = vector.extract_strided_slice %464 {offsets = [5, 0], sizes = [1, 256], strides = [1, 1]} : vector<9x256xf32> to vector<1x256xf32>
    %471 = vector.extract_strided_slice %464 {offsets = [6, 0], sizes = [1, 256], strides = [1, 1]} : vector<9x256xf32> to vector<1x256xf32>
    %472 = vector.extract_strided_slice %464 {offsets = [7, 0], sizes = [1, 256], strides = [1, 1]} : vector<9x256xf32> to vector<1x256xf32>
    %473 = vector.extract_strided_slice %464 {offsets = [8, 0], sizes = [1, 256], strides = [1, 1]} : vector<9x256xf32> to vector<1x256xf32>
    %c0_280 = arith.constant 0 : index
    %c0_281 = arith.constant 0 : index
    %474 = vector.load %arg6[%c0_280, %c0_281] : memref<4x324xf32, #tpu.memory_space<vmem>>, vector<1x324xf32>
    %475 = vector.extract_strided_slice %474 {offsets = [0, 0], sizes = [1, 256], strides = [1, 1]} : vector<1x324xf32> to vector<1x256xf32>
    %476 = arith.mulf %475, %465 : vector<1x256xf32>
    %c1_282 = arith.constant 1 : index
    %c0_283 = arith.constant 0 : index
    %477 = vector.load %arg8[%c1_282, %c0_283] : memref<37x256xf32, #tpu.memory_space<vmem>>, vector<1x256xf32>
    tpu.vector_store %arg8[%c1_282, %c0_283], %476 {strides = array<i32>} : memref<37x256xf32, #tpu.memory_space<vmem>>, vector<1x256xf32>,
    %478 = vector.extract_strided_slice %474 {offsets = [0, 2], sizes = [1, 256], strides = [1, 1]} : vector<1x324xf32> to vector<1x256xf32>
    %479 = arith.mulf %478, %466 : vector<1x256xf32>
    %c2_284 = arith.constant 2 : index
    %c0_285 = arith.constant 0 : index
    %480 = vector.load %arg8[%c2_284, %c0_285] : memref<37x256xf32, #tpu.memory_space<vmem>>, vector<1x256xf32>
    tpu.vector_store %arg8[%c2_284, %c0_285], %479 {strides = array<i32>} : memref<37x256xf32, #tpu.memory_space<vmem>>, vector<1x256xf32>,
    %481 = vector.extract_strided_slice %474 {offsets = [0, 4], sizes = [1, 256], strides = [1, 1]} : vector<1x324xf32> to vector<1x256xf32>
    %482 = arith.mulf %481, %467 : vector<1x256xf32>
    %c3_286 = arith.constant 3 : index
    %c0_287 = arith.constant 0 : index
    %483 = vector.load %arg8[%c3_286, %c0_287] : memref<37x256xf32, #tpu.memory_space<vmem>>, vector<1x256xf32>
    tpu.vector_store %arg8[%c3_286, %c0_287], %482 {strides = array<i32>} : memref<37x256xf32, #tpu.memory_space<vmem>>, vector<1x256xf32>,
    %484 = vector.extract_strided_slice %474 {offsets = [0, 32], sizes = [1, 256], strides = [1, 1]} : vector<1x324xf32> to vector<1x256xf32>
    %485 = arith.mulf %484, %468 : vector<1x256xf32>
    %c4_288 = arith.constant 4 : index
    %c0_289 = arith.constant 0 : index
    %486 = vector.load %arg8[%c4_288, %c0_289] : memref<37x256xf32, #tpu.memory_space<vmem>>, vector<1x256xf32>
    tpu.vector_store %arg8[%c4_288, %c0_289], %485 {strides = array<i32>} : memref<37x256xf32, #tpu.memory_space<vmem>>, vector<1x256xf32>,
    %487 = vector.extract_strided_slice %474 {offsets = [0, 34], sizes = [1, 256], strides = [1, 1]} : vector<1x324xf32> to vector<1x256xf32>
    %488 = arith.mulf %487, %469 : vector<1x256xf32>
    %c5_290 = arith.constant 5 : index
    %c0_291 = arith.constant 0 : index
    %489 = vector.load %arg8[%c5_290, %c0_291] : memref<37x256xf32, #tpu.memory_space<vmem>>, vector<1x256xf32>
    tpu.vector_store %arg8[%c5_290, %c0_291], %488 {strides = array<i32>} : memref<37x256xf32, #tpu.memory_space<vmem>>, vector<1x256xf32>,
    %490 = vector.extract_strided_slice %474 {offsets = [0, 36], sizes = [1, 256], strides = [1, 1]} : vector<1x324xf32> to vector<1x256xf32>
    %491 = arith.mulf %490, %470 : vector<1x256xf32>
    %c6_292 = arith.constant 6 : index
    %c0_293 = arith.constant 0 : index
    %492 = vector.load %arg8[%c6_292, %c0_293] : memref<37x256xf32, #tpu.memory_space<vmem>>, vector<1x256xf32>
    tpu.vector_store %arg8[%c6_292, %c0_293], %491 {strides = array<i32>} : memref<37x256xf32, #tpu.memory_space<vmem>>, vector<1x256xf32>,
    %493 = vector.extract_strided_slice %474 {offsets = [0, 64], sizes = [1, 256], strides = [1, 1]} : vector<1x324xf32> to vector<1x256xf32>
    %494 = arith.mulf %493, %471 : vector<1x256xf32>
    %c7_294 = arith.constant 7 : index
    %c0_295 = arith.constant 0 : index
    %495 = vector.load %arg8[%c7_294, %c0_295] : memref<37x256xf32, #tpu.memory_space<vmem>>, vector<1x256xf32>
    tpu.vector_store %arg8[%c7_294, %c0_295], %494 {strides = array<i32>} : memref<37x256xf32, #tpu.memory_space<vmem>>, vector<1x256xf32>,
    %496 = vector.extract_strided_slice %474 {offsets = [0, 66], sizes = [1, 256], strides = [1, 1]} : vector<1x324xf32> to vector<1x256xf32>
    %497 = arith.mulf %496, %472 : vector<1x256xf32>
    %c8_296 = arith.constant 8 : index
    %c0_297 = arith.constant 0 : index
    %498 = vector.load %arg8[%c8_296, %c0_297] : memref<37x256xf32, #tpu.memory_space<vmem>>, vector<1x256xf32>
    tpu.vector_store %arg8[%c8_296, %c0_297], %497 {strides = array<i32>} : memref<37x256xf32, #tpu.memory_space<vmem>>, vector<1x256xf32>,
    %499 = vector.extract_strided_slice %474 {offsets = [0, 68], sizes = [1, 256], strides = [1, 1]} : vector<1x324xf32> to vector<1x256xf32>
    %500 = arith.mulf %499, %473 : vector<1x256xf32>
    %c9_298 = arith.constant 9 : index
    %c0_299 = arith.constant 0 : index
    %501 = vector.load %arg8[%c9_298, %c0_299] : memref<37x256xf32, #tpu.memory_space<vmem>>, vector<1x256xf32>
    tpu.vector_store %arg8[%c9_298, %c0_299], %500 {strides = array<i32>} : memref<37x256xf32, #tpu.memory_space<vmem>>, vector<1x256xf32>,
    %c1_300 = arith.constant 1 : index
    %c0_301 = arith.constant 0 : index
    %502 = vector.load %arg6[%c1_300, %c0_301] : memref<4x324xf32, #tpu.memory_space<vmem>>, vector<1x324xf32>
    %503 = vector.extract_strided_slice %502 {offsets = [0, 0], sizes = [1, 256], strides = [1, 1]} : vector<1x324xf32> to vector<1x256xf32>
    %504 = arith.mulf %503, %465 : vector<1x256xf32>
    %c10_302 = arith.constant 10 : index
    %c0_303 = arith.constant 0 : index
    %505 = vector.load %arg8[%c10_302, %c0_303] : memref<37x256xf32, #tpu.memory_space<vmem>>, vector<1x256xf32>
    tpu.vector_store %arg8[%c10_302, %c0_303], %504 {strides = array<i32>} : memref<37x256xf32, #tpu.memory_space<vmem>>, vector<1x256xf32>,
    %506 = vector.extract_strided_slice %502 {offsets = [0, 2], sizes = [1, 256], strides = [1, 1]} : vector<1x324xf32> to vector<1x256xf32>
    %507 = arith.mulf %506, %466 : vector<1x256xf32>
    %c11_304 = arith.constant 11 : index
    %c0_305 = arith.constant 0 : index
    %508 = vector.load %arg8[%c11_304, %c0_305] : memref<37x256xf32, #tpu.memory_space<vmem>>, vector<1x256xf32>
    tpu.vector_store %arg8[%c11_304, %c0_305], %507 {strides = array<i32>} : memref<37x256xf32, #tpu.memory_space<vmem>>, vector<1x256xf32>,
    %509 = vector.extract_strided_slice %502 {offsets = [0, 4], sizes = [1, 256], strides = [1, 1]} : vector<1x324xf32> to vector<1x256xf32>
    %510 = arith.mulf %509, %467 : vector<1x256xf32>
    %c12_306 = arith.constant 12 : index
    %c0_307 = arith.constant 0 : index
    %511 = vector.load %arg8[%c12_306, %c0_307] : memref<37x256xf32, #tpu.memory_space<vmem>>, vector<1x256xf32>
    tpu.vector_store %arg8[%c12_306, %c0_307], %510 {strides = array<i32>} : memref<37x256xf32, #tpu.memory_space<vmem>>, vector<1x256xf32>,
    %512 = vector.extract_strided_slice %502 {offsets = [0, 32], sizes = [1, 256], strides = [1, 1]} : vector<1x324xf32> to vector<1x256xf32>
    %513 = arith.mulf %512, %468 : vector<1x256xf32>
    %c13_308 = arith.constant 13 : index
    %c0_309 = arith.constant 0 : index
    %514 = vector.load %arg8[%c13_308, %c0_309] : memref<37x256xf32, #tpu.memory_space<vmem>>, vector<1x256xf32>
    tpu.vector_store %arg8[%c13_308, %c0_309], %513 {strides = array<i32>} : memref<37x256xf32, #tpu.memory_space<vmem>>, vector<1x256xf32>,
    %515 = vector.extract_strided_slice %502 {offsets = [0, 34], sizes = [1, 256], strides = [1, 1]} : vector<1x324xf32> to vector<1x256xf32>
    %516 = arith.mulf %515, %469 : vector<1x256xf32>
    %c14_310 = arith.constant 14 : index
    %c0_311 = arith.constant 0 : index
    %517 = vector.load %arg8[%c14_310, %c0_311] : memref<37x256xf32, #tpu.memory_space<vmem>>, vector<1x256xf32>
    tpu.vector_store %arg8[%c14_310, %c0_311], %516 {strides = array<i32>} : memref<37x256xf32, #tpu.memory_space<vmem>>, vector<1x256xf32>,
    %518 = vector.extract_strided_slice %502 {offsets = [0, 36], sizes = [1, 256], strides = [1, 1]} : vector<1x324xf32> to vector<1x256xf32>
    %519 = arith.mulf %518, %470 : vector<1x256xf32>
    %c15_312 = arith.constant 15 : index
    %c0_313 = arith.constant 0 : index
    %520 = vector.load %arg8[%c15_312, %c0_313] : memref<37x256xf32, #tpu.memory_space<vmem>>, vector<1x256xf32>
    tpu.vector_store %arg8[%c15_312, %c0_313], %519 {strides = array<i32>} : memref<37x256xf32, #tpu.memory_space<vmem>>, vector<1x256xf32>,
    %521 = vector.extract_strided_slice %502 {offsets = [0, 64], sizes = [1, 256], strides = [1, 1]} : vector<1x324xf32> to vector<1x256xf32>
    %522 = arith.mulf %521, %471 : vector<1x256xf32>
    %c16_314 = arith.constant 16 : index
    %c0_315 = arith.constant 0 : index
    %523 = vector.load %arg8[%c16_314, %c0_315] : memref<37x256xf32, #tpu.memory_space<vmem>>, vector<1x256xf32>
    tpu.vector_store %arg8[%c16_314, %c0_315], %522 {strides = array<i32>} : memref<37x256xf32, #tpu.memory_space<vmem>>, vector<1x256xf32>,
    %524 = vector.extract_strided_slice %502 {offsets = [0, 66], sizes = [1, 256], strides = [1, 1]} : vector<1x324xf32> to vector<1x256xf32>
    %525 = arith.mulf %524, %472 : vector<1x256xf32>
    %c17_316 = arith.constant 17 : index
    %c0_317 = arith.constant 0 : index
    %526 = vector.load %arg8[%c17_316, %c0_317] : memref<37x256xf32, #tpu.memory_space<vmem>>, vector<1x256xf32>
    tpu.vector_store %arg8[%c17_316, %c0_317], %525 {strides = array<i32>} : memref<37x256xf32, #tpu.memory_space<vmem>>, vector<1x256xf32>,
    %527 = vector.extract_strided_slice %502 {offsets = [0, 68], sizes = [1, 256], strides = [1, 1]} : vector<1x324xf32> to vector<1x256xf32>
    %528 = arith.mulf %527, %473 : vector<1x256xf32>
    %c18_318 = arith.constant 18 : index
    %c0_319 = arith.constant 0 : index
    %529 = vector.load %arg8[%c18_318, %c0_319] : memref<37x256xf32, #tpu.memory_space<vmem>>, vector<1x256xf32>
    tpu.vector_store %arg8[%c18_318, %c0_319], %528 {strides = array<i32>} : memref<37x256xf32, #tpu.memory_space<vmem>>, vector<1x256xf32>,
    %c4_320 = arith.constant 4 : index
    %c0_321 = arith.constant 0 : index
    %c0_322 = arith.constant 0 : index
    %530 = vector.load %arg2[%c4_320, %c0_321, %c0_322] : memref<10x4x37xf32, #tpu.memory_space<vmem>>, vector<1x4x37xf32>
    %531 = vector.shape_cast %530 : vector<1x4x37xf32> to vector<4x37xf32>
    %532 = vector.extract_strided_slice %531 {offsets = [0, 0], sizes = [4, 19], strides = [1, 1]} : vector<4x37xf32> to vector<4x19xf32>
    %c0_323 = arith.constant 0 : index
    %c0_324 = arith.constant 0 : index
    %533 = vector.load %arg8[%c0_323, %c0_324] : memref<37x256xf32, #tpu.memory_space<vmem>>, vector<19x256xf32>
    %cst_325 = arith.constant dense<0.000000e+00> : vector<4x256xf32>
    %534 = tpu.matmul %532, %533, %cst_325 {dimension_numbers = #tpu.dot_dimension_numbers<[1], [0], [0], [1], [0, 0, 1, 1], [], []>} : vector<4x19xf32>, vector<19x256xf32>, vector<4x256xf32> -> vector<4x256xf32>
    %c0_326 = arith.constant 0 : index
    %c0_327 = arith.constant 0 : index
    %535 = vector.load %arg7[%c0_326, %c0_327] : memref<4x256xf32, #tpu.memory_space<vmem>>, vector<4x256xf32>
    %536 = arith.addf %534, %535 : vector<4x256xf32>
    %c0_328 = arith.constant 0 : index
    %c0_329 = arith.constant 0 : index
    %537 = vector.load %arg7[%c0_328, %c0_329] : memref<4x256xf32, #tpu.memory_space<vmem>>, vector<4x256xf32>
    tpu.vector_store %arg7[%c0_328, %c0_329], %536 {strides = array<i32>} : memref<4x256xf32, #tpu.memory_space<vmem>>, vector<4x256xf32>,
    %538 = vector.extract_strided_slice %536 {offsets = [0, 0], sizes = [2, 256], strides = [1, 1]} : vector<4x256xf32> to vector<2x256xf32>
    %539 = vector.extract_strided_slice %536 {offsets = [2, 0], sizes = [2, 256], strides = [1, 1]} : vector<4x256xf32> to vector<2x256xf32>
    %cst_330 = arith.constant 0.000000e+00 : f32
    %540 = vector.broadcast %cst_330 : f32 to vector<2x256xf32>
    %541 = arith.cmpf oge, %538, %540 : vector<2x256xf32>
    %542 = vector.broadcast %1 : f32 to vector<2x256xf32>
    %543 = arith.mulf %542, %538 : vector<2x256xf32>
    %544 = arith.select %541, %538, %543 : vector<2x256xi1>, vector<2x256xf32>
    %545 = arith.negf %539 : vector<2x256xf32>
    %546 = math.exp %545 : vector<2x256xf32>
    %cst_331 = arith.constant 1.000000e+00 : f32
    %547 = vector.broadcast %cst_331 : f32 to vector<2x256xf32>
    %548 = arith.addf %547, %546 : vector<2x256xf32>
    %549 = arith.divf %547, %548 : vector<2x256xf32>
    %550 = arith.mulf %544, %549 : vector<2x256xf32>
    %c0_332 = arith.constant 0 : index
    %c34_333 = arith.constant 34 : index
    %551 = vector.load %arg6[%c0_332, %c34_333] : memref<4x324xf32, #tpu.memory_space<vmem>>, vector<2x256xf32>
    tpu.vector_store %arg6[%c0_332, %c34_333], %550 {strides = array<i32>} : memref<4x324xf32, #tpu.memory_space<vmem>>, vector<2x256xf32>,
    %c5_334 = arith.constant 5 : index
    %c0_335 = arith.constant 0 : index
    %c0_336 = arith.constant 0 : index
    %552 = vector.load %arg3[%c5_334, %c0_335, %c0_336] : memref<10x9x256xf32, #tpu.memory_space<vmem>>, vector<1x9x256xf32>
    %553 = vector.shape_cast %552 : vector<1x9x256xf32> to vector<9x256xf32>
    %554 = vector.extract_strided_slice %553 {offsets = [0, 0], sizes = [1, 256], strides = [1, 1]} : vector<9x256xf32> to vector<1x256xf32>
    %555 = vector.extract_strided_slice %553 {offsets = [1, 0], sizes = [1, 256], strides = [1, 1]} : vector<9x256xf32> to vector<1x256xf32>
    %556 = vector.extract_strided_slice %553 {offsets = [2, 0], sizes = [1, 256], strides = [1, 1]} : vector<9x256xf32> to vector<1x256xf32>
    %557 = vector.extract_strided_slice %553 {offsets = [3, 0], sizes = [1, 256], strides = [1, 1]} : vector<9x256xf32> to vector<1x256xf32>
    %558 = vector.extract_strided_slice %553 {offsets = [4, 0], sizes = [1, 256], strides = [1, 1]} : vector<9x256xf32> to vector<1x256xf32>
    %559 = vector.extract_strided_slice %553 {offsets = [5, 0], sizes = [1, 256], strides = [1, 1]} : vector<9x256xf32> to vector<1x256xf32>
    %560 = vector.extract_strided_slice %553 {offsets = [6, 0], sizes = [1, 256], strides = [1, 1]} : vector<9x256xf32> to vector<1x256xf32>
    %561 = vector.extract_strided_slice %553 {offsets = [7, 0], sizes = [1, 256], strides = [1, 1]} : vector<9x256xf32> to vector<1x256xf32>
    %562 = vector.extract_strided_slice %553 {offsets = [8, 0], sizes = [1, 256], strides = [1, 1]} : vector<9x256xf32> to vector<1x256xf32>
    %c0_337 = arith.constant 0 : index
    %c0_338 = arith.constant 0 : index
    %563 = vector.load %arg6[%c0_337, %c0_338] : memref<4x324xf32, #tpu.memory_space<vmem>>, vector<1x324xf32>
    %564 = vector.extract_strided_slice %563 {offsets = [0, 17], sizes = [1, 256], strides = [1, 1]} : vector<1x324xf32> to vector<1x256xf32>
    %565 = arith.mulf %564, %554 : vector<1x256xf32>
    %c1_339 = arith.constant 1 : index
    %c0_340 = arith.constant 0 : index
    %566 = vector.load %arg8[%c1_339, %c0_340] : memref<37x256xf32, #tpu.memory_space<vmem>>, vector<1x256xf32>
    tpu.vector_store %arg8[%c1_339, %c0_340], %565 {strides = array<i32>} : memref<37x256xf32, #tpu.memory_space<vmem>>, vector<1x256xf32>,
    %567 = vector.extract_strided_slice %563 {offsets = [0, 18], sizes = [1, 256], strides = [1, 1]} : vector<1x324xf32> to vector<1x256xf32>
    %568 = arith.mulf %567, %555 : vector<1x256xf32>
    %c2_341 = arith.constant 2 : index
    %c0_342 = arith.constant 0 : index
    %569 = vector.load %arg8[%c2_341, %c0_342] : memref<37x256xf32, #tpu.memory_space<vmem>>, vector<1x256xf32>
    tpu.vector_store %arg8[%c2_341, %c0_342], %568 {strides = array<i32>} : memref<37x256xf32, #tpu.memory_space<vmem>>, vector<1x256xf32>,
    %570 = vector.extract_strided_slice %563 {offsets = [0, 19], sizes = [1, 256], strides = [1, 1]} : vector<1x324xf32> to vector<1x256xf32>
    %571 = arith.mulf %570, %556 : vector<1x256xf32>
    %c3_343 = arith.constant 3 : index
    %c0_344 = arith.constant 0 : index
    %572 = vector.load %arg8[%c3_343, %c0_344] : memref<37x256xf32, #tpu.memory_space<vmem>>, vector<1x256xf32>
    tpu.vector_store %arg8[%c3_343, %c0_344], %571 {strides = array<i32>} : memref<37x256xf32, #tpu.memory_space<vmem>>, vector<1x256xf32>,
    %573 = vector.extract_strided_slice %563 {offsets = [0, 33], sizes = [1, 256], strides = [1, 1]} : vector<1x324xf32> to vector<1x256xf32>
    %574 = arith.mulf %573, %557 : vector<1x256xf32>
    %c4_345 = arith.constant 4 : index
    %c0_346 = arith.constant 0 : index
    %575 = vector.load %arg8[%c4_345, %c0_346] : memref<37x256xf32, #tpu.memory_space<vmem>>, vector<1x256xf32>
    tpu.vector_store %arg8[%c4_345, %c0_346], %574 {strides = array<i32>} : memref<37x256xf32, #tpu.memory_space<vmem>>, vector<1x256xf32>,
    %576 = vector.extract_strided_slice %563 {offsets = [0, 34], sizes = [1, 256], strides = [1, 1]} : vector<1x324xf32> to vector<1x256xf32>
    %577 = arith.mulf %576, %558 : vector<1x256xf32>
    %c5_347 = arith.constant 5 : index
    %c0_348 = arith.constant 0 : index
    %578 = vector.load %arg8[%c5_347, %c0_348] : memref<37x256xf32, #tpu.memory_space<vmem>>, vector<1x256xf32>
    tpu.vector_store %arg8[%c5_347, %c0_348], %577 {strides = array<i32>} : memref<37x256xf32, #tpu.memory_space<vmem>>, vector<1x256xf32>,
    %579 = vector.extract_strided_slice %563 {offsets = [0, 35], sizes = [1, 256], strides = [1, 1]} : vector<1x324xf32> to vector<1x256xf32>
    %580 = arith.mulf %579, %559 : vector<1x256xf32>
    %c6_349 = arith.constant 6 : index
    %c0_350 = arith.constant 0 : index
    %581 = vector.load %arg8[%c6_349, %c0_350] : memref<37x256xf32, #tpu.memory_space<vmem>>, vector<1x256xf32>
    tpu.vector_store %arg8[%c6_349, %c0_350], %580 {strides = array<i32>} : memref<37x256xf32, #tpu.memory_space<vmem>>, vector<1x256xf32>,
    %582 = vector.extract_strided_slice %563 {offsets = [0, 49], sizes = [1, 256], strides = [1, 1]} : vector<1x324xf32> to vector<1x256xf32>
    %583 = arith.mulf %582, %560 : vector<1x256xf32>
    %c7_351 = arith.constant 7 : index
    %c0_352 = arith.constant 0 : index
    %584 = vector.load %arg8[%c7_351, %c0_352] : memref<37x256xf32, #tpu.memory_space<vmem>>, vector<1x256xf32>
    tpu.vector_store %arg8[%c7_351, %c0_352], %583 {strides = array<i32>} : memref<37x256xf32, #tpu.memory_space<vmem>>, vector<1x256xf32>,
    %585 = vector.extract_strided_slice %563 {offsets = [0, 50], sizes = [1, 256], strides = [1, 1]} : vector<1x324xf32> to vector<1x256xf32>
    %586 = arith.mulf %585, %561 : vector<1x256xf32>
    %c8_353 = arith.constant 8 : index
    %c0_354 = arith.constant 0 : index
    %587 = vector.load %arg8[%c8_353, %c0_354] : memref<37x256xf32, #tpu.memory_space<vmem>>, vector<1x256xf32>
    tpu.vector_store %arg8[%c8_353, %c0_354], %586 {strides = array<i32>} : memref<37x256xf32, #tpu.memory_space<vmem>>, vector<1x256xf32>,
    %588 = vector.extract_strided_slice %563 {offsets = [0, 51], sizes = [1, 256], strides = [1, 1]} : vector<1x324xf32> to vector<1x256xf32>
    %589 = arith.mulf %588, %562 : vector<1x256xf32>
    %c9_355 = arith.constant 9 : index
    %c0_356 = arith.constant 0 : index
    %590 = vector.load %arg8[%c9_355, %c0_356] : memref<37x256xf32, #tpu.memory_space<vmem>>, vector<1x256xf32>
    tpu.vector_store %arg8[%c9_355, %c0_356], %589 {strides = array<i32>} : memref<37x256xf32, #tpu.memory_space<vmem>>, vector<1x256xf32>,
    %c1_357 = arith.constant 1 : index
    %c0_358 = arith.constant 0 : index
    %591 = vector.load %arg6[%c1_357, %c0_358] : memref<4x324xf32, #tpu.memory_space<vmem>>, vector<1x324xf32>
    %592 = vector.extract_strided_slice %591 {offsets = [0, 17], sizes = [1, 256], strides = [1, 1]} : vector<1x324xf32> to vector<1x256xf32>
    %593 = arith.mulf %592, %554 : vector<1x256xf32>
    %c10_359 = arith.constant 10 : index
    %c0_360 = arith.constant 0 : index
    %594 = vector.load %arg8[%c10_359, %c0_360] : memref<37x256xf32, #tpu.memory_space<vmem>>, vector<1x256xf32>
    tpu.vector_store %arg8[%c10_359, %c0_360], %593 {strides = array<i32>} : memref<37x256xf32, #tpu.memory_space<vmem>>, vector<1x256xf32>,
    %595 = vector.extract_strided_slice %591 {offsets = [0, 18], sizes = [1, 256], strides = [1, 1]} : vector<1x324xf32> to vector<1x256xf32>
    %596 = arith.mulf %595, %555 : vector<1x256xf32>
    %c11_361 = arith.constant 11 : index
    %c0_362 = arith.constant 0 : index
    %597 = vector.load %arg8[%c11_361, %c0_362] : memref<37x256xf32, #tpu.memory_space<vmem>>, vector<1x256xf32>
    tpu.vector_store %arg8[%c11_361, %c0_362], %596 {strides = array<i32>} : memref<37x256xf32, #tpu.memory_space<vmem>>, vector<1x256xf32>,
    %598 = vector.extract_strided_slice %591 {offsets = [0, 19], sizes = [1, 256], strides = [1, 1]} : vector<1x324xf32> to vector<1x256xf32>
    %599 = arith.mulf %598, %556 : vector<1x256xf32>
    %c12_363 = arith.constant 12 : index
    %c0_364 = arith.constant 0 : index
    %600 = vector.load %arg8[%c12_363, %c0_364] : memref<37x256xf32, #tpu.memory_space<vmem>>, vector<1x256xf32>
    tpu.vector_store %arg8[%c12_363, %c0_364], %599 {strides = array<i32>} : memref<37x256xf32, #tpu.memory_space<vmem>>, vector<1x256xf32>,
    %601 = vector.extract_strided_slice %591 {offsets = [0, 33], sizes = [1, 256], strides = [1, 1]} : vector<1x324xf32> to vector<1x256xf32>
    %602 = arith.mulf %601, %557 : vector<1x256xf32>
    %c13_365 = arith.constant 13 : index
    %c0_366 = arith.constant 0 : index
    %603 = vector.load %arg8[%c13_365, %c0_366] : memref<37x256xf32, #tpu.memory_space<vmem>>, vector<1x256xf32>
    tpu.vector_store %arg8[%c13_365, %c0_366], %602 {strides = array<i32>} : memref<37x256xf32, #tpu.memory_space<vmem>>, vector<1x256xf32>,
    %604 = vector.extract_strided_slice %591 {offsets = [0, 34], sizes = [1, 256], strides = [1, 1]} : vector<1x324xf32> to vector<1x256xf32>
    %605 = arith.mulf %604, %558 : vector<1x256xf32>
    %c14_367 = arith.constant 14 : index
    %c0_368 = arith.constant 0 : index
    %606 = vector.load %arg8[%c14_367, %c0_368] : memref<37x256xf32, #tpu.memory_space<vmem>>, vector<1x256xf32>
    tpu.vector_store %arg8[%c14_367, %c0_368], %605 {strides = array<i32>} : memref<37x256xf32, #tpu.memory_space<vmem>>, vector<1x256xf32>,
    %607 = vector.extract_strided_slice %591 {offsets = [0, 35], sizes = [1, 256], strides = [1, 1]} : vector<1x324xf32> to vector<1x256xf32>
    %608 = arith.mulf %607, %559 : vector<1x256xf32>
    %c15_369 = arith.constant 15 : index
    %c0_370 = arith.constant 0 : index
    %609 = vector.load %arg8[%c15_369, %c0_370] : memref<37x256xf32, #tpu.memory_space<vmem>>, vector<1x256xf32>
    tpu.vector_store %arg8[%c15_369, %c0_370], %608 {strides = array<i32>} : memref<37x256xf32, #tpu.memory_space<vmem>>, vector<1x256xf32>,
    %610 = vector.extract_strided_slice %591 {offsets = [0, 49], sizes = [1, 256], strides = [1, 1]} : vector<1x324xf32> to vector<1x256xf32>
    %611 = arith.mulf %610, %560 : vector<1x256xf32>
    %c16_371 = arith.constant 16 : index
    %c0_372 = arith.constant 0 : index
    %612 = vector.load %arg8[%c16_371, %c0_372] : memref<37x256xf32, #tpu.memory_space<vmem>>, vector<1x256xf32>
    tpu.vector_store %arg8[%c16_371, %c0_372], %611 {strides = array<i32>} : memref<37x256xf32, #tpu.memory_space<vmem>>, vector<1x256xf32>,
    %613 = vector.extract_strided_slice %591 {offsets = [0, 50], sizes = [1, 256], strides = [1, 1]} : vector<1x324xf32> to vector<1x256xf32>
    %614 = arith.mulf %613, %561 : vector<1x256xf32>
    %c17_373 = arith.constant 17 : index
    %c0_374 = arith.constant 0 : index
    %615 = vector.load %arg8[%c17_373, %c0_374] : memref<37x256xf32, #tpu.memory_space<vmem>>, vector<1x256xf32>
    tpu.vector_store %arg8[%c17_373, %c0_374], %614 {strides = array<i32>} : memref<37x256xf32, #tpu.memory_space<vmem>>, vector<1x256xf32>,
    %616 = vector.extract_strided_slice %591 {offsets = [0, 51], sizes = [1, 256], strides = [1, 1]} : vector<1x324xf32> to vector<1x256xf32>
    %617 = arith.mulf %616, %562 : vector<1x256xf32>
    %c18_375 = arith.constant 18 : index
    %c0_376 = arith.constant 0 : index
    %618 = vector.load %arg8[%c18_375, %c0_376] : memref<37x256xf32, #tpu.memory_space<vmem>>, vector<1x256xf32>
    tpu.vector_store %arg8[%c18_375, %c0_376], %617 {strides = array<i32>} : memref<37x256xf32, #tpu.memory_space<vmem>>, vector<1x256xf32>,
    %c5_377 = arith.constant 5 : index
    %c0_378 = arith.constant 0 : index
    %c0_379 = arith.constant 0 : index
    %619 = vector.load %arg2[%c5_377, %c0_378, %c0_379] : memref<10x4x37xf32, #tpu.memory_space<vmem>>, vector<1x4x37xf32>
    %620 = vector.shape_cast %619 : vector<1x4x37xf32> to vector<4x37xf32>
    %621 = vector.extract_strided_slice %620 {offsets = [0, 0], sizes = [4, 19], strides = [1, 1]} : vector<4x37xf32> to vector<4x19xf32>
    %c0_380 = arith.constant 0 : index
    %c0_381 = arith.constant 0 : index
    %622 = vector.load %arg8[%c0_380, %c0_381] : memref<37x256xf32, #tpu.memory_space<vmem>>, vector<19x256xf32>
    %cst_382 = arith.constant dense<0.000000e+00> : vector<4x256xf32>
    %623 = tpu.matmul %621, %622, %cst_382 {dimension_numbers = #tpu.dot_dimension_numbers<[1], [0], [0], [1], [0, 0, 1, 1], [], []>} : vector<4x19xf32>, vector<19x256xf32>, vector<4x256xf32> -> vector<4x256xf32>
    %c0_383 = arith.constant 0 : index
    %c0_384 = arith.constant 0 : index
    %624 = vector.load %arg7[%c0_383, %c0_384] : memref<4x256xf32, #tpu.memory_space<vmem>>, vector<4x256xf32>
    %625 = arith.addf %623, %624 : vector<4x256xf32>
    %c0_385 = arith.constant 0 : index
    %c0_386 = arith.constant 0 : index
    %626 = vector.load %arg7[%c0_385, %c0_386] : memref<4x256xf32, #tpu.memory_space<vmem>>, vector<4x256xf32>
    tpu.vector_store %arg7[%c0_385, %c0_386], %625 {strides = array<i32>} : memref<4x256xf32, #tpu.memory_space<vmem>>, vector<4x256xf32>,
    %627 = vector.extract_strided_slice %625 {offsets = [0, 0], sizes = [2, 256], strides = [1, 1]} : vector<4x256xf32> to vector<2x256xf32>
    %628 = vector.extract_strided_slice %625 {offsets = [2, 0], sizes = [2, 256], strides = [1, 1]} : vector<4x256xf32> to vector<2x256xf32>
    %cst_387 = arith.constant 0.000000e+00 : f32
    %629 = vector.broadcast %cst_387 : f32 to vector<2x256xf32>
    %630 = arith.cmpf oge, %627, %629 : vector<2x256xf32>
    %631 = vector.broadcast %1 : f32 to vector<2x256xf32>
    %632 = arith.mulf %631, %627 : vector<2x256xf32>
    %633 = arith.select %630, %627, %632 : vector<2x256xi1>, vector<2x256xf32>
    %634 = arith.negf %628 : vector<2x256xf32>
    %635 = math.exp %634 : vector<2x256xf32>
    %cst_388 = arith.constant 1.000000e+00 : f32
    %636 = vector.broadcast %cst_388 : f32 to vector<2x256xf32>
    %637 = arith.addf %636, %635 : vector<2x256xf32>
    %638 = arith.divf %636, %637 : vector<2x256xf32>
    %639 = arith.mulf %633, %638 : vector<2x256xf32>
    %c0_389 = arith.constant 0 : index
    %c34_390 = arith.constant 34 : index
    %640 = vector.load %arg6[%c0_389, %c34_390] : memref<4x324xf32, #tpu.memory_space<vmem>>, vector<2x256xf32>
    tpu.vector_store %arg6[%c0_389, %c34_390], %639 {strides = array<i32>} : memref<4x324xf32, #tpu.memory_space<vmem>>, vector<2x256xf32>,
    %c6_391 = arith.constant 6 : index
    %c0_392 = arith.constant 0 : index
    %c0_393 = arith.constant 0 : index
    %641 = vector.load %arg3[%c6_391, %c0_392, %c0_393] : memref<10x9x256xf32, #tpu.memory_space<vmem>>, vector<1x9x256xf32>
    %642 = vector.shape_cast %641 : vector<1x9x256xf32> to vector<9x256xf32>
    %643 = vector.extract_strided_slice %642 {offsets = [0, 0], sizes = [1, 256], strides = [1, 1]} : vector<9x256xf32> to vector<1x256xf32>
    %644 = vector.extract_strided_slice %642 {offsets = [1, 0], sizes = [1, 256], strides = [1, 1]} : vector<9x256xf32> to vector<1x256xf32>
    %645 = vector.extract_strided_slice %642 {offsets = [2, 0], sizes = [1, 256], strides = [1, 1]} : vector<9x256xf32> to vector<1x256xf32>
    %646 = vector.extract_strided_slice %642 {offsets = [3, 0], sizes = [1, 256], strides = [1, 1]} : vector<9x256xf32> to vector<1x256xf32>
    %647 = vector.extract_strided_slice %642 {offsets = [4, 0], sizes = [1, 256], strides = [1, 1]} : vector<9x256xf32> to vector<1x256xf32>
    %648 = vector.extract_strided_slice %642 {offsets = [5, 0], sizes = [1, 256], strides = [1, 1]} : vector<9x256xf32> to vector<1x256xf32>
    %649 = vector.extract_strided_slice %642 {offsets = [6, 0], sizes = [1, 256], strides = [1, 1]} : vector<9x256xf32> to vector<1x256xf32>
    %650 = vector.extract_strided_slice %642 {offsets = [7, 0], sizes = [1, 256], strides = [1, 1]} : vector<9x256xf32> to vector<1x256xf32>
    %651 = vector.extract_strided_slice %642 {offsets = [8, 0], sizes = [1, 256], strides = [1, 1]} : vector<9x256xf32> to vector<1x256xf32>
    %c0_394 = arith.constant 0 : index
    %c0_395 = arith.constant 0 : index
    %652 = vector.load %arg6[%c0_394, %c0_395] : memref<4x324xf32, #tpu.memory_space<vmem>>, vector<1x324xf32>
    %653 = vector.extract_strided_slice %652 {offsets = [0, 0], sizes = [1, 256], strides = [1, 1]} : vector<1x324xf32> to vector<1x256xf32>
    %654 = arith.mulf %653, %643 : vector<1x256xf32>
    %c1_396 = arith.constant 1 : index
    %c0_397 = arith.constant 0 : index
    %655 = vector.load %arg8[%c1_396, %c0_397] : memref<37x256xf32, #tpu.memory_space<vmem>>, vector<1x256xf32>
    tpu.vector_store %arg8[%c1_396, %c0_397], %654 {strides = array<i32>} : memref<37x256xf32, #tpu.memory_space<vmem>>, vector<1x256xf32>,
    %656 = vector.extract_strided_slice %652 {offsets = [0, 2], sizes = [1, 256], strides = [1, 1]} : vector<1x324xf32> to vector<1x256xf32>
    %657 = arith.mulf %656, %644 : vector<1x256xf32>
    %c2_398 = arith.constant 2 : index
    %c0_399 = arith.constant 0 : index
    %658 = vector.load %arg8[%c2_398, %c0_399] : memref<37x256xf32, #tpu.memory_space<vmem>>, vector<1x256xf32>
    tpu.vector_store %arg8[%c2_398, %c0_399], %657 {strides = array<i32>} : memref<37x256xf32, #tpu.memory_space<vmem>>, vector<1x256xf32>,
    %659 = vector.extract_strided_slice %652 {offsets = [0, 4], sizes = [1, 256], strides = [1, 1]} : vector<1x324xf32> to vector<1x256xf32>
    %660 = arith.mulf %659, %645 : vector<1x256xf32>
    %c3_400 = arith.constant 3 : index
    %c0_401 = arith.constant 0 : index
    %661 = vector.load %arg8[%c3_400, %c0_401] : memref<37x256xf32, #tpu.memory_space<vmem>>, vector<1x256xf32>
    tpu.vector_store %arg8[%c3_400, %c0_401], %660 {strides = array<i32>} : memref<37x256xf32, #tpu.memory_space<vmem>>, vector<1x256xf32>,
    %662 = vector.extract_strided_slice %652 {offsets = [0, 32], sizes = [1, 256], strides = [1, 1]} : vector<1x324xf32> to vector<1x256xf32>
    %663 = arith.mulf %662, %646 : vector<1x256xf32>
    %c4_402 = arith.constant 4 : index
    %c0_403 = arith.constant 0 : index
    %664 = vector.load %arg8[%c4_402, %c0_403] : memref<37x256xf32, #tpu.memory_space<vmem>>, vector<1x256xf32>
    tpu.vector_store %arg8[%c4_402, %c0_403], %663 {strides = array<i32>} : memref<37x256xf32, #tpu.memory_space<vmem>>, vector<1x256xf32>,
    %665 = vector.extract_strided_slice %652 {offsets = [0, 34], sizes = [1, 256], strides = [1, 1]} : vector<1x324xf32> to vector<1x256xf32>
    %666 = arith.mulf %665, %647 : vector<1x256xf32>
    %c5_404 = arith.constant 5 : index
    %c0_405 = arith.constant 0 : index
    %667 = vector.load %arg8[%c5_404, %c0_405] : memref<37x256xf32, #tpu.memory_space<vmem>>, vector<1x256xf32>
    tpu.vector_store %arg8[%c5_404, %c0_405], %666 {strides = array<i32>} : memref<37x256xf32, #tpu.memory_space<vmem>>, vector<1x256xf32>,
    %668 = vector.extract_strided_slice %652 {offsets = [0, 36], sizes = [1, 256], strides = [1, 1]} : vector<1x324xf32> to vector<1x256xf32>
    %669 = arith.mulf %668, %648 : vector<1x256xf32>
    %c6_406 = arith.constant 6 : index
    %c0_407 = arith.constant 0 : index
    %670 = vector.load %arg8[%c6_406, %c0_407] : memref<37x256xf32, #tpu.memory_space<vmem>>, vector<1x256xf32>
    tpu.vector_store %arg8[%c6_406, %c0_407], %669 {strides = array<i32>} : memref<37x256xf32, #tpu.memory_space<vmem>>, vector<1x256xf32>,
    %671 = vector.extract_strided_slice %652 {offsets = [0, 64], sizes = [1, 256], strides = [1, 1]} : vector<1x324xf32> to vector<1x256xf32>
    %672 = arith.mulf %671, %649 : vector<1x256xf32>
    %c7_408 = arith.constant 7 : index
    %c0_409 = arith.constant 0 : index
    %673 = vector.load %arg8[%c7_408, %c0_409] : memref<37x256xf32, #tpu.memory_space<vmem>>, vector<1x256xf32>
    tpu.vector_store %arg8[%c7_408, %c0_409], %672 {strides = array<i32>} : memref<37x256xf32, #tpu.memory_space<vmem>>, vector<1x256xf32>,
    %674 = vector.extract_strided_slice %652 {offsets = [0, 66], sizes = [1, 256], strides = [1, 1]} : vector<1x324xf32> to vector<1x256xf32>
    %675 = arith.mulf %674, %650 : vector<1x256xf32>
    %c8_410 = arith.constant 8 : index
    %c0_411 = arith.constant 0 : index
    %676 = vector.load %arg8[%c8_410, %c0_411] : memref<37x256xf32, #tpu.memory_space<vmem>>, vector<1x256xf32>
    tpu.vector_store %arg8[%c8_410, %c0_411], %675 {strides = array<i32>} : memref<37x256xf32, #tpu.memory_space<vmem>>, vector<1x256xf32>,
    %677 = vector.extract_strided_slice %652 {offsets = [0, 68], sizes = [1, 256], strides = [1, 1]} : vector<1x324xf32> to vector<1x256xf32>
    %678 = arith.mulf %677, %651 : vector<1x256xf32>
    %c9_412 = arith.constant 9 : index
    %c0_413 = arith.constant 0 : index
    %679 = vector.load %arg8[%c9_412, %c0_413] : memref<37x256xf32, #tpu.memory_space<vmem>>, vector<1x256xf32>
    tpu.vector_store %arg8[%c9_412, %c0_413], %678 {strides = array<i32>} : memref<37x256xf32, #tpu.memory_space<vmem>>, vector<1x256xf32>,
    %c1_414 = arith.constant 1 : index
    %c0_415 = arith.constant 0 : index
    %680 = vector.load %arg6[%c1_414, %c0_415] : memref<4x324xf32, #tpu.memory_space<vmem>>, vector<1x324xf32>
    %681 = vector.extract_strided_slice %680 {offsets = [0, 0], sizes = [1, 256], strides = [1, 1]} : vector<1x324xf32> to vector<1x256xf32>
    %682 = arith.mulf %681, %643 : vector<1x256xf32>
    %c10_416 = arith.constant 10 : index
    %c0_417 = arith.constant 0 : index
    %683 = vector.load %arg8[%c10_416, %c0_417] : memref<37x256xf32, #tpu.memory_space<vmem>>, vector<1x256xf32>
    tpu.vector_store %arg8[%c10_416, %c0_417], %682 {strides = array<i32>} : memref<37x256xf32, #tpu.memory_space<vmem>>, vector<1x256xf32>,
    %684 = vector.extract_strided_slice %680 {offsets = [0, 2], sizes = [1, 256], strides = [1, 1]} : vector<1x324xf32> to vector<1x256xf32>
    %685 = arith.mulf %684, %644 : vector<1x256xf32>
    %c11_418 = arith.constant 11 : index
    %c0_419 = arith.constant 0 : index
    %686 = vector.load %arg8[%c11_418, %c0_419] : memref<37x256xf32, #tpu.memory_space<vmem>>, vector<1x256xf32>
    tpu.vector_store %arg8[%c11_418, %c0_419], %685 {strides = array<i32>} : memref<37x256xf32, #tpu.memory_space<vmem>>, vector<1x256xf32>,
    %687 = vector.extract_strided_slice %680 {offsets = [0, 4], sizes = [1, 256], strides = [1, 1]} : vector<1x324xf32> to vector<1x256xf32>
    %688 = arith.mulf %687, %645 : vector<1x256xf32>
    %c12_420 = arith.constant 12 : index
    %c0_421 = arith.constant 0 : index
    %689 = vector.load %arg8[%c12_420, %c0_421] : memref<37x256xf32, #tpu.memory_space<vmem>>, vector<1x256xf32>
    tpu.vector_store %arg8[%c12_420, %c0_421], %688 {strides = array<i32>} : memref<37x256xf32, #tpu.memory_space<vmem>>, vector<1x256xf32>,
    %690 = vector.extract_strided_slice %680 {offsets = [0, 32], sizes = [1, 256], strides = [1, 1]} : vector<1x324xf32> to vector<1x256xf32>
    %691 = arith.mulf %690, %646 : vector<1x256xf32>
    %c13_422 = arith.constant 13 : index
    %c0_423 = arith.constant 0 : index
    %692 = vector.load %arg8[%c13_422, %c0_423] : memref<37x256xf32, #tpu.memory_space<vmem>>, vector<1x256xf32>
    tpu.vector_store %arg8[%c13_422, %c0_423], %691 {strides = array<i32>} : memref<37x256xf32, #tpu.memory_space<vmem>>, vector<1x256xf32>,
    %693 = vector.extract_strided_slice %680 {offsets = [0, 34], sizes = [1, 256], strides = [1, 1]} : vector<1x324xf32> to vector<1x256xf32>
    %694 = arith.mulf %693, %647 : vector<1x256xf32>
    %c14_424 = arith.constant 14 : index
    %c0_425 = arith.constant 0 : index
    %695 = vector.load %arg8[%c14_424, %c0_425] : memref<37x256xf32, #tpu.memory_space<vmem>>, vector<1x256xf32>
    tpu.vector_store %arg8[%c14_424, %c0_425], %694 {strides = array<i32>} : memref<37x256xf32, #tpu.memory_space<vmem>>, vector<1x256xf32>,
    %696 = vector.extract_strided_slice %680 {offsets = [0, 36], sizes = [1, 256], strides = [1, 1]} : vector<1x324xf32> to vector<1x256xf32>
    %697 = arith.mulf %696, %648 : vector<1x256xf32>
    %c15_426 = arith.constant 15 : index
    %c0_427 = arith.constant 0 : index
    %698 = vector.load %arg8[%c15_426, %c0_427] : memref<37x256xf32, #tpu.memory_space<vmem>>, vector<1x256xf32>
    tpu.vector_store %arg8[%c15_426, %c0_427], %697 {strides = array<i32>} : memref<37x256xf32, #tpu.memory_space<vmem>>, vector<1x256xf32>,
    %699 = vector.extract_strided_slice %680 {offsets = [0, 64], sizes = [1, 256], strides = [1, 1]} : vector<1x324xf32> to vector<1x256xf32>
    %700 = arith.mulf %699, %649 : vector<1x256xf32>
    %c16_428 = arith.constant 16 : index
    %c0_429 = arith.constant 0 : index
    %701 = vector.load %arg8[%c16_428, %c0_429] : memref<37x256xf32, #tpu.memory_space<vmem>>, vector<1x256xf32>
    tpu.vector_store %arg8[%c16_428, %c0_429], %700 {strides = array<i32>} : memref<37x256xf32, #tpu.memory_space<vmem>>, vector<1x256xf32>,
    %702 = vector.extract_strided_slice %680 {offsets = [0, 66], sizes = [1, 256], strides = [1, 1]} : vector<1x324xf32> to vector<1x256xf32>
    %703 = arith.mulf %702, %650 : vector<1x256xf32>
    %c17_430 = arith.constant 17 : index
    %c0_431 = arith.constant 0 : index
    %704 = vector.load %arg8[%c17_430, %c0_431] : memref<37x256xf32, #tpu.memory_space<vmem>>, vector<1x256xf32>
    tpu.vector_store %arg8[%c17_430, %c0_431], %703 {strides = array<i32>} : memref<37x256xf32, #tpu.memory_space<vmem>>, vector<1x256xf32>,
    %705 = vector.extract_strided_slice %680 {offsets = [0, 68], sizes = [1, 256], strides = [1, 1]} : vector<1x324xf32> to vector<1x256xf32>
    %706 = arith.mulf %705, %651 : vector<1x256xf32>
    %c18_432 = arith.constant 18 : index
    %c0_433 = arith.constant 0 : index
    %707 = vector.load %arg8[%c18_432, %c0_433] : memref<37x256xf32, #tpu.memory_space<vmem>>, vector<1x256xf32>
    tpu.vector_store %arg8[%c18_432, %c0_433], %706 {strides = array<i32>} : memref<37x256xf32, #tpu.memory_space<vmem>>, vector<1x256xf32>,
    %c6_434 = arith.constant 6 : index
    %c0_435 = arith.constant 0 : index
    %c0_436 = arith.constant 0 : index
    %708 = vector.load %arg2[%c6_434, %c0_435, %c0_436] : memref<10x4x37xf32, #tpu.memory_space<vmem>>, vector<1x4x37xf32>
    %709 = vector.shape_cast %708 : vector<1x4x37xf32> to vector<4x37xf32>
    %710 = vector.extract_strided_slice %709 {offsets = [0, 0], sizes = [4, 19], strides = [1, 1]} : vector<4x37xf32> to vector<4x19xf32>
    %c0_437 = arith.constant 0 : index
    %c0_438 = arith.constant 0 : index
    %711 = vector.load %arg8[%c0_437, %c0_438] : memref<37x256xf32, #tpu.memory_space<vmem>>, vector<19x256xf32>
    %cst_439 = arith.constant dense<0.000000e+00> : vector<4x256xf32>
    %712 = tpu.matmul %710, %711, %cst_439 {dimension_numbers = #tpu.dot_dimension_numbers<[1], [0], [0], [1], [0, 0, 1, 1], [], []>} : vector<4x19xf32>, vector<19x256xf32>, vector<4x256xf32> -> vector<4x256xf32>
    %c0_440 = arith.constant 0 : index
    %c0_441 = arith.constant 0 : index
    %713 = vector.load %arg7[%c0_440, %c0_441] : memref<4x256xf32, #tpu.memory_space<vmem>>, vector<4x256xf32>
    %714 = arith.addf %712, %713 : vector<4x256xf32>
    %c0_442 = arith.constant 0 : index
    %c0_443 = arith.constant 0 : index
    %715 = vector.load %arg7[%c0_442, %c0_443] : memref<4x256xf32, #tpu.memory_space<vmem>>, vector<4x256xf32>
    tpu.vector_store %arg7[%c0_442, %c0_443], %714 {strides = array<i32>} : memref<4x256xf32, #tpu.memory_space<vmem>>, vector<4x256xf32>,
    %716 = vector.extract_strided_slice %714 {offsets = [0, 0], sizes = [2, 256], strides = [1, 1]} : vector<4x256xf32> to vector<2x256xf32>
    %717 = vector.extract_strided_slice %714 {offsets = [2, 0], sizes = [2, 256], strides = [1, 1]} : vector<4x256xf32> to vector<2x256xf32>
    %cst_444 = arith.constant 0.000000e+00 : f32
    %718 = vector.broadcast %cst_444 : f32 to vector<2x256xf32>
    %719 = arith.cmpf oge, %716, %718 : vector<2x256xf32>
    %720 = vector.broadcast %1 : f32 to vector<2x256xf32>
    %721 = arith.mulf %720, %716 : vector<2x256xf32>
    %722 = arith.select %719, %716, %721 : vector<2x256xi1>, vector<2x256xf32>
    %723 = arith.negf %717 : vector<2x256xf32>
    %724 = math.exp %723 : vector<2x256xf32>
    %cst_445 = arith.constant 1.000000e+00 : f32
    %725 = vector.broadcast %cst_445 : f32 to vector<2x256xf32>
    %726 = arith.addf %725, %724 : vector<2x256xf32>
    %727 = arith.divf %725, %726 : vector<2x256xf32>
    %728 = arith.mulf %722, %727 : vector<2x256xf32>
    %c0_446 = arith.constant 0 : index
    %c34_447 = arith.constant 34 : index
    %729 = vector.load %arg6[%c0_446, %c34_447] : memref<4x324xf32, #tpu.memory_space<vmem>>, vector<2x256xf32>
    tpu.vector_store %arg6[%c0_446, %c34_447], %728 {strides = array<i32>} : memref<4x324xf32, #tpu.memory_space<vmem>>, vector<2x256xf32>,
    %c7_448 = arith.constant 7 : index
    %c0_449 = arith.constant 0 : index
    %c0_450 = arith.constant 0 : index
    %730 = vector.load %arg3[%c7_448, %c0_449, %c0_450] : memref<10x9x256xf32, #tpu.memory_space<vmem>>, vector<1x9x256xf32>
    %731 = vector.shape_cast %730 : vector<1x9x256xf32> to vector<9x256xf32>
    %732 = vector.extract_strided_slice %731 {offsets = [0, 0], sizes = [1, 256], strides = [1, 1]} : vector<9x256xf32> to vector<1x256xf32>
    %733 = vector.extract_strided_slice %731 {offsets = [1, 0], sizes = [1, 256], strides = [1, 1]} : vector<9x256xf32> to vector<1x256xf32>
    %734 = vector.extract_strided_slice %731 {offsets = [2, 0], sizes = [1, 256], strides = [1, 1]} : vector<9x256xf32> to vector<1x256xf32>
    %735 = vector.extract_strided_slice %731 {offsets = [3, 0], sizes = [1, 256], strides = [1, 1]} : vector<9x256xf32> to vector<1x256xf32>
    %736 = vector.extract_strided_slice %731 {offsets = [4, 0], sizes = [1, 256], strides = [1, 1]} : vector<9x256xf32> to vector<1x256xf32>
    %737 = vector.extract_strided_slice %731 {offsets = [5, 0], sizes = [1, 256], strides = [1, 1]} : vector<9x256xf32> to vector<1x256xf32>
    %738 = vector.extract_strided_slice %731 {offsets = [6, 0], sizes = [1, 256], strides = [1, 1]} : vector<9x256xf32> to vector<1x256xf32>
    %739 = vector.extract_strided_slice %731 {offsets = [7, 0], sizes = [1, 256], strides = [1, 1]} : vector<9x256xf32> to vector<1x256xf32>
    %740 = vector.extract_strided_slice %731 {offsets = [8, 0], sizes = [1, 256], strides = [1, 1]} : vector<9x256xf32> to vector<1x256xf32>
    %c0_451 = arith.constant 0 : index
    %c0_452 = arith.constant 0 : index
    %741 = vector.load %arg6[%c0_451, %c0_452] : memref<4x324xf32, #tpu.memory_space<vmem>>, vector<1x324xf32>
    %742 = vector.extract_strided_slice %741 {offsets = [0, 17], sizes = [1, 256], strides = [1, 1]} : vector<1x324xf32> to vector<1x256xf32>
    %743 = arith.mulf %742, %732 : vector<1x256xf32>
    %c1_453 = arith.constant 1 : index
    %c0_454 = arith.constant 0 : index
    %744 = vector.load %arg8[%c1_453, %c0_454] : memref<37x256xf32, #tpu.memory_space<vmem>>, vector<1x256xf32>
    tpu.vector_store %arg8[%c1_453, %c0_454], %743 {strides = array<i32>} : memref<37x256xf32, #tpu.memory_space<vmem>>, vector<1x256xf32>,
    %745 = vector.extract_strided_slice %741 {offsets = [0, 18], sizes = [1, 256], strides = [1, 1]} : vector<1x324xf32> to vector<1x256xf32>
    %746 = arith.mulf %745, %733 : vector<1x256xf32>
    %c2_455 = arith.constant 2 : index
    %c0_456 = arith.constant 0 : index
    %747 = vector.load %arg8[%c2_455, %c0_456] : memref<37x256xf32, #tpu.memory_space<vmem>>, vector<1x256xf32>
    tpu.vector_store %arg8[%c2_455, %c0_456], %746 {strides = array<i32>} : memref<37x256xf32, #tpu.memory_space<vmem>>, vector<1x256xf32>,
    %748 = vector.extract_strided_slice %741 {offsets = [0, 19], sizes = [1, 256], strides = [1, 1]} : vector<1x324xf32> to vector<1x256xf32>
    %749 = arith.mulf %748, %734 : vector<1x256xf32>
    %c3_457 = arith.constant 3 : index
    %c0_458 = arith.constant 0 : index
    %750 = vector.load %arg8[%c3_457, %c0_458] : memref<37x256xf32, #tpu.memory_space<vmem>>, vector<1x256xf32>
    tpu.vector_store %arg8[%c3_457, %c0_458], %749 {strides = array<i32>} : memref<37x256xf32, #tpu.memory_space<vmem>>, vector<1x256xf32>,
    %751 = vector.extract_strided_slice %741 {offsets = [0, 33], sizes = [1, 256], strides = [1, 1]} : vector<1x324xf32> to vector<1x256xf32>
    %752 = arith.mulf %751, %735 : vector<1x256xf32>
    %c4_459 = arith.constant 4 : index
    %c0_460 = arith.constant 0 : index
    %753 = vector.load %arg8[%c4_459, %c0_460] : memref<37x256xf32, #tpu.memory_space<vmem>>, vector<1x256xf32>
    tpu.vector_store %arg8[%c4_459, %c0_460], %752 {strides = array<i32>} : memref<37x256xf32, #tpu.memory_space<vmem>>, vector<1x256xf32>,
    %754 = vector.extract_strided_slice %741 {offsets = [0, 34], sizes = [1, 256], strides = [1, 1]} : vector<1x324xf32> to vector<1x256xf32>
    %755 = arith.mulf %754, %736 : vector<1x256xf32>
    %c5_461 = arith.constant 5 : index
    %c0_462 = arith.constant 0 : index
    %756 = vector.load %arg8[%c5_461, %c0_462] : memref<37x256xf32, #tpu.memory_space<vmem>>, vector<1x256xf32>
    tpu.vector_store %arg8[%c5_461, %c0_462], %755 {strides = array<i32>} : memref<37x256xf32, #tpu.memory_space<vmem>>, vector<1x256xf32>,
    %757 = vector.extract_strided_slice %741 {offsets = [0, 35], sizes = [1, 256], strides = [1, 1]} : vector<1x324xf32> to vector<1x256xf32>
    %758 = arith.mulf %757, %737 : vector<1x256xf32>
    %c6_463 = arith.constant 6 : index
    %c0_464 = arith.constant 0 : index
    %759 = vector.load %arg8[%c6_463, %c0_464] : memref<37x256xf32, #tpu.memory_space<vmem>>, vector<1x256xf32>
    tpu.vector_store %arg8[%c6_463, %c0_464], %758 {strides = array<i32>} : memref<37x256xf32, #tpu.memory_space<vmem>>, vector<1x256xf32>,
    %760 = vector.extract_strided_slice %741 {offsets = [0, 49], sizes = [1, 256], strides = [1, 1]} : vector<1x324xf32> to vector<1x256xf32>
    %761 = arith.mulf %760, %738 : vector<1x256xf32>
    %c7_465 = arith.constant 7 : index
    %c0_466 = arith.constant 0 : index
    %762 = vector.load %arg8[%c7_465, %c0_466] : memref<37x256xf32, #tpu.memory_space<vmem>>, vector<1x256xf32>
    tpu.vector_store %arg8[%c7_465, %c0_466], %761 {strides = array<i32>} : memref<37x256xf32, #tpu.memory_space<vmem>>, vector<1x256xf32>,
    %763 = vector.extract_strided_slice %741 {offsets = [0, 50], sizes = [1, 256], strides = [1, 1]} : vector<1x324xf32> to vector<1x256xf32>
    %764 = arith.mulf %763, %739 : vector<1x256xf32>
    %c8_467 = arith.constant 8 : index
    %c0_468 = arith.constant 0 : index
    %765 = vector.load %arg8[%c8_467, %c0_468] : memref<37x256xf32, #tpu.memory_space<vmem>>, vector<1x256xf32>
    tpu.vector_store %arg8[%c8_467, %c0_468], %764 {strides = array<i32>} : memref<37x256xf32, #tpu.memory_space<vmem>>, vector<1x256xf32>,
    %766 = vector.extract_strided_slice %741 {offsets = [0, 51], sizes = [1, 256], strides = [1, 1]} : vector<1x324xf32> to vector<1x256xf32>
    %767 = arith.mulf %766, %740 : vector<1x256xf32>
    %c9_469 = arith.constant 9 : index
    %c0_470 = arith.constant 0 : index
    %768 = vector.load %arg8[%c9_469, %c0_470] : memref<37x256xf32, #tpu.memory_space<vmem>>, vector<1x256xf32>
    tpu.vector_store %arg8[%c9_469, %c0_470], %767 {strides = array<i32>} : memref<37x256xf32, #tpu.memory_space<vmem>>, vector<1x256xf32>,
    %c1_471 = arith.constant 1 : index
    %c0_472 = arith.constant 0 : index
    %769 = vector.load %arg6[%c1_471, %c0_472] : memref<4x324xf32, #tpu.memory_space<vmem>>, vector<1x324xf32>
    %770 = vector.extract_strided_slice %769 {offsets = [0, 17], sizes = [1, 256], strides = [1, 1]} : vector<1x324xf32> to vector<1x256xf32>
    %771 = arith.mulf %770, %732 : vector<1x256xf32>
    %c10_473 = arith.constant 10 : index
    %c0_474 = arith.constant 0 : index
    %772 = vector.load %arg8[%c10_473, %c0_474] : memref<37x256xf32, #tpu.memory_space<vmem>>, vector<1x256xf32>
    tpu.vector_store %arg8[%c10_473, %c0_474], %771 {strides = array<i32>} : memref<37x256xf32, #tpu.memory_space<vmem>>, vector<1x256xf32>,
    %773 = vector.extract_strided_slice %769 {offsets = [0, 18], sizes = [1, 256], strides = [1, 1]} : vector<1x324xf32> to vector<1x256xf32>
    %774 = arith.mulf %773, %733 : vector<1x256xf32>
    %c11_475 = arith.constant 11 : index
    %c0_476 = arith.constant 0 : index
    %775 = vector.load %arg8[%c11_475, %c0_476] : memref<37x256xf32, #tpu.memory_space<vmem>>, vector<1x256xf32>
    tpu.vector_store %arg8[%c11_475, %c0_476], %774 {strides = array<i32>} : memref<37x256xf32, #tpu.memory_space<vmem>>, vector<1x256xf32>,
    %776 = vector.extract_strided_slice %769 {offsets = [0, 19], sizes = [1, 256], strides = [1, 1]} : vector<1x324xf32> to vector<1x256xf32>
    %777 = arith.mulf %776, %734 : vector<1x256xf32>
    %c12_477 = arith.constant 12 : index
    %c0_478 = arith.constant 0 : index
    %778 = vector.load %arg8[%c12_477, %c0_478] : memref<37x256xf32, #tpu.memory_space<vmem>>, vector<1x256xf32>
    tpu.vector_store %arg8[%c12_477, %c0_478], %777 {strides = array<i32>} : memref<37x256xf32, #tpu.memory_space<vmem>>, vector<1x256xf32>,
    %779 = vector.extract_strided_slice %769 {offsets = [0, 33], sizes = [1, 256], strides = [1, 1]} : vector<1x324xf32> to vector<1x256xf32>
    %780 = arith.mulf %779, %735 : vector<1x256xf32>
    %c13_479 = arith.constant 13 : index
    %c0_480 = arith.constant 0 : index
    %781 = vector.load %arg8[%c13_479, %c0_480] : memref<37x256xf32, #tpu.memory_space<vmem>>, vector<1x256xf32>
    tpu.vector_store %arg8[%c13_479, %c0_480], %780 {strides = array<i32>} : memref<37x256xf32, #tpu.memory_space<vmem>>, vector<1x256xf32>,
    %782 = vector.extract_strided_slice %769 {offsets = [0, 34], sizes = [1, 256], strides = [1, 1]} : vector<1x324xf32> to vector<1x256xf32>
    %783 = arith.mulf %782, %736 : vector<1x256xf32>
    %c14_481 = arith.constant 14 : index
    %c0_482 = arith.constant 0 : index
    %784 = vector.load %arg8[%c14_481, %c0_482] : memref<37x256xf32, #tpu.memory_space<vmem>>, vector<1x256xf32>
    tpu.vector_store %arg8[%c14_481, %c0_482], %783 {strides = array<i32>} : memref<37x256xf32, #tpu.memory_space<vmem>>, vector<1x256xf32>,
    %785 = vector.extract_strided_slice %769 {offsets = [0, 35], sizes = [1, 256], strides = [1, 1]} : vector<1x324xf32> to vector<1x256xf32>
    %786 = arith.mulf %785, %737 : vector<1x256xf32>
    %c15_483 = arith.constant 15 : index
    %c0_484 = arith.constant 0 : index
    %787 = vector.load %arg8[%c15_483, %c0_484] : memref<37x256xf32, #tpu.memory_space<vmem>>, vector<1x256xf32>
    tpu.vector_store %arg8[%c15_483, %c0_484], %786 {strides = array<i32>} : memref<37x256xf32, #tpu.memory_space<vmem>>, vector<1x256xf32>,
    %788 = vector.extract_strided_slice %769 {offsets = [0, 49], sizes = [1, 256], strides = [1, 1]} : vector<1x324xf32> to vector<1x256xf32>
    %789 = arith.mulf %788, %738 : vector<1x256xf32>
    %c16_485 = arith.constant 16 : index
    %c0_486 = arith.constant 0 : index
    %790 = vector.load %arg8[%c16_485, %c0_486] : memref<37x256xf32, #tpu.memory_space<vmem>>, vector<1x256xf32>
    tpu.vector_store %arg8[%c16_485, %c0_486], %789 {strides = array<i32>} : memref<37x256xf32, #tpu.memory_space<vmem>>, vector<1x256xf32>,
    %791 = vector.extract_strided_slice %769 {offsets = [0, 50], sizes = [1, 256], strides = [1, 1]} : vector<1x324xf32> to vector<1x256xf32>
    %792 = arith.mulf %791, %739 : vector<1x256xf32>
    %c17_487 = arith.constant 17 : index
    %c0_488 = arith.constant 0 : index
    %793 = vector.load %arg8[%c17_487, %c0_488] : memref<37x256xf32, #tpu.memory_space<vmem>>, vector<1x256xf32>
    tpu.vector_store %arg8[%c17_487, %c0_488], %792 {strides = array<i32>} : memref<37x256xf32, #tpu.memory_space<vmem>>, vector<1x256xf32>,
    %794 = vector.extract_strided_slice %769 {offsets = [0, 51], sizes = [1, 256], strides = [1, 1]} : vector<1x324xf32> to vector<1x256xf32>
    %795 = arith.mulf %794, %740 : vector<1x256xf32>
    %c18_489 = arith.constant 18 : index
    %c0_490 = arith.constant 0 : index
    %796 = vector.load %arg8[%c18_489, %c0_490] : memref<37x256xf32, #tpu.memory_space<vmem>>, vector<1x256xf32>
    tpu.vector_store %arg8[%c18_489, %c0_490], %795 {strides = array<i32>} : memref<37x256xf32, #tpu.memory_space<vmem>>, vector<1x256xf32>,
    %c7_491 = arith.constant 7 : index
    %c0_492 = arith.constant 0 : index
    %c0_493 = arith.constant 0 : index
    %797 = vector.load %arg2[%c7_491, %c0_492, %c0_493] : memref<10x4x37xf32, #tpu.memory_space<vmem>>, vector<1x4x37xf32>
    %798 = vector.shape_cast %797 : vector<1x4x37xf32> to vector<4x37xf32>
    %799 = vector.extract_strided_slice %798 {offsets = [0, 0], sizes = [4, 19], strides = [1, 1]} : vector<4x37xf32> to vector<4x19xf32>
    %c0_494 = arith.constant 0 : index
    %c0_495 = arith.constant 0 : index
    %800 = vector.load %arg8[%c0_494, %c0_495] : memref<37x256xf32, #tpu.memory_space<vmem>>, vector<19x256xf32>
    %cst_496 = arith.constant dense<0.000000e+00> : vector<4x256xf32>
    %801 = tpu.matmul %799, %800, %cst_496 {dimension_numbers = #tpu.dot_dimension_numbers<[1], [0], [0], [1], [0, 0, 1, 1], [], []>} : vector<4x19xf32>, vector<19x256xf32>, vector<4x256xf32> -> vector<4x256xf32>
    %c0_497 = arith.constant 0 : index
    %c0_498 = arith.constant 0 : index
    %802 = vector.load %arg7[%c0_497, %c0_498] : memref<4x256xf32, #tpu.memory_space<vmem>>, vector<4x256xf32>
    %803 = arith.addf %801, %802 : vector<4x256xf32>
    %c0_499 = arith.constant 0 : index
    %c0_500 = arith.constant 0 : index
    %804 = vector.load %arg7[%c0_499, %c0_500] : memref<4x256xf32, #tpu.memory_space<vmem>>, vector<4x256xf32>
    tpu.vector_store %arg7[%c0_499, %c0_500], %803 {strides = array<i32>} : memref<4x256xf32, #tpu.memory_space<vmem>>, vector<4x256xf32>,
    %805 = vector.extract_strided_slice %803 {offsets = [0, 0], sizes = [2, 256], strides = [1, 1]} : vector<4x256xf32> to vector<2x256xf32>
    %806 = vector.extract_strided_slice %803 {offsets = [2, 0], sizes = [2, 256], strides = [1, 1]} : vector<4x256xf32> to vector<2x256xf32>
    %cst_501 = arith.constant 0.000000e+00 : f32
    %807 = vector.broadcast %cst_501 : f32 to vector<2x256xf32>
    %808 = arith.cmpf oge, %805, %807 : vector<2x256xf32>
    %809 = vector.broadcast %1 : f32 to vector<2x256xf32>
    %810 = arith.mulf %809, %805 : vector<2x256xf32>
    %811 = arith.select %808, %805, %810 : vector<2x256xi1>, vector<2x256xf32>
    %812 = arith.negf %806 : vector<2x256xf32>
    %813 = math.exp %812 : vector<2x256xf32>
    %cst_502 = arith.constant 1.000000e+00 : f32
    %814 = vector.broadcast %cst_502 : f32 to vector<2x256xf32>
    %815 = arith.addf %814, %813 : vector<2x256xf32>
    %816 = arith.divf %814, %815 : vector<2x256xf32>
    %817 = arith.mulf %811, %816 : vector<2x256xf32>
    %c0_503 = arith.constant 0 : index
    %c34_504 = arith.constant 34 : index
    %818 = vector.load %arg6[%c0_503, %c34_504] : memref<4x324xf32, #tpu.memory_space<vmem>>, vector<2x256xf32>
    tpu.vector_store %arg6[%c0_503, %c34_504], %817 {strides = array<i32>} : memref<4x324xf32, #tpu.memory_space<vmem>>, vector<2x256xf32>,
    %c8_505 = arith.constant 8 : index
    %c0_506 = arith.constant 0 : index
    %c0_507 = arith.constant 0 : index
    %819 = vector.load %arg3[%c8_505, %c0_506, %c0_507] : memref<10x9x256xf32, #tpu.memory_space<vmem>>, vector<1x9x256xf32>
    %820 = vector.shape_cast %819 : vector<1x9x256xf32> to vector<9x256xf32>
    %821 = vector.extract_strided_slice %820 {offsets = [0, 0], sizes = [1, 256], strides = [1, 1]} : vector<9x256xf32> to vector<1x256xf32>
    %822 = vector.extract_strided_slice %820 {offsets = [1, 0], sizes = [1, 256], strides = [1, 1]} : vector<9x256xf32> to vector<1x256xf32>
    %823 = vector.extract_strided_slice %820 {offsets = [2, 0], sizes = [1, 256], strides = [1, 1]} : vector<9x256xf32> to vector<1x256xf32>
    %824 = vector.extract_strided_slice %820 {offsets = [3, 0], sizes = [1, 256], strides = [1, 1]} : vector<9x256xf32> to vector<1x256xf32>
    %825 = vector.extract_strided_slice %820 {offsets = [4, 0], sizes = [1, 256], strides = [1, 1]} : vector<9x256xf32> to vector<1x256xf32>
    %826 = vector.extract_strided_slice %820 {offsets = [5, 0], sizes = [1, 256], strides = [1, 1]} : vector<9x256xf32> to vector<1x256xf32>
    %827 = vector.extract_strided_slice %820 {offsets = [6, 0], sizes = [1, 256], strides = [1, 1]} : vector<9x256xf32> to vector<1x256xf32>
    %828 = vector.extract_strided_slice %820 {offsets = [7, 0], sizes = [1, 256], strides = [1, 1]} : vector<9x256xf32> to vector<1x256xf32>
    %829 = vector.extract_strided_slice %820 {offsets = [8, 0], sizes = [1, 256], strides = [1, 1]} : vector<9x256xf32> to vector<1x256xf32>
    %c0_508 = arith.constant 0 : index
    %c0_509 = arith.constant 0 : index
    %830 = vector.load %arg6[%c0_508, %c0_509] : memref<4x324xf32, #tpu.memory_space<vmem>>, vector<1x324xf32>
    %831 = vector.extract_strided_slice %830 {offsets = [0, 0], sizes = [1, 256], strides = [1, 1]} : vector<1x324xf32> to vector<1x256xf32>
    %832 = arith.mulf %831, %821 : vector<1x256xf32>
    %c1_510 = arith.constant 1 : index
    %c0_511 = arith.constant 0 : index
    %833 = vector.load %arg8[%c1_510, %c0_511] : memref<37x256xf32, #tpu.memory_space<vmem>>, vector<1x256xf32>
    tpu.vector_store %arg8[%c1_510, %c0_511], %832 {strides = array<i32>} : memref<37x256xf32, #tpu.memory_space<vmem>>, vector<1x256xf32>,
    %834 = vector.extract_strided_slice %830 {offsets = [0, 2], sizes = [1, 256], strides = [1, 1]} : vector<1x324xf32> to vector<1x256xf32>
    %835 = arith.mulf %834, %822 : vector<1x256xf32>
    %c2_512 = arith.constant 2 : index
    %c0_513 = arith.constant 0 : index
    %836 = vector.load %arg8[%c2_512, %c0_513] : memref<37x256xf32, #tpu.memory_space<vmem>>, vector<1x256xf32>
    tpu.vector_store %arg8[%c2_512, %c0_513], %835 {strides = array<i32>} : memref<37x256xf32, #tpu.memory_space<vmem>>, vector<1x256xf32>,
    %837 = vector.extract_strided_slice %830 {offsets = [0, 4], sizes = [1, 256], strides = [1, 1]} : vector<1x324xf32> to vector<1x256xf32>
    %838 = arith.mulf %837, %823 : vector<1x256xf32>
    %c3_514 = arith.constant 3 : index
    %c0_515 = arith.constant 0 : index
    %839 = vector.load %arg8[%c3_514, %c0_515] : memref<37x256xf32, #tpu.memory_space<vmem>>, vector<1x256xf32>
    tpu.vector_store %arg8[%c3_514, %c0_515], %838 {strides = array<i32>} : memref<37x256xf32, #tpu.memory_space<vmem>>, vector<1x256xf32>,
    %840 = vector.extract_strided_slice %830 {offsets = [0, 32], sizes = [1, 256], strides = [1, 1]} : vector<1x324xf32> to vector<1x256xf32>
    %841 = arith.mulf %840, %824 : vector<1x256xf32>
    %c4_516 = arith.constant 4 : index
    %c0_517 = arith.constant 0 : index
    %842 = vector.load %arg8[%c4_516, %c0_517] : memref<37x256xf32, #tpu.memory_space<vmem>>, vector<1x256xf32>
    tpu.vector_store %arg8[%c4_516, %c0_517], %841 {strides = array<i32>} : memref<37x256xf32, #tpu.memory_space<vmem>>, vector<1x256xf32>,
    %843 = vector.extract_strided_slice %830 {offsets = [0, 34], sizes = [1, 256], strides = [1, 1]} : vector<1x324xf32> to vector<1x256xf32>
    %844 = arith.mulf %843, %825 : vector<1x256xf32>
    %c5_518 = arith.constant 5 : index
    %c0_519 = arith.constant 0 : index
    %845 = vector.load %arg8[%c5_518, %c0_519] : memref<37x256xf32, #tpu.memory_space<vmem>>, vector<1x256xf32>
    tpu.vector_store %arg8[%c5_518, %c0_519], %844 {strides = array<i32>} : memref<37x256xf32, #tpu.memory_space<vmem>>, vector<1x256xf32>,
    %846 = vector.extract_strided_slice %830 {offsets = [0, 36], sizes = [1, 256], strides = [1, 1]} : vector<1x324xf32> to vector<1x256xf32>
    %847 = arith.mulf %846, %826 : vector<1x256xf32>
    %c6_520 = arith.constant 6 : index
    %c0_521 = arith.constant 0 : index
    %848 = vector.load %arg8[%c6_520, %c0_521] : memref<37x256xf32, #tpu.memory_space<vmem>>, vector<1x256xf32>
    tpu.vector_store %arg8[%c6_520, %c0_521], %847 {strides = array<i32>} : memref<37x256xf32, #tpu.memory_space<vmem>>, vector<1x256xf32>,
    %849 = vector.extract_strided_slice %830 {offsets = [0, 64], sizes = [1, 256], strides = [1, 1]} : vector<1x324xf32> to vector<1x256xf32>
    %850 = arith.mulf %849, %827 : vector<1x256xf32>
    %c7_522 = arith.constant 7 : index
    %c0_523 = arith.constant 0 : index
    %851 = vector.load %arg8[%c7_522, %c0_523] : memref<37x256xf32, #tpu.memory_space<vmem>>, vector<1x256xf32>
    tpu.vector_store %arg8[%c7_522, %c0_523], %850 {strides = array<i32>} : memref<37x256xf32, #tpu.memory_space<vmem>>, vector<1x256xf32>,
    %852 = vector.extract_strided_slice %830 {offsets = [0, 66], sizes = [1, 256], strides = [1, 1]} : vector<1x324xf32> to vector<1x256xf32>
    %853 = arith.mulf %852, %828 : vector<1x256xf32>
    %c8_524 = arith.constant 8 : index
    %c0_525 = arith.constant 0 : index
    %854 = vector.load %arg8[%c8_524, %c0_525] : memref<37x256xf32, #tpu.memory_space<vmem>>, vector<1x256xf32>
    tpu.vector_store %arg8[%c8_524, %c0_525], %853 {strides = array<i32>} : memref<37x256xf32, #tpu.memory_space<vmem>>, vector<1x256xf32>,
    %855 = vector.extract_strided_slice %830 {offsets = [0, 68], sizes = [1, 256], strides = [1, 1]} : vector<1x324xf32> to vector<1x256xf32>
    %856 = arith.mulf %855, %829 : vector<1x256xf32>
    %c9_526 = arith.constant 9 : index
    %c0_527 = arith.constant 0 : index
    %857 = vector.load %arg8[%c9_526, %c0_527] : memref<37x256xf32, #tpu.memory_space<vmem>>, vector<1x256xf32>
    tpu.vector_store %arg8[%c9_526, %c0_527], %856 {strides = array<i32>} : memref<37x256xf32, #tpu.memory_space<vmem>>, vector<1x256xf32>,
    %c1_528 = arith.constant 1 : index
    %c0_529 = arith.constant 0 : index
    %858 = vector.load %arg6[%c1_528, %c0_529] : memref<4x324xf32, #tpu.memory_space<vmem>>, vector<1x324xf32>
    %859 = vector.extract_strided_slice %858 {offsets = [0, 0], sizes = [1, 256], strides = [1, 1]} : vector<1x324xf32> to vector<1x256xf32>
    %860 = arith.mulf %859, %821 : vector<1x256xf32>
    %c10_530 = arith.constant 10 : index
    %c0_531 = arith.constant 0 : index
    %861 = vector.load %arg8[%c10_530, %c0_531] : memref<37x256xf32, #tpu.memory_space<vmem>>, vector<1x256xf32>
    tpu.vector_store %arg8[%c10_530, %c0_531], %860 {strides = array<i32>} : memref<37x256xf32, #tpu.memory_space<vmem>>, vector<1x256xf32>,
    %862 = vector.extract_strided_slice %858 {offsets = [0, 2], sizes = [1, 256], strides = [1, 1]} : vector<1x324xf32> to vector<1x256xf32>
    %863 = arith.mulf %862, %822 : vector<1x256xf32>
    %c11_532 = arith.constant 11 : index
    %c0_533 = arith.constant 0 : index
    %864 = vector.load %arg8[%c11_532, %c0_533] : memref<37x256xf32, #tpu.memory_space<vmem>>, vector<1x256xf32>
    tpu.vector_store %arg8[%c11_532, %c0_533], %863 {strides = array<i32>} : memref<37x256xf32, #tpu.memory_space<vmem>>, vector<1x256xf32>,
    %865 = vector.extract_strided_slice %858 {offsets = [0, 4], sizes = [1, 256], strides = [1, 1]} : vector<1x324xf32> to vector<1x256xf32>
    %866 = arith.mulf %865, %823 : vector<1x256xf32>
    %c12_534 = arith.constant 12 : index
    %c0_535 = arith.constant 0 : index
    %867 = vector.load %arg8[%c12_534, %c0_535] : memref<37x256xf32, #tpu.memory_space<vmem>>, vector<1x256xf32>
    tpu.vector_store %arg8[%c12_534, %c0_535], %866 {strides = array<i32>} : memref<37x256xf32, #tpu.memory_space<vmem>>, vector<1x256xf32>,
    %868 = vector.extract_strided_slice %858 {offsets = [0, 32], sizes = [1, 256], strides = [1, 1]} : vector<1x324xf32> to vector<1x256xf32>
    %869 = arith.mulf %868, %824 : vector<1x256xf32>
    %c13_536 = arith.constant 13 : index
    %c0_537 = arith.constant 0 : index
    %870 = vector.load %arg8[%c13_536, %c0_537] : memref<37x256xf32, #tpu.memory_space<vmem>>, vector<1x256xf32>
    tpu.vector_store %arg8[%c13_536, %c0_537], %869 {strides = array<i32>} : memref<37x256xf32, #tpu.memory_space<vmem>>, vector<1x256xf32>,
    %871 = vector.extract_strided_slice %858 {offsets = [0, 34], sizes = [1, 256], strides = [1, 1]} : vector<1x324xf32> to vector<1x256xf32>
    %872 = arith.mulf %871, %825 : vector<1x256xf32>
    %c14_538 = arith.constant 14 : index
    %c0_539 = arith.constant 0 : index
    %873 = vector.load %arg8[%c14_538, %c0_539] : memref<37x256xf32, #tpu.memory_space<vmem>>, vector<1x256xf32>
    tpu.vector_store %arg8[%c14_538, %c0_539], %872 {strides = array<i32>} : memref<37x256xf32, #tpu.memory_space<vmem>>, vector<1x256xf32>,
    %874 = vector.extract_strided_slice %858 {offsets = [0, 36], sizes = [1, 256], strides = [1, 1]} : vector<1x324xf32> to vector<1x256xf32>
    %875 = arith.mulf %874, %826 : vector<1x256xf32>
    %c15_540 = arith.constant 15 : index
    %c0_541 = arith.constant 0 : index
    %876 = vector.load %arg8[%c15_540, %c0_541] : memref<37x256xf32, #tpu.memory_space<vmem>>, vector<1x256xf32>
    tpu.vector_store %arg8[%c15_540, %c0_541], %875 {strides = array<i32>} : memref<37x256xf32, #tpu.memory_space<vmem>>, vector<1x256xf32>,
    %877 = vector.extract_strided_slice %858 {offsets = [0, 64], sizes = [1, 256], strides = [1, 1]} : vector<1x324xf32> to vector<1x256xf32>
    %878 = arith.mulf %877, %827 : vector<1x256xf32>
    %c16_542 = arith.constant 16 : index
    %c0_543 = arith.constant 0 : index
    %879 = vector.load %arg8[%c16_542, %c0_543] : memref<37x256xf32, #tpu.memory_space<vmem>>, vector<1x256xf32>
    tpu.vector_store %arg8[%c16_542, %c0_543], %878 {strides = array<i32>} : memref<37x256xf32, #tpu.memory_space<vmem>>, vector<1x256xf32>,
    %880 = vector.extract_strided_slice %858 {offsets = [0, 66], sizes = [1, 256], strides = [1, 1]} : vector<1x324xf32> to vector<1x256xf32>
    %881 = arith.mulf %880, %828 : vector<1x256xf32>
    %c17_544 = arith.constant 17 : index
    %c0_545 = arith.constant 0 : index
    %882 = vector.load %arg8[%c17_544, %c0_545] : memref<37x256xf32, #tpu.memory_space<vmem>>, vector<1x256xf32>
    tpu.vector_store %arg8[%c17_544, %c0_545], %881 {strides = array<i32>} : memref<37x256xf32, #tpu.memory_space<vmem>>, vector<1x256xf32>,
    %883 = vector.extract_strided_slice %858 {offsets = [0, 68], sizes = [1, 256], strides = [1, 1]} : vector<1x324xf32> to vector<1x256xf32>
    %884 = arith.mulf %883, %829 : vector<1x256xf32>
    %c18_546 = arith.constant 18 : index
    %c0_547 = arith.constant 0 : index
    %885 = vector.load %arg8[%c18_546, %c0_547] : memref<37x256xf32, #tpu.memory_space<vmem>>, vector<1x256xf32>
    tpu.vector_store %arg8[%c18_546, %c0_547], %884 {strides = array<i32>} : memref<37x256xf32, #tpu.memory_space<vmem>>, vector<1x256xf32>,
    %c8_548 = arith.constant 8 : index
    %c0_549 = arith.constant 0 : index
    %c0_550 = arith.constant 0 : index
    %886 = vector.load %arg2[%c8_548, %c0_549, %c0_550] : memref<10x4x37xf32, #tpu.memory_space<vmem>>, vector<1x4x37xf32>
    %887 = vector.shape_cast %886 : vector<1x4x37xf32> to vector<4x37xf32>
    %888 = vector.extract_strided_slice %887 {offsets = [0, 0], sizes = [4, 19], strides = [1, 1]} : vector<4x37xf32> to vector<4x19xf32>
    %c0_551 = arith.constant 0 : index
    %c0_552 = arith.constant 0 : index
    %889 = vector.load %arg8[%c0_551, %c0_552] : memref<37x256xf32, #tpu.memory_space<vmem>>, vector<19x256xf32>
    %cst_553 = arith.constant dense<0.000000e+00> : vector<4x256xf32>
    %890 = tpu.matmul %888, %889, %cst_553 {dimension_numbers = #tpu.dot_dimension_numbers<[1], [0], [0], [1], [0, 0, 1, 1], [], []>} : vector<4x19xf32>, vector<19x256xf32>, vector<4x256xf32> -> vector<4x256xf32>
    %c0_554 = arith.constant 0 : index
    %c0_555 = arith.constant 0 : index
    %891 = vector.load %arg7[%c0_554, %c0_555] : memref<4x256xf32, #tpu.memory_space<vmem>>, vector<4x256xf32>
    %892 = arith.addf %890, %891 : vector<4x256xf32>
    %c0_556 = arith.constant 0 : index
    %c0_557 = arith.constant 0 : index
    %893 = vector.load %arg7[%c0_556, %c0_557] : memref<4x256xf32, #tpu.memory_space<vmem>>, vector<4x256xf32>
    tpu.vector_store %arg7[%c0_556, %c0_557], %892 {strides = array<i32>} : memref<4x256xf32, #tpu.memory_space<vmem>>, vector<4x256xf32>,
    %894 = vector.extract_strided_slice %892 {offsets = [0, 0], sizes = [2, 256], strides = [1, 1]} : vector<4x256xf32> to vector<2x256xf32>
    %895 = vector.extract_strided_slice %892 {offsets = [2, 0], sizes = [2, 256], strides = [1, 1]} : vector<4x256xf32> to vector<2x256xf32>
    %cst_558 = arith.constant 0.000000e+00 : f32
    %896 = vector.broadcast %cst_558 : f32 to vector<2x256xf32>
    %897 = arith.cmpf oge, %894, %896 : vector<2x256xf32>
    %898 = vector.broadcast %1 : f32 to vector<2x256xf32>
    %899 = arith.mulf %898, %894 : vector<2x256xf32>
    %900 = arith.select %897, %894, %899 : vector<2x256xi1>, vector<2x256xf32>
    %901 = arith.negf %895 : vector<2x256xf32>
    %902 = math.exp %901 : vector<2x256xf32>
    %cst_559 = arith.constant 1.000000e+00 : f32
    %903 = vector.broadcast %cst_559 : f32 to vector<2x256xf32>
    %904 = arith.addf %903, %902 : vector<2x256xf32>
    %905 = arith.divf %903, %904 : vector<2x256xf32>
    %906 = arith.mulf %900, %905 : vector<2x256xf32>
    %c0_560 = arith.constant 0 : index
    %c34_561 = arith.constant 34 : index
    %907 = vector.load %arg6[%c0_560, %c34_561] : memref<4x324xf32, #tpu.memory_space<vmem>>, vector<2x256xf32>
    tpu.vector_store %arg6[%c0_560, %c34_561], %906 {strides = array<i32>} : memref<4x324xf32, #tpu.memory_space<vmem>>, vector<2x256xf32>,
    %c9_562 = arith.constant 9 : index
    %c0_563 = arith.constant 0 : index
    %c0_564 = arith.constant 0 : index
    %908 = vector.load %arg3[%c9_562, %c0_563, %c0_564] : memref<10x9x256xf32, #tpu.memory_space<vmem>>, vector<1x9x256xf32>
    %909 = vector.shape_cast %908 : vector<1x9x256xf32> to vector<9x256xf32>
    %910 = vector.extract_strided_slice %909 {offsets = [0, 0], sizes = [1, 256], strides = [1, 1]} : vector<9x256xf32> to vector<1x256xf32>
    %911 = vector.extract_strided_slice %909 {offsets = [1, 0], sizes = [1, 256], strides = [1, 1]} : vector<9x256xf32> to vector<1x256xf32>
    %912 = vector.extract_strided_slice %909 {offsets = [2, 0], sizes = [1, 256], strides = [1, 1]} : vector<9x256xf32> to vector<1x256xf32>
    %913 = vector.extract_strided_slice %909 {offsets = [3, 0], sizes = [1, 256], strides = [1, 1]} : vector<9x256xf32> to vector<1x256xf32>
    %914 = vector.extract_strided_slice %909 {offsets = [4, 0], sizes = [1, 256], strides = [1, 1]} : vector<9x256xf32> to vector<1x256xf32>
    %915 = vector.extract_strided_slice %909 {offsets = [5, 0], sizes = [1, 256], strides = [1, 1]} : vector<9x256xf32> to vector<1x256xf32>
    %916 = vector.extract_strided_slice %909 {offsets = [6, 0], sizes = [1, 256], strides = [1, 1]} : vector<9x256xf32> to vector<1x256xf32>
    %917 = vector.extract_strided_slice %909 {offsets = [7, 0], sizes = [1, 256], strides = [1, 1]} : vector<9x256xf32> to vector<1x256xf32>
    %918 = vector.extract_strided_slice %909 {offsets = [8, 0], sizes = [1, 256], strides = [1, 1]} : vector<9x256xf32> to vector<1x256xf32>
    %c0_565 = arith.constant 0 : index
    %c0_566 = arith.constant 0 : index
    %919 = vector.load %arg6[%c0_565, %c0_566] : memref<4x324xf32, #tpu.memory_space<vmem>>, vector<1x324xf32>
    %920 = vector.extract_strided_slice %919 {offsets = [0, 17], sizes = [1, 256], strides = [1, 1]} : vector<1x324xf32> to vector<1x256xf32>
    %921 = arith.mulf %920, %910 : vector<1x256xf32>
    %c1_567 = arith.constant 1 : index
    %c0_568 = arith.constant 0 : index
    %922 = vector.load %arg8[%c1_567, %c0_568] : memref<37x256xf32, #tpu.memory_space<vmem>>, vector<1x256xf32>
    tpu.vector_store %arg8[%c1_567, %c0_568], %921 {strides = array<i32>} : memref<37x256xf32, #tpu.memory_space<vmem>>, vector<1x256xf32>,
    %923 = vector.extract_strided_slice %919 {offsets = [0, 18], sizes = [1, 256], strides = [1, 1]} : vector<1x324xf32> to vector<1x256xf32>
    %924 = arith.mulf %923, %911 : vector<1x256xf32>
    %c2_569 = arith.constant 2 : index
    %c0_570 = arith.constant 0 : index
    %925 = vector.load %arg8[%c2_569, %c0_570] : memref<37x256xf32, #tpu.memory_space<vmem>>, vector<1x256xf32>
    tpu.vector_store %arg8[%c2_569, %c0_570], %924 {strides = array<i32>} : memref<37x256xf32, #tpu.memory_space<vmem>>, vector<1x256xf32>,
    %926 = vector.extract_strided_slice %919 {offsets = [0, 19], sizes = [1, 256], strides = [1, 1]} : vector<1x324xf32> to vector<1x256xf32>
    %927 = arith.mulf %926, %912 : vector<1x256xf32>
    %c3_571 = arith.constant 3 : index
    %c0_572 = arith.constant 0 : index
    %928 = vector.load %arg8[%c3_571, %c0_572] : memref<37x256xf32, #tpu.memory_space<vmem>>, vector<1x256xf32>
    tpu.vector_store %arg8[%c3_571, %c0_572], %927 {strides = array<i32>} : memref<37x256xf32, #tpu.memory_space<vmem>>, vector<1x256xf32>,
    %929 = vector.extract_strided_slice %919 {offsets = [0, 33], sizes = [1, 256], strides = [1, 1]} : vector<1x324xf32> to vector<1x256xf32>
    %930 = arith.mulf %929, %913 : vector<1x256xf32>
    %c4_573 = arith.constant 4 : index
    %c0_574 = arith.constant 0 : index
    %931 = vector.load %arg8[%c4_573, %c0_574] : memref<37x256xf32, #tpu.memory_space<vmem>>, vector<1x256xf32>
    tpu.vector_store %arg8[%c4_573, %c0_574], %930 {strides = array<i32>} : memref<37x256xf32, #tpu.memory_space<vmem>>, vector<1x256xf32>,
    %932 = vector.extract_strided_slice %919 {offsets = [0, 34], sizes = [1, 256], strides = [1, 1]} : vector<1x324xf32> to vector<1x256xf32>
    %933 = arith.mulf %932, %914 : vector<1x256xf32>
    %c5_575 = arith.constant 5 : index
    %c0_576 = arith.constant 0 : index
    %934 = vector.load %arg8[%c5_575, %c0_576] : memref<37x256xf32, #tpu.memory_space<vmem>>, vector<1x256xf32>
    tpu.vector_store %arg8[%c5_575, %c0_576], %933 {strides = array<i32>} : memref<37x256xf32, #tpu.memory_space<vmem>>, vector<1x256xf32>,
    %935 = vector.extract_strided_slice %919 {offsets = [0, 35], sizes = [1, 256], strides = [1, 1]} : vector<1x324xf32> to vector<1x256xf32>
    %936 = arith.mulf %935, %915 : vector<1x256xf32>
    %c6_577 = arith.constant 6 : index
    %c0_578 = arith.constant 0 : index
    %937 = vector.load %arg8[%c6_577, %c0_578] : memref<37x256xf32, #tpu.memory_space<vmem>>, vector<1x256xf32>
    tpu.vector_store %arg8[%c6_577, %c0_578], %936 {strides = array<i32>} : memref<37x256xf32, #tpu.memory_space<vmem>>, vector<1x256xf32>,
    %938 = vector.extract_strided_slice %919 {offsets = [0, 49], sizes = [1, 256], strides = [1, 1]} : vector<1x324xf32> to vector<1x256xf32>
    %939 = arith.mulf %938, %916 : vector<1x256xf32>
    %c7_579 = arith.constant 7 : index
    %c0_580 = arith.constant 0 : index
    %940 = vector.load %arg8[%c7_579, %c0_580] : memref<37x256xf32, #tpu.memory_space<vmem>>, vector<1x256xf32>
    tpu.vector_store %arg8[%c7_579, %c0_580], %939 {strides = array<i32>} : memref<37x256xf32, #tpu.memory_space<vmem>>, vector<1x256xf32>,
    %941 = vector.extract_strided_slice %919 {offsets = [0, 50], sizes = [1, 256], strides = [1, 1]} : vector<1x324xf32> to vector<1x256xf32>
    %942 = arith.mulf %941, %917 : vector<1x256xf32>
    %c8_581 = arith.constant 8 : index
    %c0_582 = arith.constant 0 : index
    %943 = vector.load %arg8[%c8_581, %c0_582] : memref<37x256xf32, #tpu.memory_space<vmem>>, vector<1x256xf32>
    tpu.vector_store %arg8[%c8_581, %c0_582], %942 {strides = array<i32>} : memref<37x256xf32, #tpu.memory_space<vmem>>, vector<1x256xf32>,
    %944 = vector.extract_strided_slice %919 {offsets = [0, 51], sizes = [1, 256], strides = [1, 1]} : vector<1x324xf32> to vector<1x256xf32>
    %945 = arith.mulf %944, %918 : vector<1x256xf32>
    %c9_583 = arith.constant 9 : index
    %c0_584 = arith.constant 0 : index
    %946 = vector.load %arg8[%c9_583, %c0_584] : memref<37x256xf32, #tpu.memory_space<vmem>>, vector<1x256xf32>
    tpu.vector_store %arg8[%c9_583, %c0_584], %945 {strides = array<i32>} : memref<37x256xf32, #tpu.memory_space<vmem>>, vector<1x256xf32>,
    %c1_585 = arith.constant 1 : index
    %c0_586 = arith.constant 0 : index
    %947 = vector.load %arg6[%c1_585, %c0_586] : memref<4x324xf32, #tpu.memory_space<vmem>>, vector<1x324xf32>
    %948 = vector.extract_strided_slice %947 {offsets = [0, 17], sizes = [1, 256], strides = [1, 1]} : vector<1x324xf32> to vector<1x256xf32>
    %949 = arith.mulf %948, %910 : vector<1x256xf32>
    %c10_587 = arith.constant 10 : index
    %c0_588 = arith.constant 0 : index
    %950 = vector.load %arg8[%c10_587, %c0_588] : memref<37x256xf32, #tpu.memory_space<vmem>>, vector<1x256xf32>
    tpu.vector_store %arg8[%c10_587, %c0_588], %949 {strides = array<i32>} : memref<37x256xf32, #tpu.memory_space<vmem>>, vector<1x256xf32>,
    %951 = vector.extract_strided_slice %947 {offsets = [0, 18], sizes = [1, 256], strides = [1, 1]} : vector<1x324xf32> to vector<1x256xf32>
    %952 = arith.mulf %951, %911 : vector<1x256xf32>
    %c11_589 = arith.constant 11 : index
    %c0_590 = arith.constant 0 : index
    %953 = vector.load %arg8[%c11_589, %c0_590] : memref<37x256xf32, #tpu.memory_space<vmem>>, vector<1x256xf32>
    tpu.vector_store %arg8[%c11_589, %c0_590], %952 {strides = array<i32>} : memref<37x256xf32, #tpu.memory_space<vmem>>, vector<1x256xf32>,
    %954 = vector.extract_strided_slice %947 {offsets = [0, 19], sizes = [1, 256], strides = [1, 1]} : vector<1x324xf32> to vector<1x256xf32>
    %955 = arith.mulf %954, %912 : vector<1x256xf32>
    %c12_591 = arith.constant 12 : index
    %c0_592 = arith.constant 0 : index
    %956 = vector.load %arg8[%c12_591, %c0_592] : memref<37x256xf32, #tpu.memory_space<vmem>>, vector<1x256xf32>
    tpu.vector_store %arg8[%c12_591, %c0_592], %955 {strides = array<i32>} : memref<37x256xf32, #tpu.memory_space<vmem>>, vector<1x256xf32>,
    %957 = vector.extract_strided_slice %947 {offsets = [0, 33], sizes = [1, 256], strides = [1, 1]} : vector<1x324xf32> to vector<1x256xf32>
    %958 = arith.mulf %957, %913 : vector<1x256xf32>
    %c13_593 = arith.constant 13 : index
    %c0_594 = arith.constant 0 : index
    %959 = vector.load %arg8[%c13_593, %c0_594] : memref<37x256xf32, #tpu.memory_space<vmem>>, vector<1x256xf32>
    tpu.vector_store %arg8[%c13_593, %c0_594], %958 {strides = array<i32>} : memref<37x256xf32, #tpu.memory_space<vmem>>, vector<1x256xf32>,
    %960 = vector.extract_strided_slice %947 {offsets = [0, 34], sizes = [1, 256], strides = [1, 1]} : vector<1x324xf32> to vector<1x256xf32>
    %961 = arith.mulf %960, %914 : vector<1x256xf32>
    %c14_595 = arith.constant 14 : index
    %c0_596 = arith.constant 0 : index
    %962 = vector.load %arg8[%c14_595, %c0_596] : memref<37x256xf32, #tpu.memory_space<vmem>>, vector<1x256xf32>
    tpu.vector_store %arg8[%c14_595, %c0_596], %961 {strides = array<i32>} : memref<37x256xf32, #tpu.memory_space<vmem>>, vector<1x256xf32>,
    %963 = vector.extract_strided_slice %947 {offsets = [0, 35], sizes = [1, 256], strides = [1, 1]} : vector<1x324xf32> to vector<1x256xf32>
    %964 = arith.mulf %963, %915 : vector<1x256xf32>
    %c15_597 = arith.constant 15 : index
    %c0_598 = arith.constant 0 : index
    %965 = vector.load %arg8[%c15_597, %c0_598] : memref<37x256xf32, #tpu.memory_space<vmem>>, vector<1x256xf32>
    tpu.vector_store %arg8[%c15_597, %c0_598], %964 {strides = array<i32>} : memref<37x256xf32, #tpu.memory_space<vmem>>, vector<1x256xf32>,
    %966 = vector.extract_strided_slice %947 {offsets = [0, 49], sizes = [1, 256], strides = [1, 1]} : vector<1x324xf32> to vector<1x256xf32>
    %967 = arith.mulf %966, %916 : vector<1x256xf32>
    %c16_599 = arith.constant 16 : index
    %c0_600 = arith.constant 0 : index
    %968 = vector.load %arg8[%c16_599, %c0_600] : memref<37x256xf32, #tpu.memory_space<vmem>>, vector<1x256xf32>
    tpu.vector_store %arg8[%c16_599, %c0_600], %967 {strides = array<i32>} : memref<37x256xf32, #tpu.memory_space<vmem>>, vector<1x256xf32>,
    %969 = vector.extract_strided_slice %947 {offsets = [0, 50], sizes = [1, 256], strides = [1, 1]} : vector<1x324xf32> to vector<1x256xf32>
    %970 = arith.mulf %969, %917 : vector<1x256xf32>
    %c17_601 = arith.constant 17 : index
    %c0_602 = arith.constant 0 : index
    %971 = vector.load %arg8[%c17_601, %c0_602] : memref<37x256xf32, #tpu.memory_space<vmem>>, vector<1x256xf32>
    tpu.vector_store %arg8[%c17_601, %c0_602], %970 {strides = array<i32>} : memref<37x256xf32, #tpu.memory_space<vmem>>, vector<1x256xf32>,
    %972 = vector.extract_strided_slice %947 {offsets = [0, 51], sizes = [1, 256], strides = [1, 1]} : vector<1x324xf32> to vector<1x256xf32>
    %973 = arith.mulf %972, %918 : vector<1x256xf32>
    %c18_603 = arith.constant 18 : index
    %c0_604 = arith.constant 0 : index
    %974 = vector.load %arg8[%c18_603, %c0_604] : memref<37x256xf32, #tpu.memory_space<vmem>>, vector<1x256xf32>
    tpu.vector_store %arg8[%c18_603, %c0_604], %973 {strides = array<i32>} : memref<37x256xf32, #tpu.memory_space<vmem>>, vector<1x256xf32>,
    %c9_605 = arith.constant 9 : index
    %c0_606 = arith.constant 0 : index
    %c0_607 = arith.constant 0 : index
    %975 = vector.load %arg2[%c9_605, %c0_606, %c0_607] : memref<10x4x37xf32, #tpu.memory_space<vmem>>, vector<1x4x37xf32>
    %976 = vector.shape_cast %975 : vector<1x4x37xf32> to vector<4x37xf32>
    %977 = vector.extract_strided_slice %976 {offsets = [0, 0], sizes = [4, 19], strides = [1, 1]} : vector<4x37xf32> to vector<4x19xf32>
    %c0_608 = arith.constant 0 : index
    %c0_609 = arith.constant 0 : index
    %978 = vector.load %arg8[%c0_608, %c0_609] : memref<37x256xf32, #tpu.memory_space<vmem>>, vector<19x256xf32>
    %cst_610 = arith.constant dense<0.000000e+00> : vector<4x256xf32>
    %979 = tpu.matmul %977, %978, %cst_610 {dimension_numbers = #tpu.dot_dimension_numbers<[1], [0], [0], [1], [0, 0, 1, 1], [], []>} : vector<4x19xf32>, vector<19x256xf32>, vector<4x256xf32> -> vector<4x256xf32>
    %c0_611 = arith.constant 0 : index
    %c0_612 = arith.constant 0 : index
    %980 = vector.load %arg7[%c0_611, %c0_612] : memref<4x256xf32, #tpu.memory_space<vmem>>, vector<4x256xf32>
    %981 = arith.addf %979, %980 : vector<4x256xf32>
    %982 = vector.extract_strided_slice %981 {offsets = [0, 0], sizes = [2, 256], strides = [1, 1]} : vector<4x256xf32> to vector<2x256xf32>
    %983 = vector.extract_strided_slice %981 {offsets = [2, 0], sizes = [2, 256], strides = [1, 1]} : vector<4x256xf32> to vector<2x256xf32>
    %cst_613 = arith.constant 0.000000e+00 : f32
    %984 = vector.broadcast %cst_613 : f32 to vector<2x256xf32>
    %985 = arith.cmpf oge, %982, %984 : vector<2x256xf32>
    %986 = vector.broadcast %1 : f32 to vector<2x256xf32>
    %987 = arith.mulf %986, %982 : vector<2x256xf32>
    %988 = arith.select %985, %982, %987 : vector<2x256xi1>, vector<2x256xf32>
    %989 = arith.negf %983 : vector<2x256xf32>
    %990 = math.exp %989 : vector<2x256xf32>
    %cst_614 = arith.constant 1.000000e+00 : f32
    %991 = vector.broadcast %cst_614 : f32 to vector<2x256xf32>
    %992 = arith.addf %991, %990 : vector<2x256xf32>
    %993 = arith.divf %991, %992 : vector<2x256xf32>
    %994 = arith.mulf %988, %993 : vector<2x256xf32>
    %c0_615 = arith.constant 0 : index
    %c0_616 = arith.constant 0 : index
    %c0_617 = arith.constant 0 : index
    %995 = vector.load %arg5[%c0_615, %c0_616, %c0_617] : memref<1x2x256xf32, #tpu.memory_space<vmem>>, vector<1x2x256xf32>
    %996 = vector.shape_cast %995 : vector<1x2x256xf32> to vector<2x256xf32>
    %997 = vector.shape_cast %994 : vector<2x256xf32> to vector<1x2x256xf32>
    tpu.vector_store %arg5[%c0_615, %c0_616, %c0_617], %997 {strides = array<i32>} : memref<1x2x256xf32, #tpu.memory_space<vmem>>, vector<1x2x256xf32>,
    return
  }
  func.func @transform_0(%arg0: i32) -> (i32, i32, i32) {
    %c0_i32 = arith.constant 0 : i32
    %c0_i32_0 = arith.constant 0 : i32
    %c0_i32_1 = arith.constant 0 : i32
    return %arg0, %c0_i32, %c0_i32_0 : i32, i32, i32
  }
  func.func @transform_1(%arg0: i32) -> (i32, i32, i32) {
    %c0_i32 = arith.constant 0 : i32
    %c0_i32_0 = arith.constant 0 : i32
    %c0_i32_1 = arith.constant 0 : i32
    %c0_i32_2 = arith.constant 0 : i32
    return %c0_i32, %c0_i32_0, %c0_i32_1 : i32, i32, i32
  }
  func.func @transform_2(%arg0: i32) -> (i32, i32, i32) {
    %c0_i32 = arith.constant 0 : i32
    %c0_i32_0 = arith.constant 0 : i32
    %c0_i32_1 = arith.constant 0 : i32
    %c0_i32_2 = arith.constant 0 : i32
    return %c0_i32, %c0_i32_0, %c0_i32_1 : i32, i32, i32
  }
  func.func @transform_3(%arg0: i32) -> i32 {
    %c0_i32 = arith.constant 0 : i32
    %c0_i32_0 = arith.constant 0 : i32
    return %c0_i32 : i32
  }
  func.func @transform_4(%arg0: i32) -> (i32, i32, i32) {
    %c0_i32 = arith.constant 0 : i32
    %c0_i32_0 = arith.constant 0 : i32
    %c0_i32_1 = arith.constant 0 : i32
    return %arg0, %c0_i32, %c0_i32_0 : i32, i32, i32
  }
}

</mosaic_0001>

<bundles_post_ra>
// kernel: tpu_custom_call.1
= control target key start
LH: loop header
LB: loop body
LE: loop exit
PB: predicated region body
PF: predicated region fallthrough
CT: control target
= control target key end

     0   :  { %s6934_s0 = inlined_call_operand.vmem [shape: f32[2,4,256], index: 0, kind: input, shape index: {}]   ;;  %s6935_s1 = inlined_call_operand.vmem [shape: f32[10,4,37], index: 1, kind: input, shape index: {}]   ;;  %s6936_s2 = inlined_call_operand.vmem [shape: f32[10,9,256], index: 2, kind: input, shape index: {}]   ;;  %s6937_s3 = inlined_call_operand.vmem [shape: f32[2], index: 3, kind: input, shape index: {}]   ;;  %s6938_s4 = inlined_call_operand.hbm [shape: f32[2,2,256], index: 4, kind: output, shape index: {}]  }
   0x1   :  { %7052 = sst [smem:[#allocation20_spill]] %s6934_s0 }
   0x2   :  { %7053 = sst [smem:[#allocation21_spill]] %s6937_s3 }
   0x3   :  { %7054 = sst [smem:[#allocation22_spill]] %s6938_s4 }
   0x4   :  { %9 = vsyncpa [#allocation7], 0 }
   0x5   :  { %10 = vsyncpa [#allocation6], 0 }
   0x6   :  { %12 = vsyncpa [#allocation6 + $0x1], 0  ;;  %s5260_s15 = smov 0   ;;  %s5262_s16 = smov 0  }
   0x7   :  { %s5264_s17 = smov 0   ;;  %s5266_s18 = smov 0  }
   0x8 LB: > { %7055 = sst [smem:[#allocation11_spill]] %s5185_s15  ;;  %s5281_s19 = sadd.s32 4294967295, %s5197_s18   ;;  %s5197_s18 = sphi %s5266_s18, %s7266_s18   ;;  %s5193_s17 = sphi %s5264_s17, %s7269_s17   ;;  %s5189_s16 = sphi %s5262_s16, %s7268_s16   ;;  %s5185_s15 = sphi %s5260_s15, %s7267_s15  }
   0x9   : > { %7056 = sst [smem:[#allocation12_spill]] %s5189_s16  ;;  %s4803_s20 = sadd.s32 4294967294, %s5197_s18  }
   0xa   : > { %7057 = sst [smem:[#allocation13_spill]] %s5193_s17  ;;  %s5285_s21 = sadd.s32 1, %s5197_s18  }
   0xb   : > { %7058 = sst [smem:[#allocation14_spill]] %s5197_s18  ;;  %s114_s22 = sadd.s32 1, %s5193_s17 }
   0xc   : > { %7059 = sst [smem:[#allocation15_spill]] %s5281_s19  ;;  %s111_s23 = ssub.s32 %s5197_s18, %s5285_s21 }
   0xd   : > { %7060 = sst [smem:[#allocation16_spill]] %s5285_s21  ;;  %p124_p0 = scmp.ne.s32.totalorder %s5193_s17, %s5189_s16 }
   0xe   : > { %p112_p1 = scmp.eq.s32.totalorder %s111_s23, 0  ;;  %p125_p2 = scmp.eq.s32.totalorder %s5281_s19, 1 }
   0xf   : > { %p130_p3 = scmp.ne.s32.totalorder %s5189_s16, %s5185_s15  ;;  %p131_p4 = scmp.eq.s32.totalorder %s4803_s20, 1 }
  0x10   : > { %s5296_s24 = scalar_select %p112_p1, %s5193_s17, %s114_s22  }
  0x11   : > { %p5298_p5 = por %p125_p2, %p124_p0  ;;  %p5302_p6 = por %p131_p4, %p130_p3 }
  0x12   : > { %7061 = sst [smem:[#allocation17_spill]] %s5296_s24  ;;  %p4804_p7 = scmp.ge.s32.totalorder %s5197_s18, 1 }
  0x13   : > { %s7062_s25 = scalar_select %p5298_p5, 1, 0 }
  0x14   : > { %s7064_s26 = scalar_select %p5302_p6, 1, 0 }
  0x15   : > { %7063 = sst [smem:[#allocation18_spill]] %s7062_s25  ;;  %p138_p8 = scmp.lt.s32.totalorder %s5197_s18, 3 }
  0x16   : > { %7065 = sst [smem:[#allocation19_spill]] %s7064_s26  ;;  %p4936_p9 = scmp.eq.s32.totalorder %s5281_s19, 0 }
  0x17   : > { %p5309_p10 = pnand %p4804_p7, %p138_p8  ;;  %s7067_s3 = sld [smem:[#allocation21_spill]] }
  0x19   : > { %p4928_p11 = pneg %p5309_p10 }
  0x1b   : > { %p4929_p12 = pnand %p4936_p9, %p4928_p11 }
  0x1d   : > { %s157_s30 = sshll.u32 %s7067_s3, 4  ;;  %p5120_p0 = pneg %p4929_p12  ;;  %s158_s30 = int_to_ptr.vmem [resolvable:$true] %s157_s30 }
  0x1e   : > { %s5118_s5 = scalar_lea.vmem %s158_s30, 16  ;;  %p5126_p3 = scmp.lt.s32.totalorder %s158_s30, %s158_s30 }
  0x1f   : > { %p5119_p13 = scmp.ne.s32.totalorder %s158_s30, %s5118_s5  ;;  %p5127_p4 = scmp.lt.s32.totalorder %s5118_s5, %s5118_s5 }
  0x21   : > { %p5121_p1 = pnand %p5120_p0, %p5119_p13  ;;  %p5128_p7 = por %p5127_p4, %p5126_p3 }
  0x23   : > { %p5122_p2 = pneg %p5121_p1 }
  0x25   : > { %p5129_p8 = pnand %p5128_p7, %p5122_p2 }
  0x27   : > { %5132 = shalt.err (!%p5129_p8)
}
  0x28   : > { %s5199_s6 = smov [#allocation5]   ;;  %178 = sbr.rel (%p5309_p10) target bundleno = 5321 (0x14c9), region = 36 }
  0x29   : > { %4931 = dma.vmem_to_smem (!%p4929_p12), %s158_s30, 16, %s5199_s6, [#allocation7]  }
  0x2d   : > { %5176 = dma.done.wait (%p4936_p9), [#allocation7], 16  }
  0x2e   : > { %5178 = vsyncadd (%p4936_p9), [#allocation7], 4294967280 }
  0x2f   : > { %184 = sfence }
  0x30   : > { %p205_p11 = scmp.lt.s32.totalorder %s5281_s19, 1  ;;  %v230_v0 = vlaneseq  ;;  %v5200_v1 = vmov 1966171168   ;;  %vm212_vm0 = vcmask 273408   ;;  %v5007_v5 = vld [vmem:[%s6936_s2 + $0x4] ss:$8 sps:$4 sm:$0xff]  }
  0x31   : > { %v245_v2 = vunpack.c.l.s4 %v5200_v1  ;;  %v5006_v4 = vld [vmem:[%s6936_s2 + $0x10] ss:$8 sps:$4 sm:$0x11]   ;;  %v5009_v7 = vld [vmem:[%s6936_s2] ss:$8 sps:$4 sm:$0xff]   ;;  %vm214_vm1 = vcmask 552208  }
  0x32   : > { %s206_s7 = scalar_select %p205_p11, %s5281_s19, 1  ;;  %v248_v3 = vshrl.u32 %v230_v0, 7  ;;  %v5201_v8 = vmov 0.0   ;;  %vm225_vm2 = vcmask 1043728   ;;  %vm226_vm3 = vcmask 1047556  }
  0x33   : > { %v246_v6 = vunpack.c.0.s8 %v245_v2  ;;  %s7068_s0 = sld [smem:[#allocation20_spill]]  ;;  %213 = vst.msk [vmem:[#allocation2] sm:$0xf] %vm212_vm0, %v5201_v8  ;;  %824 = vmatprep.mubr.f32.mxu0 %v5201_v8  ;;  %1381 = vmatprep.mubr.f32.mxu1 %v5201_v8  ;;  %s7010_s27 = smov 34   ;;  %vm221_vm4 = vcmask 277504   ;;  %vm5366_vm5 = vmor %vm226_vm3, %vm225_vm2  ;;  %vm378_vm6 = vcmask 285696  }
  0x34   : > { %s4912_s12 = sshll.u32 %s206_s7, 3  ;;  %215 = vst.msk [vmem:[#allocation2 + $0x8] sm:$0xf] %vm214_vm1, %v5201_v8  ;;  %s7019_s28 = smov 51   ;;  %vm396_vm7 = vcmask 400384   ;;  %vm6950_vm8 = vcmask 408576  }
  0x35   : > { %v5346_v10 = vsub.s32 %v246_v6, %v248_v3  ;;  %s6952_s29 = smov 35   ;;  %s6968_s30 = smov 17   ;;  %vm6949_vm9 = vcmask 416768   ;;  %vm6948_vm10 = vcmask 138240   ;;  %vm6947_vm11 = vcmask 146432  }
  0x36   : > { %s7023_s5 = smov 49   ;;  %s7021_s6 = smov 50   ;;  %vm6946_vm12 = vcmask 154624   ;;  %vm6945_vm13 = vcmask 269312   ;;  %vm5435_vm14 = vcmp.lt.s32.totalorder %v230_v0, 256  ;;  %vm6972_vm15 = vcmask 760832  }
  0x37   : > { %v437_v11 = vrot.slane %v5006_v4, %v5346_v10  ;;  %v343_v12 = vrot.slane %v5007_v5, %v5346_v10  ;;  %v250_v13 = vrot.slane %v5009_v7, %v5346_v10  ;;  %s7017_s7 = smov 18   ;;  %s6939_s8 = smov 19   ;;  %vm361_vm1 = vcmask 769024  }
  0x38   : > { %s7014_s9 = smov 33   ;;  %s6958_s10 = smov 93   ;;  %vm422_vm2 = vcmask 637952   ;;  %vm404_vm3 = vcmask 646144  }
  0x39   : > { %s209_s23 = scalar_lea.vmem %s7068_s0, %s4912_s12  ;;  %v444_v14 = vrot.slane %v437_v11, %v5346_v10  ;;  %v350_v15 = vrot.slane %v343_v12, %v5346_v10  ;;  %v367_v16 = vcombine.high %v343_v12, %v343_v12  ;;  %v257_v18 = vrot.slane %v250_v13, %v5346_v10  ;;  %s7008_s11 = smov 94  }
  0x3a   : > { %v216_v9 = vld [vmem:[%s209_s23] sm:$0xff]  ;;  %v275_v21 = vcombine.high %v250_v13, %v250_v13  ;;  %s6964_s12 = smov 79   ;;  %s6966_s13 = smov 78  }
  0x3b   : > { %218 = vrot.lane.b32.xlu0 %v216_v9, %s7010_s27  ;;  %445 = vrot.lane.b32.xlu1 %v444_v14, %s7019_s28  ;;  %v374_v17 = vrot.slane %v367_v16, %v5346_v10  ;;  %v392_v19 = vcombine.high %v350_v15, %v350_v15  ;;  %v300_v23 = vcombine.high %v257_v18, %v257_v18  ;;  %s6943_s14 = smov 77   ;;  %s6941_s20 = smov 111  }
  0x3c   : > { %v282_v22 = vrot.slane %v275_v21, %v5346_v10  ;;  %s6960_s22 = smov 110   ;;  %s6962_s23 = smov 109  }
  0x3d   : > { %v410_v20 = vcombine.high %v374_v17, %v374_v17  ;;  %s7125_s0 = smov 2   ;;  %s7126_s3 = smov 32  }
  0x3e   : > { %v318_v24 = vcombine.high %v282_v22, %v282_v22  ;;  %s7127_s24 = smov 36   ;;  %s7130_s17 = smov 62  }
  0x3f   : > { %351 = vrot.lane.b32.xlu0 %v350_v15, %s7010_s27  ;;  %375 = vrot.lane.b32.xlu1 %v374_v17, %s6952_s29  ;;  %s7132_s21 = smov 60   ;;  %s7135_s26 = smov 126  }
  0x40   : > { %s7137_s15 = smov 96   ;;  %s7138_s18 = smov 124  }
  0x41   : > { %s7139_s4 = smov 92   ;;  %s7152_s16 = smov 51  }
  0x42   : > { %s7154_s19 = smov 33   ;;  %s7181_s25 = smov 96  }
  0x43   : > { %258 = vrot.lane.b32.xlu0 %v257_v18, %s6968_s30  ;;  %393 = vrot.lane.b32.xlu1 %v392_v19, %s7023_s5 }
  0x47   : > { %411 = vrot.lane.b32.xlu0 %v410_v20, %s7021_s6  ;;  %283 = vrot.lane.b32.xlu1 %v282_v22, %s7017_s7 }
  0x4b   : > { %301 = vrot.lane.b32.xlu0 %v300_v23, %s6939_s8  ;;  %319 = vrot.lane.b32.xlu1 %v318_v24, %s7014_s9  ;;  %s6954_s8 = smov 95  }
  0xad   : > { %v219_v25 = vpop.permute.xlu0 %218  ;;  %v446_v29 = vpop.permute.xlu1 %445 }
  0xae   : > { %v220_v27 = vrot.slane %v219_v25, 4  ;;  %v447_v44 = vrot.slane %v446_v29, 7 }
  0xb0   : > { %v222_v28 = vsel %vm221_vm4, %v220_v27, %v219_v25  ;;  %229 = vst.msk [vmem:[#allocation2 + $0x8] sm:$0xf] %vm212_vm0, %v220_v27  ;;  %v449_v50 = vsel %vm6949_vm9, %v447_v44, %v446_v29  ;;  %vm6957_vm9 = vcmask 900096  }
  0xb1   : > { %228 = vst.msk [vmem:[#allocation2] sm:$0xff] %vm5366_vm5, %v222_v28  ;;  %v352_v30 = vpop.permute.xlu0 %351  ;;  %v376_v32 = vpop.permute.xlu1 %375 }
  0xb2   : > { %v353_v31 = vrot.slane %v352_v30, 7  ;;  %v377_v34 = vrot.slane %v376_v32, 7 }
  0xb4   : > { %v5375_v35 = vsel %vm221_vm4, %v353_v31, %v352_v30  ;;  %v5378_v36 = vsel %vm378_vm6, %v377_v34, %v376_v32 }
  0xb5   : > { %v259_v33 = vpop.permute.xlu0 %258  ;;  %v394_v38 = vpop.permute.xlu1 %393 }
  0xb6   : > { %v395_v42 = vrot.slane %v394_v38, 7  ;;  %v260_v54 = vrot.slane %v259_v33, 7 }
  0xb8   : > { %v647_v37 = vld [vmem:[#allocation2 + $0x3] ss:$4 sm:$0x7]  ;;  %v5385_v45 = vsel %vm396_vm7, %v395_v42, %v394_v38  ;;  %v555_v49 = vld [vmem:[#allocation2 + $0x2] ss:$4 sm:$0x7]  ;;  %v262_v58 = vsel %vm6948_vm10, %v260_v54, %v259_v33 }
  0xb9   : > { %v412_v39 = vpop.permute.xlu0 %411  ;;  %v698_v40 = vmul.f32 %v647_v37, %v5378_v36  ;;  %v688_v41 = vmul.f32 %v647_v37, %v5375_v35  ;;  %v708_v47 = vmul.f32 %v647_v37, %v5385_v45  ;;  %v284_v51 = vpop.permute.xlu1 %283  ;;  %v728_v52 = vmul.f32 %v647_v37, %v449_v50  ;;  %v463_v7 = vld [vmem:[#allocation2 + $0x1] ss:$4 sm:$0x7]  ;;  %v240_v18 = vld [vmem:[#allocation2] ss:$4 sm:$0x7] }
  0xba   : > { %v413_v43 = vrot.slane %v412_v39, 7  ;;  %v606_v53 = vmul.f32 %v555_v49, %v5378_v36  ;;  %v616_v56 = vmul.f32 %v555_v49, %v5385_v45  ;;  %v285_v59 = vrot.slane %v284_v51, 7 }
  0xbb   : > { %700 = vrot.lane.b32.xlu1 %v698_v40, %s6958_s10  ;;  %690 = vrot.lane.b32.xlu0 %v688_v41, %s7008_s11  ;;  %v636_v62 = vmul.f32 %v555_v49, %v449_v50  ;;  %v648_v63 = vmul.f32 %v647_v37, %v262_v58  ;;  %v524_v11 = vmul.f32 %v463_v7, %v5385_v45  ;;  %v5220_v33 = vmov 1.0  }
  0xbc   : > { %v5388_v46 = vsel %vm6950_vm8, %v413_v43, %v412_v39  ;;  %v287_v1 = vsel %vm6947_vm11, %v285_v59, %v284_v51  ;;  %v544_v13 = vmul.f32 %v463_v7, %v449_v50  ;;  %v556_v14 = vmul.f32 %v555_v49, %v262_v58  ;;  %234 = vst.msk [vmem:[#allocation4] ss:$8 sm:$0x3] %vm5435_vm14, %v5220_v33  ;;  %v5010_v39 = vld [vmem:[%s6936_s2 + $0x24] ss:$8 sps:$4 sm:$0xff]  }
  0xbd   : > { %v718_v48 = vmul.f32 %v647_v37, %v5388_v46  ;;  %v302_v55 = vpop.permute.xlu0 %301  ;;  %v626_v57 = vmul.f32 %v555_v49, %v5388_v46  ;;  %v320_v61 = vpop.permute.xlu1 %319  ;;  %v658_v4 = vmul.f32 %v647_v37, %v287_v1  ;;  %v534_v12 = vmul.f32 %v463_v7, %v5388_v46 }
  0xbe   : > { %v303_v60 = vrot.slane %v302_v55, 7  ;;  %v321_v3 = vrot.slane %v320_v61, 7  ;;  %v566_v15 = vmul.f32 %v555_v49, %v287_v1  ;;  %v417_v19 = vmul.f32 %v5388_v46, %v240_v18 }
  0xbf   : > { %710 = vrot.lane.b32.xlu0 %v708_v47, %s6964_s12  ;;  %720 = vrot.lane.b32.xlu1 %v718_v48, %s6966_s13  ;;  %v596_v20 = vmul.f32 %v555_v49, %v5375_v35  ;;  %v464_v21 = vmul.f32 %v463_v7, %v262_v58  ;;  %v451_v22 = vmul.f32 %v449_v50, %v240_v18  ;;  %vm753_vm11 = vcmask 1044480  }
  0xc0   : > { %v305_v2 = vsel %vm6946_vm12, %v303_v60, %v302_v55  ;;  %v323_v6 = vsel %vm6945_vm13, %v321_v3, %v320_v61  ;;  %v474_v23 = vmul.f32 %v463_v7, %v287_v1  ;;  %v504_v27 = vmul.f32 %v463_v7, %v5375_v35 }
  0xc1   : > { %v668_v5 = vmul.f32 %v647_v37, %v305_v2  ;;  %v678_v9 = vmul.f32 %v647_v37, %v323_v6  ;;  %v586_v16 = vmul.f32 %v555_v49, %v323_v6  ;;  %v576_v17 = vmul.f32 %v555_v49, %v305_v2 }
  0xc2   : > { %v484_v24 = vmul.f32 %v463_v7, %v305_v2  ;;  %v494_v25 = vmul.f32 %v463_v7, %v323_v6  ;;  %v514_v28 = vmul.f32 %v463_v7, %v5378_v36  ;;  %v264_v29 = vmul.f32 %v262_v58, %v240_v18 }
  0xc3   : > { %730 = vrot.lane.b32.xlu0 %v728_v52, %s6943_s14  ;;  %608 = vrot.lane.b32.xlu1 %v606_v53, %s6958_s10  ;;  %v289_v31 = vmul.f32 %v287_v1, %v240_v18  ;;  %v307_v32 = vmul.f32 %v305_v2, %v240_v18  ;;  %v325_v34 = vmul.f32 %v323_v6, %v240_v18  ;;  %vm7016_vm13 = vcmask 629760  }
  0xc4   : > { %v356_v37 = vmul.f32 %v5375_v35, %v240_v18  ;;  %v381_v0 = vmul.f32 %v5378_v36, %v240_v18  ;;  %v399_v38 = vmul.f32 %v5385_v45, %v240_v18  ;;  %v945_v40 = vrot.slane %v5010_v39, %v5346_v10 }
  0xc5   : > { %vm6993_vm12 = vcmask 908288   ;;  %vm6976_vm10 = vcmask 891904   ;;  %vm6951_vm8 = vcmask 777216  }
  0xc6   : > { %v967_v41 = vcombine.high %v945_v40, %v945_v40  ;;  %v5455_v35 = vrot.slane %v945_v40, %v5346_v10 }
  0xc7   : > { %618 = vrot.lane.b32.xlu0 %v616_v56, %s6964_s12  ;;  %628 = vrot.lane.b32.xlu1 %v626_v57, %s6966_s13 }
  0xc8   : > { %v5458_v42 = vrot.slane %v967_v41, %v5346_v10 }
  0xcb   : > { %638 = vrot.lane.b32.xlu0 %v636_v62, %s6943_s14  ;;  %650 = vrot.lane.b32.xlu1 %v648_v63, %s6941_s20 }
  0xcf   : > { %660 = vrot.lane.b32.xlu0 %v658_v4, %s6960_s22  ;;  %670 = vrot.lane.b32.xlu1 %v668_v5, %s6962_s23 }
  0xd3   : > { %680 = vrot.lane.b32.xlu0 %v678_v9, %s6954_s8  ;;  %526 = vrot.lane.b32.xlu1 %v524_v11, %s6964_s12 }
  0xd7   : > { %536 = vrot.lane.b32.xlu0 %v534_v12, %s6966_s13  ;;  %546 = vrot.lane.b32.xlu1 %v544_v13, %s6943_s14 }
  0xdb   : > { %558 = vrot.lane.b32.xlu0 %v556_v14, %s6941_s20  ;;  %568 = vrot.lane.b32.xlu1 %v566_v15, %s6960_s22 }
  0xdf   : > { %588 = vrot.lane.b32.xlu1 %v586_v16, %s6954_s8  ;;  %578 = vrot.lane.b32.xlu0 %v576_v17, %s6962_s23 }
  0xe3   : > { %419 = vrot.lane.b32.xlu1 %v417_v19, %s6966_s13  ;;  %598 = vrot.lane.b32.xlu0 %v596_v20, %s7008_s11 }
  0xe7   : > { %466 = vrot.lane.b32.xlu1 %v464_v21, %s6941_s20  ;;  %453 = vrot.lane.b32.xlu0 %v451_v22, %s6943_s14  ;;  %s7076_s14 = smov 77  }
  0xeb   : > { %476 = vrot.lane.b32.xlu0 %v474_v23, %s6960_s22  ;;  %486 = vrot.lane.b32.xlu1 %v484_v24, %s6962_s23 }
  0xef   : > { %496 = vrot.lane.b32.xlu0 %v494_v25, %s6954_s8  ;;  %506 = vrot.lane.b32.xlu1 %v504_v27, %s7008_s11 }
  0xf3   : > { %516 = vrot.lane.b32.xlu0 %v514_v28, %s6958_s10  ;;  %266 = vrot.lane.b32.xlu1 %v264_v29, %s6941_s20  ;;  %s7080_s20 = smov 111  }
  0xf7   : > { %291 = vrot.lane.b32.xlu0 %v289_v31, %s6960_s22  ;;  %309 = vrot.lane.b32.xlu1 %v307_v32, %s6962_s23 }
  0xfb   : > { %327 = vrot.lane.b32.xlu0 %v325_v34, %s6954_s8  ;;  %358 = vrot.lane.b32.xlu1 %v356_v37, %s7008_s11  ;;  %s7073_s8 = smov 19  }
  0xff   : > { %383 = vrot.lane.b32.xlu0 %v381_v0, %s6958_s10  ;;  %401 = vrot.lane.b32.xlu1 %v399_v38, %s6964_s12 }
 0x103   : > { %953 = vrot.lane.b32.xlu1 %v5455_v35, %s7010_s27  ;;  %975 = vrot.lane.b32.xlu0 %v5458_v42, %s6952_s29  ;;  %s210_s29 = sld [smem:[#allocation5]] }
 0x12d   : > { %v701_v36 = vpop.permute.xlu1 %700  ;;  %v691_v43 = vpop.permute.xlu0 %690 }
 0x12e   : > { %v702_v44 = vrot.slane %v701_v36, 1  ;;  %v692_v45 = vrot.slane %v691_v43, 1 }
 0x130   : > { %v703_v46 = vsel %vm6972_vm15, %v701_v36, %v702_v44  ;;  %v693_v47 = vsel %vm361_vm1, %v691_v43, %v692_v45 }
 0x131   : > { %706 = vst.msk [vmem:[#allocation4 + $0x41] ss:$8 sm:$0x3] %vm5435_vm14, %v703_v46  ;;  %696 = vst.msk [vmem:[#allocation4 + $0x40] ss:$8 sm:$0x3] %vm5435_vm14, %v693_v47  ;;  %v721_v48 = vpop.permute.xlu1 %720  ;;  %v711_v49 = vpop.permute.xlu0 %710 }
 0x132   : > { %v722_v50 = vrot.slane %v721_v48, 1  ;;  %v712_v51 = vrot.slane %v711_v49, 1 }
 0x134   : > { %v723_v52 = vsel %vm422_vm2, %v721_v48, %v722_v50  ;;  %v713_v53 = vsel %vm404_vm3, %v711_v49, %v712_v51 }
 0x135   : > { %726 = vst.msk [vmem:[#allocation4 + $0x43] ss:$8 sm:$0x3] %vm5435_vm14, %v723_v52  ;;  %716 = vst.msk [vmem:[#allocation4 + $0x42] ss:$8 sm:$0x3] %vm5435_vm14, %v713_v53  ;;  %v609_v54 = vpop.permute.xlu1 %608  ;;  %v731_v55 = vpop.permute.xlu0 %730 }
 0x136   : > { %v610_v56 = vrot.slane %v609_v54, 1  ;;  %v732_v57 = vrot.slane %v731_v55, 1 }
 0x138   : > { %v611_v58 = vsel %vm6972_vm15, %v609_v54, %v610_v56  ;;  %v733_v59 = vsel %vm7016_vm13, %v731_v55, %v732_v57 }
 0x139   : > { %614 = vst.msk [vmem:[#allocation4 + $0x30] ss:$8 sm:$0x3] %vm5435_vm14, %v611_v58  ;;  %736 = vst.msk [vmem:[#allocation4 + $0x44] ss:$8 sm:$0x3] %vm5435_vm14, %v733_v59  ;;  %v629_v60 = vpop.permute.xlu1 %628  ;;  %v619_v61 = vpop.permute.xlu0 %618 }
 0x13a   : > { %v630_v62 = vrot.slane %v629_v60, 1  ;;  %v620_v63 = vrot.slane %v619_v61, 1 }
 0x13c   : > { %v631_v1 = vsel %vm422_vm2, %v629_v60, %v630_v62  ;;  %v621_v2 = vsel %vm404_vm3, %v619_v61, %v620_v63 }
 0x13d   : > { %634 = vst.msk [vmem:[#allocation4 + $0x32] ss:$8 sm:$0x3] %vm5435_vm14, %v631_v1  ;;  %624 = vst.msk [vmem:[#allocation4 + $0x31] ss:$8 sm:$0x3] %vm5435_vm14, %v621_v2  ;;  %v651_v3 = vpop.permute.xlu1 %650  ;;  %v639_v4 = vpop.permute.xlu0 %638 }
 0x13e   : > { %v652_v5 = vrot.slane %v651_v3, 1  ;;  %v640_v6 = vrot.slane %v639_v4, 1 }
 0x140   : > { %v653_v7 = vsel %vm6993_vm12, %v651_v3, %v652_v5  ;;  %v641_v9 = vsel %vm7016_vm13, %v639_v4, %v640_v6  ;;  %v748_v11 = vld [vmem:[#allocation4 + $0x48] sm:$0x1f]  ;;  %v747_v12 = vld [vmem:[#allocation4 + $0x40] sm:$0x1f] }
 0x141   : > { %656 = vst.msk [vmem:[#allocation4 + $0x34] ss:$8 sm:$0x3] %vm5435_vm14, %v653_v7  ;;  %644 = vst.msk [vmem:[#allocation4 + $0x33] ss:$8 sm:$0x3] %vm5435_vm14, %v641_v9  ;;  %v671_v13 = vpop.permute.xlu1 %670  ;;  %4813 = vmatprep.subr.msk.mxu0 %vm753_vm11, %v748_v11  ;;  %v661_v14 = vpop.permute.xlu0 %660 }
 0x142   : > { %v672_v15 = vrot.slane %v671_v13, 1  ;;  %v662_v16 = vrot.slane %v661_v14, 1  ;;  %4814 = vmatpush1.msk.msra.mxu0 %vm753_vm11, %v747_v12 }
 0x144   : > { %v673_v17 = vsel %vm6976_vm10, %v671_v13, %v672_v15  ;;  %v663_v18 = vsel %vm6957_vm9, %v661_v14, %v662_v16 }
 0x145   : > { %676 = vst.msk [vmem:[#allocation4 + $0x36] ss:$8 sm:$0x3] %vm5435_vm14, %v673_v17  ;;  %666 = vst.msk [vmem:[#allocation4 + $0x35] ss:$8 sm:$0x3] %vm5435_vm14, %v663_v18  ;;  %v527_v19 = vpop.permute.xlu1 %526  ;;  %v681_v20 = vpop.permute.xlu0 %680 }
 0x146   : > { %v528_v21 = vrot.slane %v527_v19, 1  ;;  %v682_v22 = vrot.slane %v681_v20, 1 }
 0x148   : > { %v529_v23 = vsel %vm404_vm3, %v527_v19, %v528_v21  ;;  %v683_v24 = vsel %vm6951_vm8, %v681_v20, %v682_v22 }
 0x149   : > { %532 = vst.msk [vmem:[#allocation4 + $0x20] ss:$8 sm:$0x3] %vm5435_vm14, %v529_v23  ;;  %686 = vst.msk [vmem:[#allocation4 + $0x37] ss:$8 sm:$0x3] %vm5435_vm14, %v683_v24  ;;  %v547_v25 = vpop.permute.xlu1 %546  ;;  %v537_v27 = vpop.permute.xlu0 %536 }
 0x14a   : > { %v548_v28 = vrot.slane %v547_v25, 1  ;;  %v538_v29 = vrot.slane %v537_v27, 1 }
 0x14c   : > { %v549_v31 = vsel %vm7016_vm13, %v547_v25, %v548_v28  ;;  %v539_v32 = vsel %vm422_vm2, %v537_v27, %v538_v29 }
 0x14d   : > { %552 = vst.msk [vmem:[#allocation4 + $0x22] ss:$8 sm:$0x3] %vm5435_vm14, %v549_v31  ;;  %542 = vst.msk [vmem:[#allocation4 + $0x21] ss:$8 sm:$0x3] %vm5435_vm14, %v539_v32  ;;  %v569_v33 = vpop.permute.xlu1 %568  ;;  %v559_v34 = vpop.permute.xlu0 %558 }
 0x14e   : > { %v570_v37 = vrot.slane %v569_v33, 1  ;;  %v560_v0 = vrot.slane %v559_v34, 1 }
 0x150   : > { %v571_v38 = vsel %vm6957_vm9, %v569_v33, %v570_v37  ;;  %v561_v39 = vsel %vm6993_vm12, %v559_v34, %v560_v0  ;;  %v746_v40 = vld [vmem:[#allocation4 + $0x38] sm:$0xff]  ;;  %v745_v41 = vld [vmem:[#allocation4 + $0x30] sm:$0xff] }
 0x151   : > { %574 = vst.msk [vmem:[#allocation4 + $0x24] ss:$8 sm:$0x3] %vm5435_vm14, %v571_v38  ;;  %564 = vst.msk [vmem:[#allocation4 + $0x23] ss:$8 sm:$0x3] %vm5435_vm14, %v561_v39  ;;  %v589_v36 = vpop.permute.xlu1 %588  ;;  %784 = vmatprep.subr.mxu0 %v746_v40  ;;  %v579_v43 = vpop.permute.xlu0 %578 }
 0x152   : > { %v590_v44 = vrot.slane %v589_v36, 1  ;;  %v580_v45 = vrot.slane %v579_v43, 1  ;;  %785 = vmatpush1.msra.mxu0 %v745_v41 }
 0x154   : > { %v591_v46 = vsel %vm6951_vm8, %v589_v36, %v590_v44  ;;  %v581_v47 = vsel %vm6976_vm10, %v579_v43, %v580_v45  ;;  %v738_v44 = vld [vmem:[%s6935_s1] sm:$0xf]  ;;  %v1004_v45 = vcombine.high %v5458_v42, %v5458_v42 }
 0x155   : > { %594 = vst.msk [vmem:[#allocation4 + $0x26] ss:$8 sm:$0x3] %vm5435_vm14, %v591_v46  ;;  %584 = vst.msk [vmem:[#allocation4 + $0x25] ss:$8 sm:$0x3] %vm5435_vm14, %v581_v47  ;;  %v420_v48 = vpop.permute.xlu1 %419  ;;  %v599_v49 = vpop.permute.xlu0 %598  ;;  %v989_v46 = vcombine.high %v5455_v35, %v5455_v35 }
 0x156   : > { %v421_v50 = vrot.slane %v420_v48, 1  ;;  %v600_v51 = vrot.slane %v599_v49, 1  ;;  %1005 = vrot.lane.b32.xlu0 %v1004_v45, %s7021_s6  ;;  %v5012_v47 = vld [vmem:[%s6936_s2 + $0x30] ss:$8 sps:$4 sm:$0x11]  }
 0x157   : > { %990 = vrot.lane.b32.xlu1 %v989_v46, %s7023_s5 }
 0x158   : > { %v423_v52 = vsel %vm422_vm2, %v420_v48, %v421_v50  ;;  %v601_v53 = vsel %vm361_vm1, %v599_v49, %v600_v51  ;;  %v1028_v48 = vrot.slane %v5012_v47, %v5346_v10  ;;  %v5013_v49 = vld [vmem:[%s6936_s2 + $0x20] ss:$8 sps:$4 sm:$0xff]  }
 0x159   : > { %426 = vst.msk [vmem:[#allocation4 + $0x10] ss:$8 sm:$0x3] %vm5435_vm14, %v423_v52  ;;  %604 = vst.msk [vmem:[#allocation4 + $0x27] ss:$8 sm:$0x3] %vm5435_vm14, %v601_v53  ;;  %v467_v54 = vpop.permute.xlu1 %466  ;;  %v454_v55 = vpop.permute.xlu0 %453  ;;  %v864_v42 = vrot.slane %v5013_v49, %v5346_v10  ;;  %v833_v53 = vstv %s210_s29 }
 0x15a   : > { %v468_v56 = vrot.slane %v467_v54, 1  ;;  %v455_v57 = vrot.slane %v454_v55, 1  ;;  %v1035_v50 = vrot.slane %v1028_v48, %v5346_v10  ;;  %s7082_s29 = smov 95  }
 0x15b   : > { %v886_v51 = vcombine.high %v864_v42, %v864_v42 }
 0x15c   : > { %v469_v58 = vsel %vm6993_vm12, %v467_v54, %v468_v56  ;;  %v457_v59 = vsel %vm7016_vm13, %v454_v55, %v455_v57  ;;  %1036 = vrot.lane.b32.xlu1 %v1035_v50, %s7019_s28 }
 0x15d   : > { %472 = vst.msk [vmem:[#allocation4 + $0x12] ss:$8 sm:$0x3] %vm5435_vm14, %v469_v58  ;;  %460 = vst.msk [vmem:[#allocation4 + $0x11] ss:$8 sm:$0x3] %vm5435_vm14, %v457_v59  ;;  %v487_v60 = vpop.permute.xlu1 %486  ;;  %v477_v61 = vpop.permute.xlu0 %476  ;;  %v893_v35 = vrot.slane %v886_v51, %v5346_v10 }
 0x15e   : > { %v488_v62 = vrot.slane %v487_v60, 1  ;;  %v478_v63 = vrot.slane %v477_v61, 1 }
 0x15f   : > { %v923_v52 = vcombine.high %v893_v35, %v893_v35 }
 0x160   : > { %v743_v1 = vld [vmem:[#allocation4 + $0x20] sm:$0xff]  ;;  %v744_v2 = vld [vmem:[#allocation4 + $0x28] sm:$0xff]  ;;  %v489_v3 = vsel %vm6976_vm10, %v487_v60, %v488_v62  ;;  %v479_v4 = vsel %vm6957_vm9, %v477_v61, %v478_v63  ;;  %894 = vrot.lane.b32.xlu1 %v893_v35, %s7017_s7  ;;  %v871_v61 = vrot.slane %v864_v42, %v5346_v10 }
 0x161   : > { %492 = vst.msk [vmem:[#allocation4 + $0x14] ss:$8 sm:$0x3] %vm5435_vm14, %v489_v3  ;;  %482 = vst.msk [vmem:[#allocation4 + $0x13] ss:$8 sm:$0x3] %vm5435_vm14, %v479_v4  ;;  %v507_v5 = vpop.permute.xlu1 %506  ;;  %786 = vmatprep.subr.mxu0 %v744_v2  ;;  %v497_v6 = vpop.permute.xlu0 %496 }
 0x162   : > { %v508_v7 = vrot.slane %v507_v5, 1  ;;  %v498_v9 = vrot.slane %v497_v6, 1  ;;  %787 = vmatpush1.msra.mxu0 %v743_v1  ;;  %v908_v62 = vcombine.high %v871_v61, %v871_v61 }
 0x164   : > { %v509_v11 = vsel %vm361_vm1, %v507_v5, %v508_v7  ;;  %v499_v12 = vsel %vm6951_vm8, %v497_v6, %v498_v9  ;;  %924 = vrot.lane.b32.xlu1 %v923_v52, %s7014_s9 }
 0x165   : > { %512 = vst.msk [vmem:[#allocation4 + $0x16] ss:$8 sm:$0x3] %vm5435_vm14, %v509_v11  ;;  %502 = vst.msk [vmem:[#allocation4 + $0x15] ss:$8 sm:$0x3] %vm5435_vm14, %v499_v12  ;;  %v267_v13 = vpop.permute.xlu1 %266  ;;  %v517_v14 = vpop.permute.xlu0 %516 }
 0x166   : > { %v268_v15 = vrot.slane %v267_v13, 1  ;;  %v518_v16 = vrot.slane %v517_v14, 1 }
 0x168   : > { %v270_v17 = vsel %vm6993_vm12, %v267_v13, %v268_v15  ;;  %v519_v18 = vsel %vm6972_vm15, %v517_v14, %v518_v16 }
 0x169   : > { %273 = vst.msk [vmem:[#allocation4 + $0x1] ss:$8 sm:$0x3] %vm5435_vm14, %v270_v17  ;;  %522 = vst.msk [vmem:[#allocation4 + $0x17] ss:$8 sm:$0x3] %vm5435_vm14, %v519_v18  ;;  %v310_v19 = vpop.permute.xlu1 %309  ;;  %v292_v20 = vpop.permute.xlu0 %291 }
 0x16a   : > { %v311_v21 = vrot.slane %v310_v19, 1  ;;  %v293_v22 = vrot.slane %v292_v20, 1 }
 0x16c   : > { %v313_v23 = vsel %vm6976_vm10, %v310_v19, %v311_v21  ;;  %v295_v24 = vsel %vm6957_vm9, %v292_v20, %v293_v22 }
 0x16d   : > { %316 = vst.msk [vmem:[#allocation4 + $0x3] ss:$8 sm:$0x3] %vm5435_vm14, %v313_v23  ;;  %298 = vst.msk [vmem:[#allocation4 + $0x2] ss:$8 sm:$0x3] %vm5435_vm14, %v295_v24  ;;  %v359_v25 = vpop.permute.xlu1 %358  ;;  %v328_v27 = vpop.permute.xlu0 %327 }
 0x16e   : > { %v360_v28 = vrot.slane %v359_v25, 1  ;;  %v329_v29 = vrot.slane %v328_v27, 1 }
 0x170   : > { %v741_v31 = vld [vmem:[#allocation4 + $0x10] sm:$0xff]  ;;  %v742_v32 = vld [vmem:[#allocation4 + $0x18] sm:$0xff]  ;;  %v362_v33 = vsel %vm361_vm1, %v359_v25, %v360_v28  ;;  %v331_v34 = vsel %vm6951_vm8, %v328_v27, %v329_v29  ;;  %vm6956_vm8 = vcmask 302080  }
 0x171   : > { %365 = vst.msk [vmem:[#allocation4 + $0x5] ss:$8 sm:$0x3] %vm5435_vm14, %v362_v33  ;;  %334 = vst.msk [vmem:[#allocation4 + $0x4] ss:$8 sm:$0x3] %vm5435_vm14, %v331_v34  ;;  %v402_v37 = vpop.permute.xlu1 %401  ;;  %788 = vmatprep.subr.mxu0 %v742_v32  ;;  %v384_v0 = vpop.permute.xlu0 %383 }
 0x172   : > { %v403_v38 = vrot.slane %v402_v37, 1  ;;  %v385_v39 = vrot.slane %v384_v0, 1  ;;  %789 = vmatpush1.msra.mxu0 %v741_v31 }
 0x174   : > { %v405_v40 = vsel %vm404_vm3, %v402_v37, %v403_v38  ;;  %v387_v41 = vsel %vm6972_vm15, %v384_v0, %v385_v39 }
 0x175   : > { %408 = vst.msk [vmem:[#allocation4 + $0x7] ss:$8 sm:$0x3] %vm5435_vm14, %v405_v40  ;;  %390 = vst.msk [vmem:[#allocation4 + $0x6] ss:$8 sm:$0x3] %vm5435_vm14, %v387_v41  ;;  %v976_v63 = vpop.permute.xlu0 %975  ;;  %v954_v3 = vpop.permute.xlu1 %953 }
 0x176   : > { %v977_v7 = vrot.slane %v976_v63, 7  ;;  %v955_v9 = vrot.slane %v954_v3, 7 }
 0x178   : > { %v5607_v12 = vsel %vm378_vm6, %v977_v7, %v976_v63  ;;  %v5610_v13 = vsel %vm221_vm4, %v955_v9, %v954_v3 }
 0x17c   : > { %v739_v36 = vld [vmem:[#allocation4] sm:$0xff]  ;;  %v740_v43 = vld [vmem:[#allocation4 + $0x8] sm:$0xff] }
 0x17d   : > { %790 = vmatprep.subr.mxu0 %v740_v43 }
 0x17e   : > { %791 = vmatpush1.msra.mxu0 %v739_v36 }
 0x17f   : > { %4815 = vmatmul.mubr.msk.f32.vlgmr.msra.gmra.mxu0 %vm6956_vm8, %v738_v44 }
 0x180   : > { %1801 = vmatprep.mubr.f32.mxu0 %v5201_v8 }
 0x1c8   : > { %v1006_v1 = vpop.permute.xlu0 %1005 }
 0x1c9   : > { %v991_v6 = vpop.permute.xlu1 %990  ;;  %v1007_v14 = vrot.slane %v1006_v1, 7 }
 0x1ca   : > { %v992_v11 = vrot.slane %v991_v6, 7 }
 0x1cc   : > { %v5615_v26 = vsel %vm396_vm7, %v992_v11, %v991_v6 }
 0x1ce   : > { %v1037_v16 = vpop.permute.xlu1 %1036 }
 0x1cf   : > { %v1038_v19 = vrot.slane %v1037_v16, 7 }
 0x1d2   : > { %v895_v27 = vpop.permute.xlu1 %894 }
 0x1d3   : > { %v896_v37 = vrot.slane %v895_v27, 7 }
 0x1d6   : > { %v925_v39 = vpop.permute.xlu1 %924 }
 0x1d7   : > { %v926_v43 = vrot.slane %v925_v39, 7 }
 0x23f   : > { %v826_v54 = vpop.f32.mrf.mxu0 }
 0x240   : > { %v834_v55 = vmul.f32 %v833_v53, %v826_v54  ;;  %vm831_vm8 = vcmp.ge.f32.partialorder %v826_v54, 0.0 }
 0x241   : > { %v828_v56 = vpop.f32.mrf.mxu0 }
 0x242   : > { %vm832_vm9 = vcmp.ge.f32.partialorder %v828_v56, 0.0  ;;  %v835_v57 = vmul.f32 %v833_v53, %v828_v56  ;;  %v836_v58 = vsel %vm831_vm8, %v826_v54, %v834_v55  ;;  %vm7077_vm8 = vcmask 138240  }
 0x244   : > { %v837_v59 = vsel %vm832_vm9, %v828_v56, %v835_v57  ;;  %vm7078_vm9 = vcmask 146432  }
 0x245   : > { %v840_v60 = vcombine.low %v836_v58, %v837_v59  ;;  %v897_v36 = vsel %vm7078_vm9, %v896_v37, %v895_v27  ;;  %vm7084_vm9 = vcmask 777216  }
 0x247   : > { %841 = vrot.lane.b32.xlu0 %v840_v60, %s7010_s27 }
 0x24b   : > { %872 = vrot.lane.b32.xlu0 %v871_v61, %s6968_s30  ;;  %s6984_s30 = smov 68  }
 0x24f   : > { %909 = vrot.lane.b32.xlu0 %v908_v62, %s7073_s8 }
 0x2b9   : > { %v842_v2 = vpop.permute.xlu0 %841 }
 0x2ba   : > { %v843_v4 = vrot.slane %v842_v2, 4 }
 0x2bc   : > { %v844_v5 = vsel %vm221_vm4, %v843_v4, %v842_v2  ;;  %848 = vst.msk [vmem:[#allocation2 + $0x8] sm:$0xf] %vm212_vm0, %v843_v4  ;;  %vm7074_vm0 = vcmask 408576  }
 0x2bd   : > { %847 = vst.msk [vmem:[#allocation2] sm:$0xff] %vm5366_vm5, %v844_v5  ;;  %v1008_v20 = vsel %vm7074_vm0, %v1007_v14, %v1006_v1  ;;  %v873_v21 = vpop.permute.xlu0 %872  ;;  %vm7075_vm5 = vcmask 416768   ;;  %vm7079_vm0 = vcmask 154624  }
 0x2be   : > { %v1039_v24 = vsel %vm7075_vm5, %v1038_v19, %v1037_v16  ;;  %v874_v31 = vrot.slane %v873_v21, 7  ;;  %vm7081_vm5 = vcmask 269312  }
 0x2bf   : > { %v927_v48 = vsel %vm7081_vm5, %v926_v43, %v925_v39 }
 0x2c0   : > { %v875_v0 = vsel %vm7077_vm8, %v874_v31, %v873_v21  ;;  %vm7083_vm8 = vcmask 900096  }
 0x2c1   : > { %v910_v32 = vpop.permute.xlu0 %909  ;;  %vm7087_vm5 = vmmov %vm7083_vm8 }
 0x2c2   : > { %v911_v38 = vrot.slane %v910_v32, 7 }
 0x2c4   : > { %v1214_v15 = vld [vmem:[#allocation2 + $0x3] ss:$4 sm:$0x7]  ;;  %v1132_v25 = vld [vmem:[#allocation2 + $0x2] ss:$4 sm:$0x7]  ;;  %v912_v44 = vsel %vm7079_vm0, %v911_v38, %v910_v32  ;;  %vm7086_vm0 = vmmov %vm7084_vm9 }
 0x2c5   : > { %v1260_v17 = vmul.f32 %v1214_v15, %v5607_v12  ;;  %v1251_v18 = vmul.f32 %v1214_v15, %v5610_v13  ;;  %v1278_v22 = vmul.f32 %v1214_v15, %v1008_v20  ;;  %v1269_v23 = vmul.f32 %v1214_v15, %v5615_v26  ;;  %v1050_v47 = vld [vmem:[#allocation2 + $0x1] ss:$4 sm:$0x7]  ;;  %v854_v55 = vld [vmem:[#allocation2] ss:$4 sm:$0x7] }
 0x2c6   : > { %v1287_v28 = vmul.f32 %v1214_v15, %v1039_v24  ;;  %v1178_v29 = vmul.f32 %v1132_v25, %v5607_v12  ;;  %v1187_v33 = vmul.f32 %v1132_v25, %v5615_v26  ;;  %v1196_v34 = vmul.f32 %v1132_v25, %v1008_v20 }
 0x2c7   : > { %1262 = vrot.lane.b32.xlu1 %v1260_v17, %s6958_s10  ;;  %1253 = vrot.lane.b32.xlu0 %v1251_v18, %s7008_s11  ;;  %v1205_v40 = vmul.f32 %v1132_v25, %v1039_v24  ;;  %v1215_v41 = vmul.f32 %v1214_v15, %v875_v0  ;;  %v1224_v45 = vmul.f32 %v1214_v15, %v897_v36 }
 0x2c8   : > { %v1233_v46 = vmul.f32 %v1214_v15, %v912_v44  ;;  %v1242_v49 = vmul.f32 %v1214_v15, %v927_v48  ;;  %v1105_v50 = vmul.f32 %v1050_v47, %v5615_v26  ;;  %v1114_v42 = vmul.f32 %v1050_v47, %v1008_v20 }
 0x2c9   : > { %v1123_v51 = vmul.f32 %v1050_v47, %v1039_v24  ;;  %v1133_v35 = vmul.f32 %v1132_v25, %v875_v0  ;;  %v1142_v52 = vmul.f32 %v1132_v25, %v897_v36  ;;  %v1160_v53 = vmul.f32 %v1132_v25, %v927_v48 }
 0x2ca   : > { %v1151_v54 = vmul.f32 %v1132_v25, %v912_v44  ;;  %v1010_v56 = vmul.f32 %v1008_v20, %v854_v55  ;;  %v1169_v57 = vmul.f32 %v1132_v25, %v5610_v13  ;;  %v1051_v58 = vmul.f32 %v1050_v47, %v875_v0 }
 0x2cb   : > { %1280 = vrot.lane.b32.xlu1 %v1278_v22, %s6966_s13  ;;  %1271 = vrot.lane.b32.xlu0 %v1269_v23, %s6964_s12  ;;  %v1041_v59 = vmul.f32 %v1039_v24, %v854_v55  ;;  %v1060_v60 = vmul.f32 %v1050_v47, %v897_v36  ;;  %v1069_v61 = vmul.f32 %v1050_v47, %v912_v44 }
 0x2cc   : > { %v1078_v62 = vmul.f32 %v1050_v47, %v927_v48  ;;  %v1087_v63 = vmul.f32 %v1050_v47, %v5610_v13  ;;  %v1096_v1 = vmul.f32 %v1050_v47, %v5607_v12  ;;  %v877_v2 = vmul.f32 %v875_v0, %v854_v55 }
 0x2cd   : > { %v899_v3 = vmul.f32 %v897_v36, %v854_v55  ;;  %v914_v4 = vmul.f32 %v912_v44, %v854_v55  ;;  %v929_v5 = vmul.f32 %v927_v48, %v854_v55  ;;  %v958_v6 = vmul.f32 %v5610_v13, %v854_v55 }
 0x2ce   : > { %v980_v7 = vmul.f32 %v5607_v12, %v854_v55  ;;  %v995_v9 = vmul.f32 %v5615_v26, %v854_v55 }
 0x2cf   : > { %1289 = vrot.lane.b32.xlu0 %v1287_v28, %s7076_s14  ;;  %1180 = vrot.lane.b32.xlu1 %v1178_v29, %s6958_s10 }
 0x2d3   : > { %1189 = vrot.lane.b32.xlu0 %v1187_v33, %s6964_s12  ;;  %1198 = vrot.lane.b32.xlu1 %v1196_v34, %s6966_s13 }
 0x2d7   : > { %1207 = vrot.lane.b32.xlu0 %v1205_v40, %s7076_s14  ;;  %1217 = vrot.lane.b32.xlu1 %v1215_v41, %s7080_s20 }
 0x2db   : > { %1226 = vrot.lane.b32.xlu0 %v1224_v45, %s6960_s22  ;;  %1235 = vrot.lane.b32.xlu1 %v1233_v46, %s6962_s23 }
 0x2df   : > { %1244 = vrot.lane.b32.xlu0 %v1242_v49, %s7082_s29  ;;  %1107 = vrot.lane.b32.xlu1 %v1105_v50, %s6964_s12 }
 0x2e3   : > { %1116 = vrot.lane.b32.xlu0 %v1114_v42, %s6966_s13  ;;  %1125 = vrot.lane.b32.xlu1 %v1123_v51, %s7076_s14 }
 0x2e7   : > { %1135 = vrot.lane.b32.xlu0 %v1133_v35, %s7080_s20  ;;  %1144 = vrot.lane.b32.xlu1 %v1142_v52, %s6960_s22 }
 0x2eb   : > { %1162 = vrot.lane.b32.xlu1 %v1160_v53, %s7082_s29  ;;  %1153 = vrot.lane.b32.xlu0 %v1151_v54, %s6962_s23 }
 0x2ef   : > { %1012 = vrot.lane.b32.xlu1 %v1010_v56, %s6966_s13  ;;  %1171 = vrot.lane.b32.xlu0 %v1169_v57, %s7008_s11  ;;  %s4812_s13 = sld [smem:[#allocation5 + $0x1]] }
 0x2f3   : > { %1053 = vrot.lane.b32.xlu1 %v1051_v58, %s7080_s20  ;;  %1043 = vrot.lane.b32.xlu0 %v1041_v59, %s7076_s14 }
 0x2f7   : > { %1062 = vrot.lane.b32.xlu0 %v1060_v60, %s6960_s22  ;;  %1071 = vrot.lane.b32.xlu1 %v1069_v61, %s6962_s23 }
 0x2fb   : > { %1080 = vrot.lane.b32.xlu0 %v1078_v62, %s7082_s29  ;;  %1089 = vrot.lane.b32.xlu1 %v1087_v63, %s7008_s11 }
 0x2ff   : > { %1098 = vrot.lane.b32.xlu0 %v1096_v1, %s6958_s10  ;;  %879 = vrot.lane.b32.xlu1 %v877_v2, %s7080_s20 }
 0x303   : > { %901 = vrot.lane.b32.xlu0 %v899_v3, %s6960_s22  ;;  %916 = vrot.lane.b32.xlu1 %v914_v4, %s6962_s23  ;;  %s6970_s23 = smov 4   ;;  %s6980_s22 = smov 2  }
 0x307   : > { %931 = vrot.lane.b32.xlu0 %v929_v5, %s7082_s29  ;;  %960 = vrot.lane.b32.xlu1 %v958_v6, %s7008_s11 }
 0x30b   : > { %982 = vrot.lane.b32.xlu0 %v980_v7, %s6958_s10  ;;  %997 = vrot.lane.b32.xlu1 %v995_v9, %s6964_s12  ;;  %s7006_s10 = smov 64   ;;  %s6986_s12 = smov 66  }
 0x339   : > { %v1263_v11 = vpop.permute.xlu1 %1262  ;;  %v1254_v14 = vpop.permute.xlu0 %1253 }
 0x33a   : > { %v1264_v15 = vrot.slane %v1263_v11, 1  ;;  %v1255_v16 = vrot.slane %v1254_v14, 1 }
 0x33c   : > { %v1265_v17 = vsel %vm6972_vm15, %v1263_v11, %v1264_v15  ;;  %v1256_v13 = vsel %vm361_vm1, %v1254_v14, %v1255_v16 }
 0x33d   : > { %1267 = vst.msk [vmem:[#allocation4 + $0x41] ss:$8 sm:$0x3] %vm5435_vm14, %v1265_v17  ;;  %1258 = vst.msk [vmem:[#allocation4 + $0x40] ss:$8 sm:$0x3] %vm5435_vm14, %v1256_v13  ;;  %v1281_v12 = vpop.permute.xlu1 %1280  ;;  %v1272_v18 = vpop.permute.xlu0 %1271 }
 0x33e   : > { %v1282_v26 = vrot.slane %v1281_v12, 1  ;;  %v1273_v19 = vrot.slane %v1272_v18, 1 }
 0x340   : > { %v1283_v20 = vsel %vm422_vm2, %v1281_v12, %v1282_v26  ;;  %v1274_v21 = vsel %vm404_vm3, %v1272_v18, %v1273_v19 }
 0x341   : > { %1285 = vst.msk [vmem:[#allocation4 + $0x43] ss:$8 sm:$0x3] %vm5435_vm14, %v1283_v20  ;;  %1276 = vst.msk [vmem:[#allocation4 + $0x42] ss:$8 sm:$0x3] %vm5435_vm14, %v1274_v21  ;;  %v1181_v22 = vpop.permute.xlu1 %1180  ;;  %v1290_v23 = vpop.permute.xlu0 %1289 }
 0x342   : > { %v1182_v24 = vrot.slane %v1181_v22, 1  ;;  %v1291_v25 = vrot.slane %v1290_v23, 1 }
 0x344   : > { %v1183_v27 = vsel %vm6972_vm15, %v1181_v22, %v1182_v24  ;;  %v1292_v28 = vsel %vm7016_vm13, %v1290_v23, %v1291_v25 }
 0x345   : > { %1185 = vst.msk [vmem:[#allocation4 + $0x30] ss:$8 sm:$0x3] %vm5435_vm14, %v1183_v27  ;;  %1294 = vst.msk [vmem:[#allocation4 + $0x44] ss:$8 sm:$0x3] %vm5435_vm14, %v1292_v28  ;;  %v1199_v29 = vpop.permute.xlu1 %1198  ;;  %v1190_v31 = vpop.permute.xlu0 %1189 }
 0x346   : > { %v1200_v32 = vrot.slane %v1199_v29, 1  ;;  %v1191_v33 = vrot.slane %v1190_v31, 1 }
 0x348   : > { %v1201_v34 = vsel %vm422_vm2, %v1199_v29, %v1200_v32  ;;  %v1192_v37 = vsel %vm404_vm3, %v1190_v31, %v1191_v33 }
 0x349   : > { %1203 = vst.msk [vmem:[#allocation4 + $0x32] ss:$8 sm:$0x3] %vm5435_vm14, %v1201_v34  ;;  %1194 = vst.msk [vmem:[#allocation4 + $0x31] ss:$8 sm:$0x3] %vm5435_vm14, %v1192_v37  ;;  %v1218_v0 = vpop.permute.xlu1 %1217  ;;  %v1208_v38 = vpop.permute.xlu0 %1207 }
 0x34a   : > { %v1219_v39 = vrot.slane %v1218_v0, 1  ;;  %v1209_v40 = vrot.slane %v1208_v38, 1 }
 0x34c   : > { %v1220_v41 = vsel %vm6993_vm12, %v1218_v0, %v1219_v39  ;;  %v1210_v36 = vsel %vm7016_vm13, %v1208_v38, %v1209_v40  ;;  %v1307_v43 = vld [vmem:[#allocation4 + $0x48] sm:$0x1f]  ;;  %v1306_v44 = vld [vmem:[#allocation4 + $0x40] sm:$0x1f] }
 0x34d   : > { %1222 = vst.msk [vmem:[#allocation4 + $0x34] ss:$8 sm:$0x3] %vm5435_vm14, %v1220_v41  ;;  %1212 = vst.msk [vmem:[#allocation4 + $0x33] ss:$8 sm:$0x3] %vm5435_vm14, %v1210_v36  ;;  %v1236_v45 = vpop.permute.xlu1 %1235  ;;  %4821 = vmatprep.subr.msk.mxu1 %vm753_vm11, %v1307_v43  ;;  %v1227_v46 = vpop.permute.xlu0 %1226 }
 0x34e   : > { %v1237_v47 = vrot.slane %v1236_v45, 1  ;;  %v1228_v48 = vrot.slane %v1227_v46, 1  ;;  %4822 = vmatpush1.msk.msra.mxu1 %vm753_vm11, %v1306_v44  ;;  %vm7085_vm11 = vmmov %vm7083_vm8 }
 0x350   : > { %v1238_v49 = vsel %vm6976_vm10, %v1236_v45, %v1237_v47  ;;  %v1229_v50 = vsel %vm7083_vm8, %v1227_v46, %v1228_v48  ;;  %vm7088_vm8 = vmmov %vm7086_vm0 }
 0x351   : > { %1240 = vst.msk [vmem:[#allocation4 + $0x36] ss:$8 sm:$0x3] %vm5435_vm14, %v1238_v49  ;;  %1231 = vst.msk [vmem:[#allocation4 + $0x35] ss:$8 sm:$0x3] %vm5435_vm14, %v1229_v50  ;;  %v1108_v42 = vpop.permute.xlu1 %1107  ;;  %v1245_v51 = vpop.permute.xlu0 %1244 }
 0x352   : > { %v1109_v35 = vrot.slane %v1108_v42, 1  ;;  %v1246_v52 = vrot.slane %v1245_v51, 1 }
 0x354   : > { %v1110_v53 = vsel %vm404_vm3, %v1108_v42, %v1109_v35  ;;  %v1247_v54 = vsel %vm7084_vm9, %v1245_v51, %v1246_v52  ;;  %vm7089_vm9 = vmmov %vm7087_vm5 }
 0x355   : > { %1112 = vst.msk [vmem:[#allocation4 + $0x20] ss:$8 sm:$0x3] %vm5435_vm14, %v1110_v53  ;;  %1249 = vst.msk [vmem:[#allocation4 + $0x37] ss:$8 sm:$0x3] %vm5435_vm14, %v1247_v54  ;;  %v1126_v55 = vpop.permute.xlu1 %1125  ;;  %v1117_v56 = vpop.permute.xlu0 %1116 }
 0x356   : > { %v1127_v57 = vrot.slane %v1126_v55, 1  ;;  %v1118_v58 = vrot.slane %v1117_v56, 1 }
 0x358   : > { %v1128_v59 = vsel %vm7016_vm13, %v1126_v55, %v1127_v57  ;;  %v1119_v60 = vsel %vm422_vm2, %v1117_v56, %v1118_v58 }
 0x359   : > { %1130 = vst.msk [vmem:[#allocation4 + $0x22] ss:$8 sm:$0x3] %vm5435_vm14, %v1128_v59  ;;  %1121 = vst.msk [vmem:[#allocation4 + $0x21] ss:$8 sm:$0x3] %vm5435_vm14, %v1119_v60  ;;  %v1145_v61 = vpop.permute.xlu1 %1144  ;;  %v1136_v62 = vpop.permute.xlu0 %1135 }
 0x35a   : > { %v1146_v63 = vrot.slane %v1145_v61, 1  ;;  %v1137_v1 = vrot.slane %v1136_v62, 1 }
 0x35c   : > { %v1147_v2 = vsel %vm7085_vm11, %v1145_v61, %v1146_v63  ;;  %v1138_v3 = vsel %vm6993_vm12, %v1136_v62, %v1137_v1  ;;  %v1305_v4 = vld [vmem:[#allocation4 + $0x38] sm:$0xff]  ;;  %v1304_v5 = vld [vmem:[#allocation4 + $0x30] sm:$0xff]  ;;  %vm7090_vm11 = vmmov %vm7086_vm0 }
 0x35d   : > { %1149 = vst.msk [vmem:[#allocation4 + $0x24] ss:$8 sm:$0x3] %vm5435_vm14, %v1147_v2  ;;  %1140 = vst.msk [vmem:[#allocation4 + $0x23] ss:$8 sm:$0x3] %vm5435_vm14, %v1138_v3  ;;  %v1163_v6 = vpop.permute.xlu1 %1162  ;;  %1341 = vmatprep.subr.mxu1 %v1305_v4  ;;  %v1154_v7 = vpop.permute.xlu0 %1153 }
 0x35e   : > { %v1164_v9 = vrot.slane %v1163_v6, 1  ;;  %v1155_v11 = vrot.slane %v1154_v7, 1  ;;  %1342 = vmatpush1.msra.mxu1 %v1304_v5  ;;  %v4820_v5 = vld [vmem:[%s6935_s1 + $0x4] sm:$0xf] }
 0x360   : > { %v1165_v14 = vsel %vm7086_vm0, %v1163_v6, %v1164_v9  ;;  %v1156_v15 = vsel %vm6976_vm10, %v1154_v7, %v1155_v11  ;;  %vm7091_vm0 = vcmask 302080   ;;  %v5014_v6 = vld [vmem:[%s6936_s2 + $0x44] ss:$8 sps:$4 sm:$0xff]   ;;  %v5016_v7 = vld [vmem:[%s6936_s2 + $0x50] ss:$8 sps:$4 sm:$0x11]  }
 0x361   : > { %1167 = vst.msk [vmem:[#allocation4 + $0x26] ss:$8 sm:$0x3] %vm5435_vm14, %v1165_v14  ;;  %1158 = vst.msk [vmem:[#allocation4 + $0x25] ss:$8 sm:$0x3] %vm5435_vm14, %v1156_v15  ;;  %v1013_v16 = vpop.permute.xlu1 %1012  ;;  %v1172_v17 = vpop.permute.xlu0 %1171  ;;  %v1527_v9 = vrot.slane %v5014_v6, %v5346_v10  ;;  %v1615_v15 = vrot.slane %v5016_v7, %v5346_v10 }
 0x362   : > { %v1014_v13 = vrot.slane %v1013_v16, 1  ;;  %v1173_v12 = vrot.slane %v1172_v17, 1 }
 0x363   : > { %v1549_v11 = vcombine.high %v1527_v9, %v1527_v9  ;;  %v1534_v14 = vrot.slane %v1527_v9, %v5346_v10 }
 0x364   : > { %v1015_v18 = vsel %vm422_vm2, %v1013_v16, %v1014_v13  ;;  %v1174_v26 = vsel %vm361_vm1, %v1172_v17, %v1173_v12  ;;  %v1622_v12 = vrot.slane %v1615_v15, %v5346_v10 }
 0x365   : > { %1017 = vst.msk [vmem:[#allocation4 + $0x10] ss:$8 sm:$0x3] %vm5435_vm14, %v1015_v18  ;;  %1176 = vst.msk [vmem:[#allocation4 + $0x27] ss:$8 sm:$0x3] %vm5435_vm14, %v1174_v26  ;;  %v1054_v19 = vpop.permute.xlu1 %1053  ;;  %v1044_v20 = vpop.permute.xlu0 %1043  ;;  %v1556_v16 = vrot.slane %v1549_v11, %v5346_v10  ;;  %v1573_v17 = vcombine.high %v1534_v14, %v1534_v14 }
 0x366   : > { %v1055_v21 = vrot.slane %v1054_v19, 1  ;;  %v1045_v22 = vrot.slane %v1044_v20, 1  ;;  %v5017_v18 = vld [vmem:[%s6936_s2 + $0x40] ss:$8 sps:$4 sm:$0xff]  }
 0x367   : > { %v1589_v13 = vcombine.high %v1556_v16, %v1556_v16  ;;  %1574 = vrot.lane.b32.xlu1 %v1573_v17, %s7006_s10  ;;  %v1450_v26 = vrot.slane %v5017_v18, %v5346_v10 }
 0x368   : > { %v1056_v23 = vsel %vm6993_vm12, %v1054_v19, %v1055_v21  ;;  %v1046_v24 = vsel %vm7016_vm13, %v1044_v20, %v1045_v22 }
 0x369   : > { %1058 = vst.msk [vmem:[#allocation4 + $0x12] ss:$8 sm:$0x3] %vm5435_vm14, %v1056_v23  ;;  %1048 = vst.msk [vmem:[#allocation4 + $0x11] ss:$8 sm:$0x3] %vm5435_vm14, %v1046_v24  ;;  %v1072_v25 = vpop.permute.xlu1 %1071  ;;  %v1063_v27 = vpop.permute.xlu0 %1062  ;;  %1590 = vrot.lane.b32.xlu0 %v1589_v13, %s6986_s12  ;;  %v5803_v19 = vrot.slane %v1450_v26, %v5346_v10 }
 0x36a   : > { %v1073_v28 = vrot.slane %v1072_v25, 1  ;;  %v1064_v29 = vrot.slane %v1063_v27, 1  ;;  %s6995_s12 = smov 92  }
 0x36b   : > { %1623 = vrot.lane.b32.xlu1 %v1622_v12, %s6984_s30  ;;  %v1486_v20 = vcombine.high %v5803_v19, %v5803_v19  ;;  %s6997_s30 = smov 124  }
 0x36c   : > { %v1302_v31 = vld [vmem:[#allocation4 + $0x20] sm:$0xff]  ;;  %v1303_v32 = vld [vmem:[#allocation4 + $0x28] sm:$0xff]  ;;  %v1074_v33 = vsel %vm6976_vm10, %v1072_v25, %v1073_v28  ;;  %v1065_v34 = vsel %vm7087_vm5, %v1063_v27, %v1064_v29 }
 0x36d   : > { %1076 = vst.msk [vmem:[#allocation4 + $0x14] ss:$8 sm:$0x3] %vm5435_vm14, %v1074_v33  ;;  %1067 = vst.msk [vmem:[#allocation4 + $0x13] ss:$8 sm:$0x3] %vm5435_vm14, %v1065_v34  ;;  %v1090_v37 = vpop.permute.xlu1 %1089  ;;  %1343 = vmatprep.subr.mxu1 %v1303_v32  ;;  %v1081_v0 = vpop.permute.xlu0 %1080 }
 0x36e   : > { %v1091_v38 = vrot.slane %v1090_v37, 1  ;;  %v1082_v39 = vrot.slane %v1081_v0, 1  ;;  %1344 = vmatpush1.msra.mxu1 %v1302_v31  ;;  %v5815_v31 = vstv %s4812_s13  ;;  %s6977_s13 = smov 32  }
 0x36f   : > { %1487 = vrot.lane.b32.xlu1 %v1486_v20, %s6970_s23  ;;  %s6973_s23 = smov 36  }
 0x370   : > { %v1092_v40 = vsel %vm361_vm1, %v1090_v37, %v1091_v38  ;;  %v1083_v41 = vsel %vm7088_vm8, %v1081_v0, %v1082_v39 }
 0x371   : > { %1094 = vst.msk [vmem:[#allocation4 + $0x16] ss:$8 sm:$0x3] %vm5435_vm14, %v1092_v40  ;;  %1085 = vst.msk [vmem:[#allocation4 + $0x15] ss:$8 sm:$0x3] %vm5435_vm14, %v1083_v41  ;;  %v880_v36 = vpop.permute.xlu1 %879  ;;  %v1099_v43 = vpop.permute.xlu0 %1098 }
 0x372   : > { %v881_v44 = vrot.slane %v880_v36, 1  ;;  %v1100_v45 = vrot.slane %v1099_v43, 1 }
 0x373   : > { %1535 = vrot.lane.b32.xlu1 %v1534_v14, %s7010_s27 }
 0x374   : > { %v882_v46 = vsel %vm6993_vm12, %v880_v36, %v881_v44  ;;  %v1101_v47 = vsel %vm6972_vm15, %v1099_v43, %v1100_v45  ;;  %v1462_v43 = vcombine.high %v1450_v26, %v1450_v26  ;;  %vm1730_vm12 = vcmask 1042432  }
 0x375   : > { %884 = vst.msk [vmem:[#allocation4 + $0x1] ss:$8 sm:$0x3] %vm5435_vm14, %v882_v46  ;;  %1103 = vst.msk [vmem:[#allocation4 + $0x17] ss:$8 sm:$0x3] %vm5435_vm14, %v1101_v47  ;;  %v917_v48 = vpop.permute.xlu1 %916  ;;  %v902_v49 = vpop.permute.xlu0 %901 }
 0x376   : > { %v918_v50 = vrot.slane %v917_v48, 1  ;;  %v903_v42 = vrot.slane %v902_v49, 1  ;;  %v1469_v45 = vrot.slane %v1462_v43, %v5346_v10 }
 0x378   : > { %v919_v51 = vsel %vm6976_vm10, %v917_v48, %v918_v50  ;;  %v904_v35 = vsel %vm7089_vm9, %v902_v49, %v903_v42  ;;  %v1503_v46 = vcombine.high %v1469_v45, %v1469_v45  ;;  %vm1429_vm9 = vcmask 1041680  }
 0x379   : > { %921 = vst.msk [vmem:[#allocation4 + $0x3] ss:$8 sm:$0x3] %vm5435_vm14, %v919_v51  ;;  %906 = vst.msk [vmem:[#allocation4 + $0x2] ss:$8 sm:$0x3] %vm5435_vm14, %v904_v35  ;;  %v961_v52 = vpop.permute.xlu1 %960  ;;  %v932_v53 = vpop.permute.xlu0 %931 }
 0x37a   : > { %v962_v54 = vrot.slane %v961_v52, 1  ;;  %v933_v55 = vrot.slane %v932_v53, 1  ;;  %vm6990_vm10 = vcmask 31744  }
 0x37c   : > { %v1300_v56 = vld [vmem:[#allocation4 + $0x10] sm:$0xff]  ;;  %v1301_v57 = vld [vmem:[#allocation4 + $0x18] sm:$0xff]  ;;  %v963_v58 = vsel %vm361_vm1, %v961_v52, %v962_v54  ;;  %v934_v59 = vsel %vm7090_vm11, %v932_v53, %v933_v55  ;;  %vm1430_vm11 = vcmask 1045508  }
 0x37d   : > { %965 = vst.msk [vmem:[#allocation4 + $0x5] ss:$8 sm:$0x3] %vm5435_vm14, %v963_v58  ;;  %936 = vst.msk [vmem:[#allocation4 + $0x4] ss:$8 sm:$0x3] %vm5435_vm14, %v934_v59  ;;  %v998_v60 = vpop.permute.xlu1 %997  ;;  %1345 = vmatprep.subr.mxu1 %v1301_v57  ;;  %v983_v61 = vpop.permute.xlu0 %982 }
 0x37e   : > { %v999_v62 = vrot.slane %v998_v60, 1  ;;  %v984_v63 = vrot.slane %v983_v61, 1  ;;  %1346 = vmatpush1.msra.mxu1 %v1300_v56 }
 0x380   : > { %v1000_v1 = vsel %vm404_vm3, %v998_v60, %v999_v62  ;;  %v985_v2 = vsel %vm6972_vm15, %v983_v61, %v984_v63  ;;  %vm1577_vm15 = vcmask 523264  }
 0x381   : > { %1002 = vst.msk [vmem:[#allocation4 + $0x7] ss:$8 sm:$0x3] %vm5435_vm14, %v1000_v1  ;;  %987 = vst.msk [vmem:[#allocation4 + $0x6] ss:$8 sm:$0x3] %vm5435_vm14, %v985_v2 }
 0x388   : > { %v1298_v3 = vld [vmem:[#allocation4] sm:$0xff]  ;;  %v1299_v4 = vld [vmem:[#allocation4 + $0x8] sm:$0xff] }
 0x389   : > { %1347 = vmatprep.subr.mxu1 %v1299_v4 }
 0x38a   : > { %1348 = vmatpush1.msra.mxu1 %v1298_v3 }
 0x38b   : > { %4823 = vmatmul.mubr.msk.f32.vlgmr.msra.gmra.mxu1 %vm7091_vm0, %v4820_v5  ;;  %vm1433_vm0 = vcmask 271360  }
 0x38c   : > { %2218 = vmatprep.mubr.f32.mxu1 %v5201_v8 }
 0x3d9   : > { %v1575_v42 = vpop.permute.xlu1 %1574 }
 0x3da   : > { %v1576_v54 = vrot.slane %v1575_v42, 7 }
 0x3db   : > { %v1591_v47 = vpop.permute.xlu0 %1590 }
 0x3dc   : > { %v1592_v52 = vrot.slane %v1591_v47, 7  ;;  %v1578_v61 = vsel %vm1577_vm15, %v1576_v54, %v1575_v42 }
 0x3dd   : > { %v1624_v53 = vpop.permute.xlu1 %1623 }
 0x3de   : > { %v1625_v57 = vrot.slane %v1624_v53, 7 }
 0x3e1   : > { %v1488_v1 = vpop.permute.xlu1 %1487 }
 0x3e2   : > { %v1489_v11 = vrot.slane %v1488_v1, 7 }
 0x3e4   : > { %v1491_v18 = vsel %vm6990_vm10, %v1489_v11, %v1488_v1  ;;  %vm1481_vm10 = vcmask 1031168  }
 0x3e5   : > { %v1536_v15 = vpop.permute.xlu1 %1535 }
 0x3e6   : > { %v1537_v26 = vrot.slane %v1536_v15, 7 }
 0x44b   : > { %v5809_v21 = vpop.f32.mrf.mxu1 }
 0x44c   : > { %v4824_v22 = vmul.f32 -1.442695, %v5809_v21  ;;  %v1396_v33 = vmul.f32 %v5815_v31, %v5809_v21  ;;  %vm1393_vm5 = vcmp.ge.f32.partialorder %v5809_v21, 0.0 }
 0x44d   : > { %v5812_v23 = vpop.f32.mrf.mxu1 }
 0x44e   : > { %5046 = vpow2.f32 %v4824_v22  ;;  %v4825_v24 = vmul.f32 -1.442695, %v5812_v23  ;;  %v1397_v34 = vmul.f32 %v5815_v31, %v5812_v23  ;;  %vm1394_vm8 = vcmp.ge.f32.partialorder %v5812_v23, 0.0 }
 0x44f   : > { %v1398_v39 = vsel %vm1393_vm5, %v5809_v21, %v1396_v33  ;;  %vm5830_vm5 = vmor %vm1430_vm11, %vm1429_vm9  ;;  %vm6992_vm9 = vcmask 556032   ;;  %vm6979_vm11 = vcmask 15360  }
 0x450   : > { %5048 = vpow2.f32 %v4825_v24  ;;  %v1399_v40 = vsel %vm1394_vm8, %v5812_v23, %v1397_v34  ;;  %vm6975_vm8 = vcmask 539648   ;;  %v1627_v4 = vsel %vm6992_vm9, %v1625_v57, %v1624_v53 }
 0x451   : > { %v1594_v60 = vsel %vm6975_vm8, %v1592_v52, %v1591_v47  ;;  %vm6989_vm8 = vcmask 261120   ;;  %v1538_v24 = vsel %vm221_vm4, %v1537_v26, %v1536_v15  ;;  %vm6999_vm9 = vcmask 1014784  }
 0x45b   : > { %v5047_v25 = vpop.eup %5046 }
 0x45c   : > { %v1406_v27 = vadd.f32 1.0, %v5047_v25 }
 0x45d   : > { %v5049_v28 = vpop.eup %5048 }
 0x45e   : > { %v1407_v29 = vadd.f32 1.0, %v5049_v28  ;;  %5050 = vrcp.f32 %v1406_v27 }
 0x460   : > { %5052 = vrcp.f32 %v1407_v29 }
 0x46b   : > { %v5051_v32 = vpop.eup %5050 }
 0x46c   : > { %v1414_v37 = vrot.slane %v5051_v32, 2 }
 0x46d   : > { %v5053_v0 = vpop.eup %5052 }
 0x46e   : > { %v1415_v38 = vrot.slane %v5053_v0, 2  ;;  %v1418_v41 = vmul.f32 %v1414_v37, %v1398_v39 }
 0x470   : > { %v1419_v36 = vmul.f32 %v1415_v38, %v1399_v40 }
 0x472   : > { %v1422_v44 = vcombine.low %v1418_v41, %v1419_v36 }
 0x474   : > { %1423 = vrot.lane.b32.xlu0 %v1422_v44, %s7010_s27  ;;  %s7095_s27 = smov 35  }
 0x478   : > { %1470 = vrot.lane.b32.xlu0 %v1469_v45, %s6980_s22  ;;  %s7002_s22 = smov 126  }
 0x47c   : > { %1504 = vrot.lane.b32.xlu0 %v1503_v46, %s6977_s13  ;;  %s7004_s13 = smov 60  }
 0x480   : > { %1557 = vrot.lane.b32.xlu0 %v1556_v16, %s6973_s23  ;;  %s6982_s23 = smov 62  }
 0x4e6   : > { %v1424_v48 = vpop.permute.xlu0 %1423 }
 0x4e7   : > { %v1425_v50 = vrot.slane %v1424_v48, 4 }
 0x4e9   : > { %v1426_v51 = vsel %vm221_vm4, %v1425_v50, %v1424_v48  ;;  %1434 = vst.msk [vmem:[#allocation2 + $0x8] sm:$0x3] %vm1433_vm0, %v1425_v50 }
 0x4ea   : > { %1432 = vst.msk [vmem:[#allocation2] sm:$0x33] %vm5830_vm5, %v1426_v51  ;;  %v1471_v35 = vpop.permute.xlu0 %1470 }
 0x4eb   : > { %v1472_v2 = vrot.slane %v1471_v35, 7 }
 0x4ed   : > { %v1474_v6 = vsel %vm6979_vm11, %v1472_v2, %v1471_v35  ;;  %vm6988_vm11 = vcmask 293888  }
 0x4ee   : > { %v1505_v62 = vpop.permute.xlu0 %1504 }
 0x4ef   : > { %v1506_v7 = vrot.slane %v1505_v62, 7 }
 0x4f1   : > { %v5838_v55 = vld [vmem:[#allocation2] ss:$4 sm:$0x7]  ;;  %v1639_v56 = vld [vmem:[#allocation2 + $0x1] ss:$4 sm:$0x7]  ;;  %v1508_v17 = vsel %vm6989_vm8, %v1506_v7, %v1505_v62 }
 0x4f2   : > { %v1459_v58 = vmul.f32 %v5803_v19, %v5838_v55  ;;  %v1640_v59 = vmul.f32 %v1639_v56, %v5803_v19  ;;  %v1697_v63 = vmul.f32 %v1639_v56, %v1594_v60  ;;  %v1688_v3 = vmul.f32 %v1639_v56, %v1578_v61  ;;  %v1558_v14 = vpop.permute.xlu0 %1557 }
 0x4f3   : > { %v1596_v5 = vmul.f32 %v1594_v60, %v5838_v55  ;;  %v1706_v9 = vmul.f32 %v1639_v56, %v1627_v4  ;;  %v1643_v16 = vmul.f32 %v1639_v56, %v1474_v6  ;;  %v1559_v13 = vrot.slane %v1558_v14, 7 }
 0x4f4   : > { %1460 = vst.msk [vmem:[#allocation4 + $0x1] ss:$8 sm:$0x3] %vm5435_vm14, %v1459_v58  ;;  %1641 = vst.msk [vmem:[#allocation4 + $0x12] ss:$8 sm:$0x3] %vm5435_vm14, %v1640_v59  ;;  %1699 = vrot.lane.b32.xlu0 %v1697_v63, %s6982_s23  ;;  %1690 = vrot.lane.b32.xlu1 %v1688_v3, %s7006_s10  ;;  %v1629_v12 = vmul.f32 %v1627_v4, %v5838_v55  ;;  %v1661_v19 = vmul.f32 %v1639_v56, %v1508_v17 }
 0x4f5   : > { %v1652_v20 = vmul.f32 %v1639_v56, %v1491_v18  ;;  %v1561_v22 = vsel %vm6988_vm11, %v1559_v13, %v1558_v14  ;;  %v1670_v27 = vmul.f32 %v1639_v56, %v1538_v24  ;;  %v1493_v28 = vmul.f32 %v1491_v18, %v5838_v55 }
 0x4f6   : > { %v1679_v25 = vmul.f32 %v1639_v56, %v1561_v22  ;;  %v1476_v29 = vmul.f32 %v1474_v6, %v5838_v55  ;;  %v1540_v32 = vmul.f32 %v1538_v24, %v5838_v55  ;;  %v1510_v33 = vmul.f32 %v1508_v17, %v5838_v55 }
 0x4f7   : > { %v1580_v34 = vmul.f32 %v1578_v61, %v5838_v55  ;;  %v1563_v37 = vmul.f32 %v1561_v22, %v5838_v55  ;;  %vm6991_vm11 = vcmask 506880   ;;  %vm6994_vm8 = vcmask 490496  }
 0x4f8   : > { %1598 = vrot.lane.b32.xlu0 %v1596_v5, %s6982_s23  ;;  %1708 = vrot.lane.b32.xlu1 %v1706_v9, %s7004_s13  ;;  %s7000_s23 = smov 96  }
 0x4fc   : > { %1645 = vrot.lane.b32.xlu0 %v1643_v16, %s7002_s22  ;;  %1631 = vrot.lane.b32.xlu1 %v1629_v12, %s7004_s13  ;;  %s7108_s13 = smov 94  }
 0x500   : > { %1663 = vrot.lane.b32.xlu0 %v1661_v19, %s7000_s23  ;;  %1654 = vrot.lane.b32.xlu1 %v1652_v20, %s6997_s30 }
 0x504   : > { %1681 = vrot.lane.b32.xlu0 %v1679_v25, %s6995_s12  ;;  %1672 = vrot.lane.b32.xlu1 %v1670_v27, %s7008_s11 }
 0x508   : > { %1495 = vrot.lane.b32.xlu0 %v1493_v28, %s6997_s30  ;;  %1478 = vrot.lane.b32.xlu1 %v1476_v29, %s7002_s22  ;;  %s7101_s30 = smov 79   ;;  %s7107_s22 = smov 110  }
 0x50c   : > { %1542 = vrot.lane.b32.xlu0 %v1540_v32, %s7008_s11  ;;  %1512 = vrot.lane.b32.xlu1 %v1510_v33, %s7000_s23  ;;  %v4830_v33 = vld [vmem:[%s6935_s1 + $0x8] sm:$0xf]  ;;  %s7096_s11 = smov 34   ;;  %s7106_s23 = smov 109  }
 0x510   : > { %1582 = vrot.lane.b32.xlu0 %v1580_v34, %s7006_s10  ;;  %1565 = vrot.lane.b32.xlu1 %v1563_v37, %s6995_s12  ;;  %v5018_v34 = vld [vmem:[%s6936_s2 + $0x64] ss:$8 sps:$4 sm:$0xff]   ;;  %v5020_v37 = vld [vmem:[%s6936_s2 + $0x70] ss:$8 sps:$4 sm:$0x11]   ;;  %s7097_s10 = smov 17  }
 0x511   : > { %s7100_s12 = smov 78  }
 0x566   : > { %v1700_v0 = vpop.permute.xlu0 %1699  ;;  %v1691_v38 = vpop.permute.xlu1 %1690 }
 0x567   : > { %v1701_v39 = vrot.slane %v1700_v0, 1  ;;  %v1692_v40 = vrot.slane %v1691_v38, 1 }
 0x569   : > { %v1702_v41 = vsel %vm6991_vm11, %v1700_v0, %v1701_v39  ;;  %v1693_v36 = vsel %vm1577_vm15, %v1691_v38, %v1692_v40  ;;  %v5021_v0 = vld [vmem:[%s6936_s2 + $0x60] ss:$8 sps:$4 sm:$0xff]   ;;  %v1946_v38 = vrot.slane %v5018_v34, %v5346_v10 }
 0x56a   : > { %1704 = vst.msk [vmem:[#allocation4 + $0x21] ss:$8 sm:$0x3] %vm5435_vm14, %v1702_v41  ;;  %v1599_v43 = vpop.permute.xlu0 %1598  ;;  %1695 = vst.msk [vmem:[#allocation4 + $0x20] ss:$8 sm:$0x3] %vm5435_vm14, %v1693_v36  ;;  %v1709_v44 = vpop.permute.xlu1 %1708  ;;  %v2029_v41 = vrot.slane %v5020_v37, %v5346_v10  ;;  %v1865_v36 = vrot.slane %v5021_v0, %v5346_v10 }
 0x56b   : > { %v1600_v45 = vrot.slane %v1599_v43, 1  ;;  %v1710_v46 = vrot.slane %v1709_v44, 1  ;;  %v1953_v39 = vrot.slane %v1946_v38, %v5346_v10  ;;  %v1968_v40 = vcombine.high %v1946_v38, %v1946_v38 }
 0x56d   : > { %v1602_v47 = vsel %vm6991_vm11, %v1599_v43, %v1600_v45  ;;  %v1711_v48 = vsel %vm6994_vm8, %v1709_v44, %v1710_v46  ;;  %vm7013_vm11 = vcmask 785408   ;;  %v1990_v43 = vcombine.high %v1953_v39, %v1953_v39 }
 0x56e   : > { %1604 = vst.msk [vmem:[#allocation4 + $0x10] ss:$8 sm:$0x3] %vm5435_vm14, %v1602_v47  ;;  %v1646_v50 = vpop.permute.xlu0 %1645  ;;  %1713 = vst.msk [vmem:[#allocation4 + $0x22] ss:$8 sm:$0x3] %vm5435_vm14, %v1711_v48  ;;  %v1632_v42 = vpop.permute.xlu1 %1631  ;;  %v1975_v44 = vrot.slane %v1968_v40, %v5346_v10  ;;  %v2036_v46 = vrot.slane %v2029_v41, %v5346_v10  ;;  %v1887_v47 = vcombine.high %v1865_v36, %v1865_v36 }
 0x56f   : > { %v1647_v51 = vrot.slane %v1646_v50, 1  ;;  %v1633_v35 = vrot.slane %v1632_v42, 1  ;;  %1991 = vrot.lane.b32.xlu0 %v1990_v43, %s7023_s5  ;;  %s7122_s5 = smov 66  }
 0x570   : > { %v2005_v45 = vcombine.high %v1975_v44, %v1975_v44  ;;  %v1894_v48 = vrot.slane %v1887_v47, %v5346_v10 }
 0x571   : > { %v1648_v52 = vsel %vm1481_vm10, %v1646_v50, %v1647_v51  ;;  %v1635_v53 = vsel %vm6994_vm8, %v1632_v42, %v1633_v35  ;;  %vm7012_vm8 = vcmask 752640   ;;  %v1390_v42 = vcombine.low %v5809_v21, %v5812_v23 }
 0x572   : > { %1650 = vst.msk [vmem:[#allocation4 + $0x13] ss:$8 sm:$0x3] %vm5435_vm14, %v1648_v52  ;;  %v1664_v54 = vpop.permute.xlu0 %1663  ;;  %1637 = vst.msk [vmem:[#allocation4 + $0x11] ss:$8 sm:$0x3] %vm5435_vm14, %v1635_v53  ;;  %v1655_v55 = vpop.permute.xlu1 %1654  ;;  %2006 = vrot.lane.b32.xlu1 %v2005_v45, %s7021_s6  ;;  %v1924_v50 = vcombine.high %v1894_v48, %v1894_v48  ;;  %v4914_v52 = vcombine.low %v5812_v23, %v5812_v23 }
 0x573   : > { %v1665_v56 = vrot.slane %v1664_v54, 1  ;;  %v1656_v57 = vrot.slane %v1655_v55, 1  ;;  %2037 = vrot.lane.b32.xlu0 %v2036_v46, %s7019_s28  ;;  %s7121_s28 = smov 64   ;;  %s7123_s6 = smov 68  }
 0x575   : > { %v1666_v58 = vsel %vm7013_vm11, %v1664_v54, %v1665_v56  ;;  %v1721_v59 = vld [vmem:[#allocation4 + $0x20] sm:$0x7]  ;;  %v1722_v60 = vld [vmem:[#allocation4 + $0x28] sm:$0x7]  ;;  %v1657_v61 = vsel %vm6999_vm9, %v1655_v55, %v1656_v57 }
 0x576   : > { %1668 = vst.msk [vmem:[#allocation4 + $0x15] ss:$8 sm:$0x3] %vm5435_vm14, %v1666_v58  ;;  %v1682_v62 = vpop.permute.xlu0 %1681  ;;  %1659 = vst.msk [vmem:[#allocation4 + $0x14] ss:$8 sm:$0x3] %vm5435_vm14, %v1657_v61  ;;  %v1673_v63 = vpop.permute.xlu1 %1672  ;;  %4831 = vmatprep.subr.msk.mxu0 %vm1730_vm12, %v1722_v60 }
 0x577   : > { %v1683_v1 = vrot.slane %v1682_v62, 1  ;;  %v1674_v2 = vrot.slane %v1673_v63, 1  ;;  %4832 = vmatpush1.msk.msra.mxu0 %vm1730_vm12, %v1721_v59  ;;  %1895 = vrot.lane.b32.xlu0 %v1894_v48, %s7017_s7  ;;  %s7124_s7 = smov 4  }
 0x579   : > { %v1684_v3 = vsel %vm7012_vm8, %v1682_v62, %v1683_v1  ;;  %v1675_v4 = vsel %vm361_vm1, %v1673_v63, %v1674_v2 }
 0x57a   : > { %1686 = vst.msk [vmem:[#allocation4 + $0x17] ss:$8 sm:$0x3] %vm5435_vm14, %v1684_v3  ;;  %v1496_v5 = vpop.permute.xlu0 %1495  ;;  %1677 = vst.msk [vmem:[#allocation4 + $0x16] ss:$8 sm:$0x3] %vm5435_vm14, %v1675_v4  ;;  %v1479_v6 = vpop.permute.xlu1 %1478 }
 0x57b   : > { %v1497_v7 = vrot.slane %v1496_v5, 1  ;;  %v1480_v9 = vrot.slane %v1479_v6, 1  ;;  %1925 = vrot.lane.b32.xlu0 %v1924_v50, %s7014_s9  ;;  %s7109_s9 = smov 93  }
 0x57d   : > { %v1499_v11 = vsel %vm6999_vm9, %v1496_v5, %v1497_v7  ;;  %v1482_v14 = vsel %vm1481_vm10, %v1479_v6, %v1480_v9  ;;  %vm7094_vm9 = vcmask 154624   ;;  %v1872_v9 = vrot.slane %v1865_v36, %v5346_v10 }
 0x57e   : > { %1501 = vst.msk [vmem:[#allocation4 + $0x3] ss:$8 sm:$0x3] %vm5435_vm14, %v1499_v11  ;;  %v1543_v15 = vpop.permute.xlu0 %1542  ;;  %1484 = vst.msk [vmem:[#allocation4 + $0x2] ss:$8 sm:$0x3] %vm5435_vm14, %v1482_v14  ;;  %v1513_v16 = vpop.permute.xlu1 %1512 }
 0x57f   : > { %v1544_v17 = vrot.slane %v1543_v15, 1  ;;  %v1514_v13 = vrot.slane %v1513_v16, 1  ;;  %1976 = vrot.lane.b32.xlu0 %v1975_v44, %s7095_s27  ;;  %v1909_v11 = vcombine.high %v1872_v9, %v1872_v9 }
 0x581   : > { %v1545_v12 = vsel %vm361_vm1, %v1543_v15, %v1544_v17  ;;  %v1719_v18 = vld [vmem:[#allocation4 + $0x10] sm:$0xff]  ;;  %v1720_v26 = vld [vmem:[#allocation4 + $0x18] sm:$0xff]  ;;  %v1516_v19 = vsel %vm7013_vm11, %v1513_v16, %v1514_v13  ;;  %vm7102_vm11 = vcmask 138240  }
 0x582   : > { %1547 = vst.msk [vmem:[#allocation4 + $0x5] ss:$8 sm:$0x3] %vm5435_vm14, %v1545_v12  ;;  %v1583_v20 = vpop.permute.xlu0 %1582  ;;  %1518 = vst.msk [vmem:[#allocation4 + $0x4] ss:$8 sm:$0x3] %vm5435_vm14, %v1516_v19  ;;  %v1566_v22 = vpop.permute.xlu1 %1565  ;;  %1765 = vmatprep.subr.mxu0 %v1720_v26 }
 0x583   : > { %v1584_v24 = vrot.slane %v1583_v20, 1  ;;  %v1567_v25 = vrot.slane %v1566_v22, 1  ;;  %1766 = vmatpush1.msra.mxu0 %v1719_v18 }
 0x585   : > { %v1585_v27 = vsel %vm1577_vm15, %v1583_v20, %v1584_v24  ;;  %v1569_v28 = vsel %vm7012_vm8, %v1566_v22, %v1567_v25 }
 0x586   : > { %1587 = vst.msk [vmem:[#allocation4 + $0x7] ss:$8 sm:$0x3] %vm5435_vm14, %v1585_v27  ;;  %1571 = vst.msk [vmem:[#allocation4 + $0x6] ss:$8 sm:$0x3] %vm5435_vm14, %v1569_v28 }
 0x58d   : > { %v1717_v29 = vld [vmem:[#allocation4] sm:$0xff]  ;;  %v1718_v32 = vld [vmem:[#allocation4 + $0x8] sm:$0xff] }
 0x58e   : > { %1767 = vmatprep.subr.mxu0 %v1718_v32 }
 0x58f   : > { %1768 = vmatpush1.msra.mxu0 %v1717_v29 }
 0x590   : > { %4833 = vmatmul.mubr.msk.f32.vlgmr.msra.gmra.mxu0 %vm7094_vm9, %v4830_v33 }
 0x591   : > { %2619 = vmatprep.mubr.f32.mxu0 %v5201_v8 }
 0x5e1   : > { %v1992_v16 = vpop.permute.xlu0 %1991 }
 0x5e2   : > { %v1993_v19 = vrot.slane %v1992_v16, 7 }
 0x5e4   : > { %v2007_v14 = vpop.permute.xlu1 %2006  ;;  %v1994_v27 = vsel %vm396_vm7, %v1993_v19, %v1992_v16 }
 0x5e5   : > { %v2038_v12 = vpop.permute.xlu0 %2037  ;;  %v2008_v26 = vrot.slane %v2007_v14, 7 }
 0x5e6   : > { %v2039_v22 = vrot.slane %v2038_v12, 7 }
 0x5e9   : > { %v1896_v25 = vpop.permute.xlu0 %1895 }
 0x5ea   : > { %v1897_v36 = vrot.slane %v1896_v25, 7 }
 0x650   : > { %v1803_v51 = vpop.f32.mrf.mxu0 }
 0x651   : > { %v5958_v35 = vadd.f32 %v1803_v51, %v1390_v42 }
 0x652   : > { %v1805_v53 = vpop.f32.mrf.mxu0 }
 0x653   : > { %v4834_v54 = vmul.f32 -1.442695, %v5958_v35  ;;  %v5963_v55 = vadd.f32 %v4914_v52, %v1805_v53  ;;  %v1815_v23 = vmul.f32 %v5958_v35, %v5815_v31  ;;  %vm1813_vm9 = vcmp.ge.f32.partialorder %v5958_v35, 0.0 }
 0x655   : > { %5054 = vpow2.f32 %v4834_v54  ;;  %v4835_v56 = vmul.f32 -1.442695, %v5963_v55  ;;  %v1810_v57 = vcombine.low %v5958_v35, %v5963_v55  ;;  %v1816_v62 = vmul.f32 %v5963_v55, %v5815_v31 }
 0x656   : > { %vm1814_vm8 = vcmp.ge.f32.partialorder %v5963_v55, 0.0  ;;  %v1817_v3 = vsel %vm1813_vm9, %v5958_v35, %v1815_v23  ;;  %vm7099_vm9 = vcmask 416768  }
 0x657   : > { %5056 = vpow2.f32 %v4835_v56  ;;  %v1818_v4 = vsel %vm1814_vm8, %v5963_v55, %v1816_v62  ;;  %vm7098_vm8 = vcmask 408576   ;;  %v2040_v37 = vsel %vm7099_vm9, %v2039_v22, %v2038_v12 }
 0x658   : > { %v2009_v24 = vsel %vm7098_vm8, %v2008_v26, %v2007_v14  ;;  %vm7103_vm8 = vcmask 154624   ;;  %vm7104_vm9 = vcmask 146432  }
 0x659   : > { %v1898_v48 = vsel %vm7104_vm9, %v1897_v36, %v1896_v25  ;;  %vm7111_vm9 = vcmask 891904  }
 0x662   : > { %v5055_v58 = vpop.eup %5054 }
 0x663   : > { %v1825_v21 = vadd.f32 1.0, %v5055_v58 }
 0x664   : > { %v5057_v59 = vpop.eup %5056 }
 0x665   : > { %v1826_v60 = vadd.f32 1.0, %v5057_v59  ;;  %5058 = vrcp.f32 %v1825_v21 }
 0x667   : > { %5060 = vrcp.f32 %v1826_v60 }
 0x672   : > { %v5059_v61 = vpop.eup %5058 }
 0x673   : > { %v1833_v63 = vrot.slane %v5059_v61, 2 }
 0x674   : > { %v5061_v1 = vpop.eup %5060 }
 0x675   : > { %v1834_v2 = vrot.slane %v5061_v1, 2  ;;  %v1837_v5 = vmul.f32 %v1833_v63, %v1817_v3 }
 0x677   : > { %v1838_v6 = vmul.f32 %v1834_v2, %v1818_v4 }
 0x679   : > { %v1841_v7 = vcombine.low %v1837_v5, %v1838_v6 }
 0x67b   : > { %1842 = vrot.lane.b32.xlu1 %v1841_v7, %s7096_s11 }
 0x67f   : > { %1873 = vrot.lane.b32.xlu1 %v1872_v9, %s7097_s10 }
 0x683   : > { %1910 = vrot.lane.b32.xlu1 %v1909_v11, %s7073_s8 }
 0x687   : > { %1954 = vrot.lane.b32.xlu1 %v1953_v39, %s7096_s11  ;;  %v1926_v39 = vpop.permute.xlu0 %1925 }
 0x688   : > { %v1927_v50 = vrot.slane %v1926_v39, 7 }
 0x68b   : > { %v1977_v42 = vpop.permute.xlu0 %1976 }
 0x68c   : > { %v1978_v56 = vrot.slane %v1977_v42, 7 }
 0x68e   : > { %v1979_v59 = vsel %vm378_vm6, %v1978_v56, %v1977_v42 }
 0x6ed   : > { %v1843_v15 = vpop.permute.xlu1 %1842 }
 0x6ee   : > { %v1844_v17 = vrot.slane %v1843_v15, 4 }
 0x6f0   : > { %v1845_v13 = vsel %vm221_vm4, %v1844_v17, %v1843_v15  ;;  %1849 = vst.msk [vmem:[#allocation2 + $0x8] sm:$0x3] %vm1433_vm0, %v1844_v17 }
 0x6f1   : > { %1848 = vst.msk [vmem:[#allocation2] sm:$0x33] %vm5830_vm5, %v1845_v13  ;;  %v1874_v18 = vpop.permute.xlu1 %1873 }
 0x6f2   : > { %v1875_v33 = vrot.slane %v1874_v18, 7 }
 0x6f4   : > { %v1876_v38 = vsel %vm7102_vm11, %v1875_v33, %v1874_v18  ;;  %vm7105_vm11 = vcmask 269312  }
 0x6f5   : > { %v1911_v28 = vpop.permute.xlu1 %1910  ;;  %v1928_v54 = vsel %vm7105_vm11, %v1927_v50, %v1926_v39  ;;  %vm7112_vm11 = vcmask 900096  }
 0x6f6   : > { %v1912_v40 = vrot.slane %v1911_v28, 7 }
 0x6f8   : > { %v2051_v20 = vld [vmem:[#allocation2 + $0x1] ss:$4 sm:$0x7]  ;;  %v1855_v32 = vld [vmem:[#allocation2] ss:$4 sm:$0x7]  ;;  %v1913_v45 = vsel %vm7103_vm8, %v1912_v40, %v1911_v28 }
 0x6f9   : > { %v2115_v29 = vmul.f32 %v2051_v20, %v2009_v24  ;;  %v2106_v34 = vmul.f32 %v2051_v20, %v1994_v27  ;;  %v2011_v0 = vmul.f32 %v2009_v24, %v1855_v32  ;;  %v2124_v41 = vmul.f32 %v2051_v20, %v2040_v37  ;;  %v1955_v43 = vpop.permute.xlu1 %1954 }
 0x6fa   : > { %v2052_v44 = vmul.f32 %v2051_v20, %v1876_v38  ;;  %v1956_v46 = vrot.slane %v1955_v43, 7  ;;  %v2042_v47 = vmul.f32 %v2040_v37, %v1855_v32  ;;  %v2070_v51 = vmul.f32 %v2051_v20, %v1913_v45 }
 0x6fb   : > { %2117 = vrot.lane.b32.xlu0 %v2115_v29, %s7100_s12  ;;  %2108 = vrot.lane.b32.xlu1 %v2106_v34, %s7101_s30  ;;  %v2061_v52 = vmul.f32 %v2051_v20, %v1898_v48  ;;  %v2079_v21 = vmul.f32 %v2051_v20, %v1928_v54  ;;  %v1878_v60 = vmul.f32 %v1876_v38, %v1855_v32  ;;  %vm7110_vm8 = vcmask 908288  }
 0x6fc   : > { %v1957_v53 = vsel %vm221_vm4, %v1956_v46, %v1955_v43  ;;  %v2097_v61 = vmul.f32 %v2051_v20, %v1979_v59  ;;  %v1915_v23 = vmul.f32 %v1913_v45, %v1855_v32  ;;  %v1900_v62 = vmul.f32 %v1898_v48, %v1855_v32 }
 0x6fd   : > { %v2088_v58 = vmul.f32 %v2051_v20, %v1957_v53  ;;  %v1959_v63 = vmul.f32 %v1957_v53, %v1855_v32  ;;  %v1930_v1 = vmul.f32 %v1928_v54, %v1855_v32  ;;  %v1996_v2 = vmul.f32 %v1994_v27, %v1855_v32 }
 0x6fe   : > { %v1981_v3 = vmul.f32 %v1979_v59, %v1855_v32 }
 0x6ff   : > { %2013 = vrot.lane.b32.xlu0 %v2011_v0, %s7100_s12  ;;  %2126 = vrot.lane.b32.xlu1 %v2124_v41, %s7076_s14 }
 0x703   : > { %2054 = vrot.lane.b32.xlu0 %v2052_v44, %s7080_s20  ;;  %2044 = vrot.lane.b32.xlu1 %v2042_v47, %s7076_s14 }
 0x707   : > { %2072 = vrot.lane.b32.xlu0 %v2070_v51, %s7106_s23  ;;  %2063 = vrot.lane.b32.xlu1 %v2061_v52, %s7107_s22 }
 0x70b   : > { %2090 = vrot.lane.b32.xlu0 %v2088_v58, %s7108_s13  ;;  %2081 = vrot.lane.b32.xlu1 %v2079_v21, %s7082_s29 }
 0x70f   : > { %1880 = vrot.lane.b32.xlu0 %v1878_v60, %s7080_s20  ;;  %2099 = vrot.lane.b32.xlu1 %v2097_v61, %s7109_s9 }
 0x713   : > { %1917 = vrot.lane.b32.xlu0 %v1915_v23, %s7106_s23  ;;  %1902 = vrot.lane.b32.xlu1 %v1900_v62, %s7107_s22 }
 0x717   : > { %1961 = vrot.lane.b32.xlu0 %v1959_v63, %s7108_s13  ;;  %1932 = vrot.lane.b32.xlu1 %v1930_v1, %s7082_s29 }
 0x71b   : > { %1998 = vrot.lane.b32.xlu0 %v1996_v2, %s7101_s30  ;;  %1983 = vrot.lane.b32.xlu1 %v1981_v3, %s7109_s9 }
 0x76d   : > { %v2118_v4 = vpop.permute.xlu0 %2117  ;;  %v2109_v5 = vpop.permute.xlu1 %2108 }
 0x76e   : > { %v2119_v6 = vrot.slane %v2118_v4, 1  ;;  %v2110_v7 = vrot.slane %v2109_v5, 1 }
 0x770   : > { %v2120_v9 = vsel %vm422_vm2, %v2118_v4, %v2119_v6  ;;  %v2111_v11 = vsel %vm404_vm3, %v2109_v5, %v2110_v7 }
 0x771   : > { %2122 = vst.msk [vmem:[#allocation4 + $0x21] ss:$8 sm:$0x3] %vm5435_vm14, %v2120_v9  ;;  %v2014_v14 = vpop.permute.xlu0 %2013  ;;  %2113 = vst.msk [vmem:[#allocation4 + $0x20] ss:$8 sm:$0x3] %vm5435_vm14, %v2111_v11  ;;  %v2127_v15 = vpop.permute.xlu1 %2126 }
 0x772   : > { %v2015_v16 = vrot.slane %v2014_v14, 1  ;;  %v2128_v17 = vrot.slane %v2127_v15, 1  ;;  %v4840_v9 = vld [vmem:[%s6935_s1 + $0xc] sm:$0xf] }
 0x773   : > { %v5022_v11 = vld [vmem:[%s6936_s2 + $0x84] ss:$8 sps:$4 sm:$0xff]  }
 0x774   : > { %v2016_v13 = vsel %vm422_vm2, %v2014_v14, %v2015_v16  ;;  %v2129_v12 = vsel %vm7016_vm13, %v2127_v15, %v2128_v17  ;;  %v5024_v14 = vld [vmem:[%s6936_s2 + $0x90] ss:$8 sps:$4 sm:$0x11]   ;;  %v2353_v15 = vrot.slane %v5022_v11, %v5346_v10 }
 0x775   : > { %2018 = vst.msk [vmem:[#allocation4 + $0x10] ss:$8 sm:$0x3] %vm5435_vm14, %v2016_v13  ;;  %v2055_v18 = vpop.permute.xlu0 %2054  ;;  %2131 = vst.msk [vmem:[#allocation4 + $0x22] ss:$8 sm:$0x3] %vm5435_vm14, %v2129_v12  ;;  %v2045_v26 = vpop.permute.xlu1 %2044  ;;  %v2436_v13 = vrot.slane %v5024_v14, %v5346_v10 }
 0x776   : > { %v2056_v19 = vrot.slane %v2055_v18, 1  ;;  %v2046_v20 = vrot.slane %v2045_v26, 1  ;;  %v2375_v16 = vcombine.high %v2353_v15, %v2353_v15  ;;  %v2360_v17 = vrot.slane %v2353_v15, %v5346_v10 }
 0x778   : > { %v2057_v22 = vsel %vm7110_vm8, %v2055_v18, %v2056_v19  ;;  %v2047_v24 = vsel %vm7016_vm13, %v2045_v26, %v2046_v20  ;;  %vm7113_vm8 = vcmask 777216   ;;  %vm7117_vm13 = vcmask 900096   ;;  %v5025_v20 = vld [vmem:[%s6936_s2 + $0x80] ss:$8 sps:$4 sm:$0xff]  }
 0x779   : > { %2059 = vst.msk [vmem:[#allocation4 + $0x12] ss:$8 sm:$0x3] %vm5435_vm14, %v2057_v22  ;;  %v2073_v25 = vpop.permute.xlu0 %2072  ;;  %2049 = vst.msk [vmem:[#allocation4 + $0x11] ss:$8 sm:$0x3] %vm5435_vm14, %v2047_v24  ;;  %v2064_v27 = vpop.permute.xlu1 %2063  ;;  %v2382_v12 = vrot.slane %v2375_v16, %v5346_v10  ;;  %v2397_v18 = vcombine.high %v2360_v17, %v2360_v17  ;;  %v2443_v19 = vrot.slane %v2436_v13, %v5346_v10 }
 0x77a   : > { %v2074_v28 = vrot.slane %v2073_v25, 1  ;;  %v2065_v29 = vrot.slane %v2064_v27, 1  ;;  %v2282_v22 = vrot.slane %v5025_v20, %v5346_v10 }
 0x77b   : > { %v2412_v26 = vcombine.high %v2382_v12, %v2382_v12  ;;  %2398 = vrot.lane.b32.xlu0 %v2397_v18, %s7121_s28 }
 0x77c   : > { %v2075_v32 = vsel %vm7111_vm9, %v2073_v25, %v2074_v28  ;;  %v2139_v33 = vld [vmem:[#allocation4 + $0x20] sm:$0x7]  ;;  %v2140_v34 = vld [vmem:[#allocation4 + $0x28] sm:$0x7]  ;;  %v2066_v37 = vsel %vm7112_vm11, %v2064_v27, %v2065_v29  ;;  %vm7114_vm9 = vcmask 908288   ;;  %vm7115_vm11 = vcmask 760832  }
 0x77d   : > { %2077 = vst.msk [vmem:[#allocation4 + $0x14] ss:$8 sm:$0x3] %vm5435_vm14, %v2075_v32  ;;  %v2091_v0 = vpop.permute.xlu0 %2090  ;;  %2068 = vst.msk [vmem:[#allocation4 + $0x13] ss:$8 sm:$0x3] %vm5435_vm14, %v2066_v37  ;;  %v2082_v38 = vpop.permute.xlu1 %2081  ;;  %4841 = vmatprep.subr.msk.mxu1 %vm1730_vm12, %v2140_v34  ;;  %2413 = vrot.lane.b32.xlu1 %v2412_v26, %s7122_s5  ;;  %v2289_v24 = vrot.slane %v2282_v22, %v5346_v10  ;;  %v4915_v29 = vcombine.low %v5963_v55, %v5963_v55 }
 0x77e   : > { %v2092_v39 = vrot.slane %v2091_v0, 1  ;;  %v2083_v40 = vrot.slane %v2082_v38, 1  ;;  %4842 = vmatpush1.msk.msra.mxu1 %vm1730_vm12, %v2139_v33 }
 0x77f   : > { %2444 = vrot.lane.b32.xlu0 %v2443_v19, %s7123_s6  ;;  %v2316_v25 = vcombine.high %v2289_v24, %v2289_v24 }
 0x780   : > { %v2093_v41 = vsel %vm361_vm1, %v2091_v0, %v2092_v39  ;;  %v2084_v36 = vsel %vm7113_vm8, %v2082_v38, %v2083_v40  ;;  %vm7116_vm8 = vcmask 891904  }
 0x781   : > { %2095 = vst.msk [vmem:[#allocation4 + $0x16] ss:$8 sm:$0x3] %vm5435_vm14, %v2093_v41  ;;  %v1881_v43 = vpop.permute.xlu0 %1880  ;;  %2086 = vst.msk [vmem:[#allocation4 + $0x15] ss:$8 sm:$0x3] %vm5435_vm14, %v2084_v36  ;;  %v2100_v44 = vpop.permute.xlu1 %2099 }
 0x782   : > { %v1882_v45 = vrot.slane %v1881_v43, 1  ;;  %v2101_v46 = vrot.slane %v2100_v44, 1 }
 0x783   : > { %2317 = vrot.lane.b32.xlu0 %v2316_v25, %s7124_s7 }
 0x784   : > { %v1883_v47 = vsel %vm7114_vm9, %v1881_v43, %v1882_v45  ;;  %v2102_v48 = vsel %vm7115_vm11, %v2100_v44, %v2101_v46  ;;  %vm7118_vm9 = vcmask 777216  }
 0x785   : > { %1885 = vst.msk [vmem:[#allocation4 + $0x1] ss:$8 sm:$0x3] %vm5435_vm14, %v1883_v47  ;;  %v1918_v50 = vpop.permute.xlu0 %1917  ;;  %2104 = vst.msk [vmem:[#allocation4 + $0x17] ss:$8 sm:$0x3] %vm5435_vm14, %v2102_v48  ;;  %v1903_v42 = vpop.permute.xlu1 %1902 }
 0x786   : > { %v1919_v51 = vrot.slane %v1918_v50, 1  ;;  %v1904_v52 = vrot.slane %v1903_v42, 1 }
 0x787   : > { %2361 = vrot.lane.b32.xlu0 %v2360_v17, %s7096_s11 }
 0x788   : > { %v1920_v53 = vsel %vm7116_vm8, %v1918_v50, %v1919_v51  ;;  %v1905_v54 = vsel %vm7117_vm13, %v1903_v42, %v1904_v52  ;;  %vm7119_vm13 = vmmov %vm7115_vm11  ;;  %vm7120_vm11 = vcmask 154624   ;;  %v2294_v50 = vcombine.high %v2282_v22, %v2282_v22 }
 0x789   : > { %1922 = vst.msk [vmem:[#allocation4 + $0x3] ss:$8 sm:$0x3] %vm5435_vm14, %v1920_v53  ;;  %v1962_v56 = vpop.permute.xlu0 %1961  ;;  %1907 = vst.msk [vmem:[#allocation4 + $0x2] ss:$8 sm:$0x3] %vm5435_vm14, %v1905_v54  ;;  %v1933_v58 = vpop.permute.xlu1 %1932 }
 0x78a   : > { %v1963_v21 = vrot.slane %v1962_v56, 1  ;;  %v1934_v59 = vrot.slane %v1933_v58, 1  ;;  %v2301_v51 = vrot.slane %v2294_v50, %v5346_v10 }
 0x78c   : > { %v1964_v60 = vsel %vm361_vm1, %v1962_v56, %v1963_v21  ;;  %v2137_v61 = vld [vmem:[#allocation4 + $0x10] sm:$0xff]  ;;  %v2138_v23 = vld [vmem:[#allocation4 + $0x18] sm:$0xff]  ;;  %v1935_v62 = vsel %vm7118_vm9, %v1933_v58, %v1934_v59  ;;  %v2331_v52 = vcombine.high %v2301_v51, %v2301_v51 }
 0x78d   : > { %1966 = vst.msk [vmem:[#allocation4 + $0x5] ss:$8 sm:$0x3] %vm5435_vm14, %v1964_v60  ;;  %v1999_v63 = vpop.permute.xlu0 %1998  ;;  %1937 = vst.msk [vmem:[#allocation4 + $0x4] ss:$8 sm:$0x3] %vm5435_vm14, %v1935_v62  ;;  %v1984_v1 = vpop.permute.xlu1 %1983  ;;  %2182 = vmatprep.subr.mxu1 %v2138_v23 }
 0x78e   : > { %v2000_v2 = vrot.slane %v1999_v63, 1  ;;  %v1985_v3 = vrot.slane %v1984_v1, 1  ;;  %2183 = vmatpush1.msra.mxu1 %v2137_v61 }
 0x790   : > { %v2001_v4 = vsel %vm404_vm3, %v1999_v63, %v2000_v2  ;;  %v1986_v5 = vsel %vm7119_vm13, %v1984_v1, %v1985_v3  ;;  %vm7128_vm13 = vcmask 539648  }
 0x791   : > { %2003 = vst.msk [vmem:[#allocation4 + $0x7] ss:$8 sm:$0x3] %vm5435_vm14, %v2001_v4  ;;  %1988 = vst.msk [vmem:[#allocation4 + $0x6] ss:$8 sm:$0x3] %vm5435_vm14, %v1986_v5 }
 0x798   : > { %v2135_v6 = vld [vmem:[#allocation4] sm:$0xff]  ;;  %v2136_v7 = vld [vmem:[#allocation4 + $0x8] sm:$0xff] }
 0x799   : > { %2184 = vmatprep.subr.mxu1 %v2136_v7 }
 0x79a   : > { %2185 = vmatpush1.msra.mxu1 %v2135_v6 }
 0x79b   : > { %4843 = vmatmul.mubr.msk.f32.vlgmr.msra.gmra.mxu1 %vm7120_vm11, %v4840_v9  ;;  %vm7129_vm11 = vcmask 556032  }
 0x79c   : > { %3036 = vmatprep.mubr.f32.mxu1 %v5201_v8 }
 0x7ed   : > { %v2399_v58 = vpop.permute.xlu0 %2398 }
 0x7ee   : > { %v2400_v23 = vrot.slane %v2399_v58, 7 }
 0x7ef   : > { %v2414_v53 = vpop.permute.xlu1 %2413 }
 0x7f0   : > { %v2415_v61 = vrot.slane %v2414_v53, 7  ;;  %v2401_v5 = vsel %vm1577_vm15, %v2400_v23, %v2399_v58 }
 0x7f1   : > { %v2445_v59 = vpop.permute.xlu0 %2444 }
 0x7f2   : > { %v2446_v3 = vrot.slane %v2445_v59, 7  ;;  %v2416_v4 = vsel %vm7128_vm13, %v2415_v61, %v2414_v53  ;;  %vm7134_vm13 = vcmask 261120  }
 0x7f4   : > { %v2447_v14 = vsel %vm7129_vm11, %v2446_v3, %v2445_v59  ;;  %vm7136_vm11 = vcmask 293888  }
 0x7f5   : > { %v2318_v6 = vpop.permute.xlu0 %2317 }
 0x7f9   : > { %v2362_v26 = vpop.permute.xlu0 %2361 }
 0x85b   : > { %v2220_v27 = vpop.f32.mrf.mxu1 }
 0x85c   : > { %v6097_v28 = vadd.f32 %v2220_v27, %v1810_v57  ;;  %v2363_v27 = vrot.slane %v2362_v26, 7 }
 0x85d   : > { %v2222_v32 = vpop.f32.mrf.mxu1 }
 0x85e   : > { %v4844_v33 = vmul.f32 -1.442695, %v6097_v28  ;;  %v6102_v34 = vadd.f32 %v4915_v29, %v2222_v32  ;;  %v2232_v55 = vmul.f32 %v6097_v28, %v5815_v31  ;;  %vm2230_vm8 = vcmp.ge.f32.partialorder %v6097_v28, 0.0 }
 0x860   : > { %5062 = vpow2.f32 %v4844_v33  ;;  %v4845_v37 = vmul.f32 -1.442695, %v6102_v34  ;;  %v2227_v0 = vcombine.low %v6097_v28, %v6102_v34  ;;  %v2233_v41 = vmul.f32 %v6102_v34, %v5815_v31 }
 0x861   : > { %vm2231_vm9 = vcmp.ge.f32.partialorder %v6102_v34, 0.0  ;;  %v2234_v45 = vsel %vm2230_vm8, %v6097_v28, %v2232_v55  ;;  %vm7131_vm8 = vcmask 15360  }
 0x862   : > { %5064 = vpow2.f32 %v4845_v37  ;;  %v2235_v46 = vsel %vm2231_vm9, %v6102_v34, %v2233_v41  ;;  %vm7133_vm9 = vcmask 31744   ;;  %v2364_v37 = vsel %vm221_vm4, %v2363_v27, %v2362_v26 }
 0x86d   : > { %v5063_v38 = vpop.eup %5062 }
 0x86e   : > { %v2242_v39 = vadd.f32 1.0, %v5063_v38 }
 0x86f   : > { %v5065_v35 = vpop.eup %5064 }
 0x870   : > { %v2243_v57 = vadd.f32 1.0, %v5065_v35  ;;  %5066 = vrcp.f32 %v2242_v39 }
 0x872   : > { %5068 = vrcp.f32 %v2243_v57 }
 0x87d   : > { %v5067_v40 = vpop.eup %5066 }
 0x87e   : > { %v2250_v36 = vrot.slane %v5067_v40, 2 }
 0x87f   : > { %v5069_v43 = vpop.eup %5068 }
 0x880   : > { %v2251_v44 = vrot.slane %v5069_v43, 2  ;;  %v2254_v47 = vmul.f32 %v2250_v36, %v2234_v45 }
 0x882   : > { %v2255_v48 = vmul.f32 %v2251_v44, %v2235_v46 }
 0x884   : > { %v2258_v42 = vcombine.low %v2254_v47, %v2255_v48 }
 0x886   : > { %2259 = vrot.lane.b32.xlu1 %v2258_v42, %s7096_s11 }
 0x88a   : > { %2302 = vrot.lane.b32.xlu1 %v2301_v51, %s7125_s0 }
 0x88e   : > { %2332 = vrot.lane.b32.xlu1 %v2331_v52, %s7126_s3 }
 0x892   : > { %2383 = vrot.lane.b32.xlu1 %v2382_v12, %s7127_s24  ;;  %v2319_v12 = vrot.slane %v2318_v6, 7 }
 0x8f8   : > { %v2260_v54 = vpop.permute.xlu1 %2259 }
 0x8f9   : > { %v2261_v56 = vrot.slane %v2260_v54, 4 }
 0x8fb   : > { %v2262_v21 = vsel %vm221_vm4, %v2261_v56, %v2260_v54  ;;  %2266 = vst.msk [vmem:[#allocation2 + $0x8] sm:$0x3] %vm1433_vm0, %v2261_v56 }
 0x8fc   : > { %2265 = vst.msk [vmem:[#allocation2] sm:$0x33] %vm5830_vm5, %v2262_v21  ;;  %v2303_v60 = vpop.permute.xlu1 %2302 }
 0x8fd   : > { %v2304_v15 = vrot.slane %v2303_v60, 7 }
 0x8ff   : > { %v2305_v13 = vsel %vm7131_vm8, %v2304_v15, %v2303_v60  ;;  %vm7140_vm8 = vcmask 506880  }
 0x900   : > { %v2333_v7 = vpop.permute.xlu1 %2332 }
 0x901   : > { %v2334_v18 = vrot.slane %v2333_v7, 7 }
 0x903   : > { %v2272_v62 = vld [vmem:[#allocation2] ss:$4 sm:$0x7]  ;;  %v2458_v63 = vld [vmem:[#allocation2 + $0x1] ss:$4 sm:$0x7]  ;;  %v2335_v25 = vsel %vm7134_vm13, %v2334_v18, %v2333_v7 }
 0x904   : > { %v2291_v1 = vmul.f32 %v2289_v24, %v2272_v62  ;;  %v2459_v2 = vmul.f32 %v2458_v63, %v2289_v24  ;;  %v2516_v9 = vmul.f32 %v2458_v63, %v2416_v4  ;;  %v2507_v11 = vmul.f32 %v2458_v63, %v2401_v5  ;;  %v2384_v19 = vpop.permute.xlu1 %2383 }
 0x905   : > { %v2525_v16 = vmul.f32 %v2458_v63, %v2447_v14  ;;  %v2418_v17 = vmul.f32 %v2416_v4, %v2272_v62  ;;  %v2449_v20 = vmul.f32 %v2447_v14, %v2272_v62  ;;  %v2462_v22 = vmul.f32 %v2458_v63, %v2305_v13 }
 0x906   : > { %2292 = vst.msk [vmem:[#allocation4 + $0x1] ss:$8 sm:$0x3] %vm5435_vm14, %v2291_v1  ;;  %2460 = vst.msk [vmem:[#allocation4 + $0x12] ss:$8 sm:$0x3] %vm5435_vm14, %v2459_v2  ;;  %2518 = vrot.lane.b32.xlu1 %v2516_v9, %s7130_s17  ;;  %2509 = vrot.lane.b32.xlu0 %v2507_v11, %s7121_s28  ;;  %v2320_v24 = vsel %vm7133_vm9, %v2319_v12, %v2318_v6  ;;  %v2480_v33 = vmul.f32 %v2458_v63, %v2335_v25 }
 0x907   : > { %v2385_v29 = vrot.slane %v2384_v19, 7  ;;  %v2471_v32 = vmul.f32 %v2458_v63, %v2320_v24  ;;  %v2489_v39 = vmul.f32 %v2458_v63, %v2364_v37  ;;  %v2307_v57 = vmul.f32 %v2305_v13, %v2272_v62  ;;  %vm7141_vm9 = vmmov %vm7140_vm8 }
 0x908   : > { %v2322_v40 = vmul.f32 %v2320_v24, %v2272_v62  ;;  %v2337_v55 = vmul.f32 %v2335_v25, %v2272_v62  ;;  %v2366_v41 = vmul.f32 %v2364_v37, %v2272_v62  ;;  %v2403_v43 = vmul.f32 %v2401_v5, %v2272_v62 }
 0x909   : > { %v2386_v38 = vsel %vm7136_vm11, %v2385_v29, %v2384_v19  ;;  %vm7142_vm13 = vcmask 490496  }
 0x90a   : > { %2420 = vrot.lane.b32.xlu1 %v2418_v17, %s7130_s17  ;;  %2527 = vrot.lane.b32.xlu0 %v2525_v16, %s7132_s21  ;;  %v2498_v35 = vmul.f32 %v2458_v63, %v2386_v38  ;;  %v2388_v36 = vmul.f32 %v2386_v38, %v2272_v62  ;;  %vm7143_vm11 = vmmov %vm7142_vm13 }
 0x90e   : > { %2464 = vrot.lane.b32.xlu1 %v2462_v22, %s7135_s26  ;;  %2451 = vrot.lane.b32.xlu0 %v2449_v20, %s7132_s21  ;;  %s7179_s21 = smov 126  }
 0x912   : > { %2482 = vrot.lane.b32.xlu1 %v2480_v33, %s7137_s15  ;;  %2473 = vrot.lane.b32.xlu0 %v2471_v32, %s7138_s18 }
 0x916   : > { %2500 = vrot.lane.b32.xlu1 %v2498_v35, %s7139_s4  ;;  %2491 = vrot.lane.b32.xlu0 %v2489_v39, %s7108_s13 }
 0x91a   : > { %2324 = vrot.lane.b32.xlu1 %v2322_v40, %s7138_s18  ;;  %2309 = vrot.lane.b32.xlu0 %v2307_v57, %s7135_s26  ;;  %s7153_s18 = smov 18   ;;  %s7182_s26 = smov 124  }
 0x91e   : > { %2339 = vrot.lane.b32.xlu0 %v2337_v55, %s7137_s15  ;;  %2368 = vrot.lane.b32.xlu1 %v2366_v41, %s7108_s13  ;;  %s7151_s15 = smov 50  }
 0x922   : > { %2390 = vrot.lane.b32.xlu0 %v2388_v36, %s7139_s4  ;;  %2405 = vrot.lane.b32.xlu1 %v2403_v43, %s7121_s28  ;;  %v4850_v36 = vld [vmem:[%s6935_s1 + $0x10] sm:$0xf]  ;;  %v5026_v43 = vld [vmem:[%s6936_s2 + $0xa4] ss:$8 sps:$4 sm:$0xff]   ;;  %s7150_s4 = smov 49  }
 0x978   : > { %v2519_v44 = vpop.permute.xlu1 %2518  ;;  %v2510_v45 = vpop.permute.xlu0 %2509 }
 0x979   : > { %v2520_v46 = vrot.slane %v2519_v44, 1  ;;  %v2511_v47 = vrot.slane %v2510_v45, 1 }
 0x97b   : > { %v2521_v48 = vsel %vm7140_vm8, %v2519_v44, %v2520_v46  ;;  %v2512_v50 = vsel %vm1577_vm15, %v2510_v45, %v2511_v47  ;;  %vm7144_vm8 = vcmask 785408   ;;  %v5028_v44 = vld [vmem:[%s6936_s2 + $0xb0] ss:$8 sps:$4 sm:$0x11]   ;;  %v5029_v45 = vld [vmem:[%s6936_s2 + $0xa0] ss:$8 sps:$4 sm:$0xff]   ;;  %v2764_v46 = vrot.slane %v5026_v43, %v5346_v10 }
 0x97c   : > { %2523 = vst.msk [vmem:[#allocation4 + $0x21] ss:$8 sm:$0x3] %vm5435_vm14, %v2521_v48  ;;  %2514 = vst.msk [vmem:[#allocation4 + $0x20] ss:$8 sm:$0x3] %vm5435_vm14, %v2512_v50  ;;  %v2421_v42 = vpop.permute.xlu1 %2420  ;;  %v2528_v51 = vpop.permute.xlu0 %2527  ;;  %v2847_v50 = vrot.slane %v5028_v44, %v5346_v10 }
 0x97d   : > { %v2422_v52 = vrot.slane %v2421_v42, 1  ;;  %v2529_v53 = vrot.slane %v2528_v51, 1  ;;  %v2771_v47 = vrot.slane %v2764_v46, %v5346_v10  ;;  %v2786_v48 = vcombine.high %v2764_v46, %v2764_v46 }
 0x97f   : > { %v2423_v54 = vsel %vm7141_vm9, %v2421_v42, %v2422_v52  ;;  %v2530_v56 = vsel %vm7142_vm13, %v2528_v51, %v2529_v53  ;;  %vm7145_vm9 = vcmask 1014784   ;;  %vm7146_vm13 = vcmask 752640  }
 0x980   : > { %2425 = vst.msk [vmem:[#allocation4 + $0x10] ss:$8 sm:$0x3] %vm5435_vm14, %v2423_v54  ;;  %2532 = vst.msk [vmem:[#allocation4 + $0x22] ss:$8 sm:$0x3] %vm5435_vm14, %v2530_v56  ;;  %v2465_v58 = vpop.permute.xlu1 %2464  ;;  %v2452_v21 = vpop.permute.xlu0 %2451  ;;  %v2683_v42 = vrot.slane %v5029_v45, %v5346_v10  ;;  %v2808_v51 = vcombine.high %v2771_v47, %v2771_v47  ;;  %v2793_v52 = vrot.slane %v2786_v48, %v5346_v10 }
 0x981   : > { %v2466_v59 = vrot.slane %v2465_v58, 1  ;;  %v2453_v60 = vrot.slane %v2452_v21, 1  ;;  %v2854_v54 = vrot.slane %v2847_v50, %v5346_v10 }
 0x982   : > { %2809 = vrot.lane.b32.xlu1 %v2808_v51, %s7150_s4  ;;  %v2823_v53 = vcombine.high %v2793_v52, %v2793_v52  ;;  %v2705_v56 = vcombine.high %v2683_v42, %v2683_v42 }
 0x983   : > { %v2467_v61 = vsel %vm1481_vm10, %v2465_v58, %v2466_v59  ;;  %v2454_v23 = vsel %vm7143_vm11, %v2452_v21, %v2453_v60  ;;  %vm7147_vm11 = vmmov %vm7145_vm9 }
 0x984   : > { %2469 = vst.msk [vmem:[#allocation4 + $0x13] ss:$8 sm:$0x3] %vm5435_vm14, %v2467_v61  ;;  %2456 = vst.msk [vmem:[#allocation4 + $0x11] ss:$8 sm:$0x3] %vm5435_vm14, %v2454_v23  ;;  %v2483_v62 = vpop.permute.xlu1 %2482  ;;  %v2474_v63 = vpop.permute.xlu0 %2473  ;;  %2824 = vrot.lane.b32.xlu0 %v2823_v53, %s7151_s15  ;;  %v2712_v58 = vrot.slane %v2705_v56, %v5346_v10  ;;  %v4916_v61 = vcombine.low %v6102_v34, %v6102_v34 }
 0x985   : > { %v2484_v1 = vrot.slane %v2483_v62, 1  ;;  %v2475_v2 = vrot.slane %v2474_v63, 1 }
 0x986   : > { %2855 = vrot.lane.b32.xlu1 %v2854_v54, %s7152_s16  ;;  %v2742_v21 = vcombine.high %v2712_v58, %v2712_v58 }
 0x987   : > { %v2485_v3 = vsel %vm7144_vm8, %v2483_v62, %v2484_v1  ;;  %v2476_v4 = vsel %vm7145_vm9, %v2474_v63, %v2475_v2  ;;  %v2541_v5 = vld [vmem:[#allocation4 + $0x28] sm:$0x7]  ;;  %v2540_v6 = vld [vmem:[#allocation4 + $0x20] sm:$0x7]  ;;  %vm7148_vm9 = vmmov %vm7146_vm13 }
 0x988   : > { %2487 = vst.msk [vmem:[#allocation4 + $0x15] ss:$8 sm:$0x3] %vm5435_vm14, %v2485_v3  ;;  %2478 = vst.msk [vmem:[#allocation4 + $0x14] ss:$8 sm:$0x3] %vm5435_vm14, %v2476_v4  ;;  %v2501_v7 = vpop.permute.xlu1 %2500  ;;  %4851 = vmatprep.subr.msk.mxu0 %vm1730_vm12, %v2541_v5  ;;  %v2492_v9 = vpop.permute.xlu0 %2491 }
 0x989   : > { %v2502_v11 = vrot.slane %v2501_v7, 1  ;;  %v2493_v14 = vrot.slane %v2492_v9, 1  ;;  %4852 = vmatpush1.msk.msra.mxu0 %vm1730_vm12, %v2540_v6 }
 0x98a   : > { %2713 = vrot.lane.b32.xlu1 %v2712_v58, %s7153_s18 }
 0x98b   : > { %v2503_v15 = vsel %vm7146_vm13, %v2501_v7, %v2502_v11  ;;  %v2494_v16 = vsel %vm361_vm1, %v2492_v9, %v2493_v14  ;;  %vm7149_vm13 = vcmask 154624  }
 0x98c   : > { %2505 = vst.msk [vmem:[#allocation4 + $0x17] ss:$8 sm:$0x3] %vm5435_vm14, %v2503_v15  ;;  %2496 = vst.msk [vmem:[#allocation4 + $0x16] ss:$8 sm:$0x3] %vm5435_vm14, %v2494_v16  ;;  %v2325_v17 = vpop.permute.xlu1 %2324  ;;  %v2310_v13 = vpop.permute.xlu0 %2309 }
 0x98d   : > { %v2326_v12 = vrot.slane %v2325_v17, 1  ;;  %v2311_v18 = vrot.slane %v2310_v13, 1 }
 0x98e   : > { %2743 = vrot.lane.b32.xlu1 %v2742_v21, %s7154_s19 }
 0x98f   : > { %v2327_v26 = vsel %vm7147_vm11, %v2325_v17, %v2326_v12  ;;  %v2312_v19 = vsel %vm1481_vm10, %v2310_v13, %v2311_v18  ;;  %v2690_v12 = vrot.slane %v2683_v42, %v5346_v10 }
 0x990   : > { %2329 = vst.msk [vmem:[#allocation4 + $0x3] ss:$8 sm:$0x3] %vm5435_vm14, %v2327_v26  ;;  %2314 = vst.msk [vmem:[#allocation4 + $0x2] ss:$8 sm:$0x3] %vm5435_vm14, %v2312_v19  ;;  %v2369_v20 = vpop.permute.xlu1 %2368  ;;  %v2340_v22 = vpop.permute.xlu0 %2339 }
 0x991   : > { %v2370_v24 = vrot.slane %v2369_v20, 1  ;;  %v2341_v25 = vrot.slane %v2340_v22, 1  ;;  %v2727_v18 = vcombine.high %v2690_v12, %v2690_v12 }
 0x992   : > { %2794 = vrot.lane.b32.xlu1 %v2793_v52, %s7095_s27 }
 0x993   : > { %v2538_v27 = vld [vmem:[#allocation4 + $0x10] sm:$0xff]  ;;  %v2539_v29 = vld [vmem:[#allocation4 + $0x18] sm:$0xff]  ;;  %v2371_v32 = vsel %vm361_vm1, %v2369_v20, %v2370_v24  ;;  %v2342_v33 = vsel %vm7144_vm8, %v2340_v22, %v2341_v25 }
 0x994   : > { %2373 = vst.msk [vmem:[#allocation4 + $0x5] ss:$8 sm:$0x3] %vm5435_vm14, %v2371_v32  ;;  %2344 = vst.msk [vmem:[#allocation4 + $0x4] ss:$8 sm:$0x3] %vm5435_vm14, %v2342_v33  ;;  %v2406_v37 = vpop.permute.xlu1 %2405  ;;  %2583 = vmatprep.subr.mxu0 %v2539_v29  ;;  %v2391_v38 = vpop.permute.xlu0 %2390 }
 0x995   : > { %v2407_v39 = vrot.slane %v2406_v37, 1  ;;  %v2392_v35 = vrot.slane %v2391_v38, 1  ;;  %2584 = vmatpush1.msra.mxu0 %v2538_v27 }
 0x997   : > { %v2408_v57 = vsel %vm1577_vm15, %v2406_v37, %v2407_v39  ;;  %v2393_v40 = vsel %vm7148_vm9, %v2391_v38, %v2392_v35  ;;  %vm7155_vm9 = vcmask 408576  }
 0x998   : > { %2410 = vst.msk [vmem:[#allocation4 + $0x7] ss:$8 sm:$0x3] %vm5435_vm14, %v2408_v57  ;;  %2395 = vst.msk [vmem:[#allocation4 + $0x6] ss:$8 sm:$0x3] %vm5435_vm14, %v2393_v40 }
 0x99f   : > { %v2536_v55 = vld [vmem:[#allocation4] sm:$0xff]  ;;  %v2537_v41 = vld [vmem:[#allocation4 + $0x8] sm:$0xff] }
 0x9a0   : > { %2585 = vmatprep.subr.mxu0 %v2537_v41 }
 0x9a1   : > { %2586 = vmatpush1.msra.mxu0 %v2536_v55 }
 0x9a2   : > { %4853 = vmatmul.mubr.msk.f32.vlgmr.msra.gmra.mxu0 %vm7149_vm13, %v4850_v36  ;;  %vm7156_vm13 = vcmask 416768  }
 0x9a3   : > { %3437 = vmatprep.mubr.f32.mxu0 %v5201_v8 }
 0x9f4   : > { %v2810_v19 = vpop.permute.xlu1 %2809 }
 0x9f5   : > { %v2811_v29 = vrot.slane %v2810_v19, 7 }
 0x9f6   : > { %v2825_v26 = vpop.permute.xlu0 %2824 }
 0x9f7   : > { %v2826_v32 = vrot.slane %v2825_v26, 7  ;;  %v2812_v39 = vsel %vm396_vm7, %v2811_v29, %v2810_v19 }
 0x9f8   : > { %v2856_v25 = vpop.permute.xlu1 %2855 }
 0x9f9   : > { %v2857_v33 = vrot.slane %v2856_v25, 7  ;;  %v2827_v35 = vsel %vm7155_vm9, %v2826_v32, %v2825_v26  ;;  %vm7159_vm9 = vcmask 154624  }
 0x9fb   : > { %v2858_v41 = vsel %vm7156_vm13, %v2857_v33, %v2856_v25  ;;  %vm7160_vm13 = vcmask 269312  }
 0x9fc   : > { %v2714_v38 = vpop.permute.xlu1 %2713 }
 0xa00   : > { %v2744_v44 = vpop.permute.xlu1 %2743 }
 0xa01   : > { %v2745_v54 = vrot.slane %v2744_v44, 7 }
 0xa04   : > { %v2795_v21 = vpop.permute.xlu1 %2794 }
 0xa62   : > { %v2621_v59 = vpop.f32.mrf.mxu0 }
 0xa63   : > { %v6232_v60 = vadd.f32 %v2621_v59, %v2227_v0 }
 0xa64   : > { %v2623_v23 = vpop.f32.mrf.mxu0 }
 0xa65   : > { %v4854_v62 = vmul.f32 -1.442695, %v6232_v60  ;;  %v6237_v63 = vadd.f32 %v4916_v61, %v2623_v23  ;;  %v2633_v34 = vmul.f32 %v6232_v60, %v5815_v31  ;;  %vm2631_vm11 = vcmp.ge.f32.partialorder %v6232_v60, 0.0 }
 0xa66   : > { %v2746_v23 = vsel %vm7160_vm13, %v2745_v54, %v2744_v44  ;;  %vm7164_vm13 = vcmask 891904  }
 0xa67   : > { %5070 = vpow2.f32 %v4854_v62  ;;  %v4855_v1 = vmul.f32 -1.442695, %v6237_v63  ;;  %v2628_v2 = vcombine.low %v6232_v60, %v6237_v63  ;;  %v2634_v6 = vmul.f32 %v6237_v63, %v5815_v31 }
 0xa68   : > { %vm2632_vm8 = vcmp.ge.f32.partialorder %v6237_v63, 0.0  ;;  %v2635_v14 = vsel %vm2631_vm11, %v6232_v60, %v2633_v34  ;;  %vm7157_vm11 = vcmask 138240   ;;  %v2796_v62 = vrot.slane %v2795_v21, 7 }
 0xa69   : > { %5072 = vpow2.f32 %v4855_v1  ;;  %v2636_v15 = vsel %vm2632_vm8, %v6237_v63, %v2634_v6  ;;  %vm7158_vm8 = vcmask 146432  }
 0xa74   : > { %v5071_v3 = vpop.eup %5070 }
 0xa75   : > { %v2643_v4 = vadd.f32 1.0, %v5071_v3 }
 0xa76   : > { %v5073_v28 = vpop.eup %5072 }
 0xa77   : > { %v2644_v0 = vadd.f32 1.0, %v5073_v28  ;;  %5074 = vrcp.f32 %v2643_v4  ;;  %v2797_v28 = vsel %vm378_vm6, %v2796_v62, %v2795_v21 }
 0xa79   : > { %5076 = vrcp.f32 %v2644_v0 }
 0xa84   : > { %v5075_v5 = vpop.eup %5074 }
 0xa85   : > { %v2651_v7 = vrot.slane %v5075_v5, 2 }
 0xa86   : > { %v5077_v9 = vpop.eup %5076 }
 0xa87   : > { %v2652_v11 = vrot.slane %v5077_v9, 2  ;;  %v2655_v16 = vmul.f32 %v2651_v7, %v2635_v14 }
 0xa89   : > { %v2656_v17 = vmul.f32 %v2652_v11, %v2636_v15 }
 0xa8b   : > { %v2659_v13 = vcombine.low %v2655_v16, %v2656_v17 }
 0xa8d   : > { %2660 = vrot.lane.b32.xlu0 %v2659_v13, %s7096_s11 }
 0xa91   : > { %2691 = vrot.lane.b32.xlu0 %v2690_v12, %s7097_s10 }
 0xa95   : > { %2728 = vrot.lane.b32.xlu0 %v2727_v18, %s7073_s8 }
 0xa99   : > { %2772 = vrot.lane.b32.xlu0 %v2771_v47, %s7096_s11  ;;  %v2715_v47 = vrot.slane %v2714_v38, 7 }
 0xa9b   : > { %v2716_v53 = vsel %vm7158_vm8, %v2715_v47, %v2714_v38  ;;  %vm7162_vm8 = vcmask 908288  }
 0xaff   : > { %v2661_v20 = vpop.permute.xlu0 %2660 }
 0xb00   : > { %v2662_v22 = vrot.slane %v2661_v20, 4 }
 0xb02   : > { %v2663_v24 = vsel %vm221_vm4, %v2662_v22, %v2661_v20  ;;  %2667 = vst.msk [vmem:[#allocation2 + $0x8] sm:$0x3] %vm1433_vm0, %v2662_v22 }
 0xb03   : > { %2666 = vst.msk [vmem:[#allocation2] sm:$0x33] %vm5830_vm5, %v2663_v24  ;;  %v2692_v27 = vpop.permute.xlu0 %2691 }
 0xb04   : > { %v2693_v43 = vrot.slane %v2692_v27, 7 }
 0xb06   : > { %v2694_v48 = vsel %vm7157_vm11, %v2693_v43, %v2692_v27  ;;  %vm7161_vm11 = vcmask 629760  }
 0xb07   : > { %v2729_v57 = vpop.permute.xlu0 %2728 }
 0xb08   : > { %v2730_v50 = vrot.slane %v2729_v57, 7 }
 0xb0a   : > { %v2869_v37 = vld [vmem:[#allocation2 + $0x1] ss:$4 sm:$0x7]  ;;  %v2673_v36 = vld [vmem:[#allocation2] ss:$4 sm:$0x7]  ;;  %v2731_v56 = vsel %vm7159_vm9, %v2730_v50, %v2729_v57  ;;  %vm7163_vm9 = vmmov %vm7161_vm11 }
 0xb0b   : > { %v2933_v40 = vmul.f32 %v2869_v37, %v2827_v35  ;;  %v2924_v55 = vmul.f32 %v2869_v37, %v2812_v39  ;;  %v2942_v45 = vmul.f32 %v2869_v37, %v2858_v41  ;;  %v2829_v46 = vmul.f32 %v2827_v35, %v2673_v36  ;;  %v2773_v42 = vpop.permute.xlu0 %2772 }
 0xb0c   : > { %v2870_v51 = vmul.f32 %v2869_v37, %v2694_v48  ;;  %v2860_v52 = vmul.f32 %v2858_v41, %v2673_v36  ;;  %v2774_v58 = vrot.slane %v2773_v42, 7  ;;  %v2888_v59 = vmul.f32 %v2869_v37, %v2731_v56 }
 0xb0d   : > { %2935 = vrot.lane.b32.xlu1 %v2933_v40, %s7100_s12  ;;  %2926 = vrot.lane.b32.xlu0 %v2924_v55, %s7101_s30  ;;  %v2879_v61 = vmul.f32 %v2869_v37, %v2716_v53  ;;  %v2897_v3 = vmul.f32 %v2869_v37, %v2746_v23  ;;  %v2696_v0 = vmul.f32 %v2694_v48, %v2673_v36 }
 0xb0e   : > { %v2775_v1 = vsel %vm221_vm4, %v2774_v58, %v2773_v42  ;;  %v2915_v5 = vmul.f32 %v2869_v37, %v2797_v28  ;;  %v2733_v34 = vmul.f32 %v2731_v56, %v2673_v36  ;;  %v2718_v6 = vmul.f32 %v2716_v53, %v2673_v36 }
 0xb0f   : > { %v2906_v4 = vmul.f32 %v2869_v37, %v2775_v1  ;;  %v2748_v7 = vmul.f32 %v2746_v23, %v2673_v36  ;;  %v2777_v9 = vmul.f32 %v2775_v1, %v2673_v36  ;;  %v2799_v11 = vmul.f32 %v2797_v28, %v2673_v36 }
 0xb10   : > { %v2814_v14 = vmul.f32 %v2812_v39, %v2673_v36 }
 0xb11   : > { %2944 = vrot.lane.b32.xlu0 %v2942_v45, %s7076_s14  ;;  %2831 = vrot.lane.b32.xlu1 %v2829_v46, %s7100_s12 }
 0xb15   : > { %2862 = vrot.lane.b32.xlu0 %v2860_v52, %s7076_s14  ;;  %2872 = vrot.lane.b32.xlu1 %v2870_v51, %s7080_s20 }
 0xb19   : > { %2881 = vrot.lane.b32.xlu0 %v2879_v61, %s7107_s22  ;;  %2890 = vrot.lane.b32.xlu1 %v2888_v59, %s7106_s23 }
 0xb1d   : > { %2899 = vrot.lane.b32.xlu0 %v2897_v3, %s7082_s29  ;;  %2908 = vrot.lane.b32.xlu1 %v2906_v4, %s7108_s13 }
 0xb21   : > { %2917 = vrot.lane.b32.xlu0 %v2915_v5, %s7109_s9  ;;  %2698 = vrot.lane.b32.xlu1 %v2696_v0, %s7080_s20 }
 0xb25   : > { %2720 = vrot.lane.b32.xlu0 %v2718_v6, %s7107_s22  ;;  %2735 = vrot.lane.b32.xlu1 %v2733_v34, %s7106_s23  ;;  %s7176_s22 = smov 60  }
 0xb29   : > { %2750 = vrot.lane.b32.xlu0 %v2748_v7, %s7082_s29  ;;  %2779 = vrot.lane.b32.xlu1 %v2777_v9, %s7108_s13 }
 0xb2d   : > { %2801 = vrot.lane.b32.xlu0 %v2799_v11, %s7109_s9  ;;  %2816 = vrot.lane.b32.xlu1 %v2814_v14, %s7101_s30  ;;  %s7183_s9 = smov 92  }
 0xb7f   : > { %v2936_v15 = vpop.permute.xlu1 %2935  ;;  %v2927_v16 = vpop.permute.xlu0 %2926 }
 0xb80   : > { %v2937_v17 = vrot.slane %v2936_v15, 1  ;;  %v2928_v13 = vrot.slane %v2927_v16, 1 }
 0xb82   : > { %v2938_v12 = vsel %vm422_vm2, %v2936_v15, %v2937_v17  ;;  %v2929_v18 = vsel %vm404_vm3, %v2927_v16, %v2928_v13 }
 0xb83   : > { %2940 = vst.msk [vmem:[#allocation4 + $0x21] ss:$8 sm:$0x3] %vm5435_vm14, %v2938_v12  ;;  %2931 = vst.msk [vmem:[#allocation4 + $0x20] ss:$8 sm:$0x3] %vm5435_vm14, %v2929_v18  ;;  %v2832_v26 = vpop.permute.xlu1 %2831  ;;  %v2945_v19 = vpop.permute.xlu0 %2944 }
 0xb84   : > { %v2833_v20 = vrot.slane %v2832_v26, 1  ;;  %v2946_v22 = vrot.slane %v2945_v19, 1  ;;  %v4860_v12 = vld [vmem:[%s6935_s1 + $0x14] sm:$0xf]  ;;  %v5030_v18 = vld [vmem:[%s6936_s2 + $0xc4] ss:$8 sps:$4 sm:$0xff]  }
 0xb86   : > { %v2834_v24 = vsel %vm422_vm2, %v2832_v26, %v2833_v20  ;;  %v2947_v25 = vsel %vm7161_vm11, %v2945_v19, %v2946_v22  ;;  %vm7165_vm11 = vcmask 900096   ;;  %v5032_v26 = vld [vmem:[%s6936_s2 + $0xd0] ss:$8 sps:$4 sm:$0x11]   ;;  %v3171_v19 = vrot.slane %v5030_v18, %v5346_v10 }
 0xb87   : > { %2836 = vst.msk [vmem:[#allocation4 + $0x10] ss:$8 sm:$0x3] %vm5435_vm14, %v2834_v24  ;;  %2949 = vst.msk [vmem:[#allocation4 + $0x22] ss:$8 sm:$0x3] %vm5435_vm14, %v2947_v25  ;;  %v2873_v27 = vpop.permute.xlu1 %2872  ;;  %v2863_v29 = vpop.permute.xlu0 %2862  ;;  %v3254_v24 = vrot.slane %v5032_v26, %v5346_v10 }
 0xb88   : > { %v2874_v32 = vrot.slane %v2873_v27, 1  ;;  %v2864_v33 = vrot.slane %v2863_v29, 1  ;;  %v3193_v20 = vcombine.high %v3171_v19, %v3171_v19  ;;  %v3178_v22 = vrot.slane %v3171_v19, %v5346_v10 }
 0xb8a   : > { %v2875_v37 = vsel %vm7162_vm8, %v2873_v27, %v2874_v32  ;;  %v2865_v38 = vsel %vm7163_vm9, %v2863_v29, %v2864_v33  ;;  %vm7166_vm8 = vcmask 777216   ;;  %vm7167_vm9 = vcmask 908288   ;;  %v5033_v33 = vld [vmem:[%s6936_s2 + $0xc0] ss:$8 sps:$4 sm:$0xff]  }
 0xb8b   : > { %2877 = vst.msk [vmem:[#allocation4 + $0x12] ss:$8 sm:$0x3] %vm5435_vm14, %v2875_v37  ;;  %2867 = vst.msk [vmem:[#allocation4 + $0x11] ss:$8 sm:$0x3] %vm5435_vm14, %v2865_v38  ;;  %v2891_v39 = vpop.permute.xlu1 %2890  ;;  %v2882_v35 = vpop.permute.xlu0 %2881  ;;  %v3200_v25 = vrot.slane %v3193_v20, %v5346_v10  ;;  %v3215_v27 = vcombine.high %v3178_v22, %v3178_v22  ;;  %v3261_v32 = vrot.slane %v3254_v24, %v5346_v10 }
 0xb8c   : > { %v2892_v57 = vrot.slane %v2891_v39, 1  ;;  %v2883_v40 = vrot.slane %v2882_v35, 1  ;;  %v3100_v37 = vrot.slane %v5033_v33, %v5346_v10 }
 0xb8d   : > { %v3230_v29 = vcombine.high %v3200_v25, %v3200_v25  ;;  %3216 = vrot.lane.b32.xlu1 %v3215_v27, %s7121_s28 }
 0xb8e   : > { %v2893_v55 = vsel %vm7164_vm13, %v2891_v39, %v2892_v57  ;;  %v2884_v41 = vsel %vm7165_vm11, %v2882_v35, %v2883_v40  ;;  %v2958_v36 = vld [vmem:[#allocation4 + $0x28] sm:$0x7]  ;;  %v2957_v43 = vld [vmem:[#allocation4 + $0x20] sm:$0x7]  ;;  %vm7168_vm13 = vcmask 760832   ;;  %vm7169_vm11 = vcmask 891904  }
 0xb8f   : > { %2895 = vst.msk [vmem:[#allocation4 + $0x14] ss:$8 sm:$0x3] %vm5435_vm14, %v2893_v55  ;;  %2886 = vst.msk [vmem:[#allocation4 + $0x13] ss:$8 sm:$0x3] %vm5435_vm14, %v2884_v41  ;;  %v2909_v44 = vpop.permute.xlu1 %2908  ;;  %4861 = vmatprep.subr.msk.mxu1 %vm1730_vm12, %v2958_v36  ;;  %v2900_v45 = vpop.permute.xlu0 %2899  ;;  %3231 = vrot.lane.b32.xlu0 %v3230_v29, %s7122_s5  ;;  %v3107_v38 = vrot.slane %v3100_v37, %v5346_v10  ;;  %v4917_v40 = vcombine.low %v6237_v63, %v6237_v63 }
 0xb90   : > { %v2910_v46 = vrot.slane %v2909_v44, 1  ;;  %v2901_v47 = vrot.slane %v2900_v45, 1  ;;  %4862 = vmatpush1.msk.msra.mxu1 %vm1730_vm12, %v2957_v43 }
 0xb91   : > { %3262 = vrot.lane.b32.xlu1 %v3261_v32, %s7123_s6  ;;  %v3134_v39 = vcombine.high %v3107_v38, %v3107_v38 }
 0xb92   : > { %v2911_v48 = vsel %vm361_vm1, %v2909_v44, %v2910_v46  ;;  %v2902_v50 = vsel %vm7166_vm8, %v2900_v45, %v2901_v47  ;;  %vm7170_vm8 = vcmask 900096  }
 0xb93   : > { %2913 = vst.msk [vmem:[#allocation4 + $0x16] ss:$8 sm:$0x3] %vm5435_vm14, %v2911_v48  ;;  %2904 = vst.msk [vmem:[#allocation4 + $0x15] ss:$8 sm:$0x3] %vm5435_vm14, %v2902_v50  ;;  %v2699_v42 = vpop.permute.xlu1 %2698  ;;  %v2918_v51 = vpop.permute.xlu0 %2917 }
 0xb94   : > { %v2700_v52 = vrot.slane %v2699_v42, 1  ;;  %v2919_v53 = vrot.slane %v2918_v51, 1 }
 0xb95   : > { %3135 = vrot.lane.b32.xlu1 %v3134_v39, %s7124_s7 }
 0xb96   : > { %v2701_v54 = vsel %vm7167_vm9, %v2699_v42, %v2700_v52  ;;  %v2920_v56 = vsel %vm7168_vm13, %v2918_v51, %v2919_v53  ;;  %vm7171_vm9 = vcmask 777216  }
 0xb97   : > { %2703 = vst.msk [vmem:[#allocation4 + $0x1] ss:$8 sm:$0x3] %vm5435_vm14, %v2701_v54  ;;  %2922 = vst.msk [vmem:[#allocation4 + $0x17] ss:$8 sm:$0x3] %vm5435_vm14, %v2920_v56  ;;  %v2736_v58 = vpop.permute.xlu1 %2735  ;;  %v2721_v21 = vpop.permute.xlu0 %2720 }
 0xb98   : > { %v2737_v59 = vrot.slane %v2736_v58, 1  ;;  %v2722_v61 = vrot.slane %v2721_v21, 1 }
 0xb99   : > { %3179 = vrot.lane.b32.xlu1 %v3178_v22, %s7096_s11 }
 0xb9a   : > { %v2738_v23 = vsel %vm7169_vm11, %v2736_v58, %v2737_v59  ;;  %v2723_v62 = vsel %vm7170_vm8, %v2721_v21, %v2722_v61  ;;  %vm7172_vm11 = vcmask 154624   ;;  %v3112_v58 = vcombine.high %v3100_v37, %v3100_v37 }
 0xb9b   : > { %2740 = vst.msk [vmem:[#allocation4 + $0x3] ss:$8 sm:$0x3] %vm5435_vm14, %v2738_v23  ;;  %2725 = vst.msk [vmem:[#allocation4 + $0x2] ss:$8 sm:$0x3] %vm5435_vm14, %v2723_v62  ;;  %v2780_v1 = vpop.permute.xlu1 %2779  ;;  %v2751_v3 = vpop.permute.xlu0 %2750 }
 0xb9c   : > { %v2781_v4 = vrot.slane %v2780_v1, 1  ;;  %v2752_v28 = vrot.slane %v2751_v3, 1  ;;  %v3119_v59 = vrot.slane %v3112_v58, %v5346_v10 }
 0xb9e   : > { %v2955_v0 = vld [vmem:[#allocation4 + $0x10] sm:$0xff]  ;;  %v2956_v5 = vld [vmem:[#allocation4 + $0x18] sm:$0xff]  ;;  %v2782_v34 = vsel %vm361_vm1, %v2780_v1, %v2781_v4  ;;  %v2753_v6 = vsel %vm7171_vm9, %v2751_v3, %v2752_v28  ;;  %v3149_v61 = vcombine.high %v3119_v59, %v3119_v59 }
 0xb9f   : > { %2784 = vst.msk [vmem:[#allocation4 + $0x5] ss:$8 sm:$0x3] %vm5435_vm14, %v2782_v34  ;;  %2755 = vst.msk [vmem:[#allocation4 + $0x4] ss:$8 sm:$0x3] %vm5435_vm14, %v2753_v6  ;;  %v2817_v7 = vpop.permute.xlu1 %2816  ;;  %3000 = vmatprep.subr.mxu1 %v2956_v5  ;;  %v2802_v9 = vpop.permute.xlu0 %2801 }
 0xba0   : > { %v2818_v11 = vrot.slane %v2817_v7, 1  ;;  %v2803_v14 = vrot.slane %v2802_v9, 1  ;;  %3001 = vmatpush1.msra.mxu1 %v2955_v0 }
 0xba2   : > { %v2819_v15 = vsel %vm404_vm3, %v2817_v7, %v2818_v11  ;;  %v2804_v16 = vsel %vm7168_vm13, %v2802_v9, %v2803_v14  ;;  %vm7173_vm13 = vcmask 539648  }
 0xba3   : > { %2821 = vst.msk [vmem:[#allocation4 + $0x7] ss:$8 sm:$0x3] %vm5435_vm14, %v2819_v15  ;;  %2806 = vst.msk [vmem:[#allocation4 + $0x6] ss:$8 sm:$0x3] %vm5435_vm14, %v2804_v16 }
 0xbaa   : > { %v2953_v17 = vld [vmem:[#allocation4] sm:$0xff]  ;;  %v2954_v13 = vld [vmem:[#allocation4 + $0x8] sm:$0xff] }
 0xbab   : > { %3002 = vmatprep.subr.mxu1 %v2954_v13 }
 0xbac   : > { %3003 = vmatpush1.msra.mxu1 %v2953_v17 }
 0xbad   : > { %4863 = vmatmul.mubr.msk.f32.vlgmr.msra.gmra.mxu1 %vm7172_vm11, %v4860_v12  ;;  %vm7174_vm11 = vcmask 556032  }
 0xbae   : > { %3854 = vmatprep.mubr.f32.mxu1 %v5201_v8 }
 0xbff   : > { %v3217_v3 = vpop.permute.xlu1 %3216 }
 0xc00   : > { %v3218_v34 = vrot.slane %v3217_v3, 7 }
 0xc01   : > { %v3232_v23 = vpop.permute.xlu0 %3231 }
 0xc02   : > { %v3233_v0 = vrot.slane %v3232_v23, 7  ;;  %v3219_v16 = vsel %vm1577_vm15, %v3218_v34, %v3217_v3 }
 0xc03   : > { %v3263_v5 = vpop.permute.xlu1 %3262 }
 0xc04   : > { %v3264_v9 = vrot.slane %v3263_v5, 7  ;;  %v3234_v15 = vsel %vm7173_vm13, %v3233_v0, %v3232_v23  ;;  %vm7178_vm13 = vcmask 31744  }
 0xc06   : > { %v3265_v19 = vsel %vm7174_vm11, %v3264_v9, %v3263_v5  ;;  %vm7180_vm11 = vcmask 293888  }
 0xc07   : > { %v3136_v12 = vpop.permute.xlu1 %3135 }
 0xc08   : > { %v3137_v27 = vrot.slane %v3136_v12, 7 }
 0xc0b   : > { %v3180_v32 = vpop.permute.xlu1 %3179 }
 0xc6d   : > { %v3038_v35 = vpop.f32.mrf.mxu1 }
 0xc6e   : > { %v6371_v57 = vadd.f32 %v3038_v35, %v2628_v2  ;;  %v3138_v35 = vsel %vm7178_vm13, %v3137_v27, %v3136_v12  ;;  %vm7186_vm13 = vcmask 490496  }
 0xc6f   : > { %v3040_v55 = vpop.f32.mrf.mxu1 }
 0xc70   : > { %v4864_v41 = vmul.f32 -1.442695, %v6371_v57  ;;  %v6376_v36 = vadd.f32 %v4917_v40, %v3040_v55  ;;  %v3050_v63 = vmul.f32 %v6371_v57, %v5815_v31  ;;  %vm3048_vm8 = vcmp.ge.f32.partialorder %v6371_v57, 0.0 }
 0xc71   : > { %v3181_v40 = vrot.slane %v3180_v32, 7 }
 0xc72   : > { %5078 = vpow2.f32 %v4864_v41  ;;  %v4865_v43 = vmul.f32 -1.442695, %v6376_v36  ;;  %v3045_v44 = vcombine.low %v6371_v57, %v6376_v36  ;;  %v3051_v48 = vmul.f32 %v6376_v36, %v5815_v31 }
 0xc73   : > { %vm3049_vm9 = vcmp.ge.f32.partialorder %v6376_v36, 0.0  ;;  %v3052_v52 = vsel %vm3048_vm8, %v6371_v57, %v3050_v63  ;;  %vm7175_vm8 = vcmask 15360  }
 0xc74   : > { %5080 = vpow2.f32 %v4865_v43  ;;  %v3053_v53 = vsel %vm3049_vm9, %v6376_v36, %v3051_v48  ;;  %vm7177_vm9 = vcmask 261120  }
 0xc7f   : > { %v5079_v45 = vpop.eup %5078 }
 0xc80   : > { %v3060_v46 = vadd.f32 1.0, %v5079_v45  ;;  %v3182_v45 = vsel %vm221_vm4, %v3181_v40, %v3180_v32 }
 0xc81   : > { %v5081_v60 = vpop.eup %5080 }
 0xc82   : > { %v3061_v2 = vadd.f32 1.0, %v5081_v60  ;;  %5082 = vrcp.f32 %v3060_v46 }
 0xc84   : > { %5084 = vrcp.f32 %v3061_v2 }
 0xc8f   : > { %v5083_v47 = vpop.eup %5082 }
 0xc90   : > { %v3068_v50 = vrot.slane %v5083_v47, 2 }
 0xc91   : > { %v5085_v42 = vpop.eup %5084 }
 0xc92   : > { %v3069_v51 = vrot.slane %v5085_v42, 2  ;;  %v3072_v54 = vmul.f32 %v3068_v50, %v3052_v52 }
 0xc94   : > { %v3073_v56 = vmul.f32 %v3069_v51, %v3053_v53 }
 0xc96   : > { %v3076_v21 = vcombine.low %v3072_v54, %v3073_v56 }
 0xc98   : > { %3077 = vrot.lane.b32.xlu0 %v3076_v21, %s7096_s11 }
 0xc9c   : > { %3120 = vrot.lane.b32.xlu0 %v3119_v59, %s7125_s0 }
 0xca0   : > { %3150 = vrot.lane.b32.xlu0 %v3149_v61, %s7126_s3 }
 0xca4   : > { %3201 = vrot.lane.b32.xlu0 %v3200_v25, %s7127_s24  ;;  %s7201_s24 = smov 95  }
 0xd0a   : > { %v3078_v62 = vpop.permute.xlu0 %3077 }
 0xd0b   : > { %v3079_v1 = vrot.slane %v3078_v62, 4 }
 0xd0d   : > { %v3080_v4 = vsel %vm221_vm4, %v3079_v1, %v3078_v62  ;;  %3084 = vst.msk [vmem:[#allocation2 + $0x8] sm:$0x3] %vm1433_vm0, %v3079_v1 }
 0xd0e   : > { %3083 = vst.msk [vmem:[#allocation2] sm:$0x33] %vm5830_vm5, %v3080_v4  ;;  %v3121_v28 = vpop.permute.xlu0 %3120 }
 0xd0f   : > { %v3122_v18 = vrot.slane %v3121_v28, 7 }
 0xd11   : > { %v3123_v22 = vsel %vm7175_vm8, %v3122_v18, %v3121_v28  ;;  %vm7184_vm8 = vcmask 506880  }
 0xd12   : > { %v3151_v17 = vpop.permute.xlu0 %3150 }
 0xd13   : > { %v3152_v24 = vrot.slane %v3151_v17, 7 }
 0xd15   : > { %v3090_v6 = vld [vmem:[#allocation2] ss:$4 sm:$0x7]  ;;  %v3276_v7 = vld [vmem:[#allocation2 + $0x1] ss:$4 sm:$0x7]  ;;  %v3153_v37 = vsel %vm7177_vm9, %v3152_v24, %v3151_v17  ;;  %vm7185_vm9 = vmmov %vm7184_vm8 }
 0xd16   : > { %v3109_v11 = vmul.f32 %v3107_v38, %v3090_v6  ;;  %v3277_v14 = vmul.f32 %v3276_v7, %v3107_v38  ;;  %v3334_v13 = vmul.f32 %v3276_v7, %v3234_v15  ;;  %v3325_v26 = vmul.f32 %v3276_v7, %v3219_v16  ;;  %v3202_v29 = vpop.permute.xlu0 %3201 }
 0xd17   : > { %v3236_v20 = vmul.f32 %v3234_v15, %v3090_v6  ;;  %v3343_v25 = vmul.f32 %v3276_v7, %v3265_v19  ;;  %v3280_v33 = vmul.f32 %v3276_v7, %v3123_v22  ;;  %v3203_v38 = vrot.slane %v3202_v29, 7 }
 0xd18   : > { %3110 = vst.msk [vmem:[#allocation4 + $0x1] ss:$8 sm:$0x3] %vm5435_vm14, %v3109_v11  ;;  %3278 = vst.msk [vmem:[#allocation4 + $0x12] ss:$8 sm:$0x3] %vm5435_vm14, %v3277_v14  ;;  %3336 = vrot.lane.b32.xlu0 %v3334_v13, %s7130_s17  ;;  %3327 = vrot.lane.b32.xlu1 %v3325_v26, %s7121_s28  ;;  %v3267_v39 = vmul.f32 %v3265_v19, %v3090_v6  ;;  %v3298_v55 = vmul.f32 %v3276_v7, %v3153_v37 }
 0xd19   : > { %v3289_v41 = vmul.f32 %v3276_v7, %v3138_v35  ;;  %v3204_v43 = vsel %vm7180_vm11, %v3203_v38, %v3202_v29  ;;  %v3307_v60 = vmul.f32 %v3276_v7, %v3182_v45  ;;  %v3140_v2 = vmul.f32 %v3138_v35, %v3090_v6  ;;  %vm7187_vm11 = vmmov %vm7186_vm13 }
 0xd1a   : > { %v3316_v46 = vmul.f32 %v3276_v7, %v3204_v43  ;;  %v3125_v47 = vmul.f32 %v3123_v22, %v3090_v6  ;;  %v3184_v63 = vmul.f32 %v3182_v45, %v3090_v6  ;;  %v3155_v48 = vmul.f32 %v3153_v37, %v3090_v6 }
 0xd1b   : > { %v3221_v50 = vmul.f32 %v3219_v16, %v3090_v6  ;;  %v3206_v42 = vmul.f32 %v3204_v43, %v3090_v6 }
 0xd1c   : > { %3238 = vrot.lane.b32.xlu0 %v3236_v20, %s7130_s17  ;;  %3345 = vrot.lane.b32.xlu1 %v3343_v25, %s7176_s22  ;;  %s7200_s17 = smov 110  }
 0xd20   : > { %3282 = vrot.lane.b32.xlu0 %v3280_v33, %s7179_s21  ;;  %3269 = vrot.lane.b32.xlu1 %v3267_v39, %s7176_s22  ;;  %s7202_s22 = smov 93  }
 0xd24   : > { %3300 = vrot.lane.b32.xlu0 %v3298_v55, %s7181_s25  ;;  %3291 = vrot.lane.b32.xlu1 %v3289_v41, %s7182_s26 }
 0xd28   : > { %3318 = vrot.lane.b32.xlu0 %v3316_v46, %s7183_s9  ;;  %3309 = vrot.lane.b32.xlu1 %v3307_v60, %s7108_s13 }
 0xd2c   : > { %3142 = vrot.lane.b32.xlu0 %v3140_v2, %s7182_s26  ;;  %3127 = vrot.lane.b32.xlu1 %v3125_v47, %s7179_s21  ;;  %s7227_s26 = smov 92  }
 0xd30   : > { %3186 = vrot.lane.b32.xlu0 %v3184_v63, %s7108_s13  ;;  %3157 = vrot.lane.b32.xlu1 %v3155_v48, %s7181_s25  ;;  %s7226_s25 = smov 124  }
 0xd34   : > { %3223 = vrot.lane.b32.xlu0 %v3221_v50, %s7121_s28  ;;  %3208 = vrot.lane.b32.xlu1 %v3206_v42, %s7183_s9  ;;  %v4870_v50 = vld [vmem:[%s6935_s1 + $0x18] sm:$0xf]  ;;  %v5034_v42 = vld [vmem:[%s6936_s2 + $0xe4] ss:$8 sps:$4 sm:$0xff]  }
 0xd8a   : > { %v3337_v51 = vpop.permute.xlu0 %3336  ;;  %v3328_v52 = vpop.permute.xlu1 %3327 }
 0xd8b   : > { %v3338_v53 = vrot.slane %v3337_v51, 1  ;;  %v3329_v54 = vrot.slane %v3328_v52, 1 }
 0xd8d   : > { %v3339_v56 = vsel %vm7184_vm8, %v3337_v51, %v3338_v53  ;;  %v3330_v58 = vsel %vm1577_vm15, %v3328_v52, %v3329_v54  ;;  %vm7188_vm8 = vcmask 785408   ;;  %v5036_v51 = vld [vmem:[%s6936_s2 + $0xf0] ss:$8 sps:$4 sm:$0x11]   ;;  %v5037_v52 = vld [vmem:[%s6936_s2 + $0xe0] ss:$8 sps:$4 sm:$0xff]   ;;  %v3582_v53 = vrot.slane %v5034_v42, %v5346_v10 }
 0xd8e   : > { %3341 = vst.msk [vmem:[#allocation4 + $0x21] ss:$8 sm:$0x3] %vm5435_vm14, %v3339_v56  ;;  %v3239_v21 = vpop.permute.xlu0 %3238  ;;  %3332 = vst.msk [vmem:[#allocation4 + $0x20] ss:$8 sm:$0x3] %vm5435_vm14, %v3330_v58  ;;  %v3346_v59 = vpop.permute.xlu1 %3345  ;;  %v3665_v58 = vrot.slane %v5036_v51, %v5346_v10 }
 0xd8f   : > { %v3240_v61 = vrot.slane %v3239_v21, 1  ;;  %v3347_v23 = vrot.slane %v3346_v59, 1  ;;  %v3589_v54 = vrot.slane %v3582_v53, %v5346_v10  ;;  %v3604_v56 = vcombine.high %v3582_v53, %v3582_v53 }
 0xd91   : > { %v3241_v62 = vsel %vm7185_vm9, %v3239_v21, %v3240_v61  ;;  %v3348_v1 = vsel %vm7186_vm13, %v3346_v59, %v3347_v23  ;;  %vm7189_vm9 = vcmask 1014784   ;;  %vm7190_vm13 = vcmask 752640  }
 0xd92   : > { %3243 = vst.msk [vmem:[#allocation4 + $0x10] ss:$8 sm:$0x3] %vm5435_vm14, %v3241_v62  ;;  %v3283_v3 = vpop.permute.xlu0 %3282  ;;  %3350 = vst.msk [vmem:[#allocation4 + $0x22] ss:$8 sm:$0x3] %vm5435_vm14, %v3348_v1  ;;  %v3270_v4 = vpop.permute.xlu1 %3269  ;;  %v3501_v21 = vrot.slane %v5037_v52, %v5346_v10  ;;  %v3626_v59 = vcombine.high %v3589_v54, %v3589_v54  ;;  %v3611_v61 = vrot.slane %v3604_v56, %v5346_v10 }
 0xd93   : > { %v3284_v28 = vrot.slane %v3283_v3, 1  ;;  %v3271_v0 = vrot.slane %v3270_v4, 1  ;;  %v3672_v62 = vrot.slane %v3665_v58, %v5346_v10 }
 0xd94   : > { %3627 = vrot.lane.b32.xlu0 %v3626_v59, %s7150_s4  ;;  %v3641_v23 = vcombine.high %v3611_v61, %v3611_v61  ;;  %v3523_v1 = vcombine.high %v3501_v21, %v3501_v21 }
 0xd95   : > { %v3285_v5 = vsel %vm1481_vm10, %v3283_v3, %v3284_v28  ;;  %v3272_v34 = vsel %vm7187_vm11, %v3270_v4, %v3271_v0  ;;  %vm7191_vm11 = vmmov %vm7189_vm9 }
 0xd96   : > { %3287 = vst.msk [vmem:[#allocation4 + $0x13] ss:$8 sm:$0x3] %vm5435_vm14, %v3285_v5  ;;  %v3301_v6 = vpop.permute.xlu0 %3300  ;;  %3274 = vst.msk [vmem:[#allocation4 + $0x11] ss:$8 sm:$0x3] %vm5435_vm14, %v3272_v34  ;;  %v3292_v7 = vpop.permute.xlu1 %3291  ;;  %3642 = vrot.lane.b32.xlu1 %v3641_v23, %s7151_s15  ;;  %v3530_v3 = vrot.slane %v3523_v1, %v5346_v10  ;;  %v4918_v5 = vcombine.low %v6376_v36, %v6376_v36 }
 0xd97   : > { %v3302_v9 = vrot.slane %v3301_v6, 1  ;;  %v3293_v11 = vrot.slane %v3292_v7, 1 }
 0xd98   : > { %3673 = vrot.lane.b32.xlu0 %v3672_v62, %s7152_s16  ;;  %v3560_v4 = vcombine.high %v3530_v3, %v3530_v3 }
 0xd99   : > { %v3303_v14 = vsel %vm7188_vm8, %v3301_v6, %v3302_v9  ;;  %v3294_v15 = vsel %vm7189_vm9, %v3292_v7, %v3293_v11  ;;  %v3359_v16 = vld [vmem:[#allocation4 + $0x28] sm:$0x7]  ;;  %v3358_v13 = vld [vmem:[#allocation4 + $0x20] sm:$0x7]  ;;  %vm7192_vm9 = vmmov %vm7190_vm13 }
 0xd9a   : > { %3305 = vst.msk [vmem:[#allocation4 + $0x15] ss:$8 sm:$0x3] %vm5435_vm14, %v3303_v14  ;;  %v3319_v17 = vpop.permute.xlu0 %3318  ;;  %3296 = vst.msk [vmem:[#allocation4 + $0x14] ss:$8 sm:$0x3] %vm5435_vm14, %v3294_v15  ;;  %v3310_v12 = vpop.permute.xlu1 %3309  ;;  %4871 = vmatprep.subr.msk.mxu0 %vm1730_vm12, %v3359_v16 }
 0xd9b   : > { %v3320_v18 = vrot.slane %v3319_v17, 1  ;;  %v3311_v26 = vrot.slane %v3310_v12, 1  ;;  %4872 = vmatpush1.msk.msra.mxu0 %vm1730_vm12, %v3358_v13 }
 0xd9c   : > { %3531 = vrot.lane.b32.xlu0 %v3530_v3, %s7153_s18 }
 0xd9d   : > { %v3321_v19 = vsel %vm7190_vm13, %v3319_v17, %v3320_v18  ;;  %v3312_v20 = vsel %vm361_vm1, %v3310_v12, %v3311_v26  ;;  %vm7193_vm13 = vcmask 154624  }
 0xd9e   : > { %3323 = vst.msk [vmem:[#allocation4 + $0x17] ss:$8 sm:$0x3] %vm5435_vm14, %v3321_v19  ;;  %v3143_v22 = vpop.permute.xlu0 %3142  ;;  %3314 = vst.msk [vmem:[#allocation4 + $0x16] ss:$8 sm:$0x3] %vm5435_vm14, %v3312_v20  ;;  %v3128_v24 = vpop.permute.xlu1 %3127 }
 0xd9f   : > { %v3144_v25 = vrot.slane %v3143_v22, 1  ;;  %v3129_v27 = vrot.slane %v3128_v24, 1 }
 0xda0   : > { %3561 = vrot.lane.b32.xlu0 %v3560_v4, %s7154_s19 }
 0xda1   : > { %v3145_v29 = vsel %vm7191_vm11, %v3143_v22, %v3144_v25  ;;  %v3130_v32 = vsel %vm1481_vm10, %v3128_v24, %v3129_v27  ;;  %v3508_v25 = vrot.slane %v3501_v21, %v5346_v10 }
 0xda2   : > { %3147 = vst.msk [vmem:[#allocation4 + $0x3] ss:$8 sm:$0x3] %vm5435_vm14, %v3145_v29  ;;  %v3187_v33 = vpop.permute.xlu0 %3186  ;;  %3132 = vst.msk [vmem:[#allocation4 + $0x2] ss:$8 sm:$0x3] %vm5435_vm14, %v3130_v32  ;;  %v3158_v37 = vpop.permute.xlu1 %3157 }
 0xda3   : > { %v3188_v38 = vrot.slane %v3187_v33, 1  ;;  %v3159_v39 = vrot.slane %v3158_v37, 1  ;;  %v3545_v27 = vcombine.high %v3508_v25, %v3508_v25 }
 0xda4   : > { %3612 = vrot.lane.b32.xlu0 %v3611_v61, %s7095_s27 }
 0xda5   : > { %v3189_v35 = vsel %vm361_vm1, %v3187_v33, %v3188_v38  ;;  %v3356_v40 = vld [vmem:[#allocation4 + $0x10] sm:$0xff]  ;;  %v3357_v55 = vld [vmem:[#allocation4 + $0x18] sm:$0xff]  ;;  %v3160_v41 = vsel %vm7188_vm8, %v3158_v37, %v3159_v39 }
 0xda6   : > { %3191 = vst.msk [vmem:[#allocation4 + $0x5] ss:$8 sm:$0x3] %vm5435_vm14, %v3189_v35  ;;  %v3224_v43 = vpop.permute.xlu0 %3223  ;;  %3162 = vst.msk [vmem:[#allocation4 + $0x4] ss:$8 sm:$0x3] %vm5435_vm14, %v3160_v41  ;;  %v3209_v45 = vpop.permute.xlu1 %3208  ;;  %3401 = vmatprep.subr.mxu0 %v3357_v55 }
 0xda7   : > { %v3225_v46 = vrot.slane %v3224_v43, 1  ;;  %v3210_v60 = vrot.slane %v3209_v45, 1  ;;  %3402 = vmatpush1.msra.mxu0 %v3356_v40 }
 0xda9   : > { %v3226_v2 = vsel %vm1577_vm15, %v3224_v43, %v3225_v46  ;;  %v3211_v47 = vsel %vm7192_vm9, %v3209_v45, %v3210_v60  ;;  %vm7194_vm9 = vcmask 408576  }
 0xdaa   : > { %3228 = vst.msk [vmem:[#allocation4 + $0x7] ss:$8 sm:$0x3] %vm5435_vm14, %v3226_v2  ;;  %3213 = vst.msk [vmem:[#allocation4 + $0x6] ss:$8 sm:$0x3] %vm5435_vm14, %v3211_v47 }
 0xdb1   : > { %v3354_v63 = vld [vmem:[#allocation4] sm:$0xff]  ;;  %v3355_v48 = vld [vmem:[#allocation4 + $0x8] sm:$0xff] }
 0xdb2   : > { %3403 = vmatprep.subr.mxu0 %v3355_v48 }
 0xdb3   : > { %3404 = vmatpush1.msra.mxu0 %v3354_v63 }
 0xdb4   : > { %4873 = vmatmul.mubr.msk.f32.vlgmr.msra.gmra.mxu0 %vm7193_vm13, %v4870_v50  ;;  %vm7195_vm13 = vcmask 416768  }
 0xdb5   : > { %4255 = vmatprep.mubr.f32.mxu0 %v5201_v8 }
 0xe06   : > { %v3628_v33 = vpop.permute.xlu0 %3627 }
 0xe07   : > { %v3629_v55 = vrot.slane %v3628_v33, 7 }
 0xe08   : > { %v3643_v29 = vpop.permute.xlu1 %3642 }
 0xe09   : > { %v3644_v40 = vrot.slane %v3643_v29, 7  ;;  %v3630_v60 = vsel %vm396_vm7, %v3629_v55, %v3628_v33 }
 0xe0a   : > { %v3674_v39 = vpop.permute.xlu0 %3673 }
 0xe0b   : > { %v3675_v43 = vrot.slane %v3674_v39, 7  ;;  %v3645_v45 = vsel %vm7194_vm9, %v3644_v40, %v3643_v29  ;;  %vm7198_vm9 = vcmask 146432  }
 0xe0d   : > { %v3676_v42 = vsel %vm7195_vm13, %v3675_v43, %v3674_v39  ;;  %vm7199_vm13 = vcmask 269312  }
 0xe0e   : > { %v3532_v46 = vpop.permute.xlu0 %3531 }
 0xe0f   : > { %v3533_v58 = vrot.slane %v3532_v46, 7 }
 0xe11   : > { %v3534_v1 = vsel %vm7198_vm9, %v3533_v58, %v3532_v46 }
 0xe12   : > { %v3562_v53 = vpop.permute.xlu0 %3561 }
 0xe13   : > { %v3563_v3 = vrot.slane %v3562_v53, 7 }
 0xe16   : > { %v3613_v4 = vpop.permute.xlu0 %3612 }
 0xe74   : > { %v3439_v28 = vpop.f32.mrf.mxu0 }
 0xe75   : > { %v6506_v0 = vadd.f32 %v3439_v28, %v3045_v44 }
 0xe76   : > { %v3441_v34 = vpop.f32.mrf.mxu0 }
 0xe77   : > { %v4874_v6 = vmul.f32 -1.442695, %v6506_v0  ;;  %v6511_v7 = vadd.f32 %v4918_v5, %v3441_v34  ;;  %v3451_v36 = vmul.f32 %v6506_v0, %v5815_v31  ;;  %vm3449_vm11 = vcmp.ge.f32.partialorder %v6506_v0, 0.0 }
 0xe79   : > { %5086 = vpow2.f32 %v4874_v6  ;;  %v4875_v9 = vmul.f32 -1.442695, %v6511_v7  ;;  %v3446_v11 = vcombine.low %v6506_v0, %v6511_v7  ;;  %v3452_v17 = vmul.f32 %v6511_v7, %v5815_v31 }
 0xe7a   : > { %vm3450_vm8 = vcmp.ge.f32.partialorder %v6511_v7, 0.0  ;;  %v3453_v26 = vsel %vm3449_vm11, %v6506_v0, %v3451_v36  ;;  %vm7196_vm11 = vcmask 138240   ;;  %v3564_v6 = vsel %vm7199_vm13, %v3563_v3, %v3562_v53 }
 0xe7b   : > { %5088 = vpow2.f32 %v4875_v9  ;;  %v3454_v19 = vsel %vm3450_vm8, %v6511_v7, %v3452_v17  ;;  %vm7197_vm8 = vcmask 154624   ;;  %v3614_v9 = vrot.slane %v3613_v4, 7 }
 0xe7c   : > { %vm7206_vm13 = vcmask 891904  }
 0xe86   : > { %v5087_v14 = vpop.eup %5086 }
 0xe87   : > { %v3461_v15 = vadd.f32 1.0, %v5087_v14 }
 0xe88   : > { %v5089_v57 = vpop.eup %5088 }
 0xe89   : > { %v3462_v44 = vadd.f32 1.0, %v5089_v57  ;;  %5090 = vrcp.f32 %v3461_v15  ;;  %v3615_v57 = vsel %vm378_vm6, %v3614_v9, %v3613_v4 }
 0xe8b   : > { %5092 = vrcp.f32 %v3462_v44 }
 0xe96   : > { %v5091_v16 = vpop.eup %5090 }
 0xe97   : > { %v3469_v13 = vrot.slane %v5091_v16, 2 }
 0xe98   : > { %v5093_v12 = vpop.eup %5092 }
 0xe99   : > { %v3470_v18 = vrot.slane %v5093_v12, 2  ;;  %v3473_v20 = vmul.f32 %v3469_v13, %v3453_v26 }
 0xe9b   : > { %v3474_v22 = vmul.f32 %v3470_v18, %v3454_v19 }
 0xe9d   : > { %v3477_v24 = vcombine.low %v3473_v20, %v3474_v22 }
 0xe9f   : > { %3478 = vrot.lane.b32.xlu1 %v3477_v24, %s7096_s11 }
 0xea3   : > { %3509 = vrot.lane.b32.xlu1 %v3508_v25, %s7097_s10 }
 0xea7   : > { %3546 = vrot.lane.b32.xlu1 %v3545_v27, %s7073_s8 }
 0xeab   : > { %3590 = vrot.lane.b32.xlu1 %v3589_v54, %s7096_s11 }
 0xf11   : > { %v3479_v32 = vpop.permute.xlu1 %3478 }
 0xf12   : > { %v3480_v37 = vrot.slane %v3479_v32, 4 }
 0xf14   : > { %v3481_v38 = vsel %vm221_vm4, %v3480_v37, %v3479_v32  ;;  %3485 = vst.msk [vmem:[#allocation2 + $0x8] sm:$0x3] %vm1433_vm0, %v3480_v37 }
 0xf15   : > { %3484 = vst.msk [vmem:[#allocation2] sm:$0x33] %vm5830_vm5, %v3481_v38  ;;  %v3510_v35 = vpop.permute.xlu1 %3509 }
 0xf16   : > { %v3511_v48 = vrot.slane %v3510_v35, 7 }
 0xf18   : > { %v3512_v52 = vsel %vm7196_vm11, %v3511_v48, %v3510_v35  ;;  %vm7203_vm11 = vcmask 629760  }
 0xf19   : > { %v3547_v2 = vpop.permute.xlu1 %3546  ;;  %vm7205_vm9 = vmmov %vm7203_vm11 }
 0xf1a   : > { %v3548_v54 = vrot.slane %v3547_v2, 7 }
 0xf1c   : > { %v3687_v41 = vld [vmem:[#allocation2 + $0x1] ss:$4 sm:$0x7]  ;;  %v3491_v63 = vld [vmem:[#allocation2] ss:$4 sm:$0x7]  ;;  %v3549_v61 = vsel %vm7197_vm8, %v3548_v54, %v3547_v2 }
 0xf1d   : > { %v3751_v47 = vmul.f32 %v3687_v41, %v3645_v45  ;;  %v3742_v50 = vmul.f32 %v3687_v41, %v3630_v60  ;;  %v3647_v51 = vmul.f32 %v3645_v45, %v3491_v63  ;;  %v3760_v56 = vmul.f32 %v3687_v41, %v3676_v42  ;;  %v3591_v21 = vpop.permute.xlu1 %3590 }
 0xf1e   : > { %v3688_v59 = vmul.f32 %v3687_v41, %v3512_v52  ;;  %v3592_v23 = vrot.slane %v3591_v21, 7  ;;  %v3678_v62 = vmul.f32 %v3676_v42, %v3491_v63  ;;  %v3706_v28 = vmul.f32 %v3687_v41, %v3549_v61 }
 0xf1f   : > { %3753 = vrot.lane.b32.xlu0 %v3751_v47, %s7100_s12  ;;  %3744 = vrot.lane.b32.xlu1 %v3742_v50, %s7101_s30  ;;  %v3697_v5 = vmul.f32 %v3687_v41, %v3534_v1  ;;  %v3715_v15 = vmul.f32 %v3687_v41, %v3564_v6  ;;  %v3514_v44 = vmul.f32 %v3512_v52, %v3491_v63  ;;  %vm7204_vm8 = vcmask 908288  }
 0xf20   : > { %v3593_v34 = vsel %vm221_vm4, %v3592_v23, %v3591_v21  ;;  %v3733_v16 = vmul.f32 %v3687_v41, %v3615_v57  ;;  %v3551_v36 = vmul.f32 %v3549_v61, %v3491_v63  ;;  %v3536_v17 = vmul.f32 %v3534_v1, %v3491_v63 }
 0xf21   : > { %v3724_v14 = vmul.f32 %v3687_v41, %v3593_v34  ;;  %v3595_v13 = vmul.f32 %v3593_v34, %v3491_v63  ;;  %v3566_v12 = vmul.f32 %v3564_v6, %v3491_v63  ;;  %v3632_v18 = vmul.f32 %v3630_v60, %v3491_v63 }
 0xf22   : > { %v3617_v26 = vmul.f32 %v3615_v57, %v3491_v63 }
 0xf23   : > { %3649 = vrot.lane.b32.xlu0 %v3647_v51, %s7100_s12  ;;  %3762 = vrot.lane.b32.xlu1 %v3760_v56, %s7076_s14 }
 0xf27   : > { %3690 = vrot.lane.b32.xlu0 %v3688_v59, %s7080_s20  ;;  %3680 = vrot.lane.b32.xlu1 %v3678_v62, %s7076_s14 }
 0xf2b   : > { %3708 = vrot.lane.b32.xlu0 %v3706_v28, %s7106_s23  ;;  %3699 = vrot.lane.b32.xlu1 %v3697_v5, %s7200_s17 }
 0xf2f   : > { %3726 = vrot.lane.b32.xlu0 %v3724_v14, %s7108_s13  ;;  %3717 = vrot.lane.b32.xlu1 %v3715_v15, %s7201_s24 }
 0xf33   : > { %3516 = vrot.lane.b32.xlu0 %v3514_v44, %s7080_s20  ;;  %3735 = vrot.lane.b32.xlu1 %v3733_v16, %s7202_s22 }
 0xf37   : > { %3553 = vrot.lane.b32.xlu0 %v3551_v36, %s7106_s23  ;;  %3538 = vrot.lane.b32.xlu1 %v3536_v17, %s7200_s17 }
 0xf3b   : > { %3597 = vrot.lane.b32.xlu0 %v3595_v13, %s7108_s13  ;;  %3568 = vrot.lane.b32.xlu1 %v3566_v12, %s7201_s24 }
 0xf3f   : > { %3634 = vrot.lane.b32.xlu0 %v3632_v18, %s7101_s30  ;;  %3619 = vrot.lane.b32.xlu1 %v3617_v26, %s7202_s22 }
 0xf91   : > { %v3754_v19 = vpop.permute.xlu0 %3753  ;;  %v3745_v20 = vpop.permute.xlu1 %3744 }
 0xf92   : > { %v3755_v22 = vrot.slane %v3754_v19, 1  ;;  %v3746_v24 = vrot.slane %v3745_v20, 1 }
 0xf94   : > { %v3756_v25 = vsel %vm422_vm2, %v3754_v19, %v3755_v22  ;;  %v3747_v27 = vsel %vm404_vm3, %v3745_v20, %v3746_v24 }
 0xf95   : > { %3758 = vst.msk [vmem:[#allocation4 + $0x21] ss:$8 sm:$0x3] %vm5435_vm14, %v3756_v25  ;;  %v3650_v29 = vpop.permute.xlu0 %3649  ;;  %3749 = vst.msk [vmem:[#allocation4 + $0x20] ss:$8 sm:$0x3] %vm5435_vm14, %v3747_v27  ;;  %v3763_v32 = vpop.permute.xlu1 %3762 }
 0xf96   : > { %v3651_v33 = vrot.slane %v3650_v29, 1  ;;  %v3764_v37 = vrot.slane %v3763_v32, 1  ;;  %v4880_v25 = vld [vmem:[%s6935_s1 + $0x1c] sm:$0xf]  ;;  %v5038_v27 = vld [vmem:[%s6936_s2 + $0x104] ss:$8 sps:$4 sm:$0xff]  }
 0xf98   : > { %v3652_v38 = vsel %vm422_vm2, %v3650_v29, %v3651_v33  ;;  %v3765_v39 = vsel %vm7203_vm11, %v3763_v32, %v3764_v37  ;;  %vm7207_vm11 = vcmask 900096   ;;  %v5040_v29 = vld [vmem:[%s6936_s2 + $0x110] ss:$8 sps:$4 sm:$0x11]   ;;  %v3989_v32 = vrot.slane %v5038_v27, %v5346_v10 }
 0xf99   : > { %3654 = vst.msk [vmem:[#allocation4 + $0x10] ss:$8 sm:$0x3] %vm5435_vm14, %v3652_v38  ;;  %v3691_v35 = vpop.permute.xlu0 %3690  ;;  %3767 = vst.msk [vmem:[#allocation4 + $0x22] ss:$8 sm:$0x3] %vm5435_vm14, %v3765_v39  ;;  %v3681_v40 = vpop.permute.xlu1 %3680  ;;  %v4072_v38 = vrot.slane %v5040_v29, %v5346_v10 }
 0xf9a   : > { %v3692_v55 = vrot.slane %v3691_v35, 1  ;;  %v3682_v41 = vrot.slane %v3681_v40, 1  ;;  %v4011_v33 = vcombine.high %v3989_v32, %v3989_v32  ;;  %v3996_v37 = vrot.slane %v3989_v32, %v5346_v10 }
 0xf9c   : > { %v3693_v43 = vsel %vm7204_vm8, %v3691_v35, %v3692_v55  ;;  %v3683_v45 = vsel %vm7205_vm9, %v3681_v40, %v3682_v41  ;;  %vm7208_vm8 = vcmask 777216   ;;  %vm7209_vm9 = vcmask 908288   ;;  %v5041_v55 = vld [vmem:[%s6936_s2 + $0x100] ss:$8 sps:$4 sm:$0xff]  }
 0xf9d   : > { %3695 = vst.msk [vmem:[#allocation4 + $0x12] ss:$8 sm:$0x3] %vm5435_vm14, %v3693_v43  ;;  %v3709_v46 = vpop.permute.xlu0 %3708  ;;  %3685 = vst.msk [vmem:[#allocation4 + $0x11] ss:$8 sm:$0x3] %vm5435_vm14, %v3683_v45  ;;  %v3700_v60 = vpop.permute.xlu1 %3699  ;;  %v4018_v39 = vrot.slane %v4011_v33, %v5346_v10  ;;  %v4033_v35 = vcombine.high %v3996_v37, %v3996_v37  ;;  %v3918_v41 = vrot.slane %v5041_v55, %v5346_v10 }
 0xf9e   : > { %v3710_v2 = vrot.slane %v3709_v46, 1  ;;  %v3701_v47 = vrot.slane %v3700_v60, 1 }
 0xf9f   : > { %v4048_v40 = vcombine.high %v4018_v39, %v4018_v39  ;;  %4034 = vrot.lane.b32.xlu0 %v4033_v35, %s7121_s28  ;;  %v3925_v43 = vrot.slane %v3918_v41, %v5346_v10 }
 0xfa0   : > { %v3711_v63 = vsel %vm7206_vm13, %v3709_v46, %v3710_v2  ;;  %v3702_v48 = vsel %vm7207_vm11, %v3700_v60, %v3701_v47  ;;  %v3776_v50 = vld [vmem:[#allocation4 + $0x28] sm:$0x7]  ;;  %v3775_v51 = vld [vmem:[#allocation4 + $0x20] sm:$0x7]  ;;  %vm7210_vm13 = vcmask 760832   ;;  %vm7211_vm11 = vcmask 891904  }
 0xfa1   : > { %3713 = vst.msk [vmem:[#allocation4 + $0x14] ss:$8 sm:$0x3] %vm5435_vm14, %v3711_v63  ;;  %v3727_v42 = vpop.permute.xlu0 %3726  ;;  %3704 = vst.msk [vmem:[#allocation4 + $0x13] ss:$8 sm:$0x3] %vm5435_vm14, %v3702_v48  ;;  %v3718_v52 = vpop.permute.xlu1 %3717  ;;  %4881 = vmatprep.subr.msk.mxu1 %vm1730_vm12, %v3776_v50  ;;  %4049 = vrot.lane.b32.xlu1 %v4048_v40, %s7122_s5  ;;  %v3952_v45 = vcombine.high %v3925_v43, %v3925_v43  ;;  %v4919_v2 = vcombine.low %v6511_v7, %v6511_v7 }
 0xfa2   : > { %v3728_v53 = vrot.slane %v3727_v42, 1  ;;  %v3719_v54 = vrot.slane %v3718_v52, 1  ;;  %4882 = vmatpush1.msk.msra.mxu1 %vm1730_vm12, %v3775_v51  ;;  %s7215_s5 = smov 36  }
 0xfa4   : > { %v3729_v56 = vsel %vm361_vm1, %v3727_v42, %v3728_v53  ;;  %v3720_v58 = vsel %vm7208_vm8, %v3718_v52, %v3719_v54  ;;  %vm7212_vm8 = vcmask 900096  }
 0xfa5   : > { %3731 = vst.msk [vmem:[#allocation4 + $0x16] ss:$8 sm:$0x3] %vm5435_vm14, %v3729_v56  ;;  %v3517_v21 = vpop.permute.xlu0 %3516  ;;  %3722 = vst.msk [vmem:[#allocation4 + $0x15] ss:$8 sm:$0x3] %vm5435_vm14, %v3720_v58  ;;  %v3736_v59 = vpop.permute.xlu1 %3735 }
 0xfa6   : > { %v3518_v61 = vrot.slane %v3517_v21, 1  ;;  %v3737_v23 = vrot.slane %v3736_v59, 1 }
 0xfa8   : > { %v3519_v62 = vsel %vm7209_vm9, %v3517_v21, %v3518_v61  ;;  %v3738_v1 = vsel %vm7210_vm13, %v3736_v59, %v3737_v23  ;;  %vm7213_vm9 = vcmask 777216  }
 0xfa9   : > { %3521 = vst.msk [vmem:[#allocation4 + $0x1] ss:$8 sm:$0x3] %vm5435_vm14, %v3519_v62  ;;  %v3554_v3 = vpop.permute.xlu0 %3553  ;;  %3740 = vst.msk [vmem:[#allocation4 + $0x17] ss:$8 sm:$0x3] %vm5435_vm14, %v3738_v1  ;;  %v3539_v4 = vpop.permute.xlu1 %3538  ;;  %v3930_v1 = vcombine.high %v3918_v41, %v3918_v41 }
 0xfaa   : > { %v3555_v28 = vrot.slane %v3554_v3, 1  ;;  %v3540_v5 = vrot.slane %v3539_v4, 1 }
 0xfac   : > { %v3556_v34 = vsel %vm7211_vm11, %v3554_v3, %v3555_v28  ;;  %v3541_v6 = vsel %vm7212_vm8, %v3539_v4, %v3540_v5  ;;  %vm7214_vm11 = vcmask 154624   ;;  %v3937_v4 = vrot.slane %v3930_v1, %v5346_v10 }
 0xfad   : > { %3558 = vst.msk [vmem:[#allocation4 + $0x3] ss:$8 sm:$0x3] %vm5435_vm14, %v3556_v34  ;;  %v3598_v9 = vpop.permute.xlu0 %3597  ;;  %3543 = vst.msk [vmem:[#allocation4 + $0x2] ss:$8 sm:$0x3] %vm5435_vm14, %v3541_v6  ;;  %v3569_v14 = vpop.permute.xlu1 %3568 }
 0xfae   : > { %v3599_v15 = vrot.slane %v3598_v9, 1  ;;  %v3570_v57 = vrot.slane %v3569_v14, 1  ;;  %v3967_v28 = vcombine.high %v3937_v4, %v3937_v4 }
 0xfb0   : > { %v3600_v44 = vsel %vm361_vm1, %v3598_v9, %v3599_v15  ;;  %v3571_v16 = vsel %vm7213_vm9, %v3569_v14, %v3570_v57  ;;  %v3774_v36 = vld [vmem:[#allocation4 + $0x18] sm:$0xff]  ;;  %v3773_v13 = vld [vmem:[#allocation4 + $0x10] sm:$0xff] }
 0xfb1   : > { %3602 = vst.msk [vmem:[#allocation4 + $0x5] ss:$8 sm:$0x3] %vm5435_vm14, %v3600_v44  ;;  %v3635_v17 = vpop.permute.xlu0 %3634  ;;  %3573 = vst.msk [vmem:[#allocation4 + $0x4] ss:$8 sm:$0x3] %vm5435_vm14, %v3571_v16  ;;  %v3620_v12 = vpop.permute.xlu1 %3619  ;;  %3818 = vmatprep.subr.mxu1 %v3774_v36 }
 0xfb2   : > { %v3636_v18 = vrot.slane %v3635_v17, 1  ;;  %v3621_v26 = vrot.slane %v3620_v12, 1  ;;  %3819 = vmatpush1.msra.mxu1 %v3773_v13 }
 0xfb4   : > { %v3637_v19 = vsel %vm404_vm3, %v3635_v17, %v3636_v18  ;;  %v3622_v20 = vsel %vm7210_vm13, %v3620_v12, %v3621_v26  ;;  %vm7216_vm13 = vcmask 539648  }
 0xfb5   : > { %3639 = vst.msk [vmem:[#allocation4 + $0x7] ss:$8 sm:$0x3] %vm5435_vm14, %v3637_v19  ;;  %3624 = vst.msk [vmem:[#allocation4 + $0x6] ss:$8 sm:$0x3] %vm5435_vm14, %v3622_v20 }
 0xfbc   : > { %v3772_v22 = vld [vmem:[#allocation4 + $0x8] sm:$0xff]  ;;  %v3771_v24 = vld [vmem:[#allocation4] sm:$0xff] }
 0xfbd   : > { %3820 = vmatprep.subr.mxu1 %v3772_v22 }
 0xfbe   : > { %3821 = vmatpush1.msra.mxu1 %v3771_v24 }
 0xfbf   : > { %4883 = vmatmul.mubr.msk.f32.vlgmr.msra.gmra.mxu1 %vm7214_vm11, %v4880_v25  ;;  %vm7217_vm11 = vcmask 556032  }
 0xfc0   : > { %4672 = vmatprep.mubr.f32.mxu1 %v5201_v8  ;;  %v4079_v8 = vrot.slane %v4072_v38, %v5346_v10 }
 0xfc2   : > { %4080 = vrot.lane.b32.xlu0 %v4079_v8, %s7123_s6  ;;  %s7218_s6 = smov 62  }
 0xfc6   : > { %3953 = vrot.lane.b32.xlu0 %v3952_v45, %s7124_s7  ;;  %s7220_s7 = smov 60  }
 0xfca   : > { %3997 = vrot.lane.b32.xlu0 %v3996_v37, %s7096_s11 }
0x1011   : > { %v4035_v9 = vpop.permute.xlu0 %4034 }
0x1012   : > { %v4036_v16 = vrot.slane %v4035_v9, 7 }
0x1013   : > { %v4050_v5 = vpop.permute.xlu1 %4049 }
0x1014   : > { %v4051_v44 = vrot.slane %v4050_v5, 7  ;;  %v4037_v19 = vsel %vm1577_vm15, %v4036_v16, %v4035_v9 }
0x1016   : > { %v4052_v26 = vsel %vm7216_vm13, %v4051_v44, %v4050_v5  ;;  %vm7222_vm13 = vcmask 261120  }
0x1034   : > { %v4081_v15 = vpop.permute.xlu0 %4080 }
0x1035   : > { %v4082_v18 = vrot.slane %v4081_v15, 7 }
0x1037   : > { %v4083_v27 = vsel %vm7217_vm11, %v4082_v18, %v4081_v15  ;;  %vm7224_vm11 = vcmask 293888  }
0x1038   : > { %v3954_v20 = vpop.permute.xlu0 %3953 }
0x1039   : > { %v3955_v38 = vrot.slane %v3954_v20, 7 }
0x103c   : > { %v3998_v35 = vpop.permute.xlu0 %3997 }
0x103d   : > { %v3999_v45 = vrot.slane %v3998_v35, 7 }
0x107f   : > { %v3856_v46 = vpop.f32.mrf.mxu1 }
0x1080   : > { %v6645_v60 = vadd.f32 %v3856_v46, %v3446_v11 }
0x1081   : > { %v3858_v47 = vpop.f32.mrf.mxu1 }
0x1082   : > { %v4884_v63 = vmul.f32 -1.442695, %v6645_v60  ;;  %v6650_v48 = vadd.f32 %v4919_v2, %v3858_v47  ;;  %v3868_v7 = vmul.f32 %v6645_v60, %v5815_v31  ;;  %vm3866_vm8 = vcmp.ge.f32.partialorder %v6645_v60, 0.0 }
0x1084   : > { %5094 = vpow2.f32 %v4884_v63  ;;  %v4885_v50 = vmul.f32 -1.442695, %v6650_v48  ;;  %v3863_v42 = vcombine.low %v6645_v60, %v6650_v48  ;;  %v3869_v54 = vmul.f32 %v6650_v48, %v5815_v31 }
0x1085   : > { %vm3867_vm9 = vcmp.ge.f32.partialorder %v6650_v48, 0.0  ;;  %v3870_v59 = vsel %vm3866_vm8, %v6645_v60, %v3868_v7  ;;  %vm7219_vm8 = vcmask 15360   ;;  %v4000_v63 = vsel %vm221_vm4, %v3999_v45, %v3998_v35 }
0x1086   : > { %5096 = vpow2.f32 %v4885_v50  ;;  %v3871_v61 = vsel %vm3867_vm9, %v6650_v48, %v3869_v54  ;;  %vm7221_vm9 = vcmask 31744  }
0x1087   : > { %v3956_v41 = vsel %vm7221_vm9, %v3955_v38, %v3954_v20 }
0x1091   : > { %v5095_v51 = vpop.eup %5094 }
0x1092   : > { %v3878_v52 = vadd.f32 1.0, %v5095_v51 }
0x1093   : > { %v5097_v0 = vpop.eup %5096 }
0x1094   : > { %v3879_v11 = vadd.f32 1.0, %v5097_v0  ;;  %5098 = vrcp.f32 %v3878_v52 }
0x1096   : > { %5100 = vrcp.f32 %v3879_v11 }
0x10a1   : > { %v5099_v53 = vpop.eup %5098 }
0x10a2   : > { %v3886_v56 = vrot.slane %v5099_v53, 2 }
0x10a3   : > { %v5101_v58 = vpop.eup %5100 }
0x10a4   : > { %v3887_v21 = vrot.slane %v5101_v58, 2  ;;  %v3890_v23 = vmul.f32 %v3886_v56, %v3870_v59 }
0x10a6   : > { %v3891_v62 = vmul.f32 %v3887_v21, %v3871_v61 }
0x10a8   : > { %v3894_v3 = vcombine.low %v3890_v23, %v3891_v62 }
0x10aa   : > { %3895 = vrot.lane.b32.xlu1 %v3894_v3, %s7096_s11 }
0x10ae   : > { %3938 = vrot.lane.b32.xlu1 %v3937_v4, %s7125_s0  ;;  %s7223_s0 = smov 126  }
0x10b2   : > { %3968 = vrot.lane.b32.xlu1 %v3967_v28, %s7126_s3  ;;  %s7225_s3 = smov 96  }
0x10b6   : > { %4019 = vrot.lane.b32.xlu1 %v4018_v39, %s7215_s5 }
0x111c   : > { %v3896_v34 = vpop.permute.xlu1 %3895 }
0x111d   : > { %v3897_v6 = vrot.slane %v3896_v34, 4 }
0x111f   : > { %v3898_v14 = vsel %vm221_vm4, %v3897_v6, %v3896_v34  ;;  %3902 = vst.msk [vmem:[#allocation2 + $0x8] sm:$0x3] %vm1433_vm0, %v3897_v6 }
0x1120   : > { %3901 = vst.msk [vmem:[#allocation2] sm:$0x33] %vm5830_vm5, %v3898_v14  ;;  %v3939_v57 = vpop.permute.xlu1 %3938 }
0x1121   : > { %v3940_v29 = vrot.slane %v3939_v57, 7 }
0x1123   : > { %v3941_v37 = vsel %vm7219_vm8, %v3940_v29, %v3939_v57  ;;  %vm7228_vm8 = vcmask 506880  }
0x1124   : > { %v3969_v22 = vpop.permute.xlu1 %3968  ;;  %vm7229_vm9 = vmmov %vm7228_vm8 }
0x1125   : > { %v3970_v39 = vrot.slane %v3969_v22, 7 }
0x1127   : > { %v3908_v36 = vld [vmem:[#allocation2] ss:$4 sm:$0x7]  ;;  %v4094_v17 = vld [vmem:[#allocation2 + $0x1] ss:$4 sm:$0x7] }
0x1128   : > { %v3927_v13 = vmul.f32 %v3925_v43, %v3908_v36  ;;  %v4095_v12 = vmul.f32 %v4094_v17, %v3925_v43  ;;  %v4152_v24 = vmul.f32 %v4094_v17, %v4052_v26  ;;  %v4143_v25 = vmul.f32 %v4094_v17, %v4037_v19  ;;  %v4020_v40 = vpop.permute.xlu1 %4019 }
0x1129   : > { %v4161_v32 = vmul.f32 %v4094_v17, %v4083_v27  ;;  %v4054_v33 = vmul.f32 %v4052_v26, %v3908_v36  ;;  %v4085_v8 = vmul.f32 %v4083_v27, %v3908_v36  ;;  %v4098_v55 = vmul.f32 %v4094_v17, %v3941_v37 }
0x112a   : > { %3928 = vst.msk [vmem:[#allocation4 + $0x1] ss:$8 sm:$0x3] %vm5435_vm14, %v3927_v13  ;;  %4096 = vst.msk [vmem:[#allocation4 + $0x12] ss:$8 sm:$0x3] %vm5435_vm14, %v4095_v12  ;;  %4154 = vrot.lane.b32.xlu1 %v4152_v24, %s7218_s6  ;;  %4145 = vrot.lane.b32.xlu0 %v4143_v25, %s7121_s28  ;;  %v3971_v43 = vsel %vm7222_vm13, %v3970_v39, %v3969_v22  ;;  %v4107_v2 = vmul.f32 %v4094_v17, %v3956_v41 }
0x112b   : > { %v4021_v46 = vrot.slane %v4020_v40, 7  ;;  %v4116_v47 = vmul.f32 %v4094_v17, %v3971_v43  ;;  %v4125_v51 = vmul.f32 %v4094_v17, %v4000_v63  ;;  %v3943_v0 = vmul.f32 %v3941_v37, %v3908_v36 }
0x112c   : > { %v3958_v11 = vmul.f32 %v3956_v41, %v3908_v36  ;;  %v3973_v53 = vmul.f32 %v3971_v43, %v3908_v36  ;;  %v4002_v7 = vmul.f32 %v4000_v63, %v3908_v36  ;;  %v4039_v56 = vmul.f32 %v4037_v19, %v3908_v36 }
0x112d   : > { %v4022_v50 = vsel %vm7224_vm11, %v4021_v46, %v4020_v40  ;;  %vm7230_vm13 = vcmask 490496  }
0x112e   : > { %4056 = vrot.lane.b32.xlu1 %v4054_v33, %s7218_s6  ;;  %4163 = vrot.lane.b32.xlu0 %v4161_v32, %s7220_s7  ;;  %v4134_v52 = vmul.f32 %v4094_v17, %v4022_v50  ;;  %v4024_v54 = vmul.f32 %v4022_v50, %v3908_v36  ;;  %vm7231_vm11 = vmmov %vm7230_vm13 }
0x1132   : > { %4100 = vrot.lane.b32.xlu1 %v4098_v55, %s7223_s0  ;;  %4087 = vrot.lane.b32.xlu0 %v4085_v8, %s7220_s7 }
0x1136   : > { %4118 = vrot.lane.b32.xlu1 %v4116_v47, %s7225_s3  ;;  %4109 = vrot.lane.b32.xlu0 %v4107_v2, %s7226_s25 }
0x113a   : > { %4136 = vrot.lane.b32.xlu1 %v4134_v52, %s7227_s26  ;;  %4127 = vrot.lane.b32.xlu0 %v4125_v51, %s7108_s13 }
0x113e   : > { %3960 = vrot.lane.b32.xlu1 %v3958_v11, %s7226_s25  ;;  %3945 = vrot.lane.b32.xlu0 %v3943_v0, %s7223_s0 }
0x1142   : > { %3975 = vrot.lane.b32.xlu0 %v3973_v53, %s7225_s3  ;;  %4004 = vrot.lane.b32.xlu1 %v4002_v7, %s7108_s13  ;;  %v4890_v7 = vld [vmem:[%s6935_s1 + $0x20] sm:$0xf]  ;;  %s5234_s3 = smov [#allocation8]  }
0x1143   : > { %s5137_s25 = sshll.u32 %s5234_s3, 4  ;;  %s5138_s25 = int_to_ptr.vmem [resolvable:$false] %s5137_s25 }
0x1146   : > { %4026 = vrot.lane.b32.xlu0 %v4024_v54, %s7227_s26  ;;  %4041 = vrot.lane.b32.xlu1 %v4039_v56, %s7121_s28  ;;  %v5042_v54 = vld [vmem:[%s6936_s2 + $0x124] ss:$8 sps:$4 sm:$0xff]   ;;  %v5044_v56 = vld [vmem:[%s6936_s2 + $0x130] ss:$8 sps:$4 sm:$0x11]   ;;  %s5139_s26 = scalar_lea.vmem %s5138_s25, 128 }
0x119c   : > { %v4155_v58 = vpop.permute.xlu1 %4154  ;;  %v4146_v21 = vpop.permute.xlu0 %4145 }
0x119d   : > { %v4156_v59 = vrot.slane %v4155_v58, 1  ;;  %v4147_v61 = vrot.slane %v4146_v21, 1 }
0x119f   : > { %v4157_v23 = vsel %vm7228_vm8, %v4155_v58, %v4156_v59  ;;  %v4148_v62 = vsel %vm1577_vm15, %v4146_v21, %v4147_v61  ;;  %vm7232_vm8 = vcmask 785408   ;;  %v5045_v58 = vld [vmem:[%s6936_s2 + $0x120] ss:$8 sps:$4 sm:$0xff]   ;;  %v4400_v21 = vrot.slane %v5042_v54, %v5346_v10 }
0x11a0   : > { %4159 = vst.msk [vmem:[#allocation4 + $0x21] ss:$8 sm:$0x3] %vm5435_vm14, %v4157_v23  ;;  %4150 = vst.msk [vmem:[#allocation4 + $0x20] ss:$8 sm:$0x3] %vm5435_vm14, %v4148_v62  ;;  %v4057_v1 = vpop.permute.xlu1 %4056  ;;  %v4164_v3 = vpop.permute.xlu0 %4163  ;;  %v4483_v23 = vrot.slane %v5044_v56, %v5346_v10  ;;  %v4319_v62 = vrot.slane %v5045_v58, %v5346_v10 }
0x11a1   : > { %v4058_v4 = vrot.slane %v4057_v1, 1  ;;  %v4165_v28 = vrot.slane %v4164_v3, 1  ;;  %v4407_v59 = vrot.slane %v4400_v21, %v5346_v10  ;;  %v4422_v61 = vcombine.high %v4400_v21, %v4400_v21 }
0x11a3   : > { %v4059_v5 = vsel %vm7229_vm9, %v4057_v1, %v4058_v4  ;;  %v4166_v34 = vsel %vm7230_vm13, %v4164_v3, %v4165_v28  ;;  %vm7233_vm9 = vcmask 1014784   ;;  %vm7234_vm13 = vcmask 752640  }
0x11a4   : > { %4061 = vst.msk [vmem:[#allocation4 + $0x10] ss:$8 sm:$0x3] %vm5435_vm14, %v4059_v5  ;;  %4168 = vst.msk [vmem:[#allocation4 + $0x22] ss:$8 sm:$0x3] %vm5435_vm14, %v4166_v34  ;;  %v4101_v6 = vpop.permute.xlu1 %4100  ;;  %v4088_v9 = vpop.permute.xlu0 %4087  ;;  %v4444_v1 = vcombine.high %v4407_v59, %v4407_v59  ;;  %v4429_v3 = vrot.slane %v4422_v61, %v5346_v10  ;;  %v4490_v28 = vrot.slane %v4483_v23, %v5346_v10 }
0x11a5   : > { %v4102_v14 = vrot.slane %v4101_v6, 1  ;;  %v4089_v15 = vrot.slane %v4088_v9, 1  ;;  %v4341_v5 = vcombine.high %v4319_v62, %v4319_v62 }
0x11a6   : > { %4445 = vrot.lane.b32.xlu1 %v4444_v1, %s7150_s4  ;;  %v4459_v4 = vcombine.high %v4429_v3, %v4429_v3 }
0x11a7   : > { %v4103_v57 = vsel %vm1481_vm10, %v4101_v6, %v4102_v14  ;;  %v4090_v44 = vsel %vm7231_vm11, %v4088_v9, %v4089_v15  ;;  %vm7235_vm11 = vmmov %vm7233_vm9  ;;  %v4348_v34 = vrot.slane %v4341_v5, %v5346_v10  ;;  %v4920_v15 = vcombine.low %v6650_v48, %v6650_v48 }
0x11a8   : > { %4105 = vst.msk [vmem:[#allocation4 + $0x13] ss:$8 sm:$0x3] %vm5435_vm14, %v4103_v57  ;;  %4092 = vst.msk [vmem:[#allocation4 + $0x11] ss:$8 sm:$0x3] %vm5435_vm14, %v4090_v44  ;;  %v4119_v16 = vpop.permute.xlu1 %4118  ;;  %v4110_v36 = vpop.permute.xlu0 %4109  ;;  %4460 = vrot.lane.b32.xlu0 %v4459_v4, %s7151_s15 }
0x11a9   : > { %v4120_v17 = vrot.slane %v4119_v16, 1  ;;  %v4111_v13 = vrot.slane %v4110_v36, 1  ;;  %v4378_v6 = vcombine.high %v4348_v34, %v4348_v34 }
0x11aa   : > { %4491 = vrot.lane.b32.xlu1 %v4490_v28, %s7152_s16 }
0x11ab   : > { %v4121_v12 = vsel %vm7232_vm8, %v4119_v16, %v4120_v17  ;;  %v4112_v18 = vsel %vm7233_vm9, %v4110_v36, %v4111_v13  ;;  %v4177_v26 = vld [vmem:[#allocation4 + $0x28] sm:$0x7]  ;;  %v4176_v19 = vld [vmem:[#allocation4 + $0x20] sm:$0x7]  ;;  %vm7237_vm9 = vcmask 154624  }
0x11ac   : > { %4123 = vst.msk [vmem:[#allocation4 + $0x15] ss:$8 sm:$0x3] %vm5435_vm14, %v4121_v12  ;;  %4114 = vst.msk [vmem:[#allocation4 + $0x14] ss:$8 sm:$0x3] %vm5435_vm14, %v4112_v18  ;;  %v4137_v20 = vpop.permute.xlu1 %4136  ;;  %4891 = vmatprep.subr.msk.mxu0 %vm1730_vm12, %v4177_v26  ;;  %v4128_v22 = vpop.permute.xlu0 %4127 }
0x11ad   : > { %v4138_v24 = vrot.slane %v4137_v20, 1  ;;  %v4129_v25 = vrot.slane %v4128_v22, 1  ;;  %4892 = vmatpush1.msk.msra.mxu0 %vm1730_vm12, %v4176_v19 }
0x11ae   : > { %4349 = vrot.lane.b32.xlu1 %v4348_v34, %s7153_s18  ;;  %s7261_s18 = sld [smem:[#allocation22_spill]] }
0x11af   : > { %v4139_v27 = vsel %vm7234_vm13, %v4137_v20, %v4138_v24  ;;  %v4130_v29 = vsel %vm361_vm1, %v4128_v22, %v4129_v25 }
0x11b0   : > { %4141 = vst.msk [vmem:[#allocation4 + $0x17] ss:$8 sm:$0x3] %vm5435_vm14, %v4139_v27  ;;  %4132 = vst.msk [vmem:[#allocation4 + $0x16] ss:$8 sm:$0x3] %vm5435_vm14, %v4130_v29  ;;  %v3961_v32 = vpop.permute.xlu1 %3960  ;;  %v3946_v33 = vpop.permute.xlu0 %3945 }
0x11b1   : > { %v3962_v37 = vrot.slane %v3961_v32, 1  ;;  %v3947_v38 = vrot.slane %v3946_v33, 1 }
0x11b2   : > { %4379 = vrot.lane.b32.xlu1 %v4378_v6, %s7154_s19 }
0x11b3   : > { %v3963_v39 = vsel %vm7235_vm11, %v3961_v32, %v3962_v37  ;;  %v3948_v35 = vsel %vm1481_vm10, %v3946_v33, %v3947_v38  ;;  %vm7236_vm10 = vmmov %vm7234_vm13  ;;  %v4326_v33 = vrot.slane %v4319_v62, %v5346_v10  ;;  %vm7238_vm11 = vcmask 408576  }
0x11b4   : > { %3965 = vst.msk [vmem:[#allocation4 + $0x3] ss:$8 sm:$0x3] %vm5435_vm14, %v3963_v39  ;;  %3950 = vst.msk [vmem:[#allocation4 + $0x2] ss:$8 sm:$0x3] %vm5435_vm14, %v3948_v35  ;;  %v4005_v40 = vpop.permute.xlu1 %4004  ;;  %v3976_v8 = vpop.permute.xlu0 %3975  ;;  %s7262_s19 = smov %s7261_s18 }
0x11b5   : > { %v4006_v55 = vrot.slane %v4005_v40, 1  ;;  %v3977_v41 = vrot.slane %v3976_v8, 1  ;;  %v4363_v37 = vcombine.high %v4326_v33, %v4326_v33 }
0x11b6   : > { %4430 = vrot.lane.b32.xlu1 %v4429_v3, %s7095_s27  ;;  %s7258_s27 = sld [smem:[#allocation12_spill]] }
0x11b7   : > { %v4007_v43 = vsel %vm361_vm1, %v4005_v40, %v4006_v55  ;;  %v3978_v45 = vsel %vm7232_vm8, %v3976_v8, %v3977_v41  ;;  %v4175_v46 = vld [vmem:[#allocation4 + $0x18] sm:$0xff]  ;;  %v4174_v2 = vld [vmem:[#allocation4 + $0x10] sm:$0xff]  ;;  %vm7239_vm8 = vcmask 416768  }
0x11b8   : > { %4009 = vst.msk [vmem:[#allocation4 + $0x5] ss:$8 sm:$0x3] %vm5435_vm14, %v4007_v43  ;;  %3980 = vst.msk [vmem:[#allocation4 + $0x4] ss:$8 sm:$0x3] %vm5435_vm14, %v3978_v45  ;;  %v4042_v47 = vpop.permute.xlu1 %4041  ;;  %4219 = vmatprep.subr.mxu0 %v4175_v46  ;;  %v4027_v63 = vpop.permute.xlu0 %4026 }
0x11b9   : > { %v4043_v50 = vrot.slane %v4042_v47, 1  ;;  %v4028_v51 = vrot.slane %v4027_v63, 1  ;;  %4220 = vmatpush1.msra.mxu0 %v4174_v2 }
0x11bb   : > { %v4044_v52 = vsel %vm1577_vm15, %v4042_v47, %v4043_v50  ;;  %v4029_v0 = vsel %vm7236_vm10, %v4027_v63, %v4028_v51  ;;  %vm7243_vm10 = vcmask 269312  }
0x11bc   : > { %4046 = vst.msk [vmem:[#allocation4 + $0x7] ss:$8 sm:$0x3] %vm5435_vm14, %v4044_v52  ;;  %4031 = vst.msk [vmem:[#allocation4 + $0x6] ss:$8 sm:$0x3] %vm5435_vm14, %v4029_v0 }
0x11c3   : > { %v4173_v11 = vld [vmem:[#allocation4 + $0x8] sm:$0xff]  ;;  %v4172_v53 = vld [vmem:[#allocation4] sm:$0xff] }
0x11c4   : > { %4221 = vmatprep.subr.mxu0 %v4173_v11 }
0x11c5   : > { %4222 = vmatpush1.msra.mxu0 %v4172_v53 }
0x11c6   : > { %4893 = vmatmul.mubr.msk.f32.vlgmr.msra.gmra.mxu0 %vm7237_vm9, %v4890_v7 }
0x1218   : > { %v4446_v39 = vpop.permute.xlu1 %4445 }
0x1219   : > { %v4447_v41 = vrot.slane %v4446_v39, 7 }
0x121a   : > { %v4461_v38 = vpop.permute.xlu0 %4460 }
0x121b   : > { %v4462_v43 = vrot.slane %v4461_v38, 7  ;;  %v4448_v47 = vsel %vm396_vm7, %v4447_v41, %v4446_v39  ;;  %vm7241_vm7 = vcmask 146432  }
0x121c   : > { %v4492_v55 = vpop.permute.xlu1 %4491 }
0x121d   : > { %v4493_v45 = vrot.slane %v4492_v55, 7  ;;  %v4463_v63 = vsel %vm7238_vm11, %v4462_v43, %v4461_v38 }
0x121f   : > { %v4494_v0 = vsel %vm7239_vm8, %v4493_v45, %v4492_v55  ;;  %vm7252_vm8 = vcmask 760832  }
0x1220   : > { %v4350_v2 = vpop.permute.xlu1 %4349 }
0x1221   : > { %v4351_v56 = vrot.slane %v4350_v2, 7 }
0x1223   : > { %v4352_v62 = vsel %vm7241_vm7, %v4351_v56, %v4350_v2 }
0x1224   : > { %v4380_v49 = vpop.permute.xlu1 %4379 }
0x1225   : > { %v4381_v1 = vrot.slane %v4380_v49, 7 }
0x1227   : > { %v4382_v6 = vsel %vm7243_vm10, %v4381_v1, %v4380_v49 }
0x1228   : > { %v4431_v28 = vpop.permute.xlu1 %4430 }
0x1286   : > { %v4257_v9 = vpop.f32.mrf.mxu0 }
0x1287   : > { %v6779_v14 = vadd.f32 %v4257_v9, %v3863_v42  ;;  %v4432_v9 = vrot.slane %v4431_v28, 7 }
0x1288   : > { %v4259_v57 = vpop.f32.mrf.mxu0 }
0x1289   : > { %v4894_v44 = vmul.f32 -1.442695, %v6779_v14  ;;  %v6784_v16 = vadd.f32 %v4920_v15, %v4259_v57  ;;  %v4269_v48 = vmul.f32 %v6779_v14, %v5815_v31  ;;  %vm4267_vm15 = vcmp.ge.f32.partialorder %v6779_v14, 0.0 }
0x128b   : > { %5102 = vpow2.f32 %v4894_v44  ;;  %v4895_v36 = vmul.f32 -1.442695, %v6784_v16  ;;  %v4264_v17 = vcombine.low %v6779_v14, %v6784_v16  ;;  %v4270_v26 = vmul.f32 %v6784_v16, %v5815_v31 }
0x128c   : > { %vm4268_vm13 = vcmp.ge.f32.partialorder %v6784_v16, 0.0  ;;  %v4271_v24 = vsel %vm4267_vm15, %v6779_v14, %v4269_v48  ;;  %vm7249_vm15 = vcmask 900096   ;;  %v4921_v30 = vcombine.low %v6784_v16, %v6784_v16 }
0x128d   : > { %5104 = vpow2.f32 %v4895_v36  ;;  %v4272_v25 = vsel %vm4268_vm13, %v6784_v16, %v4270_v26  ;;  %v4433_v36 = vsel %vm378_vm6, %v4432_v9, %v4431_v28  ;;  %vm7246_vm6 = vcmask 908288  }
0x128e   : > { %vm7250_vm13 = vcmask 777216   ;;  %vm7251_vm11 = vmmov %vm7246_vm6 }
0x128f   : > { %vm7255_vm7 = vmmov %vm7250_vm13 }
0x1298   : > { %v5103_v13 = vpop.eup %5102 }
0x1299   : > { %v4279_v12 = vadd.f32 1.0, %v5103_v13 }
0x129a   : > { %v5105_v60 = vpop.eup %5104 }
0x129b   : > { %v4280_v42 = vadd.f32 1.0, %v5105_v60  ;;  %5106 = vrcp.f32 %v4279_v12 }
0x129d   : > { %5108 = vrcp.f32 %v4280_v42 }
0x12a8   : > { %v5107_v18 = vpop.eup %5106 }
0x12a9   : > { %v4287_v19 = vrot.slane %v5107_v18, 2 }
0x12aa   : > { %v5109_v20 = vpop.eup %5108 }
0x12ab   : > { %v4288_v22 = vrot.slane %v5109_v20, 2  ;;  %v4291_v27 = vmul.f32 %v4287_v19, %v4271_v24 }
0x12ad   : > { %v4292_v29 = vmul.f32 %v4288_v22, %v4272_v25 }
0x12af   : > { %v4295_v32 = vcombine.low %v4291_v27, %v4292_v29 }
0x12b1   : > { %4296 = vrot.lane.b32.xlu0 %v4295_v32, %s7096_s11 }
0x12b5   : > { %4327 = vrot.lane.b32.xlu0 %v4326_v33, %s7097_s10  ;;  %s202_s10 = sand.u32 1, %s7258_s27  }
0x12b9   : > { %4364 = vrot.lane.b32.xlu0 %v4363_v37, %s7073_s8  ;;  %s7244_s8 = smov 93  }
0x12bd   : > { %4408 = vrot.lane.b32.xlu0 %v4407_v59, %s7096_s11  ;;  %s7259_s11 = sld [smem:[#allocation15_spill]] }
0x1323   : > { %v4297_v35 = vpop.permute.xlu0 %4296 }
0x1324   : > { %v4298_v40 = vrot.slane %v4297_v35, 4 }
0x1326   : > { %v4299_v8 = vsel %vm221_vm4, %v4298_v40, %v4297_v35  ;;  %4303 = vst.msk [vmem:[#allocation2 + $0x8] sm:$0x3] %vm1433_vm0, %v4298_v40  ;;  %vm7240_vm0 = vcmask 138240  }
0x1327   : > { %4302 = vst.msk [vmem:[#allocation2] sm:$0x33] %vm5830_vm5, %v4299_v8  ;;  %v4328_v10 = vpop.permute.xlu0 %4327  ;;  %vm7242_vm5 = vmmov %vm7237_vm9 }
0x1328   : > { %v4329_v53 = vrot.slane %v4328_v10, 7 }
0x132a   : > { %v4330_v58 = vsel %vm7240_vm0, %v4329_v53, %v4328_v10  ;;  %vm7254_vm0 = vmmov %vm7249_vm15 }
0x132b   : > { %v4365_v50 = vpop.permute.xlu0 %4364 }
0x132c   : > { %v4366_v21 = vrot.slane %v4365_v50, 7 }
0x132e   : > { %v4505_v46 = vld [vmem:[#allocation2 + $0x1] ss:$4 sm:$0x7]  ;;  %v4309_v11 = vld [vmem:[#allocation2] ss:$4 sm:$0x7]  ;;  %v4367_v3 = vsel %vm7242_vm5, %v4366_v21, %v4365_v50  ;;  %vm7256_vm5 = vmmov %vm7252_vm8 }
0x132f   : > { %v4569_v51 = vmul.f32 %v4505_v46, %v4463_v63  ;;  %v4560_v52 = vmul.f32 %v4505_v46, %v4448_v47  ;;  %v4578_v7 = vmul.f32 %v4505_v46, %v4494_v0  ;;  %v4465_v54 = vmul.f32 %v4463_v63, %v4309_v11  ;;  %v4409_v59 = vpop.permute.xlu0 %4408 }
0x1330   : > { %v4506_v61 = vmul.f32 %v4505_v46, %v4330_v58  ;;  %v4496_v23 = vmul.f32 %v4494_v0, %v4309_v11  ;;  %v4410_v4 = vrot.slane %v4409_v59, 7  ;;  %v4524_v5 = vmul.f32 %v4505_v46, %v4367_v3 }
0x1331   : > { %4571 = vrot.lane.b32.xlu1 %v4569_v51, %s7100_s12  ;;  %4562 = vrot.lane.b32.xlu0 %v4560_v52, %s7101_s30  ;;  %v4515_v34 = vmul.f32 %v4505_v46, %v4352_v62  ;;  %v4533_v57 = vmul.f32 %v4505_v46, %v4382_v6  ;;  %v4332_v13 = vmul.f32 %v4330_v58, %v4309_v11 }
0x1332   : > { %v4411_v15 = vsel %vm221_vm4, %v4410_v4, %v4409_v59  ;;  %v4551_v12 = vmul.f32 %v4505_v46, %v4433_v36  ;;  %v4369_v60 = vmul.f32 %v4367_v3, %v4309_v11  ;;  %v4354_v42 = vmul.f32 %v4352_v62, %v4309_v11 }
0x1333   : > { %v4542_v44 = vmul.f32 %v4505_v46, %v4411_v15  ;;  %v4384_v18 = vmul.f32 %v4382_v6, %v4309_v11  ;;  %v4413_v48 = vmul.f32 %v4411_v15, %v4309_v11  ;;  %v4435_v26 = vmul.f32 %v4433_v36, %v4309_v11 }
0x1334   : > { %v4450_v19 = vmul.f32 %v4448_v47, %v4309_v11  ;;  %vm7245_vm4 = vcmask 629760  }
0x1335   : > { %4580 = vrot.lane.b32.xlu0 %v4578_v7, %s7076_s14  ;;  %4467 = vrot.lane.b32.xlu1 %v4465_v54, %s7100_s12  ;;  %vm7247_vm9 = vmmov %vm7245_vm4  ;;  %s4809_s12 = sshll.u32 %s202_s10, 2 }
0x1339   : > { %4498 = vrot.lane.b32.xlu0 %v4496_v23, %s7076_s14  ;;  %4508 = vrot.lane.b32.xlu1 %v4506_v61, %s7080_s20 }
0x133d   : > { %4517 = vrot.lane.b32.xlu0 %v4515_v34, %s7200_s17  ;;  %4526 = vrot.lane.b32.xlu1 %v4524_v5, %s7106_s23 }
0x1341   : > { %4535 = vrot.lane.b32.xlu0 %v4533_v57, %s7201_s24  ;;  %4544 = vrot.lane.b32.xlu1 %v4542_v44, %s7108_s13 }
0x1345   : > { %4553 = vrot.lane.b32.xlu0 %v4551_v12, %s7244_s8  ;;  %4334 = vrot.lane.b32.xlu1 %v4332_v13, %s7080_s20 }
0x1349   : > { %4356 = vrot.lane.b32.xlu0 %v4354_v42, %s7200_s17  ;;  %4371 = vrot.lane.b32.xlu1 %v4369_v60, %s7106_s23  ;;  %s4913_s23 = sshll.u32 %s7259_s11, 6 }
0x134a   : > { %s4730_s17 = scalar_lea.hbm %s7261_s18, %s4913_s23 }
0x134d   : > { %4386 = vrot.lane.b32.xlu0 %v4384_v18, %s7201_s24  ;;  %4415 = vrot.lane.b32.xlu1 %v4413_v48, %s7108_s13  ;;  %s204_s13 = scalar_lea.vmem [#allocation8], %s4809_s12  ;;  %s4718_s24 = scalar_lea.sflag [#allocation6], %s202_s10 }
0x134e   : > { %s4732_s4 = sshll.u32 %s204_s13, 4  ;;  %s4733_s4 = int_to_ptr.vmem [resolvable:$true] %s4732_s4 }
0x134f   : > { %s5133_s0 = scalar_lea.vmem %s4733_s4, 64  ;;  %p5140_p13 = scmp.lt.s32.totalorder %s4733_s4, %s5138_s25 }
0x1350   : > { %p5134_p9 = scmp.ne.s32.totalorder %s4733_s4, %s5133_s0  ;;  %p5141_p0 = scmp.lt.s32.totalorder %s5139_s26, %s5133_s0 }
0x1351   : > { %4437 = vrot.lane.b32.xlu0 %v4435_v26, %s7244_s8  ;;  %4452 = vrot.lane.b32.xlu1 %v4450_v19, %s7101_s30 }
0x1352   : > { %p5135_p10 = pnand %p5134_p9, %p5298_p5  ;;  %p5142_p1 = por %p5141_p0, %p5140_p13 }
0x1354   : > { %p5136_p12 = pneg %p5135_p10 }
0x1356   : > { %p5143_p2 = pnand %p5142_p1, %p5136_p12 }
0x13a3   : > { %v4572_v20 = vpop.permute.xlu1 %4571  ;;  %v4563_v22 = vpop.permute.xlu0 %4562 }
0x13a4   : > { %v4573_v24 = vrot.slane %v4572_v20, 1  ;;  %v4564_v25 = vrot.slane %v4563_v22, 1 }
0x13a6   : > { %v4574_v27 = vsel %vm422_vm2, %v4572_v20, %v4573_v24  ;;  %v4565_v29 = vsel %vm404_vm3, %v4563_v22, %v4564_v25  ;;  %v4900_v22 = vld [vmem:[%s6935_s1 + $0x24] sm:$0xf] }
0x13a7   : > { %4576 = vst.msk [vmem:[#allocation4 + $0x21] ss:$8 sm:$0x3] %vm5435_vm14, %v4574_v27  ;;  %4567 = vst.msk [vmem:[#allocation4 + $0x20] ss:$8 sm:$0x3] %vm5435_vm14, %v4565_v29  ;;  %v4468_v32 = vpop.permute.xlu1 %4467  ;;  %v4581_v33 = vpop.permute.xlu0 %4580 }
0x13a8   : > { %v4469_v37 = vrot.slane %v4468_v32, 1  ;;  %v4582_v38 = vrot.slane %v4581_v33, 1 }
0x13aa   : > { %v4470_v39 = vsel %vm422_vm2, %v4468_v32, %v4469_v37  ;;  %v4583_v35 = vsel %vm7245_vm4, %v4581_v33, %v4582_v38  ;;  %vm7248_vm2 = vcmask 891904  }
0x13ab   : > { %4472 = vst.msk [vmem:[#allocation4 + $0x10] ss:$8 sm:$0x3] %vm5435_vm14, %v4470_v39  ;;  %4585 = vst.msk [vmem:[#allocation4 + $0x22] ss:$8 sm:$0x3] %vm5435_vm14, %v4583_v35  ;;  %v4509_v40 = vpop.permute.xlu1 %4508  ;;  %v4499_v8 = vpop.permute.xlu0 %4498 }
0x13ac   : > { %v4510_v55 = vrot.slane %v4509_v40, 1  ;;  %v4500_v10 = vrot.slane %v4499_v8, 1 }
0x13ae   : > { %v4511_v41 = vsel %vm7246_vm6, %v4509_v40, %v4510_v55  ;;  %v4501_v43 = vsel %vm7247_vm9, %v4499_v8, %v4500_v10 }
0x13af   : > { %4513 = vst.msk [vmem:[#allocation4 + $0x12] ss:$8 sm:$0x3] %vm5435_vm14, %v4511_v41  ;;  %4503 = vst.msk [vmem:[#allocation4 + $0x11] ss:$8 sm:$0x3] %vm5435_vm14, %v4501_v43  ;;  %v4527_v45 = vpop.permute.xlu1 %4526  ;;  %v4518_v46 = vpop.permute.xlu0 %4517 }
0x13b0   : > { %v4528_v2 = vrot.slane %v4527_v45, 1  ;;  %v4519_v47 = vrot.slane %v4518_v46, 1 }
0x13b2   : > { %v4529_v63 = vsel %vm7248_vm2, %v4527_v45, %v4528_v2  ;;  %v4520_v50 = vsel %vm7249_vm15, %v4518_v46, %v4519_v47  ;;  %v4594_v51 = vld [vmem:[#allocation4 + $0x28] sm:$0x7]  ;;  %v4593_v52 = vld [vmem:[#allocation4 + $0x20] sm:$0x7] }
0x13b3   : > { %4531 = vst.msk [vmem:[#allocation4 + $0x14] ss:$8 sm:$0x3] %vm5435_vm14, %v4529_v63  ;;  %4522 = vst.msk [vmem:[#allocation4 + $0x13] ss:$8 sm:$0x3] %vm5435_vm14, %v4520_v50  ;;  %v4545_v0 = vpop.permute.xlu1 %4544  ;;  %4901 = vmatprep.subr.msk.mxu1 %vm1730_vm12, %v4594_v51  ;;  %v4536_v11 = vpop.permute.xlu0 %4535 }
0x13b4   : > { %v4546_v53 = vrot.slane %v4545_v0, 1  ;;  %v4537_v49 = vrot.slane %v4536_v11, 1  ;;  %4902 = vmatpush1.msk.msra.mxu1 %vm1730_vm12, %v4593_v52  ;;  %vm7253_vm12 = vmmov %vm7248_vm2 }
0x13b6   : > { %v4547_v7 = vsel %vm361_vm1, %v4545_v0, %v4546_v53  ;;  %v4538_v54 = vsel %vm7250_vm13, %v4536_v11, %v4537_v49 }
0x13b7   : > { %4549 = vst.msk [vmem:[#allocation4 + $0x16] ss:$8 sm:$0x3] %vm5435_vm14, %v4547_v7  ;;  %4540 = vst.msk [vmem:[#allocation4 + $0x15] ss:$8 sm:$0x3] %vm5435_vm14, %v4538_v54  ;;  %v4335_v56 = vpop.permute.xlu1 %4334  ;;  %v4554_v58 = vpop.permute.xlu0 %4553 }
0x13b8   : > { %v4336_v21 = vrot.slane %v4335_v56, 1  ;;  %v4555_v59 = vrot.slane %v4554_v58, 1 }
0x13ba   : > { %v4337_v61 = vsel %vm7251_vm11, %v4335_v56, %v4336_v21  ;;  %v4556_v23 = vsel %vm7252_vm8, %v4554_v58, %v4555_v59 }
0x13bb   : > { %4339 = vst.msk [vmem:[#allocation4 + $0x1] ss:$8 sm:$0x3] %vm5435_vm14, %v4337_v61  ;;  %4558 = vst.msk [vmem:[#allocation4 + $0x17] ss:$8 sm:$0x3] %vm5435_vm14, %v4556_v23  ;;  %v4372_v62 = vpop.permute.xlu1 %4371  ;;  %v4357_v1 = vpop.permute.xlu0 %4356 }
0x13bc   : > { %v4373_v3 = vrot.slane %v4372_v62, 1  ;;  %v4358_v4 = vrot.slane %v4357_v1, 1 }
0x13be   : > { %v4374_v28 = vsel %vm7253_vm12, %v4372_v62, %v4373_v3  ;;  %v4359_v5 = vsel %vm7254_vm0, %v4357_v1, %v4358_v4 }
0x13bf   : > { %4376 = vst.msk [vmem:[#allocation4 + $0x3] ss:$8 sm:$0x3] %vm5435_vm14, %v4374_v28  ;;  %4361 = vst.msk [vmem:[#allocation4 + $0x2] ss:$8 sm:$0x3] %vm5435_vm14, %v4359_v5  ;;  %v4416_v34 = vpop.permute.xlu1 %4415  ;;  %v4387_v6 = vpop.permute.xlu0 %4386 }
0x13c0   : > { %v4417_v9 = vrot.slane %v4416_v34, 1  ;;  %v4388_v15 = vrot.slane %v4387_v6, 1 }
0x13c2   : > { %v4418_v57 = vsel %vm361_vm1, %v4416_v34, %v4417_v9  ;;  %v4389_v44 = vsel %vm7255_vm7, %v4387_v6, %v4388_v15  ;;  %v4592_v36 = vld [vmem:[#allocation4 + $0x18] sm:$0xff]  ;;  %v4591_v13 = vld [vmem:[#allocation4 + $0x10] sm:$0xff]  ;;  %vm7257_vm1 = vcmask 154624  }
0x13c3   : > { %4420 = vst.msk [vmem:[#allocation4 + $0x5] ss:$8 sm:$0x3] %vm5435_vm14, %v4418_v57  ;;  %4391 = vst.msk [vmem:[#allocation4 + $0x4] ss:$8 sm:$0x3] %vm5435_vm14, %v4389_v44  ;;  %v4453_v12 = vpop.permute.xlu1 %4452  ;;  %4636 = vmatprep.subr.mxu1 %v4592_v36  ;;  %v4438_v60 = vpop.permute.xlu0 %4437 }
0x13c4   : > { %v4454_v42 = vrot.slane %v4453_v12, 1  ;;  %v4439_v18 = vrot.slane %v4438_v60, 1  ;;  %4637 = vmatpush1.msra.mxu1 %v4591_v13 }
0x13c6   : > { %v4455_v48 = vsel %vm404_vm3, %v4453_v12, %v4454_v42  ;;  %v4440_v26 = vsel %vm7256_vm5, %v4438_v60, %v4439_v18 }
0x13c7   : > { %4457 = vst.msk [vmem:[#allocation4 + $0x7] ss:$8 sm:$0x3] %vm5435_vm14, %v4455_v48  ;;  %4442 = vst.msk [vmem:[#allocation4 + $0x6] ss:$8 sm:$0x3] %vm5435_vm14, %v4440_v26 }
0x13ce   : > { %v4590_v19 = vld [vmem:[#allocation4 + $0x8] sm:$0xff]  ;;  %v4589_v20 = vld [vmem:[#allocation4] sm:$0xff] }
0x13cf   : > { %4638 = vmatprep.subr.mxu1 %v4590_v19 }
0x13d0   : > { %4639 = vmatpush1.msra.mxu1 %v4589_v20 }
0x13d1   : > { %4903 = vmatmul.mubr.msk.f32.vlgmr.msra.gmra.mxu1 %vm7257_vm1, %v4900_v22 }
0x1491   : > { %v4674_v24 = vpop.f32.mrf.mxu1 }
0x1492   : > { %v4675_v25 = vadd.f32 %v4674_v24, %v4264_v17 }
0x1493   : > { %v4676_v27 = vpop.f32.mrf.mxu1 }
0x1494   : > { %v4904_v29 = vmul.f32 -1.442695, %v4675_v25  ;;  %v4677_v32 = vadd.f32 %v4921_v30, %v4676_v27  ;;  %v4681_v17 = vmul.f32 %v4675_v25, %v5815_v31  ;;  %vm4679_vm14 = vcmp.ge.f32.partialorder %v4675_v25, 0.0 }
0x1496   : > { %5110 = vpow2.f32 %v4904_v29  ;;  %v4905_v33 = vmul.f32 -1.442695, %v4677_v32  ;;  %v4682_v16 = vmul.f32 %v4677_v32, %v5815_v31  ;;  %vm4680_vm3 = vcmp.ge.f32.partialorder %v4677_v32, 0.0 }
0x1497   : > { %v4683_v10 = vsel %vm4679_vm14, %v4675_v25, %v4681_v17 }
0x1498   : > { %5112 = vpow2.f32 %v4905_v33  ;;  %v4684_v41 = vsel %vm4680_vm3, %v4677_v32, %v4682_v16 }
0x14a3   : > { %v5111_v37 = vpop.eup %5110 }
0x14a4   : > { %v4691_v38 = vadd.f32 1.0, %v5111_v37 }
0x14a5   : > { %v5113_v39 = vpop.eup %5112 }
0x14a6   : > { %v4692_v35 = vadd.f32 1.0, %v5113_v39  ;;  %5114 = vrcp.f32 %v4691_v38 }
0x14a8   : > { %5116 = vrcp.f32 %v4692_v35 }
0x14b3   : > { %v5115_v14 = vpop.eup %5114 }
0x14b4   : > { %v4699_v40 = vrot.slane %v5115_v14, 2 }
0x14b5   : > { %v5117_v8 = vpop.eup %5116 }
0x14b6   : > { %v4700_v55 = vrot.slane %v5117_v8, 2  ;;  %v4703_v43 = vmul.f32 %v4699_v40, %v4683_v10 }
0x14b8   : > { %v4704_v45 = vmul.f32 %v4700_v55, %v4684_v41 }
0x14ba   : > { %v4707_v46 = vcombine.low %v4703_v43, %v4704_v45 }
0x14bc   : > { %4906 = vst.sshfl [vmem:[%s204_s13] sm:$0x33 pattern:$0x76325410] %v4707_v46 }
0x14bd   : > { %5146 = shalt.err (!%p5143_p2)
}
0x14be   : > { %s5147_s28 = scalar_lea.hbm %s4730_s17, 64  ;;  %s5151_s22 = scalar_lea.hbm %s7262_s19, 128 }
0x14bf   : > { %p5148_p3 = scmp.ne.s32.totalorder %s4730_s17, %s5147_s28  ;;  %p5152_p8 = scmp.lt.s32.totalorder %s4730_s17, %s7262_s19 }
0x14c0   : > { %p5153_p11 = scmp.lt.s32.totalorder %s5151_s22, %s5147_s28 }
0x14c1   : > { %p5149_p4 = pnand %p5148_p3, %p5298_p5 }
0x14c2   : > { %p5154_p9 = por %p5153_p11, %p5152_p8 }
0x14c3   : > { %p5150_p7 = pneg %p5149_p4 }
0x14c5   : > { %p5155_p10 = pnand %p5154_p9, %p5150_p7 }
0x14c7   : > { %5158 = shalt.err (!%p5155_p10)
}
0x14c8   : > { %4926 = dma.vmem_to_hbm [thread:$0]  (%p5298_p5), %s4733_s4, 64, %s4730_s17, %s4718_s24  }
0x14c9 PF: > { %s7263_s6 = sld [smem:[#allocation14_spill]] }
0x14ca   : > { %s7264_s7 = sld [smem:[#allocation11_spill]] }
0x14cf   : > { %p4938_p12 = scmp.ge.s32.totalorder %s7263_s6, 2 }
0x14d0   : > { %s4744_s14 = sand.u32 1, %s7264_s7  }
0x14d1   : > { %p4933_p13 = pnand %p4938_p12, %p5302_p6  ;;  %s4745_s20 = scalar_lea.sflag [#allocation6], %s4744_s14 }
0x14d3   : > { %p4934_p0 = pneg %p4933_p13 }
0x14d5   : > { %5180 = dma.done.wait (%p4934_p0), %s4745_s20, 64  }
0x14d6   : > { %5182 = vsyncadd (%p4934_p0), %s4745_s20, 4294967232  ;;  %s7266_s18 = sld [smem:[#allocation16_spill]] }
0x14d7   : > { %s7267_s15 = sld [smem:[#allocation12_spill]] }
0x14d8   : > { %s7268_s16 = sld [smem:[#allocation13_spill]] }
0x14d9   : > { %s7269_s17 = sld [smem:[#allocation17_spill]] }
0x14dc   : > { %p15_p1 = scmp.ge.s32.totalorder %s7266_s18, 4  }
0x14de   :  { %17 = sbr.rel (!%p15_p1) target bundleno = 8 (0x8), region = 133 }
0x14e3   :  { %4750 = vsyncpa [#allocation6], 1 }
0x14e4   :  { %4752 = vsyncpa [#allocation6 + $0x1], 1 }
0x14e5   :  { %4753 = vsyncpa [#allocation7], 1 }
0x14e6   :  { %4755 = vsyncpa [#allocation7 + $0x1], 1 }

</bundles_post_ra>
